<compile_context>
chip_gen: v7x
topology: tpu7x:2x2x1
jax: 0.10.0
libtpu: 0.0.40
codegen_flags: <defaults>
</compile_context>

<pallas_src>
import functools
import math

import jax
import jax.numpy as jnp
from jax.experimental import pallas as pl
from jax.experimental.pallas import tpu as pltpu


def _round_up(x, m):
    return ((x + m - 1) // m) * m


def _resblock_kernel(x_top_ref, x_ctr_ref, x_bot_ref, w1_ref, b1_ref,
                     w2_ref, b2_ref, out_ref, buf_ref, *,
                     TH, H, W, KH, KW, pad_h, pad_w):
    """One (batch, row-tile) step.

    x_top/x_bot : (1, max(2*pad_h,1), W, Cp)  input halo rows (zero-padded rows
                                              of the image where out of range)
    x_ctr       : (1, TH, W, Cp)              the tile's own input rows
    w*          : (KH*KW, Cp, Cp)             per-tap weights (w2 pre-scaled)
    b*          : (1, Cp)                     biases (b2 pre-scaled), f32
    out         : (1, TH, W, Cp)
    buf         : VMEM f32 scratch (TH + 4*pad_h, W + 2*pad_w, Cp) -- shared
                  padded plane: holds x for conv1, then ReLU(conv1) for conv2.
    """
    Cp = out_ref.shape[-1]
    HALO = 2 * pad_h
    Wb = W + 2 * pad_w
    Hbuf = TH + 2 * HALO          # input rows needed by the two stacked convs
    R1 = TH + HALO                # conv1 output rows (tile rows + conv2 halo)
    t = pl.program_id(1)
    mxu_dt = w1_ref.dtype

    # ---- Phase 0: stage the padded input tile into the shared scratch. ----
    # Everything read later is rewritten here, so correctness never depends on
    # which TensorCore ran the previous grid step.
    if pad_w:
        buf_ref[:, 0:pad_w, :] = jnp.zeros((Hbuf, pad_w, Cp), jnp.float32)
        buf_ref[:, pad_w + W:Wb, :] = jnp.zeros((Hbuf, pad_w, Cp), jnp.float32)
    if pad_h:
        buf_ref[0:HALO, pad_w:pad_w + W, :] = x_top_ref[0].astype(jnp.float32)
        buf_ref[HALO + TH:Hbuf, pad_w:pad_w + W, :] = (
            x_bot_ref[0].astype(jnp.float32))
    buf_ref[HALO:HALO + TH, pad_w:pad_w + W, :] = x_ctr_ref[0].astype(jnp.float32)

    def conv(rows, w_ref, b_ref):
        # Per-tap MXU matmuls accumulated in f32 (no materialized im2col).
        acc = None
        for kw in range(KW):
            # One sublane-shifted load per kw, reused by all kh taps.
            shifted = buf_ref[0:rows + HALO, kw:kw + W, :].astype(mxu_dt)
            for kh in range(KH):
                tap = jax.lax.dot_general(
                    shifted[kh:kh + rows], w_ref[kh * KW + kw],
                    (((2,), (0,)), ((), ())),
                    preferred_element_type=jnp.float32)
                acc = tap if acc is None else acc + tap
        return acc + b_ref[0].astype(jnp.float32)

    # ---- conv1 + ReLU (recomputed in the tile's row halo). ----------------
    y1 = jnp.maximum(conv(R1, w1_ref, b1_ref), 0.0)
    if pad_h:
        # conv1 rows that lie outside the real image must be ZERO for conv2
        # (PyTorch zero-pads conv2's input, it does not extend conv1).
        grow = (t * TH - pad_h
                + jax.lax.broadcasted_iota(jnp.int32, (R1, 1, 1), 0))
        y1 = jnp.where(jnp.logical_and(grow >= 0, grow < H), y1, 0.0)
    # Full y1 is materialized before this store, so there is no RAW hazard
    # with conv2's reads below (ref ops follow program order).
    buf_ref[0:R1, pad_w:pad_w + W, :] = y1

    # ---- conv2 (res_scale folded into w2/b2) + residual. -------------------
    # Residual is re-read late from the resident center block (short live range).
    out_ref[0] = (conv(TH, w2_ref, b2_ref)
                  + x_ctr_ref[0].astype(jnp.float32)).astype(out_ref.dtype)


def resblock_forward(x_nchw, w1, b1, w2, b2, *, res_scale=1.0,
                     mxu_dtype=jnp.float32, row_tile=None):
    """x_nchw: (N, C, H, W); w*: (C, C, KH, KW); b*: (C,) -- PyTorch layouts."""
    N, C, H, W = (int(d) for d in x_nchw.shape)
    Cout, Cin, KH, KW = (int(d) for d in w1.shape)
    assert Cout == C and Cin == C and tuple(w2.shape) == tuple(w1.shape)
    assert KH % 2 == 1 and KW % 2 == 1, "odd kernel sizes only (SAME conv)"
    pad_h, pad_w = KH // 2, KW // 2
    HALO = 2 * pad_h
    HALO_B = max(HALO, 1)

    LANE = 128
    Cp = _round_up(max(C, 1), LANE)          # lane-dense channel count
    mxu_dtype = jnp.dtype(mxu_dtype)
    out_dtype = x_nchw.dtype
    Wb = W + 2 * pad_w

    # ---- generation-aware VMEM cap -----------------------------------------
    try:
        vmem_phys = int(pltpu.get_tpu_info().vmem_capacity_bytes)
    except Exception:
        vmem_phys = 64 << 20                 # conservative fallback
    vmem_cap = max(vmem_phys - (24 << 20), 32 << 20)

    # ---- row-tile selection (TH must be a multiple of lcm(8, 2*pad_h)) -----
    unit = 8 if HALO == 0 else (8 * HALO) // math.gcd(8, HALO)
    in_b = jnp.dtype(x_nchw.dtype).itemsize
    out_b = jnp.dtype(out_dtype).itemsize
    w_b = mxu_dtype.itemsize

    def footprint(th):
        hbuf = th + 2 * HALO
        r1 = th + HALO
        return int(
            2 * (th + 2 * HALO_B) * W * Cp * in_b        # x blocks (2-buffered)
            + 2 * th * W * Cp * out_b                    # out blocks
            + 4 * (KH * KW * Cp * Cp * w_b + Cp * 4)     # weights + biases
            + hbuf * Wb * Cp * 4                         # shared scratch (f32)
            + hbuf * W * Cp * (4 + w_b)                  # shifted slab (+cast)
            + 3 * r1 * W * Cp * 4)                       # acc / tap / y1 temps

    if row_tile is not None:
        TH = _round_up(max(int(row_tile), 1), unit)
    else:
        TH = _round_up(min(H, 128), unit)
        while TH > unit and footprint(TH) > vmem_cap // 2:
            TH -= unit
        TH = max(TH, unit)
    T = -(-H // TH)                                      # ceil(H / TH)
    vmem_limit = min(max(footprint(TH) * 7 // 5 + (4 << 20), 32 << 20), vmem_cap)

    # ---- NCHW -> NHWC, channel padding, row padding for the halo scheme ----
    x_nhwc = jnp.transpose(x_nchw, (0, 2, 3, 1))
    if Cp != C:
        x_nhwc = jnp.pad(x_nhwc, ((0, 0), (0, 0), (0, 0), (0, Cp - C)))
    # Top pad = TH rows (so tile t's rows start exactly at row-block t+1);
    # bottom pad supplies zeros for the last tile's rows + halo.
    H2 = (T + 1) * TH + HALO_B
    x_pad = jnp.pad(x_nhwc, ((0, 0), (TH, H2 - TH - H), (0, 0), (0, 0)))

    def prep_w(w, scale):
        wt = jnp.transpose(w, (2, 3, 1, 0)).astype(jnp.float32)   # (KH,KW,Ci,Co)
        wt = wt * jnp.float32(scale)
        if Cp != C:
            wt = jnp.pad(wt, ((0, 0), (0, 0), (0, Cp - C), (0, Cp - C)))
        return wt.reshape(KH * KW, Cp, Cp).astype(mxu_dtype)

    def prep_b(b, scale):
        bp = b.astype(jnp.float32) * jnp.float32(scale)
        if Cp != C:
            bp = jnp.pad(bp, (0, Cp - C))
        return bp.reshape(1, Cp)

    # Fold res_scale into conv2's weights/bias at trace time.
    w1k, b1k = prep_w(w1, 1.0), prep_b(b1, 1.0)
    w2k, b2k = prep_w(w2, res_scale), prep_b(b2, res_scale)

    kern = functools.partial(_resblock_kernel, TH=TH, H=H, W=W, KH=KH, KW=KW,
                             pad_h=pad_h, pad_w=pad_w)
    th_blocks = TH // HALO_B
    Hbuf = TH + 2 * HALO

    def build(single_buffer_consts):
        const_kw = ({"pipeline_mode": pl.Buffered(1)}
                    if single_buffer_consts else {})
        in_specs = [
            # top halo rows [t*TH - HALO, t*TH)
            pl.BlockSpec((1, HALO_B, W, Cp),
                         lambda n, t: (n, (t + 1) * th_blocks - 1, 0, 0)),
            # the tile's own rows [t*TH, (t+1)*TH)
            pl.BlockSpec((1, TH, W, Cp), lambda n, t: (n, t + 1, 0, 0)),
            # bottom halo rows [(t+1)*TH, (t+1)*TH + HALO)
            pl.BlockSpec((1, HALO_B, W, Cp),
                         lambda n, t: (n, (t + 2) * th_blocks, 0, 0)),
            pl.BlockSpec((KH * KW, Cp, Cp), lambda n, t: (0, 0, 0), **const_kw),
            pl.BlockSpec((1, Cp), lambda n, t: (0, 0), **const_kw),
            pl.BlockSpec((KH * KW, Cp, Cp), lambda n, t: (0, 0, 0), **const_kw),
            pl.BlockSpec((1, Cp), lambda n, t: (0, 0), **const_kw),
        ]
        return pl.pallas_call(
            kern,
            out_shape=jax.ShapeDtypeStruct((N, T * TH, W, Cp), out_dtype),
            grid_spec=pltpu.PrefetchScalarGridSpec(
                num_scalar_prefetch=0,
                grid=(N, T),
                in_specs=in_specs,
                out_specs=pl.BlockSpec((1, TH, W, Cp),
                                       lambda n, t: (n, t, 0, 0)),
                scratch_shapes=[pltpu.VMEM((Hbuf, Wb, Cp), jnp.float32)],
            ),
            compiler_params=pltpu.CompilerParams(
                dimension_semantics=("parallel", "parallel"),
                vmem_limit_bytes=int(vmem_limit),
            ),
        )

    args = (x_pad, x_pad, x_pad, w1k, b1k, w2k, b2k)
    try:
        out_pad = build(True)(*args)
    except Exception:
        # pipeline_mode=pl.Buffered(1) not supported on this JAX version:
        # fall back to default (double-buffered) constant operands.
        out_pad = build(False)(*args)

    # Crop row/channel padding, back to NCHW.
    return jnp.transpose(out_pad[:, :H, :, :C], (0, 3, 1, 2))


def _reference_forward(x, w1, b1, w2, b2, *, res_scale=1.0):
    """Pure-JAX reference matching the PyTorch ResBlock (NCHW, OIHW)."""
    dn = ('NCHW', 'OIHW', 'NCHW')
    prec = jax.lax.Precision.HIGHEST
    y = jax.lax.conv_general_dilated(x, w1, (1, 1), 'SAME',
                                     dimension_numbers=dn, precision=prec)
    y = jnp.maximum(y + b1[None, :, None, None], 0.0)
    y = jax.lax.conv_general_dilated(y, w2, (1, 1), 'SAME',
                                     dimension_numbers=dn, precision=prec)
    y = y + b2[None, :, None, None]
    return y * res_scale + x


if __name__ == "__main__":
    def run_case(N, C, H, W, K, res_scale, **kw):
        key = jax.random.PRNGKey(0)
        kx, kw1, kb1, kw2, kb2 = jax.random.split(key, 5)
        x = jax.random.normal(kx, (N, C, H, W), dtype=jnp.float32)
        fan_in = C * K * K
        w1 = jax.random.normal(kw1, (C, C, K, K), jnp.float32) / jnp.sqrt(fan_in)
        b1 = jax.random.normal(kb1, (C,), jnp.float32) * 0.1
        w2 = jax.random.normal(kw2, (C, C, K, K), jnp.float32) / jnp.sqrt(fan_in)
        b2 = jax.random.normal(kb2, (C,), jnp.float32) * 0.1
        out = jax.block_until_ready(
            resblock_forward(x, w1, b1, w2, b2, res_scale=res_scale, **kw))
        ref = jax.block_until_ready(
            _reference_forward(x, w1, b1, w2, b2, res_scale=res_scale))
        assert out.shape == ref.shape, (out.shape, ref.shape)
        return float(jnp.max(jnp.abs(out - ref)))

    # Tolerances are loose enough to absorb MXU bf16-pass-count differences on
    # the conv accumulations; indexing/halo/scale bugs produce O(0.1..1) errors.
    # f32 MXU path: single row tile (auto) and forced multi-tile halo path.
    assert run_case(2, 4, 16, 16, 3, 1.0) < 1e-2
    assert run_case(2, 4, 16, 16, 3, 0.1, row_tile=8) < 1e-2
    # Odd shapes: channel padding (5 -> 128) + ragged last row tile.
    assert run_case(1, 5, 11, 12, 3, 0.2, row_tile=8) < 1e-2
    # bf16 MXU operands (f32 accumulation): looser tolerance by construction.
    assert run_case(2, 4, 16, 16, 3, 1.0, mxu_dtype=jnp.bfloat16,
                    row_tile=8) < 1.5e-1

    print("KERNEL_OK")
</pallas_src>

<mosaic_0001>
module attributes {stable_mosaic.version = 11 : i64} {
  func.func @_resblock_kernel(%arg0: i32, %arg1: i32, %arg2: memref<1x2x16x128xf32, #tpu.memory_space<vmem>>, %arg3: memref<1x16x16x128xf32, #tpu.memory_space<vmem>>, %arg4: memref<1x2x16x128xf32, #tpu.memory_space<vmem>>, %arg5: memref<9x128x128xf32, #tpu.memory_space<vmem>>, %arg6: memref<1x128xf32, #tpu.memory_space<vmem>>, %arg7: memref<9x128x128xf32, #tpu.memory_space<vmem>>, %arg8: memref<1x128xf32, #tpu.memory_space<vmem>>, %arg9: memref<1x16x16x128xf32, #tpu.memory_space<vmem>>, %arg10: memref<20x18x128xf32, #tpu.memory_space<vmem>>) attributes {dimension_semantics = [#tpu.dimension_semantics<parallel>, #tpu.dimension_semantics<parallel>], iteration_bounds = array<i64: 2, 1>, scalar_prefetch = 0 : i64, scratch_operands = 1 : i64, tpu.core_type = #tpu.core_type<tc>, window_params = [{transform_indices = @transform_0, window_bounds = array<i64: 1, 2, 16, 128>}, {transform_indices = @transform_1, window_bounds = array<i64: 1, 16, 16, 128>}, {transform_indices = @transform_2, window_bounds = array<i64: 1, 2, 16, 128>}, {pipeline_mode = #tpu.pipeline_mode<synchronous>, transform_indices = @transform_3, window_bounds = array<i64: 9, 128, 128>}, {pipeline_mode = #tpu.pipeline_mode<synchronous>, transform_indices = @transform_4, window_bounds = array<i64: 1, 128>}, {pipeline_mode = #tpu.pipeline_mode<synchronous>, transform_indices = @transform_5, window_bounds = array<i64: 9, 128, 128>}, {pipeline_mode = #tpu.pipeline_mode<synchronous>, transform_indices = @transform_6, window_bounds = array<i64: 1, 128>}, {transform_indices = @transform_7, window_bounds = array<i64: 1, 16, 16, 128>}]} {
    %cst = arith.constant 0.000000e+00 : f32
    %0 = vector.broadcast %cst : f32 to vector<20x1x128xf32>
    %c0 = arith.constant 0 : index
    %c0_0 = arith.constant 0 : index
    %c0_1 = arith.constant 0 : index
    %1 = vector.load %arg10[%c0, %c0_0, %c0_1] : memref<20x18x128xf32, #tpu.memory_space<vmem>>, vector<20x1x128xf32>
    tpu.vector_store %arg10[%c0, %c0_0, %c0_1], %0 {strides = array<i32>} : memref<20x18x128xf32, #tpu.memory_space<vmem>>, vector<20x1x128xf32>,
    %cst_2 = arith.constant 0.000000e+00 : f32
    %2 = vector.broadcast %cst_2 : f32 to vector<20x1x128xf32>
    %c0_3 = arith.constant 0 : index
    %c17 = arith.constant 17 : index
    %c0_4 = arith.constant 0 : index
    %3 = vector.load %arg10[%c0_3, %c17, %c0_4] : memref<20x18x128xf32, #tpu.memory_space<vmem>>, vector<20x1x128xf32>
    tpu.vector_store %arg10[%c0_3, %c17, %c0_4], %2 {strides = array<i32>} : memref<20x18x128xf32, #tpu.memory_space<vmem>>, vector<20x1x128xf32>,
    %c0_5 = arith.constant 0 : index
    %c0_6 = arith.constant 0 : index
    %c0_7 = arith.constant 0 : index
    %c0_8 = arith.constant 0 : index
    %4 = vector.load %arg2[%c0_5, %c0_6, %c0_7, %c0_8] : memref<1x2x16x128xf32, #tpu.memory_space<vmem>>, vector<1x2x16x128xf32>
    %5 = vector.shape_cast %4 : vector<1x2x16x128xf32> to vector<2x16x128xf32>
    %c0_9 = arith.constant 0 : index
    %c1 = arith.constant 1 : index
    %c0_10 = arith.constant 0 : index
    %6 = vector.load %arg10[%c0_9, %c1, %c0_10] : memref<20x18x128xf32, #tpu.memory_space<vmem>>, vector<2x16x128xf32>
    tpu.vector_store %arg10[%c0_9, %c1, %c0_10], %5 {strides = array<i32>} : memref<20x18x128xf32, #tpu.memory_space<vmem>>, vector<2x16x128xf32>,
    %c0_11 = arith.constant 0 : index
    %c0_12 = arith.constant 0 : index
    %c0_13 = arith.constant 0 : index
    %c0_14 = arith.constant 0 : index
    %7 = vector.load %arg4[%c0_11, %c0_12, %c0_13, %c0_14] : memref<1x2x16x128xf32, #tpu.memory_space<vmem>>, vector<1x2x16x128xf32>
    %8 = vector.shape_cast %7 : vector<1x2x16x128xf32> to vector<2x16x128xf32>
    %c18 = arith.constant 18 : index
    %c1_15 = arith.constant 1 : index
    %c0_16 = arith.constant 0 : index
    %9 = vector.load %arg10[%c18, %c1_15, %c0_16] : memref<20x18x128xf32, #tpu.memory_space<vmem>>, vector<2x16x128xf32>
    tpu.vector_store %arg10[%c18, %c1_15, %c0_16], %8 {strides = array<i32>} : memref<20x18x128xf32, #tpu.memory_space<vmem>>, vector<2x16x128xf32>,
    %c0_17 = arith.constant 0 : index
    %c0_18 = arith.constant 0 : index
    %c0_19 = arith.constant 0 : index
    %c0_20 = arith.constant 0 : index
    %10 = vector.load %arg3[%c0_17, %c0_18, %c0_19, %c0_20] : memref<1x16x16x128xf32, #tpu.memory_space<vmem>>, vector<1x16x16x128xf32>
    %11 = vector.shape_cast %10 : vector<1x16x16x128xf32> to vector<16x16x128xf32>
    %c2 = arith.constant 2 : index
    %c1_21 = arith.constant 1 : index
    %c0_22 = arith.constant 0 : index
    %12 = vector.load %arg10[%c2, %c1_21, %c0_22] : memref<20x18x128xf32, #tpu.memory_space<vmem>>, vector<16x16x128xf32>
    tpu.vector_store %arg10[%c2, %c1_21, %c0_22], %11 {strides = array<i32>} : memref<20x18x128xf32, #tpu.memory_space<vmem>>, vector<16x16x128xf32>,
    %c0_23 = arith.constant 0 : index
    %c0_24 = arith.constant 0 : index
    %c0_25 = arith.constant 0 : index
    %13 = vector.load %arg10[%c0_23, %c0_24, %c0_25] : memref<20x18x128xf32, #tpu.memory_space<vmem>>, vector<20x16x128xf32>
    %14 = vector.extract_strided_slice %13 {offsets = [0, 0, 0], sizes = [18, 16, 128], strides = [1, 1, 1]} : vector<20x16x128xf32> to vector<18x16x128xf32>
    %c0_26 = arith.constant 0 : index
    %c0_27 = arith.constant 0 : index
    %c0_28 = arith.constant 0 : index
    %15 = vector.load %arg5[%c0_26, %c0_27, %c0_28] : memref<9x128x128xf32, #tpu.memory_space<vmem>>, vector<1x128x128xf32>
    %16 = vector.shape_cast %15 : vector<1x128x128xf32> to vector<128x128xf32>
    %cst_29 = arith.constant dense<0.000000e+00> : vector<18x16x128xf32>
    %17 = tpu.matmul %14, %16, %cst_29 {dimension_numbers = #tpu.dot_dimension_numbers<[2], [0], [0, 1], [1], [0, 0, 0, 1, 1, 1], [], []>} : vector<18x16x128xf32>, vector<128x128xf32>, vector<18x16x128xf32> -> vector<18x16x128xf32>
    %18 = vector.extract_strided_slice %13 {offsets = [1, 0, 0], sizes = [18, 16, 128], strides = [1, 1, 1]} : vector<20x16x128xf32> to vector<18x16x128xf32>
    %c3 = arith.constant 3 : index
    %c0_30 = arith.constant 0 : index
    %c0_31 = arith.constant 0 : index
    %19 = vector.load %arg5[%c3, %c0_30, %c0_31] : memref<9x128x128xf32, #tpu.memory_space<vmem>>, vector<1x128x128xf32>
    %20 = vector.shape_cast %19 : vector<1x128x128xf32> to vector<128x128xf32>
    %cst_32 = arith.constant dense<0.000000e+00> : vector<18x16x128xf32>
    %21 = tpu.matmul %18, %20, %cst_32 {dimension_numbers = #tpu.dot_dimension_numbers<[2], [0], [0, 1], [1], [0, 0, 0, 1, 1, 1], [], []>} : vector<18x16x128xf32>, vector<128x128xf32>, vector<18x16x128xf32> -> vector<18x16x128xf32>
    %22 = arith.addf %17, %21 : vector<18x16x128xf32>
    %23 = vector.extract_strided_slice %13 {offsets = [2, 0, 0], sizes = [18, 16, 128], strides = [1, 1, 1]} : vector<20x16x128xf32> to vector<18x16x128xf32>
    %c6 = arith.constant 6 : index
    %c0_33 = arith.constant 0 : index
    %c0_34 = arith.constant 0 : index
    %24 = vector.load %arg5[%c6, %c0_33, %c0_34] : memref<9x128x128xf32, #tpu.memory_space<vmem>>, vector<1x128x128xf32>
    %25 = vector.shape_cast %24 : vector<1x128x128xf32> to vector<128x128xf32>
    %cst_35 = arith.constant dense<0.000000e+00> : vector<18x16x128xf32>
    %26 = tpu.matmul %23, %25, %cst_35 {dimension_numbers = #tpu.dot_dimension_numbers<[2], [0], [0, 1], [1], [0, 0, 0, 1, 1, 1], [], []>} : vector<18x16x128xf32>, vector<128x128xf32>, vector<18x16x128xf32> -> vector<18x16x128xf32>
    %27 = arith.addf %22, %26 : vector<18x16x128xf32>
    %c0_36 = arith.constant 0 : index
    %c1_37 = arith.constant 1 : index
    %c0_38 = arith.constant 0 : index
    %28 = vector.load %arg10[%c0_36, %c1_37, %c0_38] : memref<20x18x128xf32, #tpu.memory_space<vmem>>, vector<20x16x128xf32>
    %29 = vector.extract_strided_slice %28 {offsets = [0, 0, 0], sizes = [18, 16, 128], strides = [1, 1, 1]} : vector<20x16x128xf32> to vector<18x16x128xf32>
    %c1_39 = arith.constant 1 : index
    %c0_40 = arith.constant 0 : index
    %c0_41 = arith.constant 0 : index
    %30 = vector.load %arg5[%c1_39, %c0_40, %c0_41] : memref<9x128x128xf32, #tpu.memory_space<vmem>>, vector<1x128x128xf32>
    %31 = vector.shape_cast %30 : vector<1x128x128xf32> to vector<128x128xf32>
    %cst_42 = arith.constant dense<0.000000e+00> : vector<18x16x128xf32>
    %32 = tpu.matmul %29, %31, %cst_42 {dimension_numbers = #tpu.dot_dimension_numbers<[2], [0], [0, 1], [1], [0, 0, 0, 1, 1, 1], [], []>} : vector<18x16x128xf32>, vector<128x128xf32>, vector<18x16x128xf32> -> vector<18x16x128xf32>
    %33 = arith.addf %27, %32 : vector<18x16x128xf32>
    %34 = vector.extract_strided_slice %28 {offsets = [1, 0, 0], sizes = [18, 16, 128], strides = [1, 1, 1]} : vector<20x16x128xf32> to vector<18x16x128xf32>
    %c4 = arith.constant 4 : index
    %c0_43 = arith.constant 0 : index
    %c0_44 = arith.constant 0 : index
    %35 = vector.load %arg5[%c4, %c0_43, %c0_44] : memref<9x128x128xf32, #tpu.memory_space<vmem>>, vector<1x128x128xf32>
    %36 = vector.shape_cast %35 : vector<1x128x128xf32> to vector<128x128xf32>
    %cst_45 = arith.constant dense<0.000000e+00> : vector<18x16x128xf32>
    %37 = tpu.matmul %34, %36, %cst_45 {dimension_numbers = #tpu.dot_dimension_numbers<[2], [0], [0, 1], [1], [0, 0, 0, 1, 1, 1], [], []>} : vector<18x16x128xf32>, vector<128x128xf32>, vector<18x16x128xf32> -> vector<18x16x128xf32>
    %38 = arith.addf %33, %37 : vector<18x16x128xf32>
    %39 = vector.extract_strided_slice %28 {offsets = [2, 0, 0], sizes = [18, 16, 128], strides = [1, 1, 1]} : vector<20x16x128xf32> to vector<18x16x128xf32>
    %c7 = arith.constant 7 : index
    %c0_46 = arith.constant 0 : index
    %c0_47 = arith.constant 0 : index
    %40 = vector.load %arg5[%c7, %c0_46, %c0_47] : memref<9x128x128xf32, #tpu.memory_space<vmem>>, vector<1x128x128xf32>
    %41 = vector.shape_cast %40 : vector<1x128x128xf32> to vector<128x128xf32>
    %cst_48 = arith.constant dense<0.000000e+00> : vector<18x16x128xf32>
    %42 = tpu.matmul %39, %41, %cst_48 {dimension_numbers = #tpu.dot_dimension_numbers<[2], [0], [0, 1], [1], [0, 0, 0, 1, 1, 1], [], []>} : vector<18x16x128xf32>, vector<128x128xf32>, vector<18x16x128xf32> -> vector<18x16x128xf32>
    %43 = arith.addf %38, %42 : vector<18x16x128xf32>
    %c0_49 = arith.constant 0 : index
    %c2_50 = arith.constant 2 : index
    %c0_51 = arith.constant 0 : index
    %44 = vector.load %arg10[%c0_49, %c2_50, %c0_51] : memref<20x18x128xf32, #tpu.memory_space<vmem>>, vector<20x16x128xf32>
    %45 = vector.extract_strided_slice %44 {offsets = [0, 0, 0], sizes = [18, 16, 128], strides = [1, 1, 1]} : vector<20x16x128xf32> to vector<18x16x128xf32>
    %c2_52 = arith.constant 2 : index
    %c0_53 = arith.constant 0 : index
    %c0_54 = arith.constant 0 : index
    %46 = vector.load %arg5[%c2_52, %c0_53, %c0_54] : memref<9x128x128xf32, #tpu.memory_space<vmem>>, vector<1x128x128xf32>
    %47 = vector.shape_cast %46 : vector<1x128x128xf32> to vector<128x128xf32>
    %cst_55 = arith.constant dense<0.000000e+00> : vector<18x16x128xf32>
    %48 = tpu.matmul %45, %47, %cst_55 {dimension_numbers = #tpu.dot_dimension_numbers<[2], [0], [0, 1], [1], [0, 0, 0, 1, 1, 1], [], []>} : vector<18x16x128xf32>, vector<128x128xf32>, vector<18x16x128xf32> -> vector<18x16x128xf32>
    %49 = arith.addf %43, %48 : vector<18x16x128xf32>
    %50 = vector.extract_strided_slice %44 {offsets = [1, 0, 0], sizes = [18, 16, 128], strides = [1, 1, 1]} : vector<20x16x128xf32> to vector<18x16x128xf32>
    %c5 = arith.constant 5 : index
    %c0_56 = arith.constant 0 : index
    %c0_57 = arith.constant 0 : index
    %51 = vector.load %arg5[%c5, %c0_56, %c0_57] : memref<9x128x128xf32, #tpu.memory_space<vmem>>, vector<1x128x128xf32>
    %52 = vector.shape_cast %51 : vector<1x128x128xf32> to vector<128x128xf32>
    %cst_58 = arith.constant dense<0.000000e+00> : vector<18x16x128xf32>
    %53 = tpu.matmul %50, %52, %cst_58 {dimension_numbers = #tpu.dot_dimension_numbers<[2], [0], [0, 1], [1], [0, 0, 0, 1, 1, 1], [], []>} : vector<18x16x128xf32>, vector<128x128xf32>, vector<18x16x128xf32> -> vector<18x16x128xf32>
    %54 = arith.addf %49, %53 : vector<18x16x128xf32>
    %55 = vector.extract_strided_slice %44 {offsets = [2, 0, 0], sizes = [18, 16, 128], strides = [1, 1, 1]} : vector<20x16x128xf32> to vector<18x16x128xf32>
    %c8 = arith.constant 8 : index
    %c0_59 = arith.constant 0 : index
    %c0_60 = arith.constant 0 : index
    %56 = vector.load %arg5[%c8, %c0_59, %c0_60] : memref<9x128x128xf32, #tpu.memory_space<vmem>>, vector<1x128x128xf32>
    %57 = vector.shape_cast %56 : vector<1x128x128xf32> to vector<128x128xf32>
    %cst_61 = arith.constant dense<0.000000e+00> : vector<18x16x128xf32>
    %58 = tpu.matmul %55, %57, %cst_61 {dimension_numbers = #tpu.dot_dimension_numbers<[2], [0], [0, 1], [1], [0, 0, 0, 1, 1, 1], [], []>} : vector<18x16x128xf32>, vector<128x128xf32>, vector<18x16x128xf32> -> vector<18x16x128xf32>
    %59 = arith.addf %54, %58 : vector<18x16x128xf32>
    %c0_62 = arith.constant 0 : index
    %c0_63 = arith.constant 0 : index
    %60 = vector.load %arg6[%c0_62, %c0_63] : memref<1x128xf32, #tpu.memory_space<vmem>>, vector<1x128xf32>
    %61 = vector.shape_cast %60 : vector<1x128xf32> to vector<128xf32>
    %62 = vector.shape_cast %61 : vector<128xf32> to vector<1x1x128xf32>
    %63 = vector.broadcast %62 : vector<1x1x128xf32> to vector<18x16x128xf32>
    %64 = arith.addf %59, %63 : vector<18x16x128xf32>
    %cst_64 = arith.constant 0.000000e+00 : f32
    %65 = vector.broadcast %cst_64 : f32 to vector<18x16x128xf32>
    %66 = arith.maximumf %64, %65 : vector<18x16x128xf32>
    %c16_i32 = arith.constant 16 : i32
    %67 = arith.muli %arg1, %c16_i32 : i32
    %c1_i32 = arith.constant 1 : i32
    %68 = arith.subi %67, %c1_i32 : i32
    %69 = tpu.iota {dimensions = array<i32: 0>} : vector<18x1x1xi32>
    %70 = vector.broadcast %68 : i32 to vector<18x1x1xi32>
    %71 = arith.addi %70, %69 : vector<18x1x1xi32>
    %c0_i32 = arith.constant 0 : i32
    %72 = vector.broadcast %c0_i32 : i32 to vector<18x1x1xi32>
    %73 = arith.cmpi sge, %71, %72 : vector<18x1x1xi32>
    %c16_i32_65 = arith.constant 16 : i32
    %74 = vector.broadcast %c16_i32_65 : i32 to vector<18x1x1xi32>
    %75 = arith.cmpi slt, %71, %74 : vector<18x1x1xi32>
    %76 = arith.andi %73, %75 : vector<18x1x1xi1>
    %cst_66 = arith.constant 0.000000e+00 : f32
    %77 = vector.shape_cast %76 : vector<18x1x1xi1> to vector<18x1x1xi1>
    %78 = vector.broadcast %77 : vector<18x1x1xi1> to vector<18x16x128xi1>
    %79 = vector.broadcast %cst_66 : f32 to vector<18x16x128xf32>
    %80 = arith.select %78, %66, %79 : vector<18x16x128xi1>, vector<18x16x128xf32>
    %c0_67 = arith.constant 0 : index
    %c1_68 = arith.constant 1 : index
    %c0_69 = arith.constant 0 : index
    %81 = vector.load %arg10[%c0_67, %c1_68, %c0_69] : memref<20x18x128xf32, #tpu.memory_space<vmem>>, vector<18x16x128xf32>
    tpu.vector_store %arg10[%c0_67, %c1_68, %c0_69], %80 {strides = array<i32>} : memref<20x18x128xf32, #tpu.memory_space<vmem>>, vector<18x16x128xf32>,
    %c0_70 = arith.constant 0 : index
    %c0_71 = arith.constant 0 : index
    %c0_72 = arith.constant 0 : index
    %82 = vector.load %arg10[%c0_70, %c0_71, %c0_72] : memref<20x18x128xf32, #tpu.memory_space<vmem>>, vector<18x16x128xf32>
    %83 = vector.extract_strided_slice %82 {offsets = [0, 0, 0], sizes = [16, 16, 128], strides = [1, 1, 1]} : vector<18x16x128xf32> to vector<16x16x128xf32>
    %c0_73 = arith.constant 0 : index
    %c0_74 = arith.constant 0 : index
    %c0_75 = arith.constant 0 : index
    %84 = vector.load %arg7[%c0_73, %c0_74, %c0_75] : memref<9x128x128xf32, #tpu.memory_space<vmem>>, vector<1x128x128xf32>
    %85 = vector.shape_cast %84 : vector<1x128x128xf32> to vector<128x128xf32>
    %cst_76 = arith.constant dense<0.000000e+00> : vector<16x16x128xf32>
    %86 = tpu.matmul %83, %85, %cst_76 {dimension_numbers = #tpu.dot_dimension_numbers<[2], [0], [0, 1], [1], [0, 0, 0, 1, 1, 1], [], []>} : vector<16x16x128xf32>, vector<128x128xf32>, vector<16x16x128xf32> -> vector<16x16x128xf32>
    %87 = vector.extract_strided_slice %82 {offsets = [1, 0, 0], sizes = [16, 16, 128], strides = [1, 1, 1]} : vector<18x16x128xf32> to vector<16x16x128xf32>
    %c3_77 = arith.constant 3 : index
    %c0_78 = arith.constant 0 : index
    %c0_79 = arith.constant 0 : index
    %88 = vector.load %arg7[%c3_77, %c0_78, %c0_79] : memref<9x128x128xf32, #tpu.memory_space<vmem>>, vector<1x128x128xf32>
    %89 = vector.shape_cast %88 : vector<1x128x128xf32> to vector<128x128xf32>
    %cst_80 = arith.constant dense<0.000000e+00> : vector<16x16x128xf32>
    %90 = tpu.matmul %87, %89, %cst_80 {dimension_numbers = #tpu.dot_dimension_numbers<[2], [0], [0, 1], [1], [0, 0, 0, 1, 1, 1], [], []>} : vector<16x16x128xf32>, vector<128x128xf32>, vector<16x16x128xf32> -> vector<16x16x128xf32>
    %91 = arith.addf %86, %90 : vector<16x16x128xf32>
    %92 = vector.extract_strided_slice %82 {offsets = [2, 0, 0], sizes = [16, 16, 128], strides = [1, 1, 1]} : vector<18x16x128xf32> to vector<16x16x128xf32>
    %c6_81 = arith.constant 6 : index
    %c0_82 = arith.constant 0 : index
    %c0_83 = arith.constant 0 : index
    %93 = vector.load %arg7[%c6_81, %c0_82, %c0_83] : memref<9x128x128xf32, #tpu.memory_space<vmem>>, vector<1x128x128xf32>
    %94 = vector.shape_cast %93 : vector<1x128x128xf32> to vector<128x128xf32>
    %cst_84 = arith.constant dense<0.000000e+00> : vector<16x16x128xf32>
    %95 = tpu.matmul %92, %94, %cst_84 {dimension_numbers = #tpu.dot_dimension_numbers<[2], [0], [0, 1], [1], [0, 0, 0, 1, 1, 1], [], []>} : vector<16x16x128xf32>, vector<128x128xf32>, vector<16x16x128xf32> -> vector<16x16x128xf32>
    %96 = arith.addf %91, %95 : vector<16x16x128xf32>
    %c0_85 = arith.constant 0 : index
    %c1_86 = arith.constant 1 : index
    %c0_87 = arith.constant 0 : index
    %97 = vector.load %arg10[%c0_85, %c1_86, %c0_87] : memref<20x18x128xf32, #tpu.memory_space<vmem>>, vector<18x16x128xf32>
    %98 = vector.extract_strided_slice %97 {offsets = [0, 0, 0], sizes = [16, 16, 128], strides = [1, 1, 1]} : vector<18x16x128xf32> to vector<16x16x128xf32>
    %c1_88 = arith.constant 1 : index
    %c0_89 = arith.constant 0 : index
    %c0_90 = arith.constant 0 : index
    %99 = vector.load %arg7[%c1_88, %c0_89, %c0_90] : memref<9x128x128xf32, #tpu.memory_space<vmem>>, vector<1x128x128xf32>
    %100 = vector.shape_cast %99 : vector<1x128x128xf32> to vector<128x128xf32>
    %cst_91 = arith.constant dense<0.000000e+00> : vector<16x16x128xf32>
    %101 = tpu.matmul %98, %100, %cst_91 {dimension_numbers = #tpu.dot_dimension_numbers<[2], [0], [0, 1], [1], [0, 0, 0, 1, 1, 1], [], []>} : vector<16x16x128xf32>, vector<128x128xf32>, vector<16x16x128xf32> -> vector<16x16x128xf32>
    %102 = arith.addf %96, %101 : vector<16x16x128xf32>
    %103 = vector.extract_strided_slice %97 {offsets = [1, 0, 0], sizes = [16, 16, 128], strides = [1, 1, 1]} : vector<18x16x128xf32> to vector<16x16x128xf32>
    %c4_92 = arith.constant 4 : index
    %c0_93 = arith.constant 0 : index
    %c0_94 = arith.constant 0 : index
    %104 = vector.load %arg7[%c4_92, %c0_93, %c0_94] : memref<9x128x128xf32, #tpu.memory_space<vmem>>, vector<1x128x128xf32>
    %105 = vector.shape_cast %104 : vector<1x128x128xf32> to vector<128x128xf32>
    %cst_95 = arith.constant dense<0.000000e+00> : vector<16x16x128xf32>
    %106 = tpu.matmul %103, %105, %cst_95 {dimension_numbers = #tpu.dot_dimension_numbers<[2], [0], [0, 1], [1], [0, 0, 0, 1, 1, 1], [], []>} : vector<16x16x128xf32>, vector<128x128xf32>, vector<16x16x128xf32> -> vector<16x16x128xf32>
    %107 = arith.addf %102, %106 : vector<16x16x128xf32>
    %108 = vector.extract_strided_slice %97 {offsets = [2, 0, 0], sizes = [16, 16, 128], strides = [1, 1, 1]} : vector<18x16x128xf32> to vector<16x16x128xf32>
    %c7_96 = arith.constant 7 : index
    %c0_97 = arith.constant 0 : index
    %c0_98 = arith.constant 0 : index
    %109 = vector.load %arg7[%c7_96, %c0_97, %c0_98] : memref<9x128x128xf32, #tpu.memory_space<vmem>>, vector<1x128x128xf32>
    %110 = vector.shape_cast %109 : vector<1x128x128xf32> to vector<128x128xf32>
    %cst_99 = arith.constant dense<0.000000e+00> : vector<16x16x128xf32>
    %111 = tpu.matmul %108, %110, %cst_99 {dimension_numbers = #tpu.dot_dimension_numbers<[2], [0], [0, 1], [1], [0, 0, 0, 1, 1, 1], [], []>} : vector<16x16x128xf32>, vector<128x128xf32>, vector<16x16x128xf32> -> vector<16x16x128xf32>
    %112 = arith.addf %107, %111 : vector<16x16x128xf32>
    %c0_100 = arith.constant 0 : index
    %c2_101 = arith.constant 2 : index
    %c0_102 = arith.constant 0 : index
    %113 = vector.load %arg10[%c0_100, %c2_101, %c0_102] : memref<20x18x128xf32, #tpu.memory_space<vmem>>, vector<18x16x128xf32>
    %114 = vector.extract_strided_slice %113 {offsets = [0, 0, 0], sizes = [16, 16, 128], strides = [1, 1, 1]} : vector<18x16x128xf32> to vector<16x16x128xf32>
    %c2_103 = arith.constant 2 : index
    %c0_104 = arith.constant 0 : index
    %c0_105 = arith.constant 0 : index
    %115 = vector.load %arg7[%c2_103, %c0_104, %c0_105] : memref<9x128x128xf32, #tpu.memory_space<vmem>>, vector<1x128x128xf32>
    %116 = vector.shape_cast %115 : vector<1x128x128xf32> to vector<128x128xf32>
    %cst_106 = arith.constant dense<0.000000e+00> : vector<16x16x128xf32>
    %117 = tpu.matmul %114, %116, %cst_106 {dimension_numbers = #tpu.dot_dimension_numbers<[2], [0], [0, 1], [1], [0, 0, 0, 1, 1, 1], [], []>} : vector<16x16x128xf32>, vector<128x128xf32>, vector<16x16x128xf32> -> vector<16x16x128xf32>
    %118 = arith.addf %112, %117 : vector<16x16x128xf32>
    %119 = vector.extract_strided_slice %113 {offsets = [1, 0, 0], sizes = [16, 16, 128], strides = [1, 1, 1]} : vector<18x16x128xf32> to vector<16x16x128xf32>
    %c5_107 = arith.constant 5 : index
    %c0_108 = arith.constant 0 : index
    %c0_109 = arith.constant 0 : index
    %120 = vector.load %arg7[%c5_107, %c0_108, %c0_109] : memref<9x128x128xf32, #tpu.memory_space<vmem>>, vector<1x128x128xf32>
    %121 = vector.shape_cast %120 : vector<1x128x128xf32> to vector<128x128xf32>
    %cst_110 = arith.constant dense<0.000000e+00> : vector<16x16x128xf32>
    %122 = tpu.matmul %119, %121, %cst_110 {dimension_numbers = #tpu.dot_dimension_numbers<[2], [0], [0, 1], [1], [0, 0, 0, 1, 1, 1], [], []>} : vector<16x16x128xf32>, vector<128x128xf32>, vector<16x16x128xf32> -> vector<16x16x128xf32>
    %123 = arith.addf %118, %122 : vector<16x16x128xf32>
    %124 = vector.extract_strided_slice %113 {offsets = [2, 0, 0], sizes = [16, 16, 128], strides = [1, 1, 1]} : vector<18x16x128xf32> to vector<16x16x128xf32>
    %c8_111 = arith.constant 8 : index
    %c0_112 = arith.constant 0 : index
    %c0_113 = arith.constant 0 : index
    %125 = vector.load %arg7[%c8_111, %c0_112, %c0_113] : memref<9x128x128xf32, #tpu.memory_space<vmem>>, vector<1x128x128xf32>
    %126 = vector.shape_cast %125 : vector<1x128x128xf32> to vector<128x128xf32>
    %cst_114 = arith.constant dense<0.000000e+00> : vector<16x16x128xf32>
    %127 = tpu.matmul %124, %126, %cst_114 {dimension_numbers = #tpu.dot_dimension_numbers<[2], [0], [0, 1], [1], [0, 0, 0, 1, 1, 1], [], []>} : vector<16x16x128xf32>, vector<128x128xf32>, vector<16x16x128xf32> -> vector<16x16x128xf32>
    %128 = arith.addf %123, %127 : vector<16x16x128xf32>
    %c0_115 = arith.constant 0 : index
    %c0_116 = arith.constant 0 : index
    %129 = vector.load %arg8[%c0_115, %c0_116] : memref<1x128xf32, #tpu.memory_space<vmem>>, vector<1x128xf32>
    %130 = vector.shape_cast %129 : vector<1x128xf32> to vector<128xf32>
    %131 = vector.shape_cast %130 : vector<128xf32> to vector<1x1x128xf32>
    %132 = vector.broadcast %131 : vector<1x1x128xf32> to vector<16x16x128xf32>
    %133 = arith.addf %128, %132 : vector<16x16x128xf32>
    %c0_117 = arith.constant 0 : index
    %c0_118 = arith.constant 0 : index
    %c0_119 = arith.constant 0 : index
    %c0_120 = arith.constant 0 : index
    %134 = vector.load %arg3[%c0_117, %c0_118, %c0_119, %c0_120] : memref<1x16x16x128xf32, #tpu.memory_space<vmem>>, vector<1x16x16x128xf32>
    %135 = vector.shape_cast %134 : vector<1x16x16x128xf32> to vector<16x16x128xf32>
    %136 = arith.addf %133, %135 : vector<16x16x128xf32>
    %c0_121 = arith.constant 0 : index
    %c0_122 = arith.constant 0 : index
    %c0_123 = arith.constant 0 : index
    %c0_124 = arith.constant 0 : index
    %137 = vector.load %arg9[%c0_121, %c0_122, %c0_123, %c0_124] : memref<1x16x16x128xf32, #tpu.memory_space<vmem>>, vector<1x16x16x128xf32>
    %138 = vector.shape_cast %137 : vector<1x16x16x128xf32> to vector<16x16x128xf32>
    %139 = vector.shape_cast %136 : vector<16x16x128xf32> to vector<1x16x16x128xf32>
    tpu.vector_store %arg9[%c0_121, %c0_122, %c0_123, %c0_124], %139 {strides = array<i32>} : memref<1x16x16x128xf32, #tpu.memory_space<vmem>>, vector<1x16x16x128xf32>,
    return
  }
  func.func @transform_0(%arg0: i32, %arg1: i32) -> (i32, i32, i32, i32) {
    %c1_i32 = arith.constant 1 : i32
    %0 = arith.addi %arg1, %c1_i32 : i32
    %c8_i32 = arith.constant 8 : i32
    %1 = arith.muli %0, %c8_i32 : i32
    %c1_i32_0 = arith.constant 1 : i32
    %2 = arith.subi %1, %c1_i32_0 : i32
    %c0_i32 = arith.constant 0 : i32
    %c0_i32_1 = arith.constant 0 : i32
    %c0_i32_2 = arith.constant 0 : i32
    return %arg0, %2, %c0_i32, %c0_i32_1 : i32, i32, i32, i32
  }
  func.func @transform_1(%arg0: i32, %arg1: i32) -> (i32, i32, i32, i32) {
    %c1_i32 = arith.constant 1 : i32
    %0 = arith.addi %arg1, %c1_i32 : i32
    %c0_i32 = arith.constant 0 : i32
    %c0_i32_0 = arith.constant 0 : i32
    %c0_i32_1 = arith.constant 0 : i32
    return %arg0, %0, %c0_i32, %c0_i32_0 : i32, i32, i32, i32
  }
  func.func @transform_2(%arg0: i32, %arg1: i32) -> (i32, i32, i32, i32) {
    %c2_i32 = arith.constant 2 : i32
    %0 = arith.addi %arg1, %c2_i32 : i32
    %c8_i32 = arith.constant 8 : i32
    %1 = arith.muli %0, %c8_i32 : i32
    %c0_i32 = arith.constant 0 : i32
    %c0_i32_0 = arith.constant 0 : i32
    %c0_i32_1 = arith.constant 0 : i32
    return %arg0, %1, %c0_i32, %c0_i32_0 : i32, i32, i32, i32
  }
  func.func @transform_3(%arg0: i32, %arg1: i32) -> (i32, i32, i32) {
    %c0_i32 = arith.constant 0 : i32
    %c0_i32_0 = arith.constant 0 : i32
    %c0_i32_1 = arith.constant 0 : i32
    %c0_i32_2 = arith.constant 0 : i32
    return %c0_i32, %c0_i32_0, %c0_i32_1 : i32, i32, i32
  }
  func.func @transform_4(%arg0: i32, %arg1: i32) -> (i32, i32) {
    %c0_i32 = arith.constant 0 : i32
    %c0_i32_0 = arith.constant 0 : i32
    %c0_i32_1 = arith.constant 0 : i32
    return %c0_i32, %c0_i32_0 : i32, i32
  }
  func.func @transform_5(%arg0: i32, %arg1: i32) -> (i32, i32, i32) {
    %c0_i32 = arith.constant 0 : i32
    %c0_i32_0 = arith.constant 0 : i32
    %c0_i32_1 = arith.constant 0 : i32
    %c0_i32_2 = arith.constant 0 : i32
    return %c0_i32, %c0_i32_0, %c0_i32_1 : i32, i32, i32
  }
  func.func @transform_6(%arg0: i32, %arg1: i32) -> (i32, i32) {
    %c0_i32 = arith.constant 0 : i32
    %c0_i32_0 = arith.constant 0 : i32
    %c0_i32_1 = arith.constant 0 : i32
    return %c0_i32, %c0_i32_0 : i32, i32
  }
  func.func @transform_7(%arg0: i32, %arg1: i32) -> (i32, i32, i32, i32) {
    %c0_i32 = arith.constant 0 : i32
    %c0_i32_0 = arith.constant 0 : i32
    %c0_i32_1 = arith.constant 0 : i32
    return %arg0, %arg1, %c0_i32, %c0_i32_0 : i32, i32, i32, i32
  }
}

module attributes {stable_mosaic.version = 11 : i64} {
  func.func @_resblock_kernel(%arg0: i32, %arg1: i32, %arg2: memref<1x2x16x128xf32, #tpu.memory_space<vmem>>, %arg3: memref<1x16x16x128xf32, #tpu.memory_space<vmem>>, %arg4: memref<1x2x16x128xf32, #tpu.memory_space<vmem>>, %arg5: memref<9x128x128xf32, #tpu.memory_space<vmem>>, %arg6: memref<1x128xf32, #tpu.memory_space<vmem>>, %arg7: memref<9x128x128xf32, #tpu.memory_space<vmem>>, %arg8: memref<1x128xf32, #tpu.memory_space<vmem>>, %arg9: memref<1x16x16x128xf32, #tpu.memory_space<vmem>>, %arg10: memref<20x18x128xf32, #tpu.memory_space<vmem>>) attributes {dimension_semantics = [#tpu.dimension_semantics<parallel>, #tpu.dimension_semantics<parallel>], iteration_bounds = array<i64: 2, 1>, scalar_prefetch = 0 : i64, scratch_operands = 1 : i64, tpu.core_type = #tpu.core_type<tc>, window_params = [{transform_indices = @transform_0, window_bounds = array<i64: 1, 2, 16, 128>}, {transform_indices = @transform_1, window_bounds = array<i64: 1, 16, 16, 128>}, {transform_indices = @transform_2, window_bounds = array<i64: 1, 2, 16, 128>}, {pipeline_mode = #tpu.pipeline_mode<synchronous>, transform_indices = @transform_3, window_bounds = array<i64: 9, 128, 128>}, {pipeline_mode = #tpu.pipeline_mode<synchronous>, transform_indices = @transform_4, window_bounds = array<i64: 1, 128>}, {pipeline_mode = #tpu.pipeline_mode<synchronous>, transform_indices = @transform_5, window_bounds = array<i64: 9, 128, 128>}, {pipeline_mode = #tpu.pipeline_mode<synchronous>, transform_indices = @transform_6, window_bounds = array<i64: 1, 128>}, {transform_indices = @transform_7, window_bounds = array<i64: 1, 16, 16, 128>}]} {
    %cst = arith.constant 0.000000e+00 : f32
    %0 = vector.broadcast %cst : f32 to vector<20x1x128xf32>
    %c0 = arith.constant 0 : index
    %c0_0 = arith.constant 0 : index
    %c0_1 = arith.constant 0 : index
    %1 = vector.load %arg10[%c0, %c0_0, %c0_1] : memref<20x18x128xf32, #tpu.memory_space<vmem>>, vector<20x1x128xf32>
    tpu.vector_store %arg10[%c0, %c0_0, %c0_1], %0 {strides = array<i32>} : memref<20x18x128xf32, #tpu.memory_space<vmem>>, vector<20x1x128xf32>,
    %cst_2 = arith.constant 0.000000e+00 : f32
    %2 = vector.broadcast %cst_2 : f32 to vector<20x1x128xf32>
    %c0_3 = arith.constant 0 : index
    %c17 = arith.constant 17 : index
    %c0_4 = arith.constant 0 : index
    %3 = vector.load %arg10[%c0_3, %c17, %c0_4] : memref<20x18x128xf32, #tpu.memory_space<vmem>>, vector<20x1x128xf32>
    tpu.vector_store %arg10[%c0_3, %c17, %c0_4], %2 {strides = array<i32>} : memref<20x18x128xf32, #tpu.memory_space<vmem>>, vector<20x1x128xf32>,
    %c0_5 = arith.constant 0 : index
    %c0_6 = arith.constant 0 : index
    %c0_7 = arith.constant 0 : index
    %c0_8 = arith.constant 0 : index
    %4 = vector.load %arg2[%c0_5, %c0_6, %c0_7, %c0_8] : memref<1x2x16x128xf32, #tpu.memory_space<vmem>>, vector<1x2x16x128xf32>
    %5 = vector.shape_cast %4 : vector<1x2x16x128xf32> to vector<2x16x128xf32>
    %c0_9 = arith.constant 0 : index
    %c1 = arith.constant 1 : index
    %c0_10 = arith.constant 0 : index
    %6 = vector.load %arg10[%c0_9, %c1, %c0_10] : memref<20x18x128xf32, #tpu.memory_space<vmem>>, vector<2x16x128xf32>
    tpu.vector_store %arg10[%c0_9, %c1, %c0_10], %5 {strides = array<i32>} : memref<20x18x128xf32, #tpu.memory_space<vmem>>, vector<2x16x128xf32>,
    %c0_11 = arith.constant 0 : index
    %c0_12 = arith.constant 0 : index
    %c0_13 = arith.constant 0 : index
    %c0_14 = arith.constant 0 : index
    %7 = vector.load %arg4[%c0_11, %c0_12, %c0_13, %c0_14] : memref<1x2x16x128xf32, #tpu.memory_space<vmem>>, vector<1x2x16x128xf32>
    %8 = vector.shape_cast %7 : vector<1x2x16x128xf32> to vector<2x16x128xf32>
    %c18 = arith.constant 18 : index
    %c1_15 = arith.constant 1 : index
    %c0_16 = arith.constant 0 : index
    %9 = vector.load %arg10[%c18, %c1_15, %c0_16] : memref<20x18x128xf32, #tpu.memory_space<vmem>>, vector<2x16x128xf32>
    tpu.vector_store %arg10[%c18, %c1_15, %c0_16], %8 {strides = array<i32>} : memref<20x18x128xf32, #tpu.memory_space<vmem>>, vector<2x16x128xf32>,
    %c0_17 = arith.constant 0 : index
    %c0_18 = arith.constant 0 : index
    %c0_19 = arith.constant 0 : index
    %c0_20 = arith.constant 0 : index
    %10 = vector.load %arg3[%c0_17, %c0_18, %c0_19, %c0_20] : memref<1x16x16x128xf32, #tpu.memory_space<vmem>>, vector<1x16x16x128xf32>
    %11 = vector.shape_cast %10 : vector<1x16x16x128xf32> to vector<16x16x128xf32>
    %c2 = arith.constant 2 : index
    %c1_21 = arith.constant 1 : index
    %c0_22 = arith.constant 0 : index
    %12 = vector.load %arg10[%c2, %c1_21, %c0_22] : memref<20x18x128xf32, #tpu.memory_space<vmem>>, vector<16x16x128xf32>
    tpu.vector_store %arg10[%c2, %c1_21, %c0_22], %11 {strides = array<i32>} : memref<20x18x128xf32, #tpu.memory_space<vmem>>, vector<16x16x128xf32>,
    %c0_23 = arith.constant 0 : index
    %c0_24 = arith.constant 0 : index
    %c0_25 = arith.constant 0 : index
    %13 = vector.load %arg10[%c0_23, %c0_24, %c0_25] : memref<20x18x128xf32, #tpu.memory_space<vmem>>, vector<20x16x128xf32>
    %14 = vector.extract_strided_slice %13 {offsets = [0, 0, 0], sizes = [18, 16, 128], strides = [1, 1, 1]} : vector<20x16x128xf32> to vector<18x16x128xf32>
    %c0_26 = arith.constant 0 : index
    %c0_27 = arith.constant 0 : index
    %c0_28 = arith.constant 0 : index
    %15 = vector.load %arg5[%c0_26, %c0_27, %c0_28] : memref<9x128x128xf32, #tpu.memory_space<vmem>>, vector<1x128x128xf32>
    %16 = vector.shape_cast %15 : vector<1x128x128xf32> to vector<128x128xf32>
    %cst_29 = arith.constant dense<0.000000e+00> : vector<18x16x128xf32>
    %17 = tpu.matmul %14, %16, %cst_29 {dimension_numbers = #tpu.dot_dimension_numbers<[2], [0], [0, 1], [1], [0, 0, 0, 1, 1, 1], [], []>} : vector<18x16x128xf32>, vector<128x128xf32>, vector<18x16x128xf32> -> vector<18x16x128xf32>
    %18 = vector.extract_strided_slice %13 {offsets = [1, 0, 0], sizes = [18, 16, 128], strides = [1, 1, 1]} : vector<20x16x128xf32> to vector<18x16x128xf32>
    %c3 = arith.constant 3 : index
    %c0_30 = arith.constant 0 : index
    %c0_31 = arith.constant 0 : index
    %19 = vector.load %arg5[%c3, %c0_30, %c0_31] : memref<9x128x128xf32, #tpu.memory_space<vmem>>, vector<1x128x128xf32>
    %20 = vector.shape_cast %19 : vector<1x128x128xf32> to vector<128x128xf32>
    %cst_32 = arith.constant dense<0.000000e+00> : vector<18x16x128xf32>
    %21 = tpu.matmul %18, %20, %cst_32 {dimension_numbers = #tpu.dot_dimension_numbers<[2], [0], [0, 1], [1], [0, 0, 0, 1, 1, 1], [], []>} : vector<18x16x128xf32>, vector<128x128xf32>, vector<18x16x128xf32> -> vector<18x16x128xf32>
    %22 = arith.addf %17, %21 : vector<18x16x128xf32>
    %23 = vector.extract_strided_slice %13 {offsets = [2, 0, 0], sizes = [18, 16, 128], strides = [1, 1, 1]} : vector<20x16x128xf32> to vector<18x16x128xf32>
    %c6 = arith.constant 6 : index
    %c0_33 = arith.constant 0 : index
    %c0_34 = arith.constant 0 : index
    %24 = vector.load %arg5[%c6, %c0_33, %c0_34] : memref<9x128x128xf32, #tpu.memory_space<vmem>>, vector<1x128x128xf32>
    %25 = vector.shape_cast %24 : vector<1x128x128xf32> to vector<128x128xf32>
    %cst_35 = arith.constant dense<0.000000e+00> : vector<18x16x128xf32>
    %26 = tpu.matmul %23, %25, %cst_35 {dimension_numbers = #tpu.dot_dimension_numbers<[2], [0], [0, 1], [1], [0, 0, 0, 1, 1, 1], [], []>} : vector<18x16x128xf32>, vector<128x128xf32>, vector<18x16x128xf32> -> vector<18x16x128xf32>
    %27 = arith.addf %22, %26 : vector<18x16x128xf32>
    %c0_36 = arith.constant 0 : index
    %c1_37 = arith.constant 1 : index
    %c0_38 = arith.constant 0 : index
    %28 = vector.load %arg10[%c0_36, %c1_37, %c0_38] : memref<20x18x128xf32, #tpu.memory_space<vmem>>, vector<20x16x128xf32>
    %29 = vector.extract_strided_slice %28 {offsets = [0, 0, 0], sizes = [18, 16, 128], strides = [1, 1, 1]} : vector<20x16x128xf32> to vector<18x16x128xf32>
    %c1_39 = arith.constant 1 : index
    %c0_40 = arith.constant 0 : index
    %c0_41 = arith.constant 0 : index
    %30 = vector.load %arg5[%c1_39, %c0_40, %c0_41] : memref<9x128x128xf32, #tpu.memory_space<vmem>>, vector<1x128x128xf32>
    %31 = vector.shape_cast %30 : vector<1x128x128xf32> to vector<128x128xf32>
    %cst_42 = arith.constant dense<0.000000e+00> : vector<18x16x128xf32>
    %32 = tpu.matmul %29, %31, %cst_42 {dimension_numbers = #tpu.dot_dimension_numbers<[2], [0], [0, 1], [1], [0, 0, 0, 1, 1, 1], [], []>} : vector<18x16x128xf32>, vector<128x128xf32>, vector<18x16x128xf32> -> vector<18x16x128xf32>
    %33 = arith.addf %27, %32 : vector<18x16x128xf32>
    %34 = vector.extract_strided_slice %28 {offsets = [1, 0, 0], sizes = [18, 16, 128], strides = [1, 1, 1]} : vector<20x16x128xf32> to vector<18x16x128xf32>
    %c4 = arith.constant 4 : index
    %c0_43 = arith.constant 0 : index
    %c0_44 = arith.constant 0 : index
    %35 = vector.load %arg5[%c4, %c0_43, %c0_44] : memref<9x128x128xf32, #tpu.memory_space<vmem>>, vector<1x128x128xf32>
    %36 = vector.shape_cast %35 : vector<1x128x128xf32> to vector<128x128xf32>
    %cst_45 = arith.constant dense<0.000000e+00> : vector<18x16x128xf32>
    %37 = tpu.matmul %34, %36, %cst_45 {dimension_numbers = #tpu.dot_dimension_numbers<[2], [0], [0, 1], [1], [0, 0, 0, 1, 1, 1], [], []>} : vector<18x16x128xf32>, vector<128x128xf32>, vector<18x16x128xf32> -> vector<18x16x128xf32>
    %38 = arith.addf %33, %37 : vector<18x16x128xf32>
    %39 = vector.extract_strided_slice %28 {offsets = [2, 0, 0], sizes = [18, 16, 128], strides = [1, 1, 1]} : vector<20x16x128xf32> to vector<18x16x128xf32>
    %c7 = arith.constant 7 : index
    %c0_46 = arith.constant 0 : index
    %c0_47 = arith.constant 0 : index
    %40 = vector.load %arg5[%c7, %c0_46, %c0_47] : memref<9x128x128xf32, #tpu.memory_space<vmem>>, vector<1x128x128xf32>
    %41 = vector.shape_cast %40 : vector<1x128x128xf32> to vector<128x128xf32>
    %cst_48 = arith.constant dense<0.000000e+00> : vector<18x16x128xf32>
    %42 = tpu.matmul %39, %41, %cst_48 {dimension_numbers = #tpu.dot_dimension_numbers<[2], [0], [0, 1], [1], [0, 0, 0, 1, 1, 1], [], []>} : vector<18x16x128xf32>, vector<128x128xf32>, vector<18x16x128xf32> -> vector<18x16x128xf32>
    %43 = arith.addf %38, %42 : vector<18x16x128xf32>
    %c0_49 = arith.constant 0 : index
    %c2_50 = arith.constant 2 : index
    %c0_51 = arith.constant 0 : index
    %44 = vector.load %arg10[%c0_49, %c2_50, %c0_51] : memref<20x18x128xf32, #tpu.memory_space<vmem>>, vector<20x16x128xf32>
    %45 = vector.extract_strided_slice %44 {offsets = [0, 0, 0], sizes = [18, 16, 128], strides = [1, 1, 1]} : vector<20x16x128xf32> to vector<18x16x128xf32>
    %c2_52 = arith.constant 2 : index
    %c0_53 = arith.constant 0 : index
    %c0_54 = arith.constant 0 : index
    %46 = vector.load %arg5[%c2_52, %c0_53, %c0_54] : memref<9x128x128xf32, #tpu.memory_space<vmem>>, vector<1x128x128xf32>
    %47 = vector.shape_cast %46 : vector<1x128x128xf32> to vector<128x128xf32>
    %cst_55 = arith.constant dense<0.000000e+00> : vector<18x16x128xf32>
    %48 = tpu.matmul %45, %47, %cst_55 {dimension_numbers = #tpu.dot_dimension_numbers<[2], [0], [0, 1], [1], [0, 0, 0, 1, 1, 1], [], []>} : vector<18x16x128xf32>, vector<128x128xf32>, vector<18x16x128xf32> -> vector<18x16x128xf32>
    %49 = arith.addf %43, %48 : vector<18x16x128xf32>
    %50 = vector.extract_strided_slice %44 {offsets = [1, 0, 0], sizes = [18, 16, 128], strides = [1, 1, 1]} : vector<20x16x128xf32> to vector<18x16x128xf32>
    %c5 = arith.constant 5 : index
    %c0_56 = arith.constant 0 : index
    %c0_57 = arith.constant 0 : index
    %51 = vector.load %arg5[%c5, %c0_56, %c0_57] : memref<9x128x128xf32, #tpu.memory_space<vmem>>, vector<1x128x128xf32>
    %52 = vector.shape_cast %51 : vector<1x128x128xf32> to vector<128x128xf32>
    %cst_58 = arith.constant dense<0.000000e+00> : vector<18x16x128xf32>
    %53 = tpu.matmul %50, %52, %cst_58 {dimension_numbers = #tpu.dot_dimension_numbers<[2], [0], [0, 1], [1], [0, 0, 0, 1, 1, 1], [], []>} : vector<18x16x128xf32>, vector<128x128xf32>, vector<18x16x128xf32> -> vector<18x16x128xf32>
    %54 = arith.addf %49, %53 : vector<18x16x128xf32>
    %55 = vector.extract_strided_slice %44 {offsets = [2, 0, 0], sizes = [18, 16, 128], strides = [1, 1, 1]} : vector<20x16x128xf32> to vector<18x16x128xf32>
    %c8 = arith.constant 8 : index
    %c0_59 = arith.constant 0 : index
    %c0_60 = arith.constant 0 : index
    %56 = vector.load %arg5[%c8, %c0_59, %c0_60] : memref<9x128x128xf32, #tpu.memory_space<vmem>>, vector<1x128x128xf32>
    %57 = vector.shape_cast %56 : vector<1x128x128xf32> to vector<128x128xf32>
    %cst_61 = arith.constant dense<0.000000e+00> : vector<18x16x128xf32>
    %58 = tpu.matmul %55, %57, %cst_61 {dimension_numbers = #tpu.dot_dimension_numbers<[2], [0], [0, 1], [1], [0, 0, 0, 1, 1, 1], [], []>} : vector<18x16x128xf32>, vector<128x128xf32>, vector<18x16x128xf32> -> vector<18x16x128xf32>
    %59 = arith.addf %54, %58 : vector<18x16x128xf32>
    %c0_62 = arith.constant 0 : index
    %c0_63 = arith.constant 0 : index
    %60 = vector.load %arg6[%c0_62, %c0_63] : memref<1x128xf32, #tpu.memory_space<vmem>>, vector<1x128xf32>
    %61 = vector.shape_cast %60 : vector<1x128xf32> to vector<128xf32>
    %62 = vector.shape_cast %61 : vector<128xf32> to vector<1x1x128xf32>
    %63 = vector.broadcast %62 : vector<1x1x128xf32> to vector<18x16x128xf32>
    %64 = arith.addf %59, %63 : vector<18x16x128xf32>
    %cst_64 = arith.constant 0.000000e+00 : f32
    %65 = vector.broadcast %cst_64 : f32 to vector<18x16x128xf32>
    %66 = arith.maximumf %64, %65 : vector<18x16x128xf32>
    %c16_i32 = arith.constant 16 : i32
    %67 = arith.muli %arg1, %c16_i32 : i32
    %c1_i32 = arith.constant 1 : i32
    %68 = arith.subi %67, %c1_i32 : i32
    %69 = tpu.iota {dimensions = array<i32: 0>} : vector<18x1x1xi32>
    %70 = vector.broadcast %68 : i32 to vector<18x1x1xi32>
    %71 = arith.addi %70, %69 : vector<18x1x1xi32>
    %c0_i32 = arith.constant 0 : i32
    %72 = vector.broadcast %c0_i32 : i32 to vector<18x1x1xi32>
    %73 = arith.cmpi sge, %71, %72 : vector<18x1x1xi32>
    %c16_i32_65 = arith.constant 16 : i32
    %74 = vector.broadcast %c16_i32_65 : i32 to vector<18x1x1xi32>
    %75 = arith.cmpi slt, %71, %74 : vector<18x1x1xi32>
    %76 = arith.andi %73, %75 : vector<18x1x1xi1>
    %cst_66 = arith.constant 0.000000e+00 : f32
    %77 = vector.shape_cast %76 : vector<18x1x1xi1> to vector<18x1x1xi1>
    %78 = vector.broadcast %77 : vector<18x1x1xi1> to vector<18x16x128xi1>
    %79 = vector.broadcast %cst_66 : f32 to vector<18x16x128xf32>
    %80 = arith.select %78, %66, %79 : vector<18x16x128xi1>, vector<18x16x128xf32>
    %c0_67 = arith.constant 0 : index
    %c1_68 = arith.constant 1 : index
    %c0_69 = arith.constant 0 : index
    %81 = vector.load %arg10[%c0_67, %c1_68, %c0_69] : memref<20x18x128xf32, #tpu.memory_space<vmem>>, vector<18x16x128xf32>
    tpu.vector_store %arg10[%c0_67, %c1_68, %c0_69], %80 {strides = array<i32>} : memref<20x18x128xf32, #tpu.memory_space<vmem>>, vector<18x16x128xf32>,
    %c0_70 = arith.constant 0 : index
    %c0_71 = arith.constant 0 : index
    %c0_72 = arith.constant 0 : index
    %82 = vector.load %arg10[%c0_70, %c0_71, %c0_72] : memref<20x18x128xf32, #tpu.memory_space<vmem>>, vector<18x16x128xf32>
    %83 = vector.extract_strided_slice %82 {offsets = [0, 0, 0], sizes = [16, 16, 128], strides = [1, 1, 1]} : vector<18x16x128xf32> to vector<16x16x128xf32>
    %c0_73 = arith.constant 0 : index
    %c0_74 = arith.constant 0 : index
    %c0_75 = arith.constant 0 : index
    %84 = vector.load %arg7[%c0_73, %c0_74, %c0_75] : memref<9x128x128xf32, #tpu.memory_space<vmem>>, vector<1x128x128xf32>
    %85 = vector.shape_cast %84 : vector<1x128x128xf32> to vector<128x128xf32>
    %cst_76 = arith.constant dense<0.000000e+00> : vector<16x16x128xf32>
    %86 = tpu.matmul %83, %85, %cst_76 {dimension_numbers = #tpu.dot_dimension_numbers<[2], [0], [0, 1], [1], [0, 0, 0, 1, 1, 1], [], []>} : vector<16x16x128xf32>, vector<128x128xf32>, vector<16x16x128xf32> -> vector<16x16x128xf32>
    %87 = vector.extract_strided_slice %82 {offsets = [1, 0, 0], sizes = [16, 16, 128], strides = [1, 1, 1]} : vector<18x16x128xf32> to vector<16x16x128xf32>
    %c3_77 = arith.constant 3 : index
    %c0_78 = arith.constant 0 : index
    %c0_79 = arith.constant 0 : index
    %88 = vector.load %arg7[%c3_77, %c0_78, %c0_79] : memref<9x128x128xf32, #tpu.memory_space<vmem>>, vector<1x128x128xf32>
    %89 = vector.shape_cast %88 : vector<1x128x128xf32> to vector<128x128xf32>
    %cst_80 = arith.constant dense<0.000000e+00> : vector<16x16x128xf32>
    %90 = tpu.matmul %87, %89, %cst_80 {dimension_numbers = #tpu.dot_dimension_numbers<[2], [0], [0, 1], [1], [0, 0, 0, 1, 1, 1], [], []>} : vector<16x16x128xf32>, vector<128x128xf32>, vector<16x16x128xf32> -> vector<16x16x128xf32>
    %91 = arith.addf %86, %90 : vector<16x16x128xf32>
    %92 = vector.extract_strided_slice %82 {offsets = [2, 0, 0], sizes = [16, 16, 128], strides = [1, 1, 1]} : vector<18x16x128xf32> to vector<16x16x128xf32>
    %c6_81 = arith.constant 6 : index
    %c0_82 = arith.constant 0 : index
    %c0_83 = arith.constant 0 : index
    %93 = vector.load %arg7[%c6_81, %c0_82, %c0_83] : memref<9x128x128xf32, #tpu.memory_space<vmem>>, vector<1x128x128xf32>
    %94 = vector.shape_cast %93 : vector<1x128x128xf32> to vector<128x128xf32>
    %cst_84 = arith.constant dense<0.000000e+00> : vector<16x16x128xf32>
    %95 = tpu.matmul %92, %94, %cst_84 {dimension_numbers = #tpu.dot_dimension_numbers<[2], [0], [0, 1], [1], [0, 0, 0, 1, 1, 1], [], []>} : vector<16x16x128xf32>, vector<128x128xf32>, vector<16x16x128xf32> -> vector<16x16x128xf32>
    %96 = arith.addf %91, %95 : vector<16x16x128xf32>
    %c0_85 = arith.constant 0 : index
    %c1_86 = arith.constant 1 : index
    %c0_87 = arith.constant 0 : index
    %97 = vector.load %arg10[%c0_85, %c1_86, %c0_87] : memref<20x18x128xf32, #tpu.memory_space<vmem>>, vector<18x16x128xf32>
    %98 = vector.extract_strided_slice %97 {offsets = [0, 0, 0], sizes = [16, 16, 128], strides = [1, 1, 1]} : vector<18x16x128xf32> to vector<16x16x128xf32>
    %c1_88 = arith.constant 1 : index
    %c0_89 = arith.constant 0 : index
    %c0_90 = arith.constant 0 : index
    %99 = vector.load %arg7[%c1_88, %c0_89, %c0_90] : memref<9x128x128xf32, #tpu.memory_space<vmem>>, vector<1x128x128xf32>
    %100 = vector.shape_cast %99 : vector<1x128x128xf32> to vector<128x128xf32>
    %cst_91 = arith.constant dense<0.000000e+00> : vector<16x16x128xf32>
    %101 = tpu.matmul %98, %100, %cst_91 {dimension_numbers = #tpu.dot_dimension_numbers<[2], [0], [0, 1], [1], [0, 0, 0, 1, 1, 1], [], []>} : vector<16x16x128xf32>, vector<128x128xf32>, vector<16x16x128xf32> -> vector<16x16x128xf32>
    %102 = arith.addf %96, %101 : vector<16x16x128xf32>
    %103 = vector.extract_strided_slice %97 {offsets = [1, 0, 0], sizes = [16, 16, 128], strides = [1, 1, 1]} : vector<18x16x128xf32> to vector<16x16x128xf32>
    %c4_92 = arith.constant 4 : index
    %c0_93 = arith.constant 0 : index
    %c0_94 = arith.constant 0 : index
    %104 = vector.load %arg7[%c4_92, %c0_93, %c0_94] : memref<9x128x128xf32, #tpu.memory_space<vmem>>, vector<1x128x128xf32>
    %105 = vector.shape_cast %104 : vector<1x128x128xf32> to vector<128x128xf32>
    %cst_95 = arith.constant dense<0.000000e+00> : vector<16x16x128xf32>
    %106 = tpu.matmul %103, %105, %cst_95 {dimension_numbers = #tpu.dot_dimension_numbers<[2], [0], [0, 1], [1], [0, 0, 0, 1, 1, 1], [], []>} : vector<16x16x128xf32>, vector<128x128xf32>, vector<16x16x128xf32> -> vector<16x16x128xf32>
    %107 = arith.addf %102, %106 : vector<16x16x128xf32>
    %108 = vector.extract_strided_slice %97 {offsets = [2, 0, 0], sizes = [16, 16, 128], strides = [1, 1, 1]} : vector<18x16x128xf32> to vector<16x16x128xf32>
    %c7_96 = arith.constant 7 : index
    %c0_97 = arith.constant 0 : index
    %c0_98 = arith.constant 0 : index
    %109 = vector.load %arg7[%c7_96, %c0_97, %c0_98] : memref<9x128x128xf32, #tpu.memory_space<vmem>>, vector<1x128x128xf32>
    %110 = vector.shape_cast %109 : vector<1x128x128xf32> to vector<128x128xf32>
    %cst_99 = arith.constant dense<0.000000e+00> : vector<16x16x128xf32>
    %111 = tpu.matmul %108, %110, %cst_99 {dimension_numbers = #tpu.dot_dimension_numbers<[2], [0], [0, 1], [1], [0, 0, 0, 1, 1, 1], [], []>} : vector<16x16x128xf32>, vector<128x128xf32>, vector<16x16x128xf32> -> vector<16x16x128xf32>
    %112 = arith.addf %107, %111 : vector<16x16x128xf32>
    %c0_100 = arith.constant 0 : index
    %c2_101 = arith.constant 2 : index
    %c0_102 = arith.constant 0 : index
    %113 = vector.load %arg10[%c0_100, %c2_101, %c0_102] : memref<20x18x128xf32, #tpu.memory_space<vmem>>, vector<18x16x128xf32>
    %114 = vector.extract_strided_slice %113 {offsets = [0, 0, 0], sizes = [16, 16, 128], strides = [1, 1, 1]} : vector<18x16x128xf32> to vector<16x16x128xf32>
    %c2_103 = arith.constant 2 : index
    %c0_104 = arith.constant 0 : index
    %c0_105 = arith.constant 0 : index
    %115 = vector.load %arg7[%c2_103, %c0_104, %c0_105] : memref<9x128x128xf32, #tpu.memory_space<vmem>>, vector<1x128x128xf32>
    %116 = vector.shape_cast %115 : vector<1x128x128xf32> to vector<128x128xf32>
    %cst_106 = arith.constant dense<0.000000e+00> : vector<16x16x128xf32>
    %117 = tpu.matmul %114, %116, %cst_106 {dimension_numbers = #tpu.dot_dimension_numbers<[2], [0], [0, 1], [1], [0, 0, 0, 1, 1, 1], [], []>} : vector<16x16x128xf32>, vector<128x128xf32>, vector<16x16x128xf32> -> vector<16x16x128xf32>
    %118 = arith.addf %112, %117 : vector<16x16x128xf32>
    %119 = vector.extract_strided_slice %113 {offsets = [1, 0, 0], sizes = [16, 16, 128], strides = [1, 1, 1]} : vector<18x16x128xf32> to vector<16x16x128xf32>
    %c5_107 = arith.constant 5 : index
    %c0_108 = arith.constant 0 : index
    %c0_109 = arith.constant 0 : index
    %120 = vector.load %arg7[%c5_107, %c0_108, %c0_109] : memref<9x128x128xf32, #tpu.memory_space<vmem>>, vector<1x128x128xf32>
    %121 = vector.shape_cast %120 : vector<1x128x128xf32> to vector<128x128xf32>
    %cst_110 = arith.constant dense<0.000000e+00> : vector<16x16x128xf32>
    %122 = tpu.matmul %119, %121, %cst_110 {dimension_numbers = #tpu.dot_dimension_numbers<[2], [0], [0, 1], [1], [0, 0, 0, 1, 1, 1], [], []>} : vector<16x16x128xf32>, vector<128x128xf32>, vector<16x16x128xf32> -> vector<16x16x128xf32>
    %123 = arith.addf %118, %122 : vector<16x16x128xf32>
    %124 = vector.extract_strided_slice %113 {offsets = [2, 0, 0], sizes = [16, 16, 128], strides = [1, 1, 1]} : vector<18x16x128xf32> to vector<16x16x128xf32>
    %c8_111 = arith.constant 8 : index
    %c0_112 = arith.constant 0 : index
    %c0_113 = arith.constant 0 : index
    %125 = vector.load %arg7[%c8_111, %c0_112, %c0_113] : memref<9x128x128xf32, #tpu.memory_space<vmem>>, vector<1x128x128xf32>
    %126 = vector.shape_cast %125 : vector<1x128x128xf32> to vector<128x128xf32>
    %cst_114 = arith.constant dense<0.000000e+00> : vector<16x16x128xf32>
    %127 = tpu.matmul %124, %126, %cst_114 {dimension_numbers = #tpu.dot_dimension_numbers<[2], [0], [0, 1], [1], [0, 0, 0, 1, 1, 1], [], []>} : vector<16x16x128xf32>, vector<128x128xf32>, vector<16x16x128xf32> -> vector<16x16x128xf32>
    %128 = arith.addf %123, %127 : vector<16x16x128xf32>
    %c0_115 = arith.constant 0 : index
    %c0_116 = arith.constant 0 : index
    %129 = vector.load %arg8[%c0_115, %c0_116] : memref<1x128xf32, #tpu.memory_space<vmem>>, vector<1x128xf32>
    %130 = vector.shape_cast %129 : vector<1x128xf32> to vector<128xf32>
    %131 = vector.shape_cast %130 : vector<128xf32> to vector<1x1x128xf32>
    %132 = vector.broadcast %131 : vector<1x1x128xf32> to vector<16x16x128xf32>
    %133 = arith.addf %128, %132 : vector<16x16x128xf32>
    %c0_117 = arith.constant 0 : index
    %c0_118 = arith.constant 0 : index
    %c0_119 = arith.constant 0 : index
    %c0_120 = arith.constant 0 : index
    %134 = vector.load %arg3[%c0_117, %c0_118, %c0_119, %c0_120] : memref<1x16x16x128xf32, #tpu.memory_space<vmem>>, vector<1x16x16x128xf32>
    %135 = vector.shape_cast %134 : vector<1x16x16x128xf32> to vector<16x16x128xf32>
    %136 = arith.addf %133, %135 : vector<16x16x128xf32>
    %c0_121 = arith.constant 0 : index
    %c0_122 = arith.constant 0 : index
    %c0_123 = arith.constant 0 : index
    %c0_124 = arith.constant 0 : index
    %137 = vector.load %arg9[%c0_121, %c0_122, %c0_123, %c0_124] : memref<1x16x16x128xf32, #tpu.memory_space<vmem>>, vector<1x16x16x128xf32>
    %138 = vector.shape_cast %137 : vector<1x16x16x128xf32> to vector<16x16x128xf32>
    %139 = vector.shape_cast %136 : vector<16x16x128xf32> to vector<1x16x16x128xf32>
    tpu.vector_store %arg9[%c0_121, %c0_122, %c0_123, %c0_124], %139 {strides = array<i32>} : memref<1x16x16x128xf32, #tpu.memory_space<vmem>>, vector<1x16x16x128xf32>,
    return
  }
  func.func @transform_0(%arg0: i32, %arg1: i32) -> (i32, i32, i32, i32) {
    %c1_i32 = arith.constant 1 : i32
    %0 = arith.addi %arg1, %c1_i32 : i32
    %c8_i32 = arith.constant 8 : i32
    %1 = arith.muli %0, %c8_i32 : i32
    %c1_i32_0 = arith.constant 1 : i32
    %2 = arith.subi %1, %c1_i32_0 : i32
    %c0_i32 = arith.constant 0 : i32
    %c0_i32_1 = arith.constant 0 : i32
    %c0_i32_2 = arith.constant 0 : i32
    return %arg0, %2, %c0_i32, %c0_i32_1 : i32, i32, i32, i32
  }
  func.func @transform_1(%arg0: i32, %arg1: i32) -> (i32, i32, i32, i32) {
    %c1_i32 = arith.constant 1 : i32
    %0 = arith.addi %arg1, %c1_i32 : i32
    %c0_i32 = arith.constant 0 : i32
    %c0_i32_0 = arith.constant 0 : i32
    %c0_i32_1 = arith.constant 0 : i32
    return %arg0, %0, %c0_i32, %c0_i32_0 : i32, i32, i32, i32
  }
  func.func @transform_2(%arg0: i32, %arg1: i32) -> (i32, i32, i32, i32) {
    %c2_i32 = arith.constant 2 : i32
    %0 = arith.addi %arg1, %c2_i32 : i32
    %c8_i32 = arith.constant 8 : i32
    %1 = arith.muli %0, %c8_i32 : i32
    %c0_i32 = arith.constant 0 : i32
    %c0_i32_0 = arith.constant 0 : i32
    %c0_i32_1 = arith.constant 0 : i32
    return %arg0, %1, %c0_i32, %c0_i32_0 : i32, i32, i32, i32
  }
  func.func @transform_3(%arg0: i32, %arg1: i32) -> (i32, i32, i32) {
    %c0_i32 = arith.constant 0 : i32
    %c0_i32_0 = arith.constant 0 : i32
    %c0_i32_1 = arith.constant 0 : i32
    %c0_i32_2 = arith.constant 0 : i32
    return %c0_i32, %c0_i32_0, %c0_i32_1 : i32, i32, i32
  }
  func.func @transform_4(%arg0: i32, %arg1: i32) -> (i32, i32) {
    %c0_i32 = arith.constant 0 : i32
    %c0_i32_0 = arith.constant 0 : i32
    %c0_i32_1 = arith.constant 0 : i32
    return %c0_i32, %c0_i32_0 : i32, i32
  }
  func.func @transform_5(%arg0: i32, %arg1: i32) -> (i32, i32, i32) {
    %c0_i32 = arith.constant 0 : i32
    %c0_i32_0 = arith.constant 0 : i32
    %c0_i32_1 = arith.constant 0 : i32
    %c0_i32_2 = arith.constant 0 : i32
    return %c0_i32, %c0_i32_0, %c0_i32_1 : i32, i32, i32
  }
  func.func @transform_6(%arg0: i32, %arg1: i32) -> (i32, i32) {
    %c0_i32 = arith.constant 0 : i32
    %c0_i32_0 = arith.constant 0 : i32
    %c0_i32_1 = arith.constant 0 : i32
    return %c0_i32, %c0_i32_0 : i32, i32
  }
  func.func @transform_7(%arg0: i32, %arg1: i32) -> (i32, i32, i32, i32) {
    %c0_i32 = arith.constant 0 : i32
    %c0_i32_0 = arith.constant 0 : i32
    %c0_i32_1 = arith.constant 0 : i32
    return %arg0, %arg1, %c0_i32, %c0_i32_0 : i32, i32, i32, i32
  }
}

</mosaic_0001>

<bundles_post_ra>
// kernel: tpu_custom_call.1
= control target key start
LH: loop header
LB: loop body
LE: loop exit
PB: predicated region body
PF: predicated region fallthrough
CT: control target
= control target key end

     0   :  { %s12040_s0 = inlined_call_operand.hbm [shape: f32[2,34,16,128], index: 0, kind: input, shape index: {}]   ;;  %s12041_s1 = inlined_call_operand.hbm [shape: f32[2,34,16,128], index: 1, kind: input, shape index: {}]   ;;  %s12042_s2 = inlined_call_operand.hbm [shape: f32[2,34,16,128], index: 2, kind: input, shape index: {}]   ;;  %s12043_s3 = inlined_call_operand.hbm [shape: f32[9,128,128], index: 3, kind: input, shape index: {}]   ;;  %s12044_s4 = inlined_call_operand.vmem [shape: f32[1,128], index: 4, kind: input, shape index: {}]   ;;  %s12045_s5 = inlined_call_operand.hbm [shape: f32[9,128,128], index: 5, kind: input, shape index: {}]   ;;  %s12046_s6 = inlined_call_operand.vmem [shape: f32[1,128], index: 6, kind: input, shape index: {}]   ;;  %s12047_s7 = inlined_call_operand.hbm [shape: f32[2,16,16,128], index: 7, kind: output, shape index: {}]  }
   0x1   :  { %12137 = sst [smem:[#allocation45_spill]] %s12041_s1 }
   0x2   :  { %12138 = sst [smem:[#allocation46_spill]] %s12043_s3 }
   0x3   :  { %12139 = sst [smem:[#allocation47_spill]] %s12047_s7 }
   0x4   :  { %12 = vsyncpa [#allocation4], 0 }
   0x5   :  { %14 = vsyncpa [#allocation4 + $0x1], 0 }
   0x6   :  { %15 = vsyncpa [#allocation7], 0 }
   0x7   :  { %17 = vsyncpa [#allocation7 + $0x1], 0 }
   0x8   :  { %18 = vsyncpa [#allocation10], 0 }
   0x9   :  { %19 = vsyncpa [#allocation5], 0 }
   0xa   :  { %21 = vsyncpa [#allocation5 + $0x1], 0  ;;  %s10353_s24 = smov 0   ;;  %s10355_s25 = smov 0  }
   0xb   :  { %s10357_s26 = smov 0   ;;  %s10359_s27 = smov 0  }
   0xc   :  { %s10361_s28 = smov 0   ;;  %s10363_s29 = smov 0  }
   0xd LB: > { %12140 = sst [smem:[#allocation17_spill]] %s10280_s24  ;;  %s10384_s30 = sadd.s32 4294967295, %s10300_s29   ;;  %s10300_s29 = sphi %s10363_s29, %s27_s29   ;;  %s10296_s28 = sphi %s10361_s28, %s12248_s28   ;;  %s10292_s27 = sphi %s10359_s27, %s12247_s27   ;;  %s10288_s26 = sphi %s10357_s26, %s12246_s26   ;;  %s10284_s25 = sphi %s10355_s25, %s12250_s25   ;;  %s10280_s24 = sphi %s10353_s24, %s12249_s24  }
   0xe   : > { %12141 = sst [smem:[#allocation18_spill]] %s10288_s26  ;;  %s6404_s8 = sadd.s32 4294967294, %s10300_s29  }
   0xf   : > { %12142 = sst [smem:[#allocation19_spill]] %s10296_s28  ;;  %p61_p0 = scmp.ne.s32.totalorder %s10288_s26, %s10284_s25 }
  0x10   : > { %12143 = sst [smem:[#allocation20_spill]] %s10300_s29  ;;  %p62_p1 = scmp.eq.s32.totalorder %s10300_s29, 0 }
  0x11   : > { %p67_p2 = scmp.ne.s32.totalorder %s10284_s25, %s10280_s24  ;;  %p12049_p3 = scmp.eq.s32.totalorder %s10384_s30, 0 }
  0x12   : > { %p239_p4 = scmp.eq.s32.totalorder %s10384_s30, 1  ;;  %p10395_p5 = por %p62_p1, %p61_p0 }
  0x13   : > { %p245_p6 = scmp.eq.s32.totalorder %s6404_s8, 1  ;;  %p10401_p7 = por %p12049_p3, %p67_p2 }
  0x14   : > { %p10405_p8 = por %p239_p4, %p61_p0  ;;  %p6405_p10 = scmp.ge.s32.totalorder %s10300_s29, 1 }
  0x15   : > { %s12145_s11 = scalar_select %p10401_p7, 1, 0 }
  0x16   : > { %s12146_s12 = scalar_select %p10405_p8, 1, 0 }
  0x17   : > { %p10409_p9 = por %p245_p6, %p67_p2  ;;  %p252_p11 = scmp.lt.s32.totalorder %s10300_s29, 3 }
  0x18   : > { %s10302_s15 = smov [#allocation9]   ;;  %s39_s18 = sadd.s32 1, %s10296_s28 }
  0x19   : > { %s12147_s13 = scalar_select %p10409_p9, 1, 0 }
  0x1a   : > { %p10415_p12 = pnand %p6405_p10, %p252_p11  ;;  %s264_s16 = sshll.u32 %s10302_s15, 4  ;;  %s10419_s16 = int_to_ptr.vmem [resolvable:$true] %s264_s16 }
  0x1b   : > { %12148 = sst [smem:[#allocation21_spill]] %s12147_s13  ;;  %s10433_s19 = sand.u32 1, %s10288_s26  }
  0x1c   : > { %s12149_s14 = scalar_select %p10415_p12, 1, 0 }
  0x1d   : > { %p9947_p13 = pneg %p10415_p12  ;;  %p10435_p4 = scmp.ge.s32.totalorder %s39_s18, 2 }
  0x1e   : > { %s12152_s3 = sld [smem:[#allocation46_spill]] }
  0x1f   : > { %p10427_p2 = pnand %p9947_p13, %p12049_p3 }
  0x21   : > { %s12150_s17 = scalar_select %p10427_p2, 1, 0 }
  0x22   : > { %p12061_p10 = pneg %p10427_p2 }
  0x24   : > { %s10062_s23 = scalar_lea.hbm %s12152_s3, 18432 }
  0x25   : > { %p10063_p6 = scmp.ne.s32.totalorder %s12152_s3, %s10062_s23  ;;  %p10069_p0 = scmp.lt.u32.totalorder %s10062_s23, %s12152_s3 }
  0x27   : > { %p10065_p11 = pnand %p12061_p10, %p10063_p6 }
  0x29   : > { %p10066_p13 = pneg %p10065_p11 }
  0x2b   : > { %p10071_p3 = pnand %p10069_p0, %p10066_p13 }
  0x2d   : > { %10074 = shalt.err (!%p10071_p3)
}
  0x2e   : > { %s10075_s21 = scalar_lea.vmem %s10419_s16, 18432  ;;  %p10083_p7 = scmp.lt.s32.totalorder %s10419_s16, %s10419_s16 }
  0x2f   : > { %p10076_p1 = scmp.ne.s32.totalorder %s10419_s16, %s10075_s21  ;;  %p10084_p6 = scmp.lt.s32.totalorder %s10075_s21, %s10075_s21 }
  0x31   : > { %p10078_p9 = pnand %p10076_p1, %p12061_p10  ;;  %p10085_p11 = por %p10084_p6, %p10083_p7 }
  0x33   : > { %p10079_p8 = pneg %p10078_p9 }
  0x35   : > { %p10086_p12 = pnand %p10085_p11, %p10079_p8 }
  0x37   : > { %10089 = shalt.err (!%p10086_p12)
}
  0x38   : > { %s12055_s9 = smov 128   ;;  %s12057_s13 = smov 8  }
  0x39   : > { %9950 = dma.hbm_to_vmem [thread:$0]  (!%p10427_p2), %s12152_s3, 18432, %s10419_s16, [#allocation10], %s12055_s9, %s12055_s9, %s12057_s13  }
  0x3a   : > { %s12252_s18 = smov (%p10435_p4, %s39_s18), 0  ;;  %p12154_p3 = scmp.lt.s32.totalorder %s10300_s29, 2 }
  0x3b   : > { %12153 = sst [smem:[#allocation22_spill]] %s12252_s18  ;;  %s49_s15 = ssub.s32 %s10296_s28, %s12252_s18 }
  0x3c   : > { %p10477_p7 = pnand %p12154_p3, %p10395_p5  ;;  %s10484_s21 = smul.u32 8704, %s10296_s28 }
  0x3d   : > { %p52_p8 = scmp.eq.s32.totalorder %s49_s15, 0  ;;  %s324_s24 = sand.u32 1, %s10300_s29  }
  0x3e   : > { %s12155_s8 = scalar_select %p10477_p7, 1, 0 }
  0x3f   : > { %s6411_s7 = sshll.u32 %s10433_s19, 8  ;;  %s12156_s22 = sadd.s32 1, %s10288_s26 }
  0x40   : > { %s10491_s16 = scalar_select %p52_p8, %s10288_s26, %s12156_s22  }
  0x41   : > { %s12158_s1 = sld [smem:[#allocation45_spill]]  ;;  %s328_s9 = scalar_lea.vmem [#allocation6], %s6411_s7 }
  0x42   : > { %12157 = sst [smem:[#allocation23_spill]] %s10491_s16  ;;  %s347_s13 = sshll.u32 %s328_s9, 4  ;;  %s10499_s13 = int_to_ptr.vmem [resolvable:$true] %s347_s13 }
  0x43   : > { %s10501_s18 = scalar_lea.sflag [#allocation7], %s324_s24  ;;  %p10506_p9 = pneg %p10477_p7 }
  0x45   : > { %s12159_s22 = scalar_select %p10506_p9, 1, 0 }
  0x47   : > { %s6292_s10 = scalar_lea.hbm %s12158_s1, %s10484_s21  ;;  %s10095_s20 = scalar_lea.hbm %s12158_s1, 17408 }
  0x48   : > { %s10497_s3 = scalar_lea.hbm %s6292_s10, 4096  ;;  %s10120_s15 = scalar_lea.hbm %s6292_s10, 8192 }
  0x49   : > { %p10091_p5 = scmp.ne.s32.totalorder %s10497_s3, %s10120_s15  ;;  %p10096_p1 = scmp.lt.u32.totalorder %s10497_s3, %s12158_s1 }
  0x4a   : > { %p10097_p4 = scmp.lt.u32.totalorder %s10095_s20, %s10120_s15  ;;  %p10099_p6 = scmp.lt.u32.totalorder %s10120_s15, %s10497_s3 }
  0x4b   : > { %p10093_p12 = pnand %p10506_p9, %p10091_p5 }
  0x4c   : > { %p10098_p13 = por %p10097_p4, %p10096_p1 }
  0x4d   : > { %p10094_p0 = pneg %p10093_p12 }
  0x4e   : > { %p10100_p11 = por %p10099_p6, %p10098_p13 }
  0x50   : > { %p10101_p3 = pnand %p10100_p11, %p10094_p0 }
  0x52   : > { %10104 = shalt.err (!%p10101_p3)
}
  0x53   : > { %s10105_s24 = scalar_lea.vmem %s10499_s13, 4096  ;;  %s10305_s10 = smov [#allocation6]  }
  0x54   : > { %p10106_p8 = scmp.ne.s32.totalorder %s10499_s13, %s10105_s24  ;;  %s10110_s7 = sshll.u32 %s10305_s10, 4  ;;  %s10111_s7 = int_to_ptr.vmem [resolvable:$false] %s10110_s7 }
  0x55   : > { %s10112_s28 = scalar_lea.vmem %s10111_s7, 8192  ;;  %p10113_p10 = scmp.lt.s32.totalorder %s10499_s13, %s10111_s7 }
  0x56   : > { %p10108_p5 = pnand %p10106_p8, %p10506_p9  ;;  %p10114_p2 = scmp.lt.s32.totalorder %s10112_s28, %s10105_s24 }
  0x58   : > { %p10109_p12 = pneg %p10108_p5  ;;  %p10115_p1 = por %p10114_p2, %p10113_p10 }
  0x5a   : > { %p10116_p4 = pnand %p10115_p1, %p10109_p12 }
  0x5c   : > { %10119 = shalt.err (!%p10116_p4)
}
  0x5d   : > { %s12160_s15 = smov 8   ;;  %s12161_s9 = smov 128  }
  0x5e   : > { %9960 = dma.hbm_to_vmem [thread:$0]  (!%p10477_p7), %s10497_s3, 4096, %s10499_s13, %s10501_s18, %s12161_s9, %s12161_s9, %s12160_s15  }
  0x5f   : > { %s10306_s20 = smov [#allocation11]   ;;  %s6409_s10 = sshll.u32 %s10433_s19, 5 }
  0x60   : > { %s280_s23 = sshll.u32 %s10306_s20, 4  ;;  %s10121_s28 = scalar_lea.hbm %s12045_s5, 18432  ;;  %s281_s23 = int_to_ptr.vmem [resolvable:$true] %s280_s23 }
  0x61   : > { %p10122_p2 = scmp.ne.s32.totalorder %s12045_s5, %s10121_s28  ;;  %p12162_p10 = scmp.ne.s32.totalorder %s12150_s17, 0 }
  0x62   : > { %p10128_p11 = scmp.lt.u32.totalorder %s10121_s28, %s12045_s5 }
  0x63   : > { %p12163_p0 = pneg %p12162_p10 }
  0x65   : > { %p10124_p13 = pnand %p10122_p2, %p12163_p0 }
  0x67   : > { %p10125_p6 = pneg %p10124_p13 }
  0x69   : > { %p10130_p3 = pnand %p10128_p11, %p10125_p6 }
  0x6b   : > { %10133 = shalt.err (!%p10130_p3)
}
  0x6c   : > { %s10134_s3 = scalar_lea.vmem %s281_s23, 18432  ;;  %p12164_p5 = pmov %p12163_p0 }
  0x6d   : > { %p10135_p8 = scmp.ne.s32.totalorder %s281_s23, %s10134_s3  ;;  %p10142_p4 = scmp.lt.s32.totalorder %s281_s23, %s281_s23 }
  0x6e   : > { %p10143_p7 = scmp.lt.s32.totalorder %s10134_s3, %s10134_s3 }
  0x6f   : > { %p10137_p12 = pnand %p10135_p8, %p12164_p5 }
  0x70   : > { %p10144_p9 = por %p10143_p7, %p10142_p4 }
  0x71   : > { %p10138_p1 = pneg %p10137_p12 }
  0x73   : > { %p10145_p0 = pnand %p10144_p9, %p10138_p1 }
  0x75   : > { %10148 = shalt.err (!%p10145_p0)
}
  0x76   : > { %9953 = dma.hbm_to_vmem [thread:$0]  (!%p12162_p10), %s12045_s5, 18432, %s281_s23, [#allocation10], %s12161_s9, %s12161_s9, %s12160_s15  }
  0x77   : > { %s6430_s29 = sadd.s32 3584, %s10484_s21  ;;  %s301_s13 = scalar_lea.vmem [#allocation3], %s6409_s10 }
  0x78   : > { %s314_s16 = sshll.u32 %s301_s13, 4  ;;  %s10563_s24 = scalar_lea.hbm %s12040_s0, %s6430_s29  ;;  %s10565_s16 = int_to_ptr.vmem [resolvable:$true] %s314_s16 }
  0x79   : > { %s298_s17 = scalar_lea.sflag [#allocation4], %s10433_s19  ;;  %s10149_s28 = scalar_lea.hbm %s10563_s24, 512 }
  0x7a   : > { %p10150_p7 = scmp.ne.s32.totalorder %s10563_s24, %s10149_s28  ;;  %p12165_p9 = scmp.ne.s32.totalorder %s12159_s22, 0 }
  0x7b   : > { %s10154_s1 = scalar_lea.hbm %s12040_s0, 17408  ;;  %p10155_p13 = scmp.lt.u32.totalorder %s10563_s24, %s12040_s0 }
  0x7c   : > { %p10152_p2 = pnand %p10150_p7, %p12165_p9  ;;  %p10156_p6 = scmp.lt.u32.totalorder %s10154_s1, %s10149_s28 }
  0x7d   : > { %p10158_p3 = scmp.lt.u32.totalorder %s10149_s28, %s10563_s24 }
  0x7e   : > { %p10153_p10 = pneg %p10152_p2  ;;  %p10157_p11 = por %p10156_p6, %p10155_p13 }
  0x80   : > { %p10159_p8 = por %p10158_p3, %p10157_p11 }
  0x82   : > { %p10160_p5 = pnand %p10159_p8, %p10153_p10 }
  0x84   : > { %10163 = shalt.err (!%p10160_p5)
}
  0x85   : > { %s10164_s29 = scalar_lea.vmem %s10565_s16, 512  ;;  %s10307_s20 = smov [#allocation3]  }
  0x86   : > { %p10165_p12 = scmp.ne.s32.totalorder %s10565_s16, %s10164_s29  ;;  %s10169_s7 = sshll.u32 %s10307_s20, 4  ;;  %s10170_s7 = int_to_ptr.vmem [resolvable:$false] %s10169_s7 }
  0x87   : > { %s10171_s23 = scalar_lea.vmem %s10170_s7, 1024  ;;  %p10172_p0 = scmp.lt.s32.totalorder %s10565_s16, %s10170_s7 }
  0x88   : > { %p10167_p1 = pnand %p10165_p12, %p12165_p9  ;;  %p10173_p7 = scmp.lt.s32.totalorder %s10171_s23, %s10164_s29 }
  0x8a   : > { %p10168_p4 = pneg %p10167_p1  ;;  %p10174_p2 = por %p10173_p7, %p10172_p0 }
  0x8c   : > { %p10175_p13 = pnand %p10174_p2, %p10168_p4 }
  0x8e   : > { %10178 = shalt.err (!%p10175_p13)
}
  0x8f   : > { %p12166_p10 = scmp.ne.s32.totalorder %s12155_s8, 0  ;;  %s6301_s1 = scalar_lea.hbm %s12042_s2, %s10484_s21 }
  0x90   : > { %s361_s26 = scalar_lea.vmem [#allocation8], %s6409_s10  ;;  %s10600_s29 = scalar_lea.hbm %s6301_s1, 8192 }
  0x91   : > { %9957 = dma.hbm_to_vmem [thread:$0]  (!%p12166_p10), %s10563_s24, 512, %s10565_s16, %s298_s17, %s12161_s9, %s12161_s9, %s12160_s15  }
  0x92   : > { %s373_s13 = sshll.u32 %s361_s26, 4  ;;  %s10209_s20 = scalar_lea.hbm %s6301_s1, 8704  ;;  %s10602_s13 = int_to_ptr.vmem [resolvable:$true] %s373_s13 }
  0x93   : > { %p10180_p6 = scmp.ne.s32.totalorder %s10600_s29, %s10209_s20  ;;  %s10184_s17 = scalar_lea.hbm %s12042_s2, 17408 }
  0x94   : > { %p10185_p8 = scmp.lt.u32.totalorder %s10600_s29, %s12042_s2  ;;  %p10186_p5 = scmp.lt.u32.totalorder %s10184_s17, %s10209_s20 }
  0x95   : > { %p10182_p11 = pnand %p10180_p6, %p12165_p9  ;;  %p10188_p1 = scmp.lt.u32.totalorder %s10209_s20, %s10600_s29 }
  0x96   : > { %p10187_p12 = por %p10186_p5, %p10185_p8 }
  0x97   : > { %p10183_p3 = pneg %p10182_p11 }
  0x98   : > { %p10189_p4 = por %p10188_p1, %p10187_p12 }
  0x9a   : > { %p10190_p0 = pnand %p10189_p4, %p10183_p3 }
  0x9c   : > { %10193 = shalt.err (!%p10190_p0)
}
  0x9d   : > { %s10194_s10 = scalar_lea.vmem %s10602_s13, 512  ;;  %s10308_s7 = smov [#allocation8]  }
  0x9e   : > { %p10195_p7 = scmp.ne.s32.totalorder %s10602_s13, %s10194_s10  ;;  %s10199_s23 = sshll.u32 %s10308_s7, 4  ;;  %s10200_s23 = int_to_ptr.vmem [resolvable:$false] %s10199_s23 }
  0x9f   : > { %s10201_s28 = scalar_lea.vmem %s10200_s23, 1024  ;;  %p10202_p6 = scmp.lt.s32.totalorder %s10602_s13, %s10200_s23 }
  0xa0   : > { %p10197_p2 = pnand %p10195_p7, %p12165_p9  ;;  %p10203_p11 = scmp.lt.s32.totalorder %s10201_s28, %s10194_s10 }
  0xa2   : > { %p10198_p13 = pneg %p10197_p2  ;;  %p10204_p8 = por %p10203_p11, %p10202_p6 }
  0xa4   : > { %p10205_p5 = pnand %p10204_p8, %p10198_p13 }
  0xa6   : > { %10208 = shalt.err (!%p10205_p5)
}
  0xa7   : > { %9963 = dma.hbm_to_vmem [thread:$0]  (!%p12166_p10), %s10600_s29, 512, %s10602_s13, %s10501_s18, %s12161_s9, %s12161_s9, %s12160_s15  }
  0xa8   : > { %p12167_p9 = scmp.ne.s32.totalorder %s12149_s14, 0 }
  0xaa   : > { %385 = sbr.rel (%p12167_p9) target bundleno = 1798 (0x706), region = 48 }
  0xb1   : > { %s10631_s22 = sand.u32 1, %s10284_s25   ;;  %p12168_p3 = scmp.ne.s32.totalorder %s12145_s11, 0 }
  0xb2   : > { %s6416_s3 = sshll.u32 %s10631_s22, 5  ;;  %s388_s1 = scalar_lea.sflag [#allocation4], %s10631_s22 }
  0xb3   : > { %s10635_s26 = scalar_lea.vmem [#allocation3], %s6416_s3 }
  0xb4   : > { %10263 = dma.done.wait (%p12168_p3), %s388_s1, 512  }
  0xb5   : > { %10265 = vsyncadd (%p12168_p3), %s388_s1, 4294966784  ;;  %s396_s14 = sand.u32 1, %s10384_s30   ;;  %s6417_s18 = sshll.u32 %s10631_s22, 8 }
  0xb6   : > { %s397_s8 = scalar_lea.sflag [#allocation7], %s396_s14  ;;  %s10645_s15 = scalar_lea.vmem [#allocation6], %s6417_s18 }
  0xb7   : > { %10267 = dma.done.wait (%p12168_p3), %s397_s8, 4608  }
  0xb8   : > { %10269 = vsyncadd (%p12168_p3), %s397_s8, 4294962688  ;;  %s10651_s9 = scalar_lea.vmem [#allocation8], %s6416_s3  ;;  %p12169_p10 = scmp.eq.s32.totalorder %s10384_s30, 0 }
  0xba   : > { %10271 = dma.done.wait (%p12169_p10), [#allocation10], 36864   ;;  %p12170_p12 = pmov %p12169_p10 }
  0xbb   : > { %v12071_v0 = vmov 0.0   ;;  %v652_v1 = vld [vmem:[#allocation9 + $0x180] sm:$0xff]  ;;  %v653_v2 = vld [vmem:[#allocation9 + $0x188] sm:$0xff]  ;;  %v654_v3 = vld [vmem:[#allocation9 + $0x190] sm:$0xff]  ;;  %s11891_s20 = scalar_lea.vmem [#allocation12], %s6417_s18  ;;  %s6431_s16 = sshll.u32 %s10292_s27, 12 }
  0xbc   : > { %10273 = vsyncadd (%p12170_p12), [#allocation10], 4294930432  ;;  %474 = vst [vmem:[#allocation2 + $0x18] sm:$0x1] %v12071_v0  ;;  %v8826_v4 = vpack.c.bf16 %v653_v2, %v652_v1  ;;  %v655_v5 = vld [vmem:[#allocation9 + $0x198] sm:$0xff]  ;;  %v656_v7 = vld [vmem:[#allocation9 + $0x1a0] sm:$0xff] }
  0xbd   : > { %473 = vst [vmem:[#allocation2] sm:$0x1] %v12071_v0  ;;  %475 = vst [vmem:[#allocation2 + $0x30] sm:$0x1] %v12071_v0  ;;  %v8830_v6 = vpack.c.bf16 %v655_v5, %v654_v3  ;;  %v657_v8 = vld [vmem:[#allocation9 + $0x1a8] sm:$0xff]  ;;  %v10698_v10 = vld [vmem:[%s10635_s26 + $0x10] sm:$0xff] }
  0xbe   : > { %476 = vst [vmem:[#allocation2 + $0x48] sm:$0x1] %v12071_v0  ;;  %477 = vst [vmem:[#allocation2 + $0x60] sm:$0x1] %v12071_v0  ;;  %8827 = vmatprep.subr.bf16.mxu0 %v8826_v4  ;;  %9402 = vmatprep.subr.bf16.mxu1 %v8826_v4  ;;  %v8834_v9 = vpack.c.bf16 %v657_v8, %v656_v7  ;;  %v10701_v11 = vld [vmem:[%s10635_s26 + $0x18] sm:$0xff]  ;;  %v658_v12 = vld [vmem:[#allocation9 + $0x1b0] sm:$0xff] }
  0xbf   : > { %478 = vst [vmem:[#allocation2 + $0x78] sm:$0x1] %v12071_v0  ;;  %479 = vst [vmem:[#allocation2 + $0x90] sm:$0x1] %v12071_v0  ;;  %8829 = vmatpush3.bf16.msra.mxu0 %v8826_v4  ;;  %9410 = vmatpush3.bf16.msra.mxu1 %v8826_v4  ;;  %v659_v13 = vld [vmem:[#allocation9 + $0x1b8] sm:$0xff]  ;;  %v10706_v14 = vld [vmem:[%s10645_s15] sm:$0xff] }
  0xc0   : > { %480 = vst [vmem:[#allocation2 + $0xa8] sm:$0x1] %v12071_v0  ;;  %481 = vst [vmem:[#allocation2 + $0xc0] sm:$0x1] %v12071_v0  ;;  %8831 = vmatprep.subr.bf16.mxu0 %v8830_v6  ;;  %9403 = vmatprep.subr.bf16.mxu1 %v8830_v6  ;;  %v10710_v15 = vld [vmem:[%s10645_s15 + $0x8] sm:$0xff]  ;;  %v10714_v16 = vld [vmem:[%s10645_s15 + $0x10] sm:$0xff]  ;;  %v8838_v18 = vpack.c.bf16 %v659_v13, %v658_v12 }
  0xc1   : > { %482 = vst [vmem:[#allocation2 + $0xd8] sm:$0x1] %v12071_v0  ;;  %483 = vst [vmem:[#allocation2 + $0xf0] sm:$0x1] %v12071_v0  ;;  %v10717_v17 = vld [vmem:[%s10645_s15 + $0x18] sm:$0xff]  ;;  %v10722_v19 = vld [vmem:[%s10645_s15 + $0x20] sm:$0xff] }
  0xc2   : > { %484 = vst [vmem:[#allocation2 + $0x108] sm:$0x1] %v12071_v0  ;;  %485 = vst [vmem:[#allocation2 + $0x120] sm:$0x1] %v12071_v0  ;;  %v10725_v20 = vld [vmem:[%s10645_s15 + $0x28] sm:$0xff]  ;;  %v660_v21 = vld [vmem:[#allocation9 + $0x1c0] sm:$0xff] }
  0xc3   : > { %486 = vst [vmem:[#allocation2 + $0x138] sm:$0x1] %v12071_v0  ;;  %487 = vst [vmem:[#allocation2 + $0x150] sm:$0x1] %v12071_v0  ;;  %8833 = vmatpush3.bf16.msra.mxu0 %v8830_v6  ;;  %9411 = vmatpush3.bf16.msra.mxu1 %v8830_v6  ;;  %v661_v22 = vld [vmem:[#allocation9 + $0x1c8] sm:$0xff]  ;;  %v10730_v23 = vld [vmem:[%s10645_s15 + $0x30] sm:$0xff] }
  0xc4   : > { %488 = vst [vmem:[#allocation2 + $0x168] sm:$0x1] %v12071_v0  ;;  %489 = vst [vmem:[#allocation2 + $0x180] sm:$0x1] %v12071_v0  ;;  %8835 = vmatprep.subr.bf16.mxu0 %v8834_v9  ;;  %9404 = vmatprep.subr.bf16.mxu1 %v8834_v9  ;;  %v10734_v24 = vld [vmem:[%s10645_s15 + $0x38] sm:$0xff]  ;;  %v10738_v25 = vld [vmem:[%s10645_s15 + $0x40] sm:$0xff]  ;;  %v8842_v28 = vpack.c.bf16 %v661_v22, %v660_v21 }
  0xc5   : > { %490 = vst [vmem:[#allocation2 + $0x198] sm:$0x1] %v12071_v0  ;;  %491 = vst [vmem:[#allocation2 + $0x1b0] sm:$0x1] %v12071_v0  ;;  %v10741_v26 = vld [vmem:[%s10645_s15 + $0x48] sm:$0xff]  ;;  %v10744_v27 = vld [vmem:[%s10645_s15 + $0x50] sm:$0xff] }
  0xc6   : > { %492 = vst [vmem:[#allocation2 + $0x1c8] sm:$0x1] %v12071_v0  ;;  %493 = vst [vmem:[#allocation2 + $0x11] sm:$0x1] %v12071_v0  ;;  %v662_v30 = vld [vmem:[#allocation9 + $0x1d0] sm:$0xff]  ;;  %v663_v31 = vld [vmem:[#allocation9 + $0x1d8] sm:$0xff] }
  0xc7   : > { %494 = vst [vmem:[#allocation2 + $0x29] sm:$0x1] %v12071_v0  ;;  %495 = vst [vmem:[#allocation2 + $0x41] sm:$0x1] %v12071_v0  ;;  %8837 = vmatpush3.bf16.msra.mxu0 %v8834_v9  ;;  %9412 = vmatpush3.bf16.msra.mxu1 %v8834_v9  ;;  %v10753_v32 = vld [vmem:[%s10645_s15 + $0x58] sm:$0xff]  ;;  %v10757_v33 = vld [vmem:[%s10645_s15 + $0x60] sm:$0xff]  ;;  %v8846_v34 = vpack.c.bf16 %v663_v31, %v662_v30 }
  0xc8   : > { %496 = vst [vmem:[#allocation2 + $0x59] sm:$0x1] %v12071_v0  ;;  %497 = vst [vmem:[#allocation2 + $0x71] sm:$0x1] %v12071_v0  ;;  %8839 = vmatprep.subr.bf16.mxu0 %v8838_v18  ;;  %9405 = vmatprep.subr.bf16.mxu1 %v8838_v18  ;;  %v664_v35 = vld [vmem:[#allocation9 + $0x1e0] sm:$0xff]  ;;  %v10761_v36 = vld [vmem:[%s10645_s15 + $0x68] sm:$0xff] }
  0xc9   : > { %498 = vst [vmem:[#allocation2 + $0x89] sm:$0x1] %v12071_v0  ;;  %499 = vst [vmem:[#allocation2 + $0xa1] sm:$0x1] %v12071_v0  ;;  %v665_v37 = vld [vmem:[#allocation9 + $0x1e8] sm:$0xff]  ;;  %v10765_v38 = vld [vmem:[%s10645_s15 + $0x70] sm:$0xff] }
  0xca   : > { %500 = vst [vmem:[#allocation2 + $0xb9] sm:$0x1] %v12071_v0  ;;  %501 = vst [vmem:[#allocation2 + $0xd1] sm:$0x1] %v12071_v0  ;;  %v10768_v39 = vld [vmem:[%s10645_s15 + $0x78] sm:$0xff]  ;;  %v8850_v40 = vpack.c.bf16 %v665_v37, %v664_v35  ;;  %v10773_v41 = vld [vmem:[%s10635_s26] sm:$0xff] }
  0xcb   : > { %502 = vst [vmem:[#allocation2 + $0xe9] sm:$0x1] %v12071_v0  ;;  %503 = vst [vmem:[#allocation2 + $0x101] sm:$0x1] %v12071_v0  ;;  %8841 = vmatpush3.bf16.msra.mxu0 %v8838_v18  ;;  %9413 = vmatpush3.bf16.msra.mxu1 %v8838_v18  ;;  %v10776_v42 = vld [vmem:[%s10635_s26 + $0x8] sm:$0xff]  ;;  %v666_v43 = vld [vmem:[#allocation9 + $0x1f0] sm:$0xff] }
  0xcc   : > { %504 = vst [vmem:[#allocation2 + $0x119] sm:$0x1] %v12071_v0  ;;  %505 = vst [vmem:[#allocation2 + $0x131] sm:$0x1] %v12071_v0  ;;  %8843 = vmatprep.subr.bf16.mxu0 %v8842_v28  ;;  %9406 = vmatprep.subr.bf16.mxu1 %v8842_v28  ;;  %v667_v44 = vld [vmem:[#allocation9 + $0x1f8] sm:$0xff]  ;;  %v635_v46 = vld [vmem:[#allocation9] sm:$0xff] }
  0xcd   : > { %506 = vst [vmem:[#allocation2 + $0x149] sm:$0x1] %v12071_v0  ;;  %507 = vst [vmem:[#allocation2 + $0x161] sm:$0x1] %v12071_v0  ;;  %v8854_v45 = vpack.c.bf16 %v667_v44, %v666_v43  ;;  %v636_v47 = vld [vmem:[#allocation9 + $0x8] sm:$0xff]  ;;  %v10781_v48 = vld [vmem:[%s10645_s15 + $0x80] sm:$0xff] }
  0xce   : > { %508 = vst [vmem:[#allocation2 + $0x179] sm:$0x1] %v12071_v0  ;;  %509 = vst [vmem:[#allocation2 + $0x191] sm:$0x1] %v12071_v0  ;;  %v10785_v49 = vld [vmem:[%s10645_s15 + $0x88] sm:$0xff]  ;;  %v10788_v50 = vld [vmem:[%s10645_s15 + $0x90] sm:$0xff]  ;;  %v8858_v53 = vpack.c.bf16 %v636_v47, %v635_v46 }
  0xcf   : > { %510 = vst [vmem:[#allocation2 + $0x1a9] sm:$0x1] %v12071_v0  ;;  %511 = vst [vmem:[#allocation2 + $0x1c1] sm:$0x1] %v12071_v0  ;;  %8845 = vmatpush3.bf16.msra.mxu0 %v8842_v28  ;;  %9414 = vmatpush3.bf16.msra.mxu1 %v8842_v28  ;;  %v10791_v51 = vld [vmem:[%s10645_s15 + $0x98] sm:$0xff]  ;;  %v10797_v52 = vld [vmem:[%s10645_s15 + $0xa0] sm:$0xff] }
  0xd0   : > { %512 = vst [vmem:[#allocation2 + $0x1d9] sm:$0x1] %v12071_v0  ;;  %519 = vst [vmem:[#allocation2 + $0x19] sm:$0xff] %v10698_v10  ;;  %8847 = vmatprep.subr.bf16.mxu0 %v8846_v34  ;;  %9407 = vmatprep.subr.bf16.mxu1 %v8846_v34  ;;  %v637_v54 = vld [vmem:[#allocation9 + $0x10] sm:$0xff]  ;;  %v10801_v55 = vld [vmem:[%s10645_s15 + $0xa8] sm:$0xff]  ;;  %s6246_s24 = sshll.u32 %s11891_s20, 4  ;;  %s11989_s24 = int_to_ptr.vmem [resolvable:$true] %s6246_s24 }
  0xd1   : > { %520 = vst [vmem:[#allocation2 + $0x21] sm:$0xff] %v10701_v11  ;;  %563 = vst [vmem:[#allocation2 + $0x31] sm:$0xff] %v10706_v14  ;;  %v638_v56 = vld [vmem:[#allocation9 + $0x18] sm:$0xff]  ;;  %v10805_v57 = vld [vmem:[%s10645_s15 + $0xb0] sm:$0xff]  ;;  %s12238_s19 = sld [smem:[#allocation47_spill]]  ;;  %s6230_s27 = scalar_lea.sflag [#allocation5], %s10631_s22 }
  0xd2   : > { %564 = vst [vmem:[#allocation2 + $0x39] sm:$0xff] %v10710_v15  ;;  %565 = vst [vmem:[#allocation2 + $0x49] sm:$0xff] %v10714_v16  ;;  %v10808_v58 = vld [vmem:[%s10645_s15 + $0xb8] sm:$0xff]  ;;  %v10815_v60 = vld [vmem:[%s10645_s15 + $0xc0] sm:$0xff]  ;;  %v8862_v4 = vpack.c.bf16 %v638_v56, %v637_v54  ;;  %s10210_s7 = scalar_lea.vmem %s11989_s24, 4096  ;;  %p12239_p4 = scmp.ne.s32.totalorder %s12146_s12, 0 }
  0xd3   : > { %566 = vst [vmem:[#allocation2 + $0x51] sm:$0xff] %v10717_v17  ;;  %567 = vst [vmem:[#allocation2 + $0x61] sm:$0xff] %v10722_v19  ;;  %8849 = vmatpush3.bf16.msra.mxu0 %v8846_v34  ;;  %9415 = vmatpush3.bf16.msra.mxu1 %v8846_v34  ;;  %v10818_v61 = vld [vmem:[%s10645_s15 + $0xc8] sm:$0xff]  ;;  %v639_v62 = vld [vmem:[#allocation9 + $0x20] sm:$0xff]  ;;  %p10211_p1 = scmp.ne.s32.totalorder %s11989_s24, %s10210_s7  ;;  %s10310_s23 = smov [#allocation12]  }
  0xd4   : > { %568 = vst [vmem:[#allocation2 + $0x69] sm:$0xff] %v10725_v20  ;;  %569 = vst [vmem:[#allocation2 + $0x79] sm:$0xff] %v10730_v23  ;;  %8851 = vmatprep.subr.bf16.mxu0 %v8850_v40  ;;  %9408 = vmatprep.subr.bf16.mxu1 %v8850_v40  ;;  %v10823_v63 = vld [vmem:[%s10645_s15 + $0xd0] sm:$0xff]  ;;  %v10826_v1 = vld [vmem:[%s10645_s15 + $0xd8] sm:$0xff]  ;;  %s10214_s28 = sshll.u32 %s10310_s23, 4  ;;  %s10215_s28 = int_to_ptr.vmem [resolvable:$false] %s10214_s28 }
  0xd5   : > { %570 = vst [vmem:[#allocation2 + $0x81] sm:$0xff] %v10734_v24  ;;  %571 = vst [vmem:[#allocation2 + $0x91] sm:$0xff] %v10738_v25  ;;  %v10829_v2 = vld [vmem:[%s10645_s15 + $0xe0] sm:$0xff]  ;;  %v640_v5 = vld [vmem:[#allocation9 + $0x28] sm:$0xff]  ;;  %p10212_p0 = pnand %p10211_p1, %p12239_p4  ;;  %s10216_s3 = scalar_lea.vmem %s10215_s28, 8192 }
  0xd6   : > { %572 = vst [vmem:[#allocation2 + $0x99] sm:$0xff] %v10741_v26  ;;  %573 = vst [vmem:[#allocation2 + $0xa9] sm:$0xff] %v10744_v27  ;;  %v10837_v6 = vld [vmem:[%s10645_s15 + $0xe8] sm:$0xff]  ;;  %v10843_v8 = vld [vmem:[%s10645_s15 + $0xf0] sm:$0xff]  ;;  %v8866_v21 = vpack.c.bf16 %v640_v5, %v639_v62  ;;  %p10217_p2 = scmp.lt.s32.totalorder %s11989_s24, %s10215_s28  ;;  %p10218_p13 = scmp.lt.s32.totalorder %s10216_s3, %s10210_s7 }
  0xd7   : > { %v10746_v29 = vld [vmem:[#allocation2 + $0x18] sm:$0xff]  ;;  %574 = vst [vmem:[#allocation2 + $0xb1] sm:$0xff] %v10753_v32  ;;  %575 = vst [vmem:[#allocation2 + $0xc1] sm:$0xff] %v10757_v33  ;;  %8853 = vmatpush3.bf16.msra.mxu0 %v8850_v40  ;;  %9416 = vmatpush3.bf16.msra.mxu1 %v8850_v40  ;;  %v641_v28 = vld [vmem:[#allocation9 + $0x30] sm:$0xff]  ;;  %s11987_s10 = scalar_lea.hbm %s12238_s19, %s6431_s16  ;;  %p10213_p7 = pneg %p10212_p0 }
  0xd8   : > { %7364 = vmatprep.mubr.f32.mxu0 %v10746_v29  ;;  %576 = vst [vmem:[#allocation2 + $0xc9] sm:$0xff] %v10761_v36  ;;  %12171 = vst [vmem:[#allocation24_spill] sm:$0xff] %v10765_v38  ;;  %8855 = vmatprep.subr.bf16.mxu0 %v8854_v45  ;;  %v10810_v59 = vld [vmem:[#allocation2 + $0x20] sm:$0xff]  ;;  %v10831_v3 = vld [vmem:[#allocation2 + $0x30] sm:$0xff]  ;;  %p10219_p6 = por %p10218_p13, %p10217_p2 }
  0xd9   : > { %12172 = vst [vmem:[#allocation25_spill] sm:$0xff] %v10768_v39  ;;  %577 = vst [vmem:[#allocation2 + $0xd9] sm:$0xff] %v10765_v38  ;;  %9409 = vmatprep.subr.bf16.mxu1 %v8854_v45  ;;  %v10846_v9 = vld [vmem:[%s10645_s15 + $0xf8] sm:$0xff]  ;;  %v10857_v18 = vld [vmem:[#allocation2 + $0x48] sm:$0xff] }
  0xda   : > { %578 = vst [vmem:[#allocation2 + $0xe1] sm:$0xff] %v10768_v39  ;;  %517 = vst [vmem:[#allocation2 + $0x1] sm:$0xff] %v10773_v41  ;;  %v10853_v12 = vld [vmem:[#allocation2 + $0x38] sm:$0xff]  ;;  %v10865_v31 = vld [vmem:[#allocation2 + $0x50] sm:$0xff]  ;;  %p10220_p11 = pnand %p10219_p6, %p10213_p7 }
  0xdb   : > { %518 = vst [vmem:[#allocation2 + $0x9] sm:$0xff] %v10776_v42  ;;  %12173 = vst [vmem:[#allocation26_spill] sm:$0xff] %v10781_v48  ;;  %8857 = vmatpush3.bf16.msra.mxu0 %v8854_v45  ;;  %9417 = vmatpush3.bf16.msra.mxu1 %v8854_v45  ;;  %v642_v30 = vld [vmem:[#allocation9 + $0x38] sm:$0xff]  ;;  %v10869_v35 = vld [vmem:[#allocation2 + $0x60] sm:$0xff] }
  0xdc   : > { %579 = vst [vmem:[#allocation2 + $0xf1] sm:$0xff] %v10781_v48  ;;  %12174 = vst [vmem:[#allocation27_spill] sm:$0xff] %v10785_v49  ;;  %8859 = vmatprep.subr.bf16.mxu0 %v8858_v53  ;;  %v8870_v37 = vpack.c.bf16 %v642_v30, %v641_v28  ;;  %v643_v43 = vld [vmem:[#allocation9 + $0x40] sm:$0xff]  ;;  %v644_v44 = vld [vmem:[#allocation9 + $0x48] sm:$0xff] }
  0xdd   : > { %12175 = vst [vmem:[#allocation28_spill] sm:$0xff] %v10788_v50  ;;  %12176 = vst [vmem:[#allocation29_spill] sm:$0xff] %v10791_v51  ;;  %v10877_v45 = vld [vmem:[#allocation2 + $0x68] sm:$0xff]  ;;  %v10881_v47 = vld [vmem:[#allocation2 + $0x78] sm:$0xff] }
  0xde   : > { %580 = vst [vmem:[#allocation2 + $0xf9] sm:$0xff] %v10785_v49  ;;  %581 = vst [vmem:[#allocation2 + $0x109] sm:$0xff] %v10788_v50  ;;  %7365 = vmatmul.mubr.f32.vlgmr.msra.gmra.mrb[0].mxu0 %v10810_v59  ;;  %v645_v56 = vld [vmem:[#allocation9 + $0x50] sm:$0xff]  ;;  %v646_v62 = vld [vmem:[#allocation9 + $0x58] sm:$0xff] }
  0xdf   : > { %582 = vst [vmem:[#allocation2 + $0x111] sm:$0xff] %v10791_v51  ;;  %12177 = vst [vmem:[#allocation30_spill] sm:$0xff] %v10797_v52  ;;  %8861 = vmatpush3.bf16.msra.mxu0 %v8858_v53  ;;  %7367 = vmatprep.mubr.f32.mxu0 %v10831_v3  ;;  %v8874_v53 = vpack.c.bf16 %v644_v44, %v643_v43  ;;  %v8878_v28 = vpack.c.bf16 %v646_v62, %v645_v56  ;;  %v647_v43 = vld [vmem:[#allocation9 + $0x60] sm:$0xff]  ;;  %v648_v44 = vld [vmem:[#allocation9 + $0x68] sm:$0xff] }
  0xe0   : > { %583 = vst [vmem:[#allocation2 + $0x121] sm:$0xff] %v10797_v52  ;;  %12178 = vst [vmem:[#allocation31_spill] sm:$0xff] %v10801_v55  ;;  %8863 = vmatprep.subr.bf16.mxu0 %v8862_v4  ;;  %v8882_v56 = vpack.c.bf16 %v648_v44, %v647_v43  ;;  %v10944_v50 = vld [vmem:[%s10651_s9] sm:$0xff]  ;;  %v1164_v48 = vld [vmem:[#allocation9 + $0x328] sm:$0xff] }
  0xe1   : > { %584 = vst [vmem:[#allocation2 + $0x129] sm:$0xff] %v10801_v55  ;;  %12179 = vst [vmem:[#allocation32_spill] sm:$0xff] %v10805_v57  ;;  %v595_v55 = vld [vmem:[#allocation2] sm:$0xff]  ;;  %v10957_v38 = vld [vmem:[%s10651_s9 + $0x18] sm:$0xff] }
  0xe2   : > { %12180 = vst [vmem:[#allocation33_spill] sm:$0xff] %v10808_v58  ;;  %585 = vst [vmem:[#allocation2 + $0x139] sm:$0xff] %v10805_v57  ;;  %7368 = vmatmul.mubr.f32.gmra.mrb[2].mxu0 %v10853_v12  ;;  %v10937_v57 = vld [vmem:[#allocation2 + $0xe0] sm:$0xff]  ;;  %v596_v52 = vld [vmem:[#allocation2 + $0x8] sm:$0xff] }
  0xe3   : > { %586 = vst [vmem:[#allocation2 + $0x141] sm:$0xff] %v10808_v58  ;;  %12181 = vst [vmem:[#allocation34_spill] sm:$0xff] %v10815_v60  ;;  %v10839_v7 = vld [vmem:[#allocation2 + $0xf0] sm:$0xff]  ;;  %8865 = vmatpush3.bf16.msra.mxu0 %v8862_v4  ;;  %7370 = vmatprep.mubr.f32.mxu0 %v10857_v18  ;;  %v10889_v4 = vld [vmem:[#allocation2 + $0x80] sm:$0xff] }
  0xe4   : > { %12182 = vst [vmem:[#allocation35_spill] sm:$0xff] %v10818_v61  ;;  %587 = vst [vmem:[#allocation2 + $0x151] sm:$0xff] %v10815_v60  ;;  %7391 = vmatprep.mubr.f32.mxu1 %v10839_v7  ;;  %8867 = vmatprep.subr.bf16.mxu0 %v8866_v21  ;;  %v10925_v60 = vld [vmem:[#allocation2 + $0xc8] sm:$0xff]  ;;  %v10929_v58 = vld [vmem:[#allocation2 + $0xd8] sm:$0xff] }
  0xe5   : > { %588 = vst [vmem:[#allocation2 + $0x159] sm:$0xff] %v10818_v61  ;;  %12183 = vst [vmem:[#allocation36_spill] sm:$0xff] %v10823_v63  ;;  %v10855_v13 = vld [vmem:[#allocation2 + $0xf8] sm:$0xff]  ;;  %v10859_v22 = vld [vmem:[#allocation2 + $0x108] sm:$0xff] }
  0xe6   : > { %12184 = vst [vmem:[#allocation37_spill] sm:$0xff] %v10826_v1  ;;  %12185 = vst [vmem:[#allocation38_spill] sm:$0xff] %v10829_v2  ;;  %7392 = vmatmul.mubr.f32.vlgmr.msra.gmra.mrb[0].mxu1 %v10855_v13  ;;  %v10867_v34 = vld [vmem:[#allocation2 + $0x110] sm:$0xff]  ;;  %7371 = vmatmul.mubr.f32.gmra.mrb[4].mxu0 %v10865_v31  ;;  %v1160_v61 = vld [vmem:[#allocation9 + $0x308] sm:$0xff] }
  0xe7   : > { %589 = vst [vmem:[#allocation2 + $0x169] sm:$0xff] %v10823_v63  ;;  %590 = vst [vmem:[#allocation2 + $0x171] sm:$0xff] %v10826_v1  ;;  %7394 = vmatprep.mubr.f32.mxu1 %v10859_v22  ;;  %v10871_v40 = vld [vmem:[#allocation2 + $0x120] sm:$0xff]  ;;  %8869 = vmatpush3.bf16.msra.mxu0 %v8866_v21  ;;  %v10893_v21 = vld [vmem:[#allocation2 + $0x90] sm:$0xff] }
  0xe8   : > { %591 = vst [vmem:[#allocation2 + $0x181] sm:$0xff] %v10829_v2  ;;  %12186 = vst [vmem:[#allocation39_spill] sm:$0xff] %v10837_v6  ;;  %7373 = vmatprep.mubr.f32.mxu0 %v10869_v35  ;;  %v10879_v46 = vld [vmem:[#allocation2 + $0x128] sm:$0xff]  ;;  %8871 = vmatprep.subr.bf16.mxu0 %v8870_v37  ;;  %v10917_v1 = vld [vmem:[#allocation2 + $0xc0] sm:$0xff] }
  0xe9   : > { %592 = vst [vmem:[#allocation2 + $0x189] sm:$0xff] %v10837_v6  ;;  %12187 = vst [vmem:[#allocation40_spill] sm:$0xff] %v10843_v8  ;;  %v10883_v54 = vld [vmem:[#allocation2 + $0x138] sm:$0xff]  ;;  %v1159_v63 = vld [vmem:[#allocation9 + $0x300] sm:$0xff] }
  0xea   : > { %12188 = vst [vmem:[#allocation41_spill] sm:$0xff] %v10846_v9  ;;  %593 = vst [vmem:[#allocation2 + $0x199] sm:$0xff] %v10843_v8  ;;  %7395 = vmatmul.mubr.f32.gmra.mrb[2].mxu1 %v10867_v34  ;;  %7374 = vmatmul.mubr.f32.gmra.mrb[6].mxu0 %v10877_v45  ;;  %v10891_v5 = vld [vmem:[#allocation2 + $0x140] sm:$0xff]  ;;  %v649_v8 = vld [vmem:[#allocation9 + $0x70] sm:$0xff] }
  0xeb   : > { %594 = vst [vmem:[#allocation2 + $0x1a1] sm:$0xff] %v10846_v9  ;;  %7397 = vmatprep.mubr.f32.mxu1 %v10871_v40  ;;  %7376 = vmatprep.mubr.f32.mxu0 %v10881_v47  ;;  %v10895_v30 = vld [vmem:[#allocation2 + $0x150] sm:$0xff]  ;;  %v10905_v9 = vld [vmem:[#allocation2 + $0xa8] sm:$0xff]  ;;  %v650_v6 = vld [vmem:[#allocation9 + $0x78] sm:$0xff] }
  0xec   : > { %8873 = vmatpush3.bf16.msra.mxu0 %v8870_v37  ;;  %v10901_v37 = vld [vmem:[#allocation2 + $0x98] sm:$0xff]  ;;  %v8886_v43 = vpack.c.bf16 %v650_v6, %v649_v8  ;;  %v8890_v6 = vpack.c.bf16 %v1160_v61, %v1159_v63  ;;  %v1161_v61 = vld [vmem:[#allocation9 + $0x310] sm:$0xff]  ;;  %v1163_v49 = vld [vmem:[#allocation9 + $0x320] sm:$0xff]  ;;  %526 = vst [vmem:[#allocation2 + $0x1b1] sm:$0xff] %v10944_v50 }
  0xed   : > { %8875 = vmatprep.subr.bf16.mxu0 %v8874_v53  ;;  %v10903_v0 = vld [vmem:[#allocation2 + $0x158] sm:$0xff]  ;;  %v8898_v39 = vpack.c.bf16 %v1164_v48, %v1163_v49  ;;  %12191 = vst [vmem:[#allocation44_spill] sm:$0xff] %v10957_v38  ;;  %529 = vst [vmem:[#allocation2 + $0x1d1] sm:$0xff] %v10957_v38  ;;  %v1167_v48 = vld [vmem:[#allocation9 + $0x340] sm:$0xff] }
  0xee   : > { %7398 = vmatmul.mubr.f32.gmra.mrb[4].mxu1 %v10879_v46  ;;  %7377 = vmatmul.mubr.f32.gmra.mrb[8].mxu0 %v10889_v4  ;;  %v10907_v62 = vld [vmem:[#allocation2 + $0x168] sm:$0xff]  ;;  %v10915_v2 = vld [vmem:[#allocation2 + $0x170] sm:$0xff]  ;;  %v1162_v63 = vld [vmem:[#allocation9 + $0x318] sm:$0xff] }
  0xef   : > { %7400 = vmatprep.mubr.f32.mxu1 %v10883_v54  ;;  %7379 = vmatprep.mubr.f32.mxu0 %v10893_v21  ;;  %v10919_v44 = vld [vmem:[#allocation2 + $0x180] sm:$0xff]  ;;  %v8894_v51 = vpack.c.bf16 %v1162_v63, %v1161_v61  ;;  %v1165_v61 = vld [vmem:[#allocation9 + $0x330] sm:$0xff]  ;;  %v1166_v63 = vld [vmem:[#allocation9 + $0x338] sm:$0xff] }
  0xf0   : > { %8877 = vmatpush3.bf16.msra.mxu0 %v8874_v53  ;;  %v10913_v53 = vld [vmem:[#allocation2 + $0xb0] sm:$0xff]  ;;  %v1168_v49 = vld [vmem:[#allocation9 + $0x348] sm:$0xff]  ;;  %v1170_v38 = vld [vmem:[#allocation9 + $0x358] sm:$0xff] }
  0xf1   : > { %8879 = vmatprep.subr.bf16.mxu0 %v8878_v28  ;;  %v10931_v8 = vld [vmem:[#allocation2 + $0x198] sm:$0xff] }
  0xf2   : > { %7401 = vmatmul.mubr.f32.gmra.mrb[6].mxu1 %v10891_v5  ;;  %7380 = vmatmul.mubr.f32.gmra.mrb[10].mxu0 %v10901_v37 }
  0xf3   : > { %7403 = vmatprep.mubr.f32.mxu1 %v10895_v30  ;;  %7382 = vmatprep.mubr.f32.mxu0 %v10905_v9 }
  0xf4   : > { %8881 = vmatpush3.bf16.msra.mxu0 %v8878_v28  ;;  %v10927_v28 = vld [vmem:[#allocation2 + $0x188] sm:$0xff] }
  0xf5   : > { %8883 = vmatprep.subr.bf16.mxu0 %v8882_v56 }
  0xf6   : > { %7404 = vmatmul.mubr.f32.gmra.mrb[8].mxu1 %v10903_v0  ;;  %7383 = vmatmul.mubr.f32.gmra.mrb[12].mxu0 %v10913_v53 }
  0xf7   : > { %7406 = vmatprep.mubr.f32.mxu1 %v10907_v62  ;;  %7385 = vmatprep.mubr.f32.mxu0 %v10917_v1 }
  0xf8   : > { %8885 = vmatpush3.bf16.msra.mxu0 %v8882_v56  ;;  %v10939_v56 = vld [vmem:[#allocation2 + $0x1a0] sm:$0xff] }
  0xf9   : > { %8887 = vmatprep.subr.bf16.mxu0 %v8886_v43 }
  0xfa   : > { %7407 = vmatmul.mubr.f32.gmra.mrb[10].mxu1 %v10915_v2  ;;  %7386 = vmatmul.mubr.f32.gmra.mrb[14].mxu0 %v10925_v60 }
  0xfb   : > { %7409 = vmatprep.mubr.f32.mxu1 %v10919_v44  ;;  %7388 = vmatprep.mubr.f32.mxu0 %v10929_v58 }
  0xfc   : > { %8889 = vmatpush3.bf16.msra.mxu0 %v8886_v43  ;;  %v10948_v43 = vld [vmem:[%s10651_s9 + $0x8] sm:$0xff] }
  0xfd   : > { %8891 = vmatprep.subr.bf16.mxu0 %v8890_v6  ;;  %12189 = vst [vmem:[#allocation42_spill] sm:$0xff] %v10948_v43  ;;  %527 = vst [vmem:[#allocation2 + $0x1b9] sm:$0xff] %v10948_v43  ;;  %v1173_v43 = vld [vmem:[#allocation9 + $0x370] sm:$0xff] }
  0xfe   : > { %7410 = vmatmul.mubr.f32.gmra.mrb[12].mxu1 %v10927_v28  ;;  %7389 = vmatmul.mubr.f32.gmra.mrb[16].mxu0 %v10937_v57 }
  0xff   : > { %7412 = vmatprep.mubr.f32.mxu1 %v10931_v8  ;;  %7450 = vmatprep.mubr.f32.mxu0 %v595_v55  ;;  %v10953_v55 = vld [vmem:[%s10651_s9 + $0x10] sm:$0xff] }
 0x100   : > { %12190 = vst [vmem:[#allocation43_spill] sm:$0xff] %v10953_v55  ;;  %528 = vst [vmem:[#allocation2 + $0x1c9] sm:$0xff] %v10953_v55  ;;  %v1172_v55 = vld [vmem:[#allocation9 + $0x368] sm:$0xff] }
 0x102   : > { %7413 = vmatmul.mubr.f32.gmra.mrb[14].mxu1 %v10939_v56  ;;  %7451 = vmatmul.mubr.f32.vlgmr.msra.gmra.mrb[18].mxu0 %v596_v52  ;;  %v8902_v52 = vpack.c.bf16 %v1166_v63, %v1165_v61  ;;  %v1171_v63 = vld [vmem:[#allocation9 + $0x360] sm:$0xff] }
 0x103   : > { %8893 = vmatpush3.bf16.msra.mxu0 %v8890_v6  ;;  %7453 = vmatprep.mubr.f32.mxu0 %v10746_v29  ;;  %v10962_v29 = vld [vmem:[#allocation2 + $0x1b0] sm:$0xff] }
 0x104   : > { %8895 = vmatprep.subr.bf16.mxu0 %v8894_v51  ;;  %v10964_v6 = vld [vmem:[#allocation2 + $0x1b8] sm:$0xff]  ;;  %7415 = vmatprep.mubr.f32.mxu1 %v10962_v29 }
 0x106   : > { %7454 = vmatmul.mubr.f32.gmra.mrb[2].mxu0 %v10810_v59  ;;  %7416 = vmatmul.mubr.f32.gmra.mrb[16].mxu1 %v10964_v6  ;;  %v8906_v59 = vpack.c.bf16 %v1168_v49, %v1167_v48  ;;  %v1174_v48 = vld [vmem:[#allocation9 + $0x378] sm:$0xff]  ;;  %v1497_v49 = vld [vmem:[#allocation9 + $0x80] sm:$0xff] }
 0x107   : > { %7456 = vmatprep.mubr.f32.mxu0 %v10831_v3  ;;  %8897 = vmatpush3.bf16.msra.mxu0 %v8894_v51  ;;  %v1169_v51 = vld [vmem:[#allocation9 + $0x350] sm:$0xff] }
 0x108   : > { %8899 = vmatprep.subr.bf16.mxu0 %v8898_v39  ;;  %v8910_v61 = vpack.c.bf16 %v1170_v38, %v1169_v51  ;;  %v1498_v38 = vld [vmem:[#allocation9 + $0x88] sm:$0xff] }
 0x10a   : > { %7457 = vmatmul.mubr.f32.gmra.mrb[4].mxu0 %v10853_v12 }
 0x10b   : > { %7459 = vmatprep.mubr.f32.mxu0 %v10857_v18  ;;  %8901 = vmatpush3.bf16.msra.mxu0 %v8898_v39  ;;  %v8914_v39 = vpack.c.bf16 %v1172_v55, %v1171_v63  ;;  %v1500_v55 = vld [vmem:[#allocation9 + $0x98] sm:$0xff]  ;;  %v1502_v63 = vld [vmem:[#allocation9 + $0xa8] sm:$0xff] }
 0x10c   : > { %8903 = vmatprep.subr.bf16.mxu0 %v8902_v52 }
 0x10e   : > { %7460 = vmatmul.mubr.f32.gmra.mrb[6].mxu0 %v10865_v31 }
 0x10f   : > { %7462 = vmatprep.mubr.f32.mxu0 %v10869_v35  ;;  %8905 = vmatpush3.bf16.msra.mxu0 %v8902_v52  ;;  %v8918_v52 = vpack.c.bf16 %v1174_v48, %v1173_v43  ;;  %v1499_v43 = vld [vmem:[#allocation9 + $0x90] sm:$0xff] }
 0x110   : > { %8907 = vmatprep.subr.bf16.mxu0 %v8906_v59  ;;  %v8926_v51 = vpack.c.bf16 %v1500_v55, %v1499_v43  ;;  %v1503_v48 = vld [vmem:[#allocation9 + $0xb0] sm:$0xff]  ;;  %v1510_v43 = vld [vmem:[#allocation9 + $0xe8] sm:$0xff]  ;;  %v1512_v55 = vld [vmem:[#allocation9 + $0xf8] sm:$0xff] }
 0x112   : > { %7463 = vmatmul.mubr.f32.gmra.mrb[8].mxu0 %v10877_v45 }
 0x113   : > { %7465 = vmatprep.mubr.f32.mxu0 %v10881_v47  ;;  %8909 = vmatpush3.bf16.msra.mxu0 %v8906_v59  ;;  %v8922_v59 = vpack.c.bf16 %v1498_v38, %v1497_v49  ;;  %v1506_v38 = vld [vmem:[#allocation9 + $0xc8] sm:$0xff] }
 0x114   : > { %8911 = vmatprep.subr.bf16.mxu0 %v8910_v61 }
 0x116   : > { %7466 = vmatmul.mubr.f32.gmra.mrb[10].mxu0 %v10889_v4 }
 0x117   : > { %7468 = vmatprep.mubr.f32.mxu0 %v10893_v21  ;;  %8913 = vmatpush3.bf16.msra.mxu0 %v8910_v61  ;;  %v1501_v61 = vld [vmem:[#allocation9 + $0xa0] sm:$0xff] }
 0x118   : > { %8915 = vmatprep.subr.bf16.mxu0 %v8914_v39 }
 0x11a   : > { %7469 = vmatmul.mubr.f32.gmra.mrb[12].mxu0 %v10901_v37 }
 0x11b   : > { %7471 = vmatprep.mubr.f32.mxu0 %v10905_v9  ;;  %8917 = vmatpush3.bf16.msra.mxu0 %v8914_v39  ;;  %v8930_v39 = vpack.c.bf16 %v1502_v63, %v1501_v61 }
 0x11c   : > { %8919 = vmatprep.subr.bf16.mxu0 %v8918_v52 }
 0x11e   : > { %7472 = vmatmul.mubr.f32.gmra.mrb[14].mxu0 %v10913_v53 }
 0x11f   : > { %7474 = vmatprep.mubr.f32.mxu0 %v10917_v1  ;;  %8921 = vmatpush3.bf16.msra.mxu0 %v8918_v52  ;;  %v1504_v52 = vld [vmem:[#allocation9 + $0xb8] sm:$0xff] }
 0x120   : > { %8923 = vmatprep.subr.bf16.mxu0 %v8922_v59  ;;  %v8934_v49 = vpack.c.bf16 %v1504_v52, %v1503_v48  ;;  %v12193_v48 = vld [vmem:[#allocation25_spill] sm:$0xff]  ;;  %v12194_v52 = vld [vmem:[#allocation26_spill] sm:$0xff] }
 0x122   : > { %7475 = vmatmul.mubr.f32.gmra.mrb[16].mxu0 %v10925_v60 }
 0x123   : > { %7477 = vmatprep.mubr.f32.mxu0 %v10929_v58 }
 0x126   : > { %7478 = vmatmul.mubr.f32.gmra.mrb[20].mxu0 %v10937_v57 }
 0x127   : > { %7480 = vmatprep.mubr.f32.mxu0 %v10839_v7 }
 0x12a   : > { %7481 = vmatmul.mubr.f32.gmra.mrb[22].mxu0 %v10855_v13 }
 0x12b   : > { %7483 = vmatprep.mubr.f32.mxu0 %v10859_v22 }
 0x12e   : > { %7484 = vmatmul.mubr.f32.gmra.mrb[24].mxu0 %v10867_v34 }
 0x12f   : > { %7486 = vmatprep.mubr.f32.mxu0 %v10871_v40 }
 0x132   : > { %7487 = vmatmul.mubr.f32.gmra.mrb[26].mxu0 %v10879_v46 }
 0x133   : > { %7489 = vmatprep.mubr.f32.mxu0 %v10883_v54 }
 0x136   : > { %7490 = vmatmul.mubr.f32.gmra.mrb[28].mxu0 %v10891_v5 }
 0x137   : > { %7492 = vmatprep.mubr.f32.mxu0 %v10895_v30 }
 0x13a   : > { %7493 = vmatmul.mubr.f32.gmra.mrb[30].mxu0 %v10903_v0 }
 0x13b   : > { %7495 = vmatprep.mubr.f32.mxu0 %v10907_v62 }
 0x13e   : > { %7496 = vmatmul.mubr.f32.gmra.mrb[32].mxu0 %v10915_v2 }
 0x13f   : > { %7498 = vmatprep.mubr.f32.mxu0 %v10919_v44 }
 0x142   : > { %7499 = vmatmul.mubr.f32.gmra.mrb[34].mxu0 %v10927_v28 }
 0x143   : > { %7501 = vmatprep.mubr.f32.mxu0 %v10931_v8 }
 0x146   : > { %7502 = vmatmul.mubr.f32.gmra.mrb[36].mxu0 %v10939_v56 }
 0x147   : > { %7536 = vmatprep.mubr.f32.mxu0 %v10831_v3  ;;  %v1505_v3 = vld [vmem:[#allocation9 + $0xc0] sm:$0xff] }
 0x14a   : > { %7537 = vmatmul.mubr.f32.vlgmr.msra.gmra.mrb[38].mxu0 %v10853_v12  ;;  %v8938_v12 = vpack.c.bf16 %v1506_v38, %v1505_v3  ;;  %v12196_v3 = vld [vmem:[#allocation28_spill] sm:$0xff]  ;;  %v12197_v38 = vld [vmem:[#allocation29_spill] sm:$0xff] }
 0x14b   : > { %8925 = vmatpush3.bf16.msra.mxu0 %v8922_v59  ;;  %7539 = vmatprep.mubr.f32.mxu0 %v10857_v18  ;;  %v1507_v18 = vld [vmem:[#allocation9 + $0xd0] sm:$0xff]  ;;  %v1508_v59 = vld [vmem:[#allocation9 + $0xd8] sm:$0xff] }
 0x14c   : > { %8927 = vmatprep.subr.bf16.mxu0 %v8926_v51 }
 0x14e   : > { %7540 = vmatmul.mubr.f32.gmra.mrb[2].mxu0 %v10865_v31  ;;  %v8942_v31 = vpack.c.bf16 %v1508_v59, %v1507_v18  ;;  %v12199_v18 = vld [vmem:[#allocation31_spill] sm:$0xff]  ;;  %v12200_v59 = vld [vmem:[#allocation32_spill] sm:$0xff] }
 0x14f   : > { %7542 = vmatprep.mubr.f32.mxu0 %v10869_v35  ;;  %8929 = vmatpush3.bf16.msra.mxu0 %v8926_v51  ;;  %v1509_v35 = vld [vmem:[#allocation9 + $0xe0] sm:$0xff]  ;;  %v1796_v51 = vld [vmem:[#allocation9 + $0x208] sm:$0xff] }
 0x150   : > { %8931 = vmatprep.subr.bf16.mxu0 %v8930_v39 }
 0x152   : > { %7543 = vmatmul.mubr.f32.gmra.mrb[4].mxu0 %v10877_v45  ;;  %v8946_v45 = vpack.c.bf16 %v1510_v43, %v1509_v35  ;;  %v12202_v35 = vld [vmem:[#allocation34_spill] sm:$0xff]  ;;  %v12203_v43 = vld [vmem:[#allocation35_spill] sm:$0xff] }
 0x153   : > { %7545 = vmatprep.mubr.f32.mxu0 %v10881_v47  ;;  %8933 = vmatpush3.bf16.msra.mxu0 %v8930_v39  ;;  %v1511_v47 = vld [vmem:[#allocation9 + $0xf0] sm:$0xff]  ;;  %v12192_v39 = vld [vmem:[#allocation24_spill] sm:$0xff] }
 0x154   : > { %8935 = vmatprep.subr.bf16.mxu0 %v8934_v49 }
 0x156   : > { %7546 = vmatmul.mubr.f32.gmra.mrb[6].mxu0 %v10889_v4  ;;  %v8950_v4 = vpack.c.bf16 %v1512_v55, %v1511_v47  ;;  %v12205_v47 = vld [vmem:[#allocation37_spill] sm:$0xff]  ;;  %v12206_v55 = vld [vmem:[#allocation38_spill] sm:$0xff] }
 0x157   : > { %7548 = vmatprep.mubr.f32.mxu0 %v10893_v21  ;;  %8937 = vmatpush3.bf16.msra.mxu0 %v8934_v49  ;;  %v1795_v21 = vld [vmem:[#allocation9 + $0x200] sm:$0xff]  ;;  %v12195_v49 = vld [vmem:[#allocation27_spill] sm:$0xff] }
 0x158   : > { %8939 = vmatprep.subr.bf16.mxu0 %v8938_v12 }
 0x15a   : > { %7549 = vmatmul.mubr.f32.gmra.mrb[8].mxu0 %v10901_v37  ;;  %v1807_v37 = vld [vmem:[#allocation9 + $0x260] sm:$0xff] }
 0x15b   : > { %7551 = vmatprep.mubr.f32.mxu0 %v10905_v9  ;;  %8941 = vmatpush3.bf16.msra.mxu0 %v8938_v12  ;;  %v8954_v9 = vpack.c.bf16 %v1796_v51, %v1795_v21  ;;  %v12198_v12 = vld [vmem:[#allocation30_spill] sm:$0xff]  ;;  %v12208_v21 = vld [vmem:[#allocation40_spill] sm:$0xff] }
 0x15c   : > { %8943 = vmatprep.subr.bf16.mxu0 %v8942_v31 }
 0x15e   : > { %7552 = vmatmul.mubr.f32.gmra.mrb[10].mxu0 %v10913_v53 }
 0x15f   : > { %7554 = vmatprep.mubr.f32.mxu0 %v10917_v1  ;;  %8945 = vmatpush3.bf16.msra.mxu0 %v8942_v31  ;;  %v12201_v31 = vld [vmem:[#allocation33_spill] sm:$0xff] }
 0x160   : > { %8947 = vmatprep.subr.bf16.mxu0 %v8946_v45 }
 0x162   : > { %7555 = vmatmul.mubr.f32.gmra.mrb[12].mxu0 %v10925_v60  ;;  %v1798_v60 = vld [vmem:[#allocation9 + $0x218] sm:$0xff] }
 0x163   : > { %7557 = vmatprep.mubr.f32.mxu0 %v10929_v58  ;;  %8949 = vmatpush3.bf16.msra.mxu0 %v8946_v45  ;;  %v634_v58 = vld [vmem:[#allocation2 + $0x1d0] sm:$0xff]  ;;  %v12204_v45 = vld [vmem:[#allocation36_spill] sm:$0xff] }
 0x164   : > { %8951 = vmatprep.subr.bf16.mxu0 %v8950_v4 }
 0x166   : > { %7558 = vmatmul.mubr.f32.gmra.mrb[14].mxu0 %v10937_v57  ;;  %v633_v57 = vld [vmem:[#allocation2 + $0x1c8] sm:$0xff] }
 0x167   : > { %7560 = vmatprep.mubr.f32.mxu0 %v10839_v7  ;;  %8953 = vmatpush3.bf16.msra.mxu0 %v8950_v4  ;;  %v1800_v7 = vld [vmem:[#allocation9 + $0x228] sm:$0xff]  ;;  %v12207_v4 = vld [vmem:[#allocation39_spill] sm:$0xff] }
 0x168   : > { %8955 = vmatprep.subr.bf16.mxu0 %v8954_v9 }
 0x16a   : > { %7561 = vmatmul.mubr.f32.gmra.mrb[16].mxu0 %v10855_v13 }
 0x16b   : > { %7563 = vmatprep.mubr.f32.mxu0 %v10859_v22  ;;  %v1801_v22 = vld [vmem:[#allocation9 + $0x230] sm:$0xff] }
 0x16e   : > { %7564 = vmatmul.mubr.f32.gmra.mrb[20].mxu0 %v10867_v34  ;;  %v1802_v34 = vld [vmem:[#allocation9 + $0x238] sm:$0xff] }
 0x16f   : > { %7566 = vmatprep.mubr.f32.mxu0 %v10871_v40  ;;  %v8966_v40 = vpack.c.bf16 %v1802_v34, %v1801_v22  ;;  %v2100_v22 = vld [vmem:[#allocation9 + $0x3b8] sm:$0xff] }
 0x172   : > { %7567 = vmatmul.mubr.f32.gmra.mrb[22].mxu0 %v10879_v46  ;;  %v1804_v46 = vld [vmem:[#allocation9 + $0x248] sm:$0xff] }
 0x173   : > { %7569 = vmatprep.mubr.f32.mxu0 %v10883_v54  ;;  %v1805_v54 = vld [vmem:[#allocation9 + $0x250] sm:$0xff] }
 0x176   : > { %7570 = vmatmul.mubr.f32.gmra.mrb[24].mxu0 %v10891_v5  ;;  %v1806_v5 = vld [vmem:[#allocation9 + $0x258] sm:$0xff] }
 0x177   : > { %7572 = vmatprep.mubr.f32.mxu0 %v10895_v30  ;;  %v8974_v30 = vpack.c.bf16 %v1806_v5, %v1805_v54  ;;  %v2107_v54 = vld [vmem:[#allocation9 + $0x3f0] sm:$0xff] }
 0x17a   : > { %7573 = vmatmul.mubr.f32.gmra.mrb[26].mxu0 %v10903_v0  ;;  %v1797_v0 = vld [vmem:[#allocation9 + $0x210] sm:$0xff] }
 0x17b   : > { %7575 = vmatprep.mubr.f32.mxu0 %v10907_v62  ;;  %v8958_v1 = vpack.c.bf16 %v1798_v60, %v1797_v0  ;;  %v1808_v62 = vld [vmem:[#allocation9 + $0x268] sm:$0xff] }
 0x17c   : > { %v8978_v53 = vpack.c.bf16 %v1808_v62, %v1807_v37  ;;  %v12209_v0 = vld [vmem:[#allocation41_spill] sm:$0xff]  ;;  %v12211_v62 = vld [vmem:[#allocation42_spill] sm:$0xff] }
 0x17d   : > { %v2432_v37 = vld [vmem:[#allocation9 + $0x108] sm:$0xff] }
 0x17e   : > { %7576 = vmatmul.mubr.f32.gmra.mrb[28].mxu0 %v10915_v2  ;;  %v1799_v2 = vld [vmem:[#allocation9 + $0x220] sm:$0xff] }
 0x17f   : > { %7578 = vmatprep.mubr.f32.mxu0 %v10919_v44  ;;  %v8962_v13 = vpack.c.bf16 %v1800_v7, %v1799_v2  ;;  %v1809_v44 = vld [vmem:[#allocation9 + $0x270] sm:$0xff]  ;;  %v2098_v2 = vld [vmem:[#allocation9 + $0x3a8] sm:$0xff] }
 0x182   : > { %7579 = vmatmul.mubr.f32.gmra.mrb[30].mxu0 %v10927_v28  ;;  %v1810_v28 = vld [vmem:[#allocation9 + $0x278] sm:$0xff] }
 0x183   : > { %7581 = vmatprep.mubr.f32.mxu0 %v10931_v8  ;;  %v8982_v8 = vpack.c.bf16 %v1810_v28, %v1809_v44  ;;  %v2435_v28 = vld [vmem:[#allocation9 + $0x120] sm:$0xff] }
 0x186   : > { %7582 = vmatmul.mubr.f32.gmra.mrb[32].mxu0 %v10939_v56  ;;  %v2093_v56 = vld [vmem:[#allocation9 + $0x380] sm:$0xff] }
 0x187   : > { %7584 = vmatprep.mubr.f32.mxu0 %v10962_v29  ;;  %v2094_v29 = vld [vmem:[#allocation9 + $0x388] sm:$0xff] }
 0x18a   : > { %7585 = vmatmul.mubr.f32.gmra.mrb[34].mxu0 %v10964_v6  ;;  %v8986_v6 = vpack.c.bf16 %v2094_v29, %v2093_v56  ;;  %v10031_v56 = vld [vmem:[#allocation2 + $0x39] sm:$0xff]  ;;  %v10032_v29 = vld [vmem:[#allocation2 + $0x49] sm:$0xff] }
 0x18b   : > { %7587 = vmatprep.mubr.f32.mxu0 %v633_v57  ;;  %v2096_v57 = vld [vmem:[#allocation9 + $0x398] sm:$0xff] }
 0x18e   : > { %7588 = vmatmul.mubr.f32.gmra.mrb[40].mxu0 %v634_v58 }
 0x18f   : > { %7622 = vmatprep.mubr.f32.mxu0 %v10773_v41  ;;  %v1803_v41 = vld [vmem:[#allocation9 + $0x240] sm:$0xff] }
 0x192   : > { %7623 = vmatmul.mubr.f32.vlgmr.msra.gmra.mrb[42].mxu0 %v10776_v42  ;;  %v8970_v42 = vpack.c.bf16 %v1804_v46, %v1803_v41  ;;  %v2104_v41 = vld [vmem:[#allocation9 + $0x3d8] sm:$0xff]  ;;  %v11077_v46 = vld [vmem:[#allocation2 + $0x2] sm:$0xff] }
 0x193   : > { %8957 = vmatpush3.bf16.msra.mxu0 %v8954_v9  ;;  %7625 = vmatprep.mubr.f32.mxu0 %v10698_v10  ;;  %v2095_v9 = vld [vmem:[#allocation9 + $0x390] sm:$0xff] }
 0x194   : > { %8959 = vmatprep.subr.bf16.mxu0 %v8958_v1  ;;  %v8990_v60 = vpack.c.bf16 %v2096_v57, %v2095_v9  ;;  %v10038_v9 = vld [vmem:[#allocation2 + $0x91] sm:$0xff] }
 0x196   : > { %7626 = vmatmul.mubr.f32.gmra.mrb[2].mxu0 %v10701_v11 }
 0x197   : > { %7628 = vmatprep.mubr.f32.mxu0 %v10706_v14  ;;  %8961 = vmatpush3.bf16.msra.mxu0 %v8958_v1  ;;  %v2097_v1 = vld [vmem:[#allocation9 + $0x3a0] sm:$0xff] }
 0x198   : > { %8963 = vmatprep.subr.bf16.mxu0 %v8962_v13  ;;  %v8994_v7 = vpack.c.bf16 %v2098_v2, %v2097_v1  ;;  %v10039_v1 = vld [vmem:[#allocation2 + $0x99] sm:$0xff]  ;;  %v10040_v2 = vld [vmem:[#allocation2 + $0xa9] sm:$0xff] }
 0x19a   : > { %7629 = vmatmul.mubr.f32.gmra.mrb[4].mxu0 %v10710_v15 }
 0x19b   : > { %7631 = vmatprep.mubr.f32.mxu0 %v10714_v16  ;;  %8965 = vmatpush3.bf16.msra.mxu0 %v8962_v13  ;;  %v2099_v13 = vld [vmem:[#allocation9 + $0x3b0] sm:$0xff] }
 0x19c   : > { %8967 = vmatprep.subr.bf16.mxu0 %v8966_v40  ;;  %v8998_v34 = vpack.c.bf16 %v2100_v22, %v2099_v13  ;;  %v2445_v13 = vld [vmem:[#allocation9 + $0x170] sm:$0xff]  ;;  %v2446_v22 = vld [vmem:[#allocation9 + $0x178] sm:$0xff] }
 0x19e   : > { %7632 = vmatmul.mubr.f32.gmra.mrb[6].mxu0 %v10717_v17 }
 0x19f   : > { %7634 = vmatprep.mubr.f32.mxu0 %v10722_v19  ;;  %8969 = vmatpush3.bf16.msra.mxu0 %v8966_v40  ;;  %v2102_v40 = vld [vmem:[#allocation9 + $0x3c8] sm:$0xff] }
 0x1a0   : > { %8971 = vmatprep.subr.bf16.mxu0 %v8970_v42 }
 0x1a2   : > { %7635 = vmatmul.mubr.f32.gmra.mrb[8].mxu0 %v10725_v20 }
 0x1a3   : > { %7637 = vmatprep.mubr.f32.mxu0 %v10730_v23  ;;  %8973 = vmatpush3.bf16.msra.mxu0 %v8970_v42  ;;  %v2106_v42 = vld [vmem:[#allocation9 + $0x3e8] sm:$0xff] }
 0x1a4   : > { %8975 = vmatprep.subr.bf16.mxu0 %v8974_v30 }
 0x1a6   : > { %7638 = vmatmul.mubr.f32.gmra.mrb[10].mxu0 %v10734_v24 }
 0x1a7   : > { %7640 = vmatprep.mubr.f32.mxu0 %v10738_v25  ;;  %8977 = vmatpush3.bf16.msra.mxu0 %v8974_v30  ;;  %v2431_v30 = vld [vmem:[#allocation9 + $0x100] sm:$0xff] }
 0x1a8   : > { %8979 = vmatprep.subr.bf16.mxu0 %v8978_v53 }
 0x1aa   : > { %7641 = vmatmul.mubr.f32.gmra.mrb[12].mxu0 %v10741_v26 }
 0x1ab   : > { %7643 = vmatprep.mubr.f32.mxu0 %v10744_v27  ;;  %8981 = vmatpush3.bf16.msra.mxu0 %v8978_v53  ;;  %v10030_v53 = vld [vmem:[#allocation2 + $0x31] sm:$0xff] }
 0x1ac   : > { %8983 = vmatprep.subr.bf16.mxu0 %v8982_v8 }
 0x1ae   : > { %7644 = vmatmul.mubr.f32.gmra.mrb[14].mxu0 %v10753_v32 }
 0x1af   : > { %7646 = vmatprep.mubr.f32.mxu0 %v10757_v33  ;;  %8985 = vmatpush3.bf16.msra.mxu0 %v8982_v8  ;;  %v2436_v8 = vld [vmem:[#allocation9 + $0x128] sm:$0xff] }
 0x1b0   : > { %8987 = vmatprep.subr.bf16.mxu0 %v8986_v6 }
 0x1b1   : > { %v7366_v61 = vpop.f32.mrb[0].mxu0 }
 0x1b2   : > { %v734_v63 = vpop.f32.mrb[1].mxu0  ;;  %7647 = vmatmul.mubr.f32.gmra.mrb[16].mxu0 %v10761_v36  ;;  %v2437_v61 = vld [vmem:[#allocation9 + $0x130] sm:$0xff] }
 0x1b3   : > { %7649 = vmatprep.mubr.f32.mxu0 %v12192_v39  ;;  %v2438_v63 = vld [vmem:[#allocation9 + $0x138] sm:$0xff] }
 0x1b6   : > { %7650 = vmatmul.mubr.f32.gmra.mrb[20].mxu0 %v12193_v48 }
 0x1b7   : > { %7652 = vmatprep.mubr.f32.mxu0 %v12194_v52 }
 0x1ba   : > { %7653 = vmatmul.mubr.f32.gmra.mrb[22].mxu0 %v12195_v49 }
 0x1bb   : > { %7655 = vmatprep.mubr.f32.mxu0 %v12196_v3 }
 0x1be   : > { %7656 = vmatmul.mubr.f32.gmra.mrb[24].mxu0 %v12197_v38 }
 0x1bf   : > { %7658 = vmatprep.mubr.f32.mxu0 %v12198_v12 }
 0x1c2   : > { %7659 = vmatmul.mubr.f32.gmra.mrb[26].mxu0 %v12199_v18 }
 0x1c3   : > { %7661 = vmatprep.mubr.f32.mxu0 %v12200_v59 }
 0x1c6   : > { %7662 = vmatmul.mubr.f32.gmra.mrb[28].mxu0 %v12201_v31 }
 0x1c7   : > { %7664 = vmatprep.mubr.f32.mxu0 %v12202_v35 }
 0x1ca   : > { %7665 = vmatmul.mubr.f32.gmra.mrb[30].mxu0 %v12203_v43 }
 0x1cb   : > { %7667 = vmatprep.mubr.f32.mxu0 %v12204_v45 }
 0x1ce   : > { %7668 = vmatmul.mubr.f32.gmra.mrb[32].mxu0 %v12205_v47 }
 0x1cf   : > { %7670 = vmatprep.mubr.f32.mxu0 %v12206_v55 }
 0x1d2   : > { %7671 = vmatmul.mubr.f32.gmra.mrb[34].mxu0 %v12207_v4 }
 0x1d3   : > { %7673 = vmatprep.mubr.f32.mxu0 %v12208_v21 }
 0x1d5   : > { %v7452_v51 = vpop.f32.mrb[18].mxu0 }
 0x1d6   : > { %v979_v58 = vpop.f32.mrb[19].mxu0  ;;  %7674 = vmatmul.mubr.f32.gmra.mrb[44].mxu0 %v12209_v0  ;;  %v10037_v51 = vld [vmem:[#allocation2 + $0x81] sm:$0xff] }
 0x1d7   : > { %7708 = vmatprep.mubr.f32.mxu0 %v10698_v10  ;;  %v2101_v10 = vld [vmem:[#allocation9 + $0x3c0] sm:$0xff] }
 0x1d8   : > { %v2443_v58 = vld [vmem:[#allocation9 + $0x160] sm:$0xff] }
 0x1da   : > { %7709 = vmatmul.mubr.f32.vlgmr.msra.gmra.mrb[46].mxu0 %v10701_v11  ;;  %v9002_v11 = vpack.c.bf16 %v2102_v40, %v2101_v10  ;;  %v10042_v10 = vld [vmem:[#allocation2 + $0xc1] sm:$0xff]  ;;  %v9046_v40 = vpack.c.bf16 %v2446_v22, %v2445_v13  ;;  %v11168_v22 = vld [vmem:[#allocation2 + $0xb2] sm:$0xff] }
 0x1db   : > { %8989 = vmatpush3.bf16.msra.mxu0 %v8986_v6  ;;  %7711 = vmatprep.mubr.f32.mxu0 %v10706_v14  ;;  %v2103_v14 = vld [vmem:[#allocation9 + $0x3d0] sm:$0xff]  ;;  %v9026_v6 = vpack.c.bf16 %v2436_v8, %v2435_v28  ;;  %v3028_v13 = vld [vmem:[#allocation9 + $0x408] sm:$0xff] }
 0x1dc   : > { %8991 = vmatprep.subr.bf16.mxu0 %v8990_v60  ;;  %v2735_v8 = vld [vmem:[#allocation9 + $0x2b0] sm:$0xff] }
 0x1de   : > { %7712 = vmatmul.mubr.f32.gmra.mrb[2].mxu0 %v10710_v15  ;;  %v12210_v15 = vmov 0.0  }
 0x1df   : > { %7714 = vmatprep.mubr.f32.mxu0 %v10714_v16  ;;  %8993 = vmatpush3.bf16.msra.mxu0 %v8990_v60  ;;  %3549 = vst [vmem:[#allocation2 + $0x1] sm:$0xff] %v12210_v15  ;;  %v11081_v16 = vld [vmem:[#allocation2 + $0xa] sm:$0xff] }
 0x1e0   : > { %8995 = vmatprep.subr.bf16.mxu0 %v8994_v7  ;;  %3550 = vst [vmem:[#allocation2 + $0x9] sm:$0xff] %v12210_v15  ;;  %v2444_v60 = vld [vmem:[#allocation9 + $0x168] sm:$0xff] }
 0x1e2   : > { %7715 = vmatmul.mubr.f32.gmra.mrb[4].mxu0 %v10717_v17  ;;  %v9006_v17 = vpack.c.bf16 %v2104_v41, %v2103_v14  ;;  %v2730_v14 = vld [vmem:[#allocation9 + $0x288] sm:$0xff] }
 0x1e3   : > { %7717 = vmatprep.mubr.f32.mxu0 %v10722_v19  ;;  %8997 = vmatpush3.bf16.msra.mxu0 %v8994_v7  ;;  %v2105_v19 = vld [vmem:[#allocation9 + $0x3e0] sm:$0xff]  ;;  %v9042_v7 = vpack.c.bf16 %v2444_v60, %v2443_v58  ;;  %v10043_v41 = vld [vmem:[#allocation2 + $0xc9] sm:$0xff]  ;;  %v2744_v58 = vld [vmem:[#allocation9 + $0x2f8] sm:$0xff] }
 0x1e4   : > { %8999 = vmatprep.subr.bf16.mxu0 %v8998_v34  ;;  %v11162_v60 = vld [vmem:[#allocation2 + $0x9a] sm:$0xff] }
 0x1e6   : > { %7718 = vmatmul.mubr.f32.gmra.mrb[6].mxu0 %v10725_v20  ;;  %v9010_v20 = vpack.c.bf16 %v2106_v42, %v2105_v19  ;;  %v10045_v19 = vld [vmem:[#allocation2 + $0xe1] sm:$0xff]  ;;  %v10046_v42 = vld [vmem:[#allocation2 + $0xf1] sm:$0xff] }
 0x1e7   : > { %7720 = vmatprep.mubr.f32.mxu0 %v10730_v23  ;;  %9001 = vmatpush3.bf16.msra.mxu0 %v8998_v34  ;;  %v2108_v23 = vld [vmem:[#allocation9 + $0x3f8] sm:$0xff] }
 0x1e8   : > { %9003 = vmatprep.subr.bf16.mxu0 %v9002_v11  ;;  %v9014_v5 = vpack.c.bf16 %v2108_v23, %v2107_v54  ;;  %v10041_v34 = vld [vmem:[#allocation2 + $0xb1] sm:$0xff]  ;;  %v10048_v54 = vld [vmem:[#allocation2 + $0x109] sm:$0xff] }
 0x1e9   : > { %v10049_v23 = vld [vmem:[#allocation2 + $0x111] sm:$0xff] }
 0x1ea   : > { %7721 = vmatmul.mubr.f32.gmra.mrb[8].mxu0 %v10734_v24  ;;  %v9018_v24 = vpack.c.bf16 %v2432_v37, %v2431_v30  ;;  %v10051_v30 = vld [vmem:[#allocation2 + $0x129] sm:$0xff]  ;;  %v10052_v37 = vld [vmem:[#allocation2 + $0x139] sm:$0xff] }
 0x1eb   : > { %7723 = vmatprep.mubr.f32.mxu0 %v10738_v25  ;;  %9005 = vmatpush3.bf16.msra.mxu0 %v9002_v11  ;;  %v2729_v11 = vld [vmem:[#allocation9 + $0x280] sm:$0xff] }
 0x1ec   : > { %9007 = vmatprep.subr.bf16.mxu0 %v9006_v17 }
 0x1ee   : > { %7724 = vmatmul.mubr.f32.gmra.mrb[10].mxu0 %v10741_v26 }
 0x1ef   : > { %7726 = vmatprep.mubr.f32.mxu0 %v10744_v27  ;;  %9009 = vmatpush3.bf16.msra.mxu0 %v9006_v17  ;;  %v9050_v17 = vpack.c.bf16 %v2730_v14, %v2729_v11  ;;  %v11176_v11 = vld [vmem:[#allocation2 + $0xda] sm:$0xff]  ;;  %v11180_v14 = vld [vmem:[#allocation2 + $0xe2] sm:$0xff] }
 0x1f0   : > { %9011 = vmatprep.subr.bf16.mxu0 %v9010_v20 }
 0x1f2   : > { %7727 = vmatmul.mubr.f32.gmra.mrb[12].mxu0 %v10753_v32  ;;  %v2433_v32 = vld [vmem:[#allocation9 + $0x110] sm:$0xff] }
 0x1f3   : > { %7729 = vmatprep.mubr.f32.mxu0 %v10757_v33  ;;  %9013 = vmatpush3.bf16.msra.mxu0 %v9010_v20  ;;  %v2434_v33 = vld [vmem:[#allocation9 + $0x118] sm:$0xff] }
 0x1f4   : > { %9015 = vmatprep.subr.bf16.mxu0 %v9014_v5  ;;  %v9022_v44 = vpack.c.bf16 %v2434_v33, %v2433_v32  ;;  %v10047_v20 = vld [vmem:[#allocation2 + $0xf9] sm:$0xff] }
 0x1f5   : > { %v12212_v33 = vld [vmem:[#allocation43_spill] sm:$0xff] }
 0x1f6   : > { %7730 = vmatmul.mubr.f32.gmra.mrb[14].mxu0 %v10761_v36 }
 0x1f7   : > { %7732 = vmatprep.mubr.f32.mxu0 %v12192_v39  ;;  %9017 = vmatpush3.bf16.msra.mxu0 %v9014_v5  ;;  %v10033_v39 = vld [vmem:[#allocation2 + $0x51] sm:$0xff]  ;;  %v10050_v5 = vld [vmem:[#allocation2 + $0x121] sm:$0xff] }
 0x1f8   : > { %9019 = vmatprep.subr.bf16.mxu0 %v9018_v24 }
 0x1fa   : > { %7733 = vmatmul.mubr.f32.gmra.mrb[16].mxu0 %v12193_v48  ;;  %v10034_v48 = vld [vmem:[#allocation2 + $0x61] sm:$0xff] }
 0x1fb   : > { %7735 = vmatprep.mubr.f32.mxu0 %v12194_v52  ;;  %v9030_v52 = vpack.c.bf16 %v2438_v63, %v2437_v61  ;;  %v2738_v61 = vld [vmem:[#allocation9 + $0x2c8] sm:$0xff]  ;;  %v11144_v63 = vld [vmem:[#allocation2 + $0x52] sm:$0xff] }
 0x1fe   : > { %7736 = vmatmul.mubr.f32.gmra.mrb[20].mxu0 %v12195_v49  ;;  %v2439_v49 = vld [vmem:[#allocation9 + $0x140] sm:$0xff] }
 0x1ff   : > { %7738 = vmatprep.mubr.f32.mxu0 %v12196_v3  ;;  %v2440_v3 = vld [vmem:[#allocation9 + $0x148] sm:$0xff] }
 0x202   : > { %7739 = vmatmul.mubr.f32.gmra.mrb[22].mxu0 %v12197_v38  ;;  %v10035_v38 = vld [vmem:[#allocation2 + $0x69] sm:$0xff] }
 0x203   : > { %7741 = vmatprep.mubr.f32.mxu0 %v12198_v12  ;;  %v10036_v12 = vld [vmem:[#allocation2 + $0x79] sm:$0xff] }
 0x206   : > { %7742 = vmatmul.mubr.f32.gmra.mrb[24].mxu0 %v12199_v18  ;;  %v9034_v18 = vpack.c.bf16 %v2440_v3, %v2439_v49  ;;  %v2740_v49 = vld [vmem:[#allocation9 + $0x2d8] sm:$0xff]  ;;  %v11150_v3 = vld [vmem:[#allocation2 + $0x6a] sm:$0xff] }
 0x207   : > { %7744 = vmatprep.mubr.f32.mxu0 %v12200_v59  ;;  %v11111_v59 = vld [vmem:[#allocation2 + $0x19a] sm:$0xff] }
 0x208   : > { %3583 = vst [vmem:[#allocation2 + $0x199] sm:$0xff] %v12210_v15 }
 0x20a   : > { %7745 = vmatmul.mubr.f32.gmra.mrb[26].mxu0 %v12201_v31  ;;  %v2441_v31 = vld [vmem:[#allocation9 + $0x150] sm:$0xff] }
 0x20b   : > { %7747 = vmatprep.mubr.f32.mxu0 %v12202_v35  ;;  %v2442_v35 = vld [vmem:[#allocation9 + $0x158] sm:$0xff] }
 0x20c   : > { %v9038_v57 = vpack.c.bf16 %v2442_v35, %v2441_v31  ;;  %v2742_v31 = vld [vmem:[#allocation9 + $0x2e8] sm:$0xff] }
 0x20d   : > { %v11156_v35 = vld [vmem:[#allocation2 + $0x82] sm:$0xff] }
 0x20e   : > { %7748 = vmatmul.mubr.f32.gmra.mrb[28].mxu0 %v12203_v43  ;;  %v11114_v43 = vld [vmem:[#allocation2 + $0x1a2] sm:$0xff] }
 0x20f   : > { %7750 = vmatprep.mubr.f32.mxu0 %v12204_v45  ;;  %3584 = vst [vmem:[#allocation2 + $0x1a1] sm:$0xff] %v12210_v15  ;;  %v10044_v15 = vld [vmem:[#allocation2 + $0xd9] sm:$0xff] }
 0x212   : > { %7751 = vmatmul.mubr.f32.gmra.mrb[30].mxu0 %v12205_v47 }
 0x213   : > { %7753 = vmatprep.mubr.f32.mxu0 %v12206_v55 }
 0x216   : > { %7754 = vmatmul.mubr.f32.gmra.mrb[32].mxu0 %v12207_v4 }
 0x217   : > { %7756 = vmatprep.mubr.f32.mxu0 %v12208_v21 }
 0x219   : > { %v7503_v25 = vpop.f32.mrb[36].mxu0 }
 0x21a   : > { %v1149_v26 = vpop.f32.mrb[37].mxu0  ;;  %7757 = vmatmul.mubr.f32.gmra.mrb[34].mxu0 %v12209_v0  ;;  %v10054_v25 = vld [vmem:[#allocation2 + $0x151] sm:$0xff] }
 0x21b   : > { %7759 = vmatprep.mubr.f32.mxu0 %v10944_v50  ;;  %v10055_v26 = vld [vmem:[#allocation2 + $0x159] sm:$0xff] }
 0x21d   : > { %v7538_v27 = vpop.f32.mrb[38].mxu0 }
 0x21e   : > { %v1241_v36 = vpop.f32.mrb[39].mxu0  ;;  %7760 = vmatmul.mubr.f32.gmra.mrb[48].mxu0 %v12211_v62 }
 0x21f   : > { %7794 = vmatprep.mubr.f32.mxu0 %v10030_v53  ;;  %v2732_v53 = vld [vmem:[#allocation9 + $0x298] sm:$0xff] }
 0x222   : > { %7795 = vmatmul.mubr.f32.vlgmr.msra.gmra.mrb[50].mxu0 %v10031_v56  ;;  %v2736_v56 = vld [vmem:[#allocation9 + $0x2b8] sm:$0xff] }
 0x223   : > { %9021 = vmatpush3.bf16.msra.mxu0 %v9018_v24  ;;  %7797 = vmatprep.mubr.f32.mxu0 %v10032_v29  ;;  %v10053_v24 = vld [vmem:[#allocation2 + $0x141] sm:$0xff]  ;;  %v11140_v29 = vld [vmem:[#allocation2 + $0x4a] sm:$0xff] }
 0x224   : > { %9023 = vmatprep.subr.bf16.mxu0 %v9022_v44 }
 0x226   : > { %7798 = vmatmul.mubr.f32.gmra.mrb[2].mxu0 %v10033_v39  ;;  %v11146_v39 = vld [vmem:[#allocation2 + $0x62] sm:$0xff] }
 0x227   : > { %7800 = vmatprep.mubr.f32.mxu0 %v10034_v48  ;;  %9025 = vmatpush3.bf16.msra.mxu0 %v9022_v44  ;;  %v12213_v44 = vld [vmem:[#allocation44_spill] sm:$0xff] }
 0x228   : > { %9027 = vmatprep.subr.bf16.mxu0 %v9026_v6 }
 0x22a   : > { %7801 = vmatmul.mubr.f32.gmra.mrb[4].mxu0 %v10035_v38  ;;  %v11152_v38 = vld [vmem:[#allocation2 + $0x7a] sm:$0xff] }
 0x22b   : > { %7803 = vmatprep.mubr.f32.mxu0 %v10036_v12  ;;  %9029 = vmatpush3.bf16.msra.mxu0 %v9026_v6  ;;  %v2737_v6 = vld [vmem:[#allocation9 + $0x2c0] sm:$0xff] }
 0x22c   : > { %9031 = vmatprep.subr.bf16.mxu0 %v9030_v52  ;;  %v9066_v48 = vpack.c.bf16 %v2738_v61, %v2737_v6  ;;  %v3038_v6 = vld [vmem:[#allocation9 + $0x458] sm:$0xff] }
 0x22e   : > { %7804 = vmatmul.mubr.f32.gmra.mrb[6].mxu0 %v10037_v51  ;;  %v11158_v51 = vld [vmem:[#allocation2 + $0x92] sm:$0xff] }
 0x22f   : > { %7806 = vmatprep.mubr.f32.mxu0 %v10038_v9  ;;  %9033 = vmatpush3.bf16.msra.mxu0 %v9030_v52  ;;  %v2739_v52 = vld [vmem:[#allocation9 + $0x2d0] sm:$0xff] }
 0x230   : > { %9035 = vmatprep.subr.bf16.mxu0 %v9034_v18  ;;  %v9070_v12 = vpack.c.bf16 %v2740_v49, %v2739_v52  ;;  %v3040_v52 = vld [vmem:[#allocation9 + $0x468] sm:$0xff] }
 0x232   : > { %7807 = vmatmul.mubr.f32.gmra.mrb[8].mxu0 %v10039_v1  ;;  %v11164_v1 = vld [vmem:[#allocation2 + $0xaa] sm:$0xff] }
 0x233   : > { %7809 = vmatprep.mubr.f32.mxu0 %v10040_v2  ;;  %9037 = vmatpush3.bf16.msra.mxu0 %v9034_v18  ;;  %v2741_v18 = vld [vmem:[#allocation9 + $0x2e0] sm:$0xff] }
 0x234   : > { %9039 = vmatprep.subr.bf16.mxu0 %v9038_v57  ;;  %v9074_v9 = vpack.c.bf16 %v2742_v31, %v2741_v18  ;;  %v3042_v18 = vld [vmem:[#allocation9 + $0x478] sm:$0xff] }
 0x236   : > { %7810 = vmatmul.mubr.f32.gmra.mrb[10].mxu0 %v10041_v34  ;;  %v11170_v34 = vld [vmem:[#allocation2 + $0xc2] sm:$0xff] }
 0x237   : > { %7812 = vmatprep.mubr.f32.mxu0 %v10042_v10  ;;  %9041 = vmatpush3.bf16.msra.mxu0 %v9038_v57  ;;  %v2743_v57 = vld [vmem:[#allocation9 + $0x2f0] sm:$0xff] }
 0x238   : > { %9043 = vmatprep.subr.bf16.mxu0 %v9042_v7  ;;  %v9078_v2 = vpack.c.bf16 %v2744_v58, %v2743_v57 }
 0x23a   : > { %7813 = vmatmul.mubr.f32.gmra.mrb[12].mxu0 %v10043_v41  ;;  %v11182_v41 = vld [vmem:[#allocation2 + $0xf2] sm:$0xff] }
 0x23b   : > { %7815 = vmatprep.mubr.f32.mxu0 %v10044_v15  ;;  %9045 = vmatpush3.bf16.msra.mxu0 %v9042_v7  ;;  %v3027_v7 = vld [vmem:[#allocation9 + $0x400] sm:$0xff] }
 0x23c   : > { %9047 = vmatprep.subr.bf16.mxu0 %v9046_v40  ;;  %v9082_v10 = vpack.c.bf16 %v3028_v13, %v3027_v7  ;;  %v11186_v15 = vld [vmem:[#allocation2 + $0xfa] sm:$0xff] }
 0x23e   : > { %7816 = vmatmul.mubr.f32.gmra.mrb[14].mxu0 %v10045_v19  ;;  %v11192_v19 = vld [vmem:[#allocation2 + $0x112] sm:$0xff] }
 0x23f   : > { %7818 = vmatprep.mubr.f32.mxu0 %v10046_v42  ;;  %9049 = vmatpush3.bf16.msra.mxu0 %v9046_v40  ;;  %v11174_v40 = vld [vmem:[#allocation2 + $0xca] sm:$0xff]  ;;  %v11194_v42 = vld [vmem:[#allocation2 + $0x122] sm:$0xff] }
 0x240   : > { %9051 = vmatprep.subr.bf16.mxu0 %v9050_v17 }
 0x242   : > { %7819 = vmatmul.mubr.f32.gmra.mrb[16].mxu0 %v10047_v20  ;;  %v11198_v20 = vld [vmem:[#allocation2 + $0x12a] sm:$0xff] }
 0x243   : > { %7821 = vmatprep.mubr.f32.mxu0 %v10048_v54  ;;  %v11200_v54 = vld [vmem:[#allocation2 + $0x13a] sm:$0xff] }
 0x246   : > { %7822 = vmatmul.mubr.f32.gmra.mrb[20].mxu0 %v10049_v23  ;;  %v11204_v23 = vld [vmem:[#allocation2 + $0x142] sm:$0xff] }
 0x247   : > { %7824 = vmatprep.mubr.f32.mxu0 %v10050_v5  ;;  %v11206_v5 = vld [vmem:[#allocation2 + $0x152] sm:$0xff] }
 0x24a   : > { %7825 = vmatmul.mubr.f32.gmra.mrb[22].mxu0 %v10051_v30  ;;  %v11210_v30 = vld [vmem:[#allocation2 + $0x15a] sm:$0xff] }
 0x24b   : > { %7827 = vmatprep.mubr.f32.mxu0 %v10052_v37  ;;  %v11212_v37 = vld [vmem:[#allocation2 + $0x16a] sm:$0xff] }
 0x24e   : > { %7828 = vmatmul.mubr.f32.gmra.mrb[24].mxu0 %v10053_v24  ;;  %v11216_v24 = vld [vmem:[#allocation2 + $0x172] sm:$0xff] }
 0x24f   : > { %7830 = vmatprep.mubr.f32.mxu0 %v10054_v25  ;;  %v11218_v25 = vld [vmem:[#allocation2 + $0x182] sm:$0xff] }
 0x252   : > { %7831 = vmatmul.mubr.f32.gmra.mrb[26].mxu0 %v10055_v26  ;;  %v11222_v26 = vld [vmem:[#allocation2 + $0x18a] sm:$0xff] }
 0x253   : > { %7833 = vmatprep.mubr.f32.mxu0 %v12204_v45  ;;  %v2731_v45 = vld [vmem:[#allocation9 + $0x290] sm:$0xff] }
 0x256   : > { %7834 = vmatmul.mubr.f32.gmra.mrb[28].mxu0 %v12205_v47 }
 0x257   : > { %7836 = vmatprep.mubr.f32.mxu0 %v12206_v55  ;;  %v11128_v55 = vld [vmem:[#allocation2 + $0x1a] sm:$0xff] }
 0x25a   : > { %7837 = vmatmul.mubr.f32.gmra.mrb[30].mxu0 %v12207_v4  ;;  %v9054_v4 = vpack.c.bf16 %v2732_v53, %v2731_v45  ;;  %v3030_v45 = vld [vmem:[#allocation9 + $0x418] sm:$0xff] }
 0x25b   : > { %7839 = vmatprep.mubr.f32.mxu0 %v12208_v21  ;;  %v2733_v21 = vld [vmem:[#allocation9 + $0x2a0] sm:$0xff] }
 0x25e   : > { %7840 = vmatmul.mubr.f32.gmra.mrb[32].mxu0 %v12209_v0  ;;  %v2734_v0 = vld [vmem:[#allocation9 + $0x2a8] sm:$0xff] }
 0x25f   : > { %7842 = vmatprep.mubr.f32.mxu0 %v10944_v50  ;;  %v11132_v50 = vld [vmem:[#allocation2 + $0x22] sm:$0xff]  ;;  %v9058_v28 = vpack.c.bf16 %v2734_v0, %v2733_v21  ;;  %v3033_v0 = vld [vmem:[#allocation9 + $0x430] sm:$0xff] }
 0x261   : > { %v7589_v27 = vpop.f32.mrb[40].mxu0 }
 0x262   : > { %v1411_v32 = vpop.f32.mrb[41].mxu0  ;;  %7843 = vmatmul.mubr.f32.gmra.mrb[34].mxu0 %v12211_v62  ;;  %v11134_v62 = vld [vmem:[#allocation2 + $0x32] sm:$0xff] }
 0x263   : > { %7845 = vmatprep.mubr.f32.mxu0 %v12212_v33 }
 0x265   : > { %v7624_v36 = vpop.f32.mrb[42].mxu0 }
 0x266   : > { %v1579_v47 = vpop.f32.mrb[43].mxu0  ;;  %7846 = vmatmul.mubr.f32.gmra.mrb[52].mxu0 %v12213_v44  ;;  %v3029_v36 = vld [vmem:[#allocation9 + $0x410] sm:$0xff]  ;;  %v3031_v44 = vld [vmem:[#allocation9 + $0x420] sm:$0xff] }
 0x267   : > { %7880 = vmatprep.mubr.f32.mxu0 %v11077_v46  ;;  %v11138_v46 = vld [vmem:[#allocation2 + $0x3a] sm:$0xff]  ;;  %v9086_v47 = vpack.c.bf16 %v3030_v45, %v3029_v36 }
 0x268   : > { %v3642_v36 = vld [vmem:[#allocation11 + $0x1a0] sm:$0xff] }
 0x26a   : > { %7881 = vmatmul.mubr.f32.vlgmr.msra.gmra.mrb[54].mxu0 %v11081_v16  ;;  %v9062_v16 = vpack.c.bf16 %v2736_v56, %v2735_v8  ;;  %v3036_v56 = vld [vmem:[#allocation9 + $0x448] sm:$0xff] }
 0x26b   : > { %9053 = vmatpush3.bf16.msra.mxu0 %v9050_v17  ;;  %7883 = vmatprep.mubr.f32.mxu0 %v11128_v55  ;;  %v11188_v17 = vld [vmem:[#allocation2 + $0x10a] sm:$0xff] }
 0x26c   : > { %9055 = vmatprep.subr.bf16.mxu0 %v9054_v4 }
 0x26e   : > { %7884 = vmatmul.mubr.f32.gmra.mrb[2].mxu0 %v11132_v50 }
 0x26f   : > { %7886 = vmatprep.mubr.f32.mxu0 %v11134_v62  ;;  %9057 = vmatpush3.bf16.msra.mxu0 %v9054_v4  ;;  %v3032_v4 = vld [vmem:[#allocation9 + $0x428] sm:$0xff] }
 0x270   : > { %9059 = vmatprep.subr.bf16.mxu0 %v9058_v28  ;;  %v9090_v21 = vpack.c.bf16 %v3032_v4, %v3031_v44 }
 0x272   : > { %7887 = vmatmul.mubr.f32.gmra.mrb[4].mxu0 %v11138_v46 }
 0x273   : > { %7889 = vmatprep.mubr.f32.mxu0 %v11140_v29  ;;  %9061 = vmatpush3.bf16.msra.mxu0 %v9058_v28  ;;  %v3034_v28 = vld [vmem:[#allocation9 + $0x438] sm:$0xff] }
 0x274   : > { %9063 = vmatprep.subr.bf16.mxu0 %v9062_v16  ;;  %v9094_v8 = vpack.c.bf16 %v3034_v28, %v3033_v0 }
 0x276   : > { %7890 = vmatmul.mubr.f32.gmra.mrb[6].mxu0 %v11144_v63 }
 0x277   : > { %7892 = vmatprep.mubr.f32.mxu0 %v11146_v39  ;;  %9065 = vmatpush3.bf16.msra.mxu0 %v9062_v16  ;;  %v3037_v16 = vld [vmem:[#allocation9 + $0x450] sm:$0xff] }
 0x278   : > { %9067 = vmatprep.subr.bf16.mxu0 %v9066_v48  ;;  %v9102_v61 = vpack.c.bf16 %v3038_v6, %v3037_v16 }
 0x27a   : > { %7893 = vmatmul.mubr.f32.gmra.mrb[8].mxu0 %v11150_v3 }
 0x27b   : > { %7895 = vmatprep.mubr.f32.mxu0 %v11152_v38  ;;  %9069 = vmatpush3.bf16.msra.mxu0 %v9066_v48  ;;  %v3039_v48 = vld [vmem:[#allocation9 + $0x460] sm:$0xff] }
 0x27c   : > { %9071 = vmatprep.subr.bf16.mxu0 %v9070_v12  ;;  %v9106_v49 = vpack.c.bf16 %v3040_v52, %v3039_v48 }
 0x27e   : > { %7896 = vmatmul.mubr.f32.gmra.mrb[10].mxu0 %v11156_v35 }
 0x27f   : > { %7898 = vmatprep.mubr.f32.mxu0 %v11158_v51  ;;  %9073 = vmatpush3.bf16.msra.mxu0 %v9070_v12  ;;  %v3041_v12 = vld [vmem:[#allocation9 + $0x470] sm:$0xff] }
 0x280   : > { %9075 = vmatprep.subr.bf16.mxu0 %v9074_v9  ;;  %v9110_v31 = vpack.c.bf16 %v3042_v18, %v3041_v12 }
 0x282   : > { %7899 = vmatmul.mubr.f32.gmra.mrb[12].mxu0 %v11162_v60 }
 0x283   : > { %7901 = vmatprep.mubr.f32.mxu0 %v11164_v1  ;;  %9077 = vmatpush3.bf16.msra.mxu0 %v9074_v9  ;;  %v2426_v9 = vld [vmem:[#allocation2 + $0x1b2] sm:$0xff] }
 0x284   : > { %9079 = vmatprep.subr.bf16.mxu0 %v9078_v2 }
 0x286   : > { %7902 = vmatmul.mubr.f32.gmra.mrb[14].mxu0 %v11168_v22 }
 0x287   : > { %7904 = vmatprep.mubr.f32.mxu0 %v11170_v34  ;;  %9081 = vmatpush3.bf16.msra.mxu0 %v9078_v2  ;;  %v2427_v2 = vld [vmem:[#allocation2 + $0x1ba] sm:$0xff] }
 0x288   : > { %9083 = vmatprep.subr.bf16.mxu0 %v9082_v10 }
 0x28a   : > { %7905 = vmatmul.mubr.f32.gmra.mrb[16].mxu0 %v11174_v40 }
 0x28b   : > { %7907 = vmatprep.mubr.f32.mxu0 %v11176_v11 }
 0x28e   : > { %7908 = vmatmul.mubr.f32.gmra.mrb[20].mxu0 %v11180_v14 }
 0x28f   : > { %7910 = vmatprep.mubr.f32.mxu0 %v11182_v41 }
 0x292   : > { %7911 = vmatmul.mubr.f32.gmra.mrb[22].mxu0 %v11186_v15 }
 0x293   : > { %7913 = vmatprep.mubr.f32.mxu0 %v11188_v17 }
 0x296   : > { %7914 = vmatmul.mubr.f32.gmra.mrb[24].mxu0 %v11192_v19 }
 0x297   : > { %7916 = vmatprep.mubr.f32.mxu0 %v11194_v42 }
 0x29a   : > { %7917 = vmatmul.mubr.f32.gmra.mrb[26].mxu0 %v11198_v20 }
 0x29b   : > { %7919 = vmatprep.mubr.f32.mxu0 %v11200_v54 }
 0x29e   : > { %7920 = vmatmul.mubr.f32.gmra.mrb[28].mxu0 %v11204_v23 }
 0x29f   : > { %7922 = vmatprep.mubr.f32.mxu0 %v11206_v5 }
 0x2a2   : > { %7923 = vmatmul.mubr.f32.gmra.mrb[30].mxu0 %v11210_v30 }
 0x2a3   : > { %7925 = vmatprep.mubr.f32.mxu0 %v11212_v37 }
 0x2a6   : > { %7926 = vmatmul.mubr.f32.gmra.mrb[32].mxu0 %v11216_v24 }
 0x2a7   : > { %7928 = vmatprep.mubr.f32.mxu0 %v11218_v25 }
 0x2a9   : > { %v7675_v27 = vpop.f32.mrb[44].mxu0 }
 0x2aa   : > { %v1749_v32 = vpop.f32.mrb[45].mxu0  ;;  %7929 = vmatmul.mubr.f32.gmra.mrb[34].mxu0 %v11222_v26  ;;  %v3639_v27 = vld [vmem:[#allocation11 + $0x188] sm:$0xff] }
 0x2ab   : > { %7931 = vmatprep.mubr.f32.mxu0 %v11111_v59  ;;  %v3640_v32 = vld [vmem:[#allocation11 + $0x190] sm:$0xff] }
 0x2ad   : > { %v7710_v33 = vpop.f32.mrb[46].mxu0 }
 0x2ae   : > { %v1877_v53 = vpop.f32.mrb[47].mxu0  ;;  %7932 = vmatmul.mubr.f32.gmra.mrb[56].mxu0 %v11114_v43  ;;  %v3641_v33 = vld [vmem:[#allocation11 + $0x198] sm:$0xff] }
 0x2af   : > { %7966 = vmatprep.mubr.f32.mxu0 %v11128_v55  ;;  %v3035_v55 = vld [vmem:[#allocation9 + $0x440] sm:$0xff] }
 0x2b2   : > { %7967 = vmatmul.mubr.f32.vlgmr.msra.gmra.mrb[58].mxu0 %v11132_v50  ;;  %v9098_v50 = vpack.c.bf16 %v3036_v56, %v3035_v55 }
 0x2b3   : > { %9085 = vmatpush3.bf16.msra.mxu0 %v9082_v10  ;;  %7969 = vmatprep.mubr.f32.mxu0 %v11134_v62  ;;  %v3638_v10 = vld [vmem:[#allocation11 + $0x180] sm:$0xff] }
 0x2b4   : > { %9087 = vmatprep.subr.bf16.mxu0 %v9086_v47 }
 0x2b6   : > { %7970 = vmatmul.mubr.f32.gmra.mrb[2].mxu0 %v11138_v46 }
 0x2b7   : > { %7972 = vmatprep.mubr.f32.mxu0 %v11140_v29  ;;  %9089 = vmatpush3.bf16.msra.mxu0 %v9086_v47 }
 0x2b8   : > { %9091 = vmatprep.subr.bf16.mxu0 %v9090_v21 }
 0x2ba   : > { %7973 = vmatmul.mubr.f32.gmra.mrb[4].mxu0 %v11144_v63 }
 0x2bb   : > { %7975 = vmatprep.mubr.f32.mxu0 %v11146_v39  ;;  %9093 = vmatpush3.bf16.msra.mxu0 %v9090_v21 }
 0x2bc   : > { %9095 = vmatprep.subr.bf16.mxu0 %v9094_v8 }
 0x2be   : > { %7976 = vmatmul.mubr.f32.gmra.mrb[6].mxu0 %v11150_v3 }
 0x2bf   : > { %7978 = vmatprep.mubr.f32.mxu0 %v11152_v38  ;;  %9097 = vmatpush3.bf16.msra.mxu0 %v9094_v8 }
 0x2c0   : > { %9099 = vmatprep.subr.bf16.mxu0 %v9098_v50 }
 0x2c2   : > { %7979 = vmatmul.mubr.f32.gmra.mrb[8].mxu0 %v11156_v35 }
 0x2c3   : > { %7981 = vmatprep.mubr.f32.mxu0 %v11158_v51  ;;  %9101 = vmatpush3.bf16.msra.mxu0 %v9098_v50 }
 0x2c4   : > { %9103 = vmatprep.subr.bf16.mxu0 %v9102_v61 }
 0x2c6   : > { %7982 = vmatmul.mubr.f32.gmra.mrb[10].mxu0 %v11162_v60 }
 0x2c7   : > { %7984 = vmatprep.mubr.f32.mxu0 %v11164_v1  ;;  %9105 = vmatpush3.bf16.msra.mxu0 %v9102_v61 }
 0x2c8   : > { %9107 = vmatprep.subr.bf16.mxu0 %v9106_v49 }
 0x2ca   : > { %7985 = vmatmul.mubr.f32.gmra.mrb[12].mxu0 %v11168_v22 }
 0x2cb   : > { %7987 = vmatprep.mubr.f32.mxu0 %v11170_v34  ;;  %9109 = vmatpush3.bf16.msra.mxu0 %v9106_v49 }
 0x2cc   : > { %9111 = vmatprep.subr.bf16.mxu0 %v9110_v31 }
 0x2ce   : > { %7988 = vmatmul.mubr.f32.gmra.mrb[14].mxu0 %v11174_v40 }
 0x2cf   : > { %7990 = vmatprep.mubr.f32.mxu0 %v11176_v11  ;;  %9113 = vmatpush3.bf16.msra.mxu0 %v9110_v31  ;;  %v11331_v31 = vld [vmem:[%s12044_s4] ss:$0 sm:$0xff] }
 0x2d2   : > { %7991 = vmatmul.mubr.f32.gmra.mrb[16].mxu0 %v11180_v14 }
 0x2d3   : > { %7993 = vmatprep.mubr.f32.mxu0 %v11182_v41 }
 0x2d6   : > { %7994 = vmatmul.mubr.f32.gmra.mrb[20].mxu0 %v11186_v15 }
 0x2d7   : > { %7996 = vmatprep.mubr.f32.mxu0 %v11188_v17 }
 0x2da   : > { %7997 = vmatmul.mubr.f32.gmra.mrb[22].mxu0 %v11192_v19 }
 0x2db   : > { %7999 = vmatprep.mubr.f32.mxu0 %v11194_v42 }
 0x2de   : > { %8000 = vmatmul.mubr.f32.gmra.mrb[24].mxu0 %v11198_v20 }
 0x2df   : > { %8002 = vmatprep.mubr.f32.mxu0 %v11200_v54 }
 0x2e2   : > { %8003 = vmatmul.mubr.f32.gmra.mrb[26].mxu0 %v11204_v23 }
 0x2e3   : > { %8005 = vmatprep.mubr.f32.mxu0 %v11206_v5 }
 0x2e6   : > { %8006 = vmatmul.mubr.f32.gmra.mrb[28].mxu0 %v11210_v30 }
 0x2e7   : > { %8008 = vmatprep.mubr.f32.mxu0 %v11212_v37 }
 0x2ea   : > { %8009 = vmatmul.mubr.f32.gmra.mrb[30].mxu0 %v11216_v24 }
 0x2eb   : > { %8011 = vmatprep.mubr.f32.mxu0 %v11218_v25 }
 0x2ee   : > { %8012 = vmatmul.mubr.f32.gmra.mrb[32].mxu0 %v11222_v26 }
 0x2ef   : > { %8014 = vmatprep.mubr.f32.mxu0 %v11111_v59 }
 0x2f1   : > { %v7761_v57 = vpop.f32.mrb[48].mxu0 }
 0x2f2   : > { %v2047_v58 = vpop.f32.mrb[49].mxu0  ;;  %8015 = vmatmul.mubr.f32.gmra.mrb[34].mxu0 %v11114_v43 }
 0x2f3   : > { %8017 = vmatprep.mubr.f32.mxu0 %v2426_v9 }
 0x2f5   : > { %v7796_v7 = vpop.f32.mrb[50].mxu0 }
 0x2f6   : > { %v2175_v13 = vpop.f32.mrb[51].mxu0  ;;  %8018 = vmatmul.mubr.f32.gmra.mrb[60].mxu0 %v2427_v2 }
 0x2f7   : > { %8052 = vmatprep.mubr.f32.mxu0 %v11134_v62  ;;  %v9114_v62 = vpack.c.bf16 %v3639_v27, %v3638_v10 }
 0x2f9   : > { %9115 = vmatprep.subr.bf16.mxu1 %v9114_v62 }
 0x2fa   : > { %8053 = vmatmul.mubr.f32.vlgmr.msra.gmra.mrb[62].mxu0 %v11138_v46  ;;  %v9118_v46 = vpack.c.bf16 %v3641_v33, %v3640_v32  ;;  %9117 = vmatpush3.bf16.msra.mxu1 %v9114_v62 }
 0x2fb   : > { %8055 = vmatprep.mubr.f32.mxu0 %v11140_v29  ;;  %v3643_v29 = vld [vmem:[#allocation11 + $0x1a8] sm:$0xff] }
 0x2fc   : > { %9119 = vmatprep.subr.bf16.mxu1 %v9118_v46 }
 0x2fe   : > { %8056 = vmatmul.mubr.f32.gmra.mrb[2].mxu0 %v11144_v63  ;;  %v9122_v63 = vpack.c.bf16 %v3643_v29, %v3642_v36  ;;  %9121 = vmatpush3.bf16.msra.mxu1 %v9118_v46 }
 0x2ff   : > { %8058 = vmatprep.mubr.f32.mxu0 %v11146_v39 }
 0x300   : > { %9123 = vmatprep.subr.bf16.mxu1 %v9122_v63 }
 0x302   : > { %8059 = vmatmul.mubr.f32.gmra.mrb[4].mxu0 %v11150_v3  ;;  %9125 = vmatpush3.bf16.msra.mxu1 %v9122_v63 }
 0x303   : > { %8061 = vmatprep.mubr.f32.mxu0 %v11152_v38 }
 0x306   : > { %8062 = vmatmul.mubr.f32.gmra.mrb[6].mxu0 %v11156_v35 }
 0x307   : > { %8064 = vmatprep.mubr.f32.mxu0 %v11158_v51  ;;  %v3644_v51 = vld [vmem:[#allocation11 + $0x1b0] sm:$0xff] }
 0x30a   : > { %8065 = vmatmul.mubr.f32.gmra.mrb[8].mxu0 %v11162_v60  ;;  %v3645_v60 = vld [vmem:[#allocation11 + $0x1b8] sm:$0xff] }
 0x30b   : > { %8067 = vmatprep.mubr.f32.mxu0 %v11164_v1  ;;  %v9126_v1 = vpack.c.bf16 %v3645_v60, %v3644_v51 }
 0x30d   : > { %9127 = vmatprep.subr.bf16.mxu1 %v9126_v1 }
 0x30e   : > { %8068 = vmatmul.mubr.f32.gmra.mrb[10].mxu0 %v11168_v22  ;;  %9129 = vmatpush3.bf16.msra.mxu1 %v9126_v1  ;;  %v3646_v22 = vld [vmem:[#allocation11 + $0x1c0] sm:$0xff] }
 0x30f   : > { %8070 = vmatprep.mubr.f32.mxu0 %v11170_v34  ;;  %v3647_v34 = vld [vmem:[#allocation11 + $0x1c8] sm:$0xff] }
 0x312   : > { %8071 = vmatmul.mubr.f32.gmra.mrb[12].mxu0 %v11174_v40  ;;  %v9130_v40 = vpack.c.bf16 %v3647_v34, %v3646_v22 }
 0x313   : > { %8073 = vmatprep.mubr.f32.mxu0 %v11176_v11  ;;  %v3648_v11 = vld [vmem:[#allocation11 + $0x1d0] sm:$0xff] }
 0x314   : > { %9131 = vmatprep.subr.bf16.mxu1 %v9130_v40 }
 0x315   : > { %9133 = vmatpush3.bf16.msra.mxu1 %v9130_v40 }
 0x316   : > { %8074 = vmatmul.mubr.f32.gmra.mrb[14].mxu0 %v11180_v14 }
 0x317   : > { %8076 = vmatprep.mubr.f32.mxu0 %v11182_v41  ;;  %v3651_v41 = vld [vmem:[#allocation11 + $0x1e8] sm:$0xff] }
 0x31a   : > { %8077 = vmatmul.mubr.f32.gmra.mrb[16].mxu0 %v11186_v15 }
 0x31b   : > { %8079 = vmatprep.mubr.f32.mxu0 %v11188_v17  ;;  %v3652_v17 = vld [vmem:[#allocation11 + $0x1f0] sm:$0xff] }
 0x31e   : > { %8080 = vmatmul.mubr.f32.gmra.mrb[20].mxu0 %v11192_v19  ;;  %v3653_v19 = vld [vmem:[#allocation11 + $0x1f8] sm:$0xff] }
 0x31f   : > { %8082 = vmatprep.mubr.f32.mxu0 %v11194_v42  ;;  %v9142_v42 = vpack.c.bf16 %v3653_v19, %v3652_v17 }
 0x322   : > { %8083 = vmatmul.mubr.f32.gmra.mrb[22].mxu0 %v11198_v20  ;;  %v3621_v20 = vld [vmem:[#allocation11] sm:$0xff] }
 0x323   : > { %8085 = vmatprep.mubr.f32.mxu0 %v11200_v54  ;;  %v3622_v54 = vld [vmem:[#allocation11 + $0x8] sm:$0xff] }
 0x326   : > { %8086 = vmatmul.mubr.f32.gmra.mrb[24].mxu0 %v11204_v23  ;;  %v11293_v23 = vpack.c.bf16 %v3622_v54, %v3621_v20 }
 0x327   : > { %8088 = vmatprep.mubr.f32.mxu0 %v11206_v5  ;;  %v11296_v5 = vpop.f32.mrb[0].mxu1 }
 0x32a   : > { %8089 = vmatmul.mubr.f32.gmra.mrb[26].mxu0 %v11210_v30  ;;  %v11298_v30 = vpop.f32.mrb[1].mxu1 }
 0x32b   : > { %8091 = vmatprep.mubr.f32.mxu0 %v11212_v37  ;;  %v11300_v37 = vpop.f32.mrb[2].mxu1 }
 0x32e   : > { %8092 = vmatmul.mubr.f32.gmra.mrb[28].mxu0 %v11216_v24  ;;  %v11302_v24 = vpop.f32.mrb[3].mxu1 }
 0x32f   : > { %8094 = vmatprep.mubr.f32.mxu0 %v11218_v25  ;;  %v11304_v25 = vpop.f32.mrb[4].mxu1 }
 0x332   : > { %8095 = vmatmul.mubr.f32.gmra.mrb[30].mxu0 %v11222_v26  ;;  %v11306_v26 = vpop.f32.mrb[5].mxu1 }
 0x333   : > { %8097 = vmatprep.mubr.f32.mxu0 %v11111_v59  ;;  %v3649_v59 = vld [vmem:[#allocation11 + $0x1d8] sm:$0xff]  ;;  %v11308_v45 = vpop.f32.mrb[6].mxu1 }
 0x334   : > { %v9134_v14 = vpack.c.bf16 %v3649_v59, %v3648_v11  ;;  %v11310_v53 = vpop.f32.mrb[7].mxu1 }
 0x335   : > { %v11312_v47 = vpop.f32.mrb[8].mxu1 }
 0x336   : > { %8098 = vmatmul.mubr.f32.gmra.mrb[32].mxu0 %v11114_v43  ;;  %9135 = vmatprep.subr.bf16.mxu1 %v9134_v14  ;;  %v3650_v43 = vld [vmem:[#allocation11 + $0x1e0] sm:$0xff]  ;;  %v11314_v4 = vpop.f32.mrb[9].mxu1 }
 0x337   : > { %8100 = vmatprep.mubr.f32.mxu0 %v2426_v9  ;;  %9137 = vmatpush3.bf16.msra.mxu1 %v9134_v14  ;;  %v9138_v15 = vpack.c.bf16 %v3651_v41, %v3650_v43  ;;  %v11316_v0 = vpop.f32.mrb[10].mxu1  ;;  %v3625_v14 = vld [vmem:[#allocation11 + $0x20] sm:$0xff]  ;;  %v3626_v43 = vld [vmem:[#allocation11 + $0x28] sm:$0xff] }
 0x338   : > { %v11318_v8 = vpop.f32.mrb[11].mxu1 }
 0x339   : > { %v7847_v39 = vpop.f32.mrb[52].mxu0  ;;  %9139 = vmatprep.subr.bf16.mxu1 %v9138_v15  ;;  %v11320_v56 = vpop.f32.mrb[12].mxu1 }
 0x33a   : > { %v2345_v3 = vpop.f32.mrb[53].mxu0  ;;  %8101 = vmatmul.mubr.f32.gmra.mrb[34].mxu0 %v2427_v2  ;;  %v11322_v50 = vpop.f32.mrb[13].mxu1 }
 0x33b   : > { %9141 = vmatpush3.bf16.msra.mxu1 %v9138_v15  ;;  %v11324_v16 = vpop.f32.mrb[14].mxu1  ;;  %v3623_v3 = vld [vmem:[#allocation11 + $0x10] sm:$0xff] }
 0x33c   : > { %9143 = vmatprep.subr.bf16.mxu1 %v9142_v42  ;;  %v11326_v6 = vpop.f32.mrb[15].mxu1 }
 0x33d   : > { %v7882_v38 = vpop.f32.mrb[54].mxu0  ;;  %v7417_v61 = vpop.f32.mrb[16].mxu1 }
 0x33e   : > { %v2513_v35 = vpop.f32.mrb[55].mxu0  ;;  %v904_v48 = vpop.f32.mrb[17].mxu1  ;;  %v3624_v38 = vld [vmem:[#allocation11 + $0x18] sm:$0xff] }
 0x33f   : > { %9145 = vmatpush3.bf16.msra.mxu1 %v9142_v42  ;;  %v9150_v11 = vpack.c.bf16 %v3624_v38, %v3623_v3  ;;  %v3631_v38 = vld [vmem:[#allocation11 + $0x50] sm:$0xff] }
 0x340   : > { %9147 = vmatprep.subr.bf16.mxu1 %v11293_v23 }
 0x381   : > { %v7933_v44 = vpop.f32.mrb[56].mxu0 }
 0x382   : > { %v2683_v21 = vpop.f32.mrb[57].mxu0  ;;  %v9154_v44 = vpack.c.bf16 %v3626_v43, %v3625_v14 }
 0x385   : > { %v7968_v28 = vpop.f32.mrb[58].mxu0 }
 0x386   : > { %v2811_v55 = vpop.f32.mrb[59].mxu0  ;;  %v3627_v28 = vld [vmem:[#allocation11 + $0x30] sm:$0xff] }
 0x387   : > { %v3628_v55 = vld [vmem:[#allocation11 + $0x38] sm:$0xff] }
 0x3c9   : > { %v8019_v52 = vpop.f32.mrb[60].mxu0 }
 0x3ca   : > { %v2981_v49 = vpop.f32.mrb[61].mxu0 }
 0x3cd   : > { %v8054_v12 = vpop.f32.mrb[62].mxu0 }
 0x3ce   : > { %v3109_v18 = vpop.f32.mrb[63].mxu0 }
 0x3d1   : > { %v8057_v9 = vpop.f32.mrb[2].mxu0 }
 0x3d2   : > { %v3334_v57 = vadd.f32 %v8057_v9, %v11331_v31  ;;  %v3119_v58 = vpop.f32.mrb[3].mxu0  ;;  %v9158_v9 = vpack.c.bf16 %v3628_v55, %v3627_v28 }
 0x3d3   : > { %v3333_v2 = vadd.f32 %v11331_v31, %v3119_v58  ;;  %v3629_v58 = vld [vmem:[#allocation11 + $0x40] sm:$0xff] }
 0x3d4   : > { %v11335_v7 = vmax.f32 %v3334_v57, 0.0 }
 0x3d5   : > { %v11337_v13 = vmax.f32 %v3333_v2, 0.0  ;;  %v8060_v10 = vpop.f32.mrb[4].mxu0  ;;  %v3630_v2 = vld [vmem:[#allocation11 + $0x48] sm:$0xff] }
 0x3d6   : > { %3552 = vst [vmem:[#allocation2 + $0x21] sm:$0xff] %v11335_v7  ;;  %v3336_v27 = vadd.f32 %v8060_v10, %v11331_v31  ;;  %v3129_v32 = vpop.f32.mrb[5].mxu0 }
 0x3d7   : > { %3551 = vst [vmem:[#allocation2 + $0x19] sm:$0xff] %v11337_v13  ;;  %v3335_v62 = vadd.f32 %v11331_v31, %v3129_v32 }
 0x3d8   : > { %v11343_v33 = vmax.f32 %v3336_v27, 0.0 }
 0x3d9   : > { %v11345_v46 = vmax.f32 %v3335_v62, 0.0  ;;  %v8063_v36 = vpop.f32.mrb[6].mxu0 }
 0x3da   : > { %3554 = vst [vmem:[#allocation2 + $0x39] sm:$0xff] %v11343_v33  ;;  %v3338_v29 = vadd.f32 %v8063_v36, %v11331_v31  ;;  %v3139_v63 = vpop.f32.mrb[7].mxu0 }
 0x3db   : > { %3553 = vst [vmem:[#allocation2 + $0x31] sm:$0xff] %v11345_v46  ;;  %v3337_v39 = vadd.f32 %v11331_v31, %v3139_v63 }
 0x3dc   : > { %v11351_v35 = vmax.f32 %v3338_v29, 0.0 }
 0x3dd   : > { %v11353_v51 = vmax.f32 %v3337_v39, 0.0  ;;  %v8066_v60 = vpop.f32.mrb[8].mxu0  ;;  %v9162_v39 = vpack.c.bf16 %v3630_v2, %v3629_v58 }
 0x3de   : > { %3556 = vst [vmem:[#allocation2 + $0x51] sm:$0xff] %v11351_v35  ;;  %v3340_v1 = vadd.f32 %v8066_v60, %v11331_v31  ;;  %v3149_v22 = vpop.f32.mrb[9].mxu0  ;;  %v11357_v34 = vld [vmem:[#allocation2 + $0x18] sm:$0xff]  ;;  %v11359_v40 = vld [vmem:[#allocation2 + $0x20] sm:$0xff] }
 0x3df   : > { %3555 = vst [vmem:[#allocation2 + $0x49] sm:$0xff] %v11353_v51  ;;  %v3339_v59 = vadd.f32 %v11331_v31, %v3149_v22  ;;  %8138 = vmatprep.mubr.f32.mxu1 %v11357_v34  ;;  %v3632_v60 = vld [vmem:[#allocation11 + $0x58] sm:$0xff] }
 0x3e0   : > { %v11364_v41 = vmax.f32 %v3340_v1, 0.0  ;;  %8139 = vmatmul.mubr.f32.vlgmr.msra.gmra.mrb[18].mxu1 %v11359_v40 }
 0x3e1   : > { %v11367_v15 = vmax.f32 %v3339_v59, 0.0  ;;  %v8069_v17 = vpop.f32.mrb[10].mxu0  ;;  %9149 = vmatpush3.bf16.msra.mxu1 %v11293_v23 }
 0x3e2   : > { %3558 = vst [vmem:[#allocation2 + $0x69] sm:$0xff] %v11364_v41  ;;  %v3342_v19 = vadd.f32 %v8069_v17, %v11331_v31  ;;  %v3159_v42 = vpop.f32.mrb[11].mxu0  ;;  %v11372_v20 = vld [vmem:[#allocation2 + $0x30] sm:$0xff]  ;;  %v11374_v54 = vld [vmem:[#allocation2 + $0x38] sm:$0xff]  ;;  %9151 = vmatprep.subr.bf16.mxu1 %v9150_v11 }
 0x3e3   : > { %3557 = vst [vmem:[#allocation2 + $0x61] sm:$0xff] %v11367_v15  ;;  %v3341_v21 = vadd.f32 %v11331_v31, %v3159_v42  ;;  %8141 = vmatprep.mubr.f32.mxu1 %v11372_v20 }
 0x3e4   : > { %v11379_v23 = vmax.f32 %v3342_v19, 0.0  ;;  %8142 = vmatmul.mubr.f32.gmra.mrb[20].mxu1 %v11374_v54  ;;  %v9166_v19 = vpack.c.bf16 %v3632_v60, %v3631_v38 }
 0x3e5   : > { %v11382_v61 = vmax.f32 %v3341_v21, 0.0  ;;  %v8072_v48 = vpop.f32.mrb[12].mxu0  ;;  %9153 = vmatpush3.bf16.msra.mxu1 %v9150_v11  ;;  %v3634_v21 = vld [vmem:[#allocation11 + $0x68] sm:$0xff] }
 0x3e6   : > { %3560 = vst [vmem:[#allocation2 + $0x81] sm:$0xff] %v11379_v23  ;;  %v3344_v52 = vadd.f32 %v8072_v48, %v11331_v31  ;;  %v3169_v49 = vpop.f32.mrb[13].mxu0  ;;  %v11386_v12 = vld [vmem:[#allocation2 + $0x48] sm:$0xff]  ;;  %v11388_v18 = vld [vmem:[#allocation2 + $0x50] sm:$0xff]  ;;  %9155 = vmatprep.subr.bf16.mxu1 %v9154_v44 }
 0x3e7   : > { %3559 = vst [vmem:[#allocation2 + $0x79] sm:$0xff] %v11382_v61  ;;  %v3343_v57 = vadd.f32 %v11331_v31, %v3169_v49  ;;  %8144 = vmatprep.mubr.f32.mxu1 %v11386_v12 }
 0x3e8   : > { %v11393_v10 = vmax.f32 %v3344_v52, 0.0  ;;  %8145 = vmatmul.mubr.f32.gmra.mrb[22].mxu1 %v11388_v18 }
 0x3e9   : > { %v11396_v27 = vmax.f32 %v3343_v57, 0.0  ;;  %v8075_v32 = vpop.f32.mrb[14].mxu0  ;;  %9157 = vmatpush3.bf16.msra.mxu1 %v9154_v44  ;;  %v3633_v44 = vld [vmem:[#allocation11 + $0x60] sm:$0xff] }
 0x3ea   : > { %3562 = vst [vmem:[#allocation2 + $0x99] sm:$0xff] %v11393_v10  ;;  %v3346_v62 = vadd.f32 %v8075_v32, %v11331_v31  ;;  %v3179_v36 = vpop.f32.mrb[15].mxu0  ;;  %v11400_v29 = vld [vmem:[#allocation2 + $0x60] sm:$0xff]  ;;  %v11402_v63 = vld [vmem:[#allocation2 + $0x68] sm:$0xff]  ;;  %9159 = vmatprep.subr.bf16.mxu1 %v9158_v9  ;;  %v9170_v58 = vpack.c.bf16 %v3634_v21, %v3633_v44  ;;  %v3635_v32 = vld [vmem:[#allocation11 + $0x70] sm:$0xff] }
 0x3eb   : > { %3561 = vst [vmem:[#allocation2 + $0x91] sm:$0xff] %v11396_v27  ;;  %v3345_v3 = vadd.f32 %v11331_v31, %v3179_v36  ;;  %8147 = vmatprep.mubr.f32.mxu1 %v11400_v29  ;;  %v4105_v44 = vld [vmem:[#allocation11 + $0x300] sm:$0xff]  ;;  %v4106_v21 = vld [vmem:[#allocation11 + $0x308] sm:$0xff] }
 0x3ec   : > { %v11407_v1 = vmax.f32 %v3346_v62, 0.0  ;;  %8148 = vmatmul.mubr.f32.gmra.mrb[24].mxu1 %v11402_v63  ;;  %v3636_v62 = vld [vmem:[#allocation11 + $0x78] sm:$0xff] }
 0x3ed   : > { %v11410_v22 = vmax.f32 %v3345_v3, 0.0  ;;  %v8078_v11 = vpop.f32.mrb[16].mxu0  ;;  %9161 = vmatpush3.bf16.msra.mxu1 %v9158_v9 }
 0x3ee   : > { %3564 = vst [vmem:[#allocation2 + $0xb1] sm:$0xff] %v11407_v1  ;;  %v3348_v59 = vadd.f32 %v8078_v11, %v11331_v31  ;;  %v3189_v14 = vpop.f32.mrb[17].mxu0  ;;  %v11414_v43 = vld [vmem:[#allocation2 + $0x78] sm:$0xff]  ;;  %v11416_v17 = vld [vmem:[#allocation2 + $0x80] sm:$0xff]  ;;  %9163 = vmatprep.subr.bf16.mxu1 %v9162_v39 }
 0x3ef   : > { %3563 = vst [vmem:[#allocation2 + $0xa9] sm:$0xff] %v11410_v22  ;;  %v3347_v42 = vadd.f32 %v11331_v31, %v3189_v14  ;;  %8150 = vmatprep.mubr.f32.mxu1 %v11414_v43 }
 0x3f0   : > { %v11421_v28 = vmax.f32 %v3348_v59, 0.0  ;;  %8151 = vmatmul.mubr.f32.gmra.mrb[26].mxu1 %v11416_v17  ;;  %v9174_v59 = vpack.c.bf16 %v3636_v62, %v3635_v32  ;;  %v11461_v62 = vpack.c.bf16 %v4106_v21, %v4105_v44 }
 0x3f1   : > { %v11424_v55 = vmax.f32 %v3347_v42, 0.0  ;;  %v8081_v48 = vpop.f32.mrb[20].mxu0  ;;  %9165 = vmatpush3.bf16.msra.mxu1 %v9162_v39 }
 0x3f2   : > { %3566 = vst [vmem:[#allocation2 + $0xc9] sm:$0xff] %v11421_v28  ;;  %v9418_v52 = vadd.f32 %v8081_v48, %v11296_v5  ;;  %v3199_v49 = vpop.f32.mrb[21].mxu0  ;;  %v11428_v9 = vld [vmem:[#allocation2 + $0x90] sm:$0xff]  ;;  %v11430_v57 = vld [vmem:[#allocation2 + $0x98] sm:$0xff]  ;;  %9167 = vmatprep.subr.bf16.mxu1 %v9166_v19 }
 0x3f3   : > { %3565 = vst [vmem:[#allocation2 + $0xc1] sm:$0xff] %v11424_v55  ;;  %v9419_v2 = vadd.f32 %v3199_v49, %v11298_v30  ;;  %8153 = vmatprep.mubr.f32.mxu1 %v11428_v9 }
 0x3f4   : > { %v3350_v36 = vadd.f32 %v9418_v52, %v11331_v31  ;;  %8154 = vmatmul.mubr.f32.gmra.mrb[28].mxu1 %v11430_v57 }
 0x3f5   : > { %v3349_v5 = vadd.f32 %v9419_v2, %v11331_v31  ;;  %v8084_v39 = vpop.f32.mrb[22].mxu0  ;;  %9169 = vmatpush3.bf16.msra.mxu1 %v9166_v19 }
 0x3f6   : > { %v11438_v3 = vmax.f32 %v3350_v36, 0.0  ;;  %v9420_v38 = vadd.f32 %v8084_v39, %v11300_v37  ;;  %v3209_v60 = vpop.f32.mrb[23].mxu0  ;;  %v11441_v11 = vld [vmem:[#allocation2 + $0xa8] sm:$0xff]  ;;  %v11443_v30 = vld [vmem:[#allocation2 + $0xb0] sm:$0xff]  ;;  %9171 = vmatprep.subr.bf16.mxu1 %v9170_v58 }
 0x3f7   : > { %v11445_v14 = vmax.f32 %v3349_v5, 0.0  ;;  %v9421_v42 = vadd.f32 %v3209_v60, %v11302_v24  ;;  %8156 = vmatprep.mubr.f32.mxu1 %v11441_v11 }
 0x3f8   : > { %3568 = vst [vmem:[#allocation2 + $0xe1] sm:$0xff] %v11438_v3  ;;  %v3352_v19 = vadd.f32 %v9420_v38, %v11331_v31  ;;  %8157 = vmatmul.mubr.f32.gmra.mrb[30].mxu1 %v11443_v30 }
 0x3f9   : > { %3567 = vst [vmem:[#allocation2 + $0xd9] sm:$0xff] %v11445_v14  ;;  %v3351_v37 = vadd.f32 %v9421_v42, %v11331_v31  ;;  %v8087_v48 = vpop.f32.mrb[24].mxu0  ;;  %9173 = vmatpush3.bf16.msra.mxu1 %v9170_v58 }
 0x3fa   : > { %v11454_v52 = vmax.f32 %v3352_v19, 0.0  ;;  %v9422_v24 = vadd.f32 %v8087_v48, %v11304_v25  ;;  %v3219_v49 = vpop.f32.mrb[25].mxu0  ;;  %v11457_v2 = vld [vmem:[#allocation2 + $0xc0] sm:$0xff]  ;;  %v11459_v32 = vld [vmem:[#allocation2 + $0xc8] sm:$0xff]  ;;  %9175 = vmatprep.subr.bf16.mxu1 %v9174_v59 }
 0x3fb   : > { %v11463_v36 = vmax.f32 %v3351_v37, 0.0  ;;  %v9423_v5 = vadd.f32 %v3219_v49, %v11306_v26  ;;  %8159 = vmatprep.mubr.f32.mxu1 %v11457_v2 }
 0x3fc   : > { %3570 = vst [vmem:[#allocation2 + $0xf9] sm:$0xff] %v11454_v52  ;;  %v3354_v58 = vadd.f32 %v9422_v24, %v11331_v31  ;;  %8160 = vmatmul.mubr.f32.gmra.mrb[32].mxu1 %v11459_v32 }
 0x3fd   : > { %3569 = vst [vmem:[#allocation2 + $0xf1] sm:$0xff] %v11463_v36  ;;  %v3353_v25 = vadd.f32 %v9423_v5, %v11331_v31  ;;  %v8090_v39 = vpop.f32.mrb[26].mxu0  ;;  %9177 = vmatpush3.bf16.msra.mxu1 %v9174_v59 }
 0x3fe   : > { %v11472_v38 = vmax.f32 %v3354_v58, 0.0  ;;  %v9424_v60 = vadd.f32 %v8090_v39, %v11308_v45  ;;  %v3229_v42 = vpop.f32.mrb[27].mxu0  ;;  %9179 = vmatprep.subr.bf16.mxu1 %v11461_v62 }
 0x3ff   : > { %v11476_v26 = vmax.f32 %v3353_v25, 0.0  ;;  %v9425_v44 = vadd.f32 %v3229_v42, %v11310_v53 }
 0x400   : > { %12214 = vst [vmem:[#allocation24_spill] sm:$0xff] %v11472_v38  ;;  %3572 = vst [vmem:[#allocation2 + $0x111] sm:$0xff] %v11472_v38  ;;  %v3356_v21 = vadd.f32 %v9424_v60, %v11331_v31  ;;  %v11481_v19 = vld [vmem:[#allocation2 + $0xd8] sm:$0xff]  ;;  %v11483_v37 = vld [vmem:[#allocation2 + $0xe0] sm:$0xff] }
 0x401   : > { %12215 = vst [vmem:[#allocation25_spill] sm:$0xff] %v11476_v26  ;;  %3571 = vst [vmem:[#allocation2 + $0x109] sm:$0xff] %v11476_v26  ;;  %v3355_v59 = vadd.f32 %v9425_v44, %v11331_v31  ;;  %v8093_v45 = vpop.f32.mrb[28].mxu0  ;;  %8162 = vmatprep.mubr.f32.mxu1 %v11481_v19  ;;  %v4112_v38 = vld [vmem:[#allocation11 + $0x338] sm:$0xff]  ;;  %v4113_v26 = vld [vmem:[#allocation11 + $0x340] sm:$0xff] }
 0x402   : > { %v11488_v48 = vmax.f32 %v3356_v21, 0.0  ;;  %v9426_v24 = vadd.f32 %v8093_v45, %v11312_v47  ;;  %v3239_v53 = vpop.f32.mrb[29].mxu0  ;;  %8163 = vmatmul.mubr.f32.gmra.mrb[34].mxu1 %v11483_v37 }
 0x403   : > { %v11492_v49 = vmax.f32 %v3355_v59, 0.0  ;;  %v9427_v5 = vadd.f32 %v3239_v53, %v11314_v4 }
 0x404   : > { %12216 = vst [vmem:[#allocation26_spill] sm:$0xff] %v11488_v48  ;;  %3574 = vst [vmem:[#allocation2 + $0x129] sm:$0xff] %v11488_v48  ;;  %v3358_v58 = vadd.f32 %v9426_v24, %v11331_v31  ;;  %v11497_v25 = vld [vmem:[#allocation2 + $0xf0] sm:$0xff]  ;;  %v11499_v39 = vld [vmem:[#allocation2 + $0xf8] sm:$0xff] }
 0x405   : > { %12217 = vst [vmem:[#allocation27_spill] sm:$0xff] %v11492_v49  ;;  %3573 = vst [vmem:[#allocation2 + $0x121] sm:$0xff] %v11492_v49  ;;  %v3357_v60 = vadd.f32 %v9427_v5, %v11331_v31  ;;  %v8096_v47 = vpop.f32.mrb[30].mxu0  ;;  %8165 = vmatprep.mubr.f32.mxu1 %v11497_v25  ;;  %v4111_v49 = vld [vmem:[#allocation11 + $0x330] sm:$0xff] }
 0x406   : > { %v11504_v42 = vmax.f32 %v3358_v58, 0.0  ;;  %v9428_v44 = vadd.f32 %v8096_v47, %v11316_v0  ;;  %v3249_v4 = vpop.f32.mrb[31].mxu0  ;;  %8166 = vmatmul.mubr.f32.gmra.mrb[36].mxu1 %v11499_v39 }
 0x407   : > { %v11508_v21 = vmax.f32 %v3357_v60, 0.0  ;;  %v9429_v59 = vadd.f32 %v3249_v4, %v11318_v8 }
 0x408   : > { %12218 = vst [vmem:[#allocation28_spill] sm:$0xff] %v11504_v42  ;;  %3576 = vst [vmem:[#allocation2 + $0x141] sm:$0xff] %v11504_v42  ;;  %v3360_v45 = vadd.f32 %v9428_v44, %v11331_v31  ;;  %v11513_v24 = vld [vmem:[#allocation2 + $0x108] sm:$0xff]  ;;  %v11515_v53 = vld [vmem:[#allocation2 + $0x110] sm:$0xff] }
 0x409   : > { %12219 = vst [vmem:[#allocation29_spill] sm:$0xff] %v11508_v21  ;;  %3575 = vst [vmem:[#allocation2 + $0x139] sm:$0xff] %v11508_v21  ;;  %v3359_v5 = vadd.f32 %v9429_v59, %v11331_v31  ;;  %v8099_v0 = vpop.f32.mrb[32].mxu0  ;;  %8168 = vmatprep.mubr.f32.mxu1 %v11513_v24  ;;  %v4110_v21 = vld [vmem:[#allocation11 + $0x328] sm:$0xff] }
 0x40a   : > { %v11520_v58 = vmax.f32 %v3360_v45, 0.0  ;;  %v9430_v60 = vadd.f32 %v8099_v0, %v11320_v56  ;;  %v3259_v8 = vpop.f32.mrb[33].mxu0  ;;  %8169 = vmatmul.mubr.f32.gmra.mrb[38].mxu1 %v11515_v53 }
 0x40b   : > { %v11524_v47 = vmax.f32 %v3359_v5, 0.0  ;;  %v9431_v44 = vadd.f32 %v3259_v8, %v11322_v50 }
 0x40c   : > { %12220 = vst [vmem:[#allocation30_spill] sm:$0xff] %v11520_v58  ;;  %3578 = vst [vmem:[#allocation2 + $0x159] sm:$0xff] %v11520_v58  ;;  %v3362_v4 = vadd.f32 %v9430_v60, %v11331_v31  ;;  %v11529_v42 = vld [vmem:[#allocation2 + $0x120] sm:$0xff]  ;;  %v11531_v59 = vld [vmem:[#allocation2 + $0x128] sm:$0xff] }
 0x40d   : > { %12221 = vst [vmem:[#allocation31_spill] sm:$0xff] %v11524_v47  ;;  %3577 = vst [vmem:[#allocation2 + $0x151] sm:$0xff] %v11524_v47  ;;  %v3361_v45 = vadd.f32 %v9431_v44, %v11331_v31  ;;  %v8102_v56 = vpop.f32.mrb[34].mxu0  ;;  %8171 = vmatprep.mubr.f32.mxu1 %v11529_v42 }
 0x40e   : > { %v11536_v0 = vmax.f32 %v3362_v4, 0.0  ;;  %v9432_v5 = vadd.f32 %v8102_v56, %v11324_v16  ;;  %v3269_v50 = vpop.f32.mrb[35].mxu0  ;;  %8172 = vmatmul.mubr.f32.gmra.mrb[40].mxu1 %v11531_v59 }
 0x40f   : > { %v11540_v8 = vmax.f32 %v3361_v45, 0.0  ;;  %v9433_v60 = vadd.f32 %v3269_v50, %v11326_v6 }
 0x410   : > { %12222 = vst [vmem:[#allocation32_spill] sm:$0xff] %v11536_v0  ;;  %3580 = vst [vmem:[#allocation2 + $0x171] sm:$0xff] %v11536_v0  ;;  %v3364_v58 = vadd.f32 %v9432_v5, %v11331_v31  ;;  %v11545_v47 = vld [vmem:[#allocation2 + $0x138] sm:$0xff]  ;;  %v11547_v44 = vld [vmem:[#allocation2 + $0x140] sm:$0xff] }
 0x411   : > { %12223 = vst [vmem:[#allocation33_spill] sm:$0xff] %v11540_v8  ;;  %3579 = vst [vmem:[#allocation2 + $0x169] sm:$0xff] %v11540_v8  ;;  %v3363_v4 = vadd.f32 %v9433_v60, %v11331_v31  ;;  %8174 = vmatprep.mubr.f32.mxu1 %v11545_v47  ;;  %v3585_v60 = vld [vmem:[#allocation2] sm:$0xff] }
 0x412   : > { %v11552_v16 = vmax.f32 %v3364_v58, 0.0  ;;  %8175 = vmatmul.mubr.f32.gmra.mrb[42].mxu1 %v11547_v44  ;;  %v4109_v8 = vld [vmem:[#allocation11 + $0x320] sm:$0xff] }
 0x413   : > { %v11555_v45 = vmax.f32 %v3363_v4, 0.0  ;;  %v4107_v4 = vld [vmem:[#allocation11 + $0x310] sm:$0xff]  ;;  %v9186_v48 = vpack.c.bf16 %v4110_v21, %v4109_v8  ;;  %v4116_v21 = vld [vmem:[#allocation11 + $0x358] sm:$0xff] }
 0x414   : > { %12224 = vst [vmem:[#allocation34_spill] sm:$0xff] %v11552_v16  ;;  %3582 = vst [vmem:[#allocation2 + $0x189] sm:$0xff] %v11552_v16  ;;  %v11558_v6 = vld [vmem:[#allocation2 + $0x150] sm:$0xff]  ;;  %v11560_v56 = vld [vmem:[#allocation2 + $0x158] sm:$0xff] }
 0x415   : > { %12225 = vst [vmem:[#allocation35_spill] sm:$0xff] %v11555_v45  ;;  %3581 = vst [vmem:[#allocation2 + $0x181] sm:$0xff] %v11555_v45  ;;  %8177 = vmatprep.mubr.f32.mxu1 %v11558_v6  ;;  %v4108_v16 = vld [vmem:[#allocation11 + $0x318] sm:$0xff]  ;;  %v3586_v45 = vld [vmem:[#allocation2 + $0x8] sm:$0xff] }
 0x416   : > { %8178 = vmatmul.mubr.f32.gmra.mrb[44].mxu1 %v11560_v56  ;;  %v9182_v0 = vpack.c.bf16 %v4108_v16, %v4107_v4  ;;  %v4114_v16 = vld [vmem:[#allocation11 + $0x348] sm:$0xff] }
 0x417   : > { %v4416_v4 = vld [vmem:[#allocation11 + $0x88] sm:$0xff] }
 0x418   : > { %v11565_v31 = vld [vmem:[#allocation2 + $0x168] sm:$0xff]  ;;  %v11567_v58 = vld [vmem:[#allocation2 + $0x170] sm:$0xff] }
 0x419   : > { %8180 = vmatprep.mubr.f32.mxu1 %v11565_v31 }
 0x41a   : > { %8181 = vmatmul.mubr.f32.gmra.mrb[46].mxu1 %v11567_v58 }
 0x41c   : > { %v11571_v5 = vld [vmem:[#allocation2 + $0x180] sm:$0xff]  ;;  %v11573_v50 = vld [vmem:[#allocation2 + $0x188] sm:$0xff] }
 0x41d   : > { %8183 = vmatprep.mubr.f32.mxu1 %v11571_v5 }
 0x41e   : > { %8184 = vmatmul.mubr.f32.gmra.mrb[48].mxu1 %v11573_v50 }
 0x41f   : > { %8218 = vmatprep.mubr.f32.mxu1 %v3585_v60  ;;  %v9190_v60 = vpack.c.bf16 %v4112_v38, %v4111_v49  ;;  %v4118_v38 = vld [vmem:[#allocation11 + $0x368] sm:$0xff]  ;;  %v4119_v49 = vld [vmem:[#allocation11 + $0x370] sm:$0xff] }
 0x422   : > { %8219 = vmatmul.mubr.f32.vlgmr.msra.gmra.mrb[18].mxu1 %v3586_v45  ;;  %v4415_v45 = vld [vmem:[#allocation11 + $0x80] sm:$0xff] }
 0x423   : > { %8221 = vmatprep.mubr.f32.mxu1 %v11357_v34  ;;  %9181 = vmatpush3.bf16.msra.mxu1 %v11461_v62  ;;  %v9194_v34 = vpack.c.bf16 %v4114_v16, %v4113_v26  ;;  %v4115_v62 = vld [vmem:[#allocation11 + $0x350] sm:$0xff]  ;;  %v4120_v26 = vld [vmem:[#allocation11 + $0x378] sm:$0xff] }
 0x424   : > { %9183 = vmatprep.subr.bf16.mxu1 %v9182_v0  ;;  %v9206_v8 = vpack.c.bf16 %v4120_v26, %v4119_v49  ;;  %v4417_v16 = vld [vmem:[#allocation11 + $0x90] sm:$0xff]  ;;  %v4424_v26 = vld [vmem:[#allocation11 + $0xc8] sm:$0xff] }
 0x426   : > { %8222 = vmatmul.mubr.f32.gmra.mrb[20].mxu1 %v11359_v40  ;;  %v9198_v40 = vpack.c.bf16 %v4116_v21, %v4115_v62  ;;  %v4419_v21 = vld [vmem:[#allocation11 + $0xa0] sm:$0xff] }
 0x427   : > { %8224 = vmatprep.mubr.f32.mxu1 %v11372_v20  ;;  %9185 = vmatpush3.bf16.msra.mxu1 %v9182_v0  ;;  %v4117_v0 = vld [vmem:[#allocation11 + $0x360] sm:$0xff] }
 0x428   : > { %9187 = vmatprep.subr.bf16.mxu1 %v9186_v48 }
 0x42a   : > { %8225 = vmatmul.mubr.f32.gmra.mrb[22].mxu1 %v11374_v54 }
 0x42b   : > { %8227 = vmatprep.mubr.f32.mxu1 %v11386_v12  ;;  %9189 = vmatpush3.bf16.msra.mxu1 %v9186_v48  ;;  %v9202_v48 = vpack.c.bf16 %v4118_v38, %v4117_v0  ;;  %v4421_v38 = vld [vmem:[#allocation11 + $0xb0] sm:$0xff] }
 0x42c   : > { %9191 = vmatprep.subr.bf16.mxu1 %v9190_v60 }
 0x42e   : > { %8228 = vmatmul.mubr.f32.gmra.mrb[24].mxu1 %v11388_v18 }
 0x42f   : > { %8230 = vmatprep.mubr.f32.mxu1 %v11400_v29  ;;  %9193 = vmatpush3.bf16.msra.mxu1 %v9190_v60  ;;  %v9210_v60 = vpack.c.bf16 %v4416_v4, %v4415_v45  ;;  %v4428_v45 = vld [vmem:[#allocation11 + $0xe8] sm:$0xff]  ;;  %v4430_v4 = vld [vmem:[#allocation11 + $0xf8] sm:$0xff] }
 0x430   : > { %9195 = vmatprep.subr.bf16.mxu1 %v9194_v34 }
 0x432   : > { %8231 = vmatmul.mubr.f32.gmra.mrb[26].mxu1 %v11402_v63 }
 0x433   : > { %8233 = vmatprep.mubr.f32.mxu1 %v11414_v43  ;;  %9197 = vmatpush3.bf16.msra.mxu1 %v9194_v34  ;;  %v4418_v34 = vld [vmem:[#allocation11 + $0x98] sm:$0xff] }
 0x434   : > { %9199 = vmatprep.subr.bf16.mxu1 %v9198_v40  ;;  %v9214_v62 = vpack.c.bf16 %v4418_v34, %v4417_v16  ;;  %v4703_v34 = vld [vmem:[#allocation11 + $0x270] sm:$0xff] }
 0x436   : > { %8234 = vmatmul.mubr.f32.gmra.mrb[28].mxu1 %v11416_v17 }
 0x437   : > { %8236 = vmatprep.mubr.f32.mxu1 %v11428_v9  ;;  %9201 = vmatpush3.bf16.msra.mxu1 %v9198_v40  ;;  %v4420_v40 = vld [vmem:[#allocation11 + $0xa8] sm:$0xff] }
 0x438   : > { %9203 = vmatprep.subr.bf16.mxu1 %v9202_v48  ;;  %v9218_v0 = vpack.c.bf16 %v4420_v40, %v4419_v21  ;;  %v4963_v40 = vld [vmem:[#allocation11 + $0x380] sm:$0xff] }
 0x43a   : > { %8237 = vmatmul.mubr.f32.gmra.mrb[30].mxu1 %v11430_v57 }
 0x43b   : > { %8239 = vmatprep.mubr.f32.mxu1 %v11441_v11  ;;  %9205 = vmatpush3.bf16.msra.mxu1 %v9202_v48  ;;  %v4422_v48 = vld [vmem:[#allocation11 + $0xb8] sm:$0xff] }
 0x43c   : > { %9207 = vmatprep.subr.bf16.mxu1 %v9206_v8  ;;  %v9222_v49 = vpack.c.bf16 %v4422_v48, %v4421_v38  ;;  %v12226_v48 = vld [vmem:[#allocation25_spill] sm:$0xff] }
 0x43e   : > { %8240 = vmatmul.mubr.f32.gmra.mrb[32].mxu1 %v11443_v30 }
 0x43f   : > { %8242 = vmatprep.mubr.f32.mxu1 %v11457_v2  ;;  %9209 = vmatpush3.bf16.msra.mxu1 %v9206_v8  ;;  %v4426_v8 = vld [vmem:[#allocation11 + $0xd8] sm:$0xff] }
 0x440   : > { %9211 = vmatprep.subr.bf16.mxu1 %v9210_v60 }
 0x442   : > { %8243 = vmatmul.mubr.f32.gmra.mrb[34].mxu1 %v11459_v32 }
 0x443   : > { %8245 = vmatprep.mubr.f32.mxu1 %v11481_v19 }
 0x446   : > { %8246 = vmatmul.mubr.f32.gmra.mrb[36].mxu1 %v11483_v37 }
 0x447   : > { %8248 = vmatprep.mubr.f32.mxu1 %v11497_v25 }
 0x44a   : > { %8249 = vmatmul.mubr.f32.gmra.mrb[38].mxu1 %v11499_v39 }
 0x44b   : > { %8251 = vmatprep.mubr.f32.mxu1 %v11513_v24 }
 0x44e   : > { %8252 = vmatmul.mubr.f32.gmra.mrb[40].mxu1 %v11515_v53 }
 0x44f   : > { %8254 = vmatprep.mubr.f32.mxu1 %v11529_v42 }
 0x452   : > { %8255 = vmatmul.mubr.f32.gmra.mrb[42].mxu1 %v11531_v59 }
 0x453   : > { %8257 = vmatprep.mubr.f32.mxu1 %v11545_v47 }
 0x456   : > { %8258 = vmatmul.mubr.f32.gmra.mrb[44].mxu1 %v11547_v44 }
 0x457   : > { %8260 = vmatprep.mubr.f32.mxu1 %v11558_v6 }
 0x45a   : > { %8261 = vmatmul.mubr.f32.gmra.mrb[46].mxu1 %v11560_v56 }
 0x45b   : > { %8263 = vmatprep.mubr.f32.mxu1 %v11565_v31 }
 0x45e   : > { %8264 = vmatmul.mubr.f32.gmra.mrb[48].mxu1 %v11567_v58 }
 0x45f   : > { %8298 = vmatprep.mubr.f32.mxu1 %v11372_v20  ;;  %v4423_v20 = vld [vmem:[#allocation11 + $0xc0] sm:$0xff] }
 0x462   : > { %8299 = vmatmul.mubr.f32.vlgmr.msra.gmra.mrb[18].mxu1 %v11374_v54  ;;  %v9226_v54 = vpack.c.bf16 %v4424_v26, %v4423_v20  ;;  %v12228_v20 = vld [vmem:[#allocation27_spill] sm:$0xff]  ;;  %v12229_v26 = vld [vmem:[#allocation26_spill] sm:$0xff] }
 0x463   : > { %8301 = vmatprep.mubr.f32.mxu1 %v11386_v12  ;;  %9213 = vmatpush3.bf16.msra.mxu1 %v9210_v60  ;;  %v4425_v12 = vld [vmem:[#allocation11 + $0xd0] sm:$0xff]  ;;  %v4690_v60 = vld [vmem:[#allocation11 + $0x208] sm:$0xff] }
 0x464   : > { %9215 = vmatprep.subr.bf16.mxu1 %v9214_v62 }
 0x466   : > { %8302 = vmatmul.mubr.f32.gmra.mrb[20].mxu1 %v11388_v18  ;;  %v9230_v18 = vpack.c.bf16 %v4426_v8, %v4425_v12  ;;  %v12231_v12 = vld [vmem:[#allocation28_spill] sm:$0xff]  ;;  %v12232_v8 = vld [vmem:[#allocation31_spill] sm:$0xff] }
 0x467   : > { %8304 = vmatprep.mubr.f32.mxu1 %v11400_v29  ;;  %9217 = vmatpush3.bf16.msra.mxu1 %v9214_v62  ;;  %v4427_v29 = vld [vmem:[#allocation11 + $0xe0] sm:$0xff]  ;;  %v4704_v62 = vld [vmem:[#allocation11 + $0x278] sm:$0xff] }
 0x468   : > { %9219 = vmatprep.subr.bf16.mxu1 %v9218_v0  ;;  %v9270_v21 = vpack.c.bf16 %v4704_v62, %v4703_v34  ;;  %v5279_v62 = vld [vmem:[#allocation11 + $0x130] sm:$0xff] }
 0x46a   : > { %8305 = vmatmul.mubr.f32.gmra.mrb[22].mxu1 %v11402_v63  ;;  %v9234_v63 = vpack.c.bf16 %v4428_v45, %v4427_v29  ;;  %v12234_v29 = vld [vmem:[#allocation33_spill] sm:$0xff]  ;;  %v4965_v45 = vld [vmem:[#allocation11 + $0x390] sm:$0xff] }
 0x46b   : > { %8307 = vmatprep.mubr.f32.mxu1 %v11414_v43  ;;  %9221 = vmatpush3.bf16.msra.mxu1 %v9218_v0  ;;  %v4429_v43 = vld [vmem:[#allocation11 + $0xf0] sm:$0xff]  ;;  %v4964_v0 = vld [vmem:[#allocation11 + $0x388] sm:$0xff] }
 0x46c   : > { %9223 = vmatprep.subr.bf16.mxu1 %v9222_v49  ;;  %v9274_v38 = vpack.c.bf16 %v4964_v0, %v4963_v40  ;;  %v10060_v40 = vld [vmem:[#allocation2 + $0x51] sm:$0xff] }
 0x46e   : > { %8308 = vmatmul.mubr.f32.gmra.mrb[24].mxu1 %v11416_v17  ;;  %v9238_v17 = vpack.c.bf16 %v4430_v4, %v4429_v43  ;;  %v12235_v43 = vld [vmem:[#allocation32_spill] sm:$0xff] }
 0x46f   : > { %8310 = vmatprep.mubr.f32.mxu1 %v11428_v9  ;;  %9225 = vmatpush3.bf16.msra.mxu1 %v9222_v49  ;;  %v4689_v9 = vld [vmem:[#allocation11 + $0x200] sm:$0xff] }
 0x470   : > { %9227 = vmatprep.subr.bf16.mxu1 %v9226_v54  ;;  %v12227_v49 = vld [vmem:[#allocation24_spill] sm:$0xff] }
 0x472   : > { %8311 = vmatmul.mubr.f32.gmra.mrb[26].mxu1 %v11430_v57  ;;  %v9242_v57 = vpack.c.bf16 %v4690_v60, %v4689_v9  ;;  %v4968_v9 = vld [vmem:[#allocation11 + $0x3a8] sm:$0xff] }
 0x473   : > { %8313 = vmatprep.mubr.f32.mxu1 %v11441_v11  ;;  %9229 = vmatpush3.bf16.msra.mxu1 %v9226_v54  ;;  %v3619_v11 = vld [vmem:[#allocation2 + $0x198] sm:$0xff]  ;;  %v12230_v54 = vld [vmem:[#allocation29_spill] sm:$0xff] }
 0x474   : > { %9231 = vmatprep.subr.bf16.mxu1 %v9230_v18 }
 0x476   : > { %8314 = vmatmul.mubr.f32.gmra.mrb[28].mxu1 %v11443_v30  ;;  %v3620_v30 = vld [vmem:[#allocation2 + $0x1a0] sm:$0xff] }
 0x477   : > { %8316 = vmatprep.mubr.f32.mxu1 %v11457_v2  ;;  %9233 = vmatpush3.bf16.msra.mxu1 %v9230_v18  ;;  %v4691_v2 = vld [vmem:[#allocation11 + $0x210] sm:$0xff] }
 0x478   : > { %9235 = vmatprep.subr.bf16.mxu1 %v9234_v63  ;;  %v12233_v18 = vld [vmem:[#allocation30_spill] sm:$0xff] }
 0x47a   : > { %8317 = vmatmul.mubr.f32.gmra.mrb[30].mxu1 %v11459_v32  ;;  %v4692_v32 = vld [vmem:[#allocation11 + $0x218] sm:$0xff] }
 0x47b   : > { %8319 = vmatprep.mubr.f32.mxu1 %v11481_v19  ;;  %9237 = vmatpush3.bf16.msra.mxu1 %v9234_v63  ;;  %v11638_v19 = vld [vmem:[#allocation2 + $0x1] sm:$0xff]  ;;  %v4966_v63 = vld [vmem:[#allocation11 + $0x398] sm:$0xff] }
 0x47c   : > { %9239 = vmatprep.subr.bf16.mxu1 %v9238_v17  ;;  %v9278_v4 = vpack.c.bf16 %v4966_v63, %v4965_v45  ;;  %v5282_v45 = vld [vmem:[#allocation11 + $0x148] sm:$0xff] }
 0x47d   : > { %v10061_v63 = vld [vmem:[#allocation2 + $0x69] sm:$0xff] }
 0x47e   : > { %8320 = vmatmul.mubr.f32.gmra.mrb[32].mxu1 %v11483_v37  ;;  %v9246_v37 = vpack.c.bf16 %v4692_v32, %v4691_v2  ;;  %v4972_v2 = vld [vmem:[#allocation11 + $0x3c8] sm:$0xff]  ;;  %v4974_v32 = vld [vmem:[#allocation11 + $0x3d8] sm:$0xff] }
 0x47f   : > { %8322 = vmatprep.mubr.f32.mxu1 %v11497_v25  ;;  %9241 = vmatpush3.bf16.msra.mxu1 %v9238_v17  ;;  %v4693_v25 = vld [vmem:[#allocation11 + $0x220] sm:$0xff] }
 0x480   : > { %9243 = vmatprep.subr.bf16.mxu1 %v9242_v57  ;;  %v4967_v17 = vld [vmem:[#allocation11 + $0x3a0] sm:$0xff] }
 0x481   : > { %v9282_v60 = vpack.c.bf16 %v4968_v9, %v4967_v17  ;;  %v5283_v17 = vld [vmem:[#allocation11 + $0x150] sm:$0xff]  ;;  %v5284_v9 = vld [vmem:[#allocation11 + $0x158] sm:$0xff] }
 0x482   : > { %8323 = vmatmul.mubr.f32.gmra.mrb[34].mxu1 %v11499_v39  ;;  %v4694_v39 = vld [vmem:[#allocation11 + $0x228] sm:$0xff] }
 0x483   : > { %8325 = vmatprep.mubr.f32.mxu1 %v11513_v24  ;;  %v4695_v24 = vld [vmem:[#allocation11 + $0x230] sm:$0xff] }
 0x486   : > { %8326 = vmatmul.mubr.f32.gmra.mrb[36].mxu1 %v11515_v53  ;;  %v4696_v53 = vld [vmem:[#allocation11 + $0x238] sm:$0xff] }
 0x487   : > { %8328 = vmatprep.mubr.f32.mxu1 %v11529_v42  ;;  %v9250_v42 = vpack.c.bf16 %v4694_v39, %v4693_v25  ;;  %v4977_v25 = vld [vmem:[#allocation11 + $0x3f0] sm:$0xff]  ;;  %v4978_v39 = vld [vmem:[#allocation11 + $0x3f8] sm:$0xff] }
 0x48a   : > { %8329 = vmatmul.mubr.f32.gmra.mrb[38].mxu1 %v11531_v59  ;;  %v4697_v59 = vld [vmem:[#allocation11 + $0x240] sm:$0xff] }
 0x48b   : > { %8331 = vmatprep.mubr.f32.mxu1 %v11545_v47  ;;  %v9254_v47 = vpack.c.bf16 %v4696_v53, %v4695_v24  ;;  %v5274_v24 = vld [vmem:[#allocation11 + $0x108] sm:$0xff] }
 0x48e   : > { %8332 = vmatmul.mubr.f32.gmra.mrb[40].mxu1 %v11547_v44  ;;  %v4698_v44 = vld [vmem:[#allocation11 + $0x248] sm:$0xff] }
 0x48f   : > { %8334 = vmatprep.mubr.f32.mxu1 %v11558_v6  ;;  %v9258_v6 = vpack.c.bf16 %v4698_v44, %v4697_v59  ;;  %v5275_v59 = vld [vmem:[#allocation11 + $0x110] sm:$0xff]  ;;  %v5276_v44 = vld [vmem:[#allocation11 + $0x118] sm:$0xff] }
 0x492   : > { %8335 = vmatmul.mubr.f32.gmra.mrb[42].mxu1 %v11560_v56  ;;  %v4699_v56 = vld [vmem:[#allocation11 + $0x250] sm:$0xff] }
 0x493   : > { %8337 = vmatprep.mubr.f32.mxu1 %v11565_v31  ;;  %v4700_v31 = vld [vmem:[#allocation11 + $0x258] sm:$0xff] }
 0x496   : > { %8338 = vmatmul.mubr.f32.gmra.mrb[44].mxu1 %v11567_v58  ;;  %v9262_v58 = vpack.c.bf16 %v4700_v31, %v4699_v56  ;;  %v10057_v56 = vld [vmem:[#allocation2 + $0x31] sm:$0xff]  ;;  %v9310_v31 = vpack.c.bf16 %v5276_v44, %v5275_v59  ;;  %v11764_v59 = vld [vmem:[#allocation2 + $0x9a] sm:$0xff] }
 0x497   : > { %8340 = vmatprep.mubr.f32.mxu1 %v11571_v5  ;;  %v4701_v5 = vld [vmem:[#allocation11 + $0x260] sm:$0xff] }
 0x498   : > { %v5821_v44 = vld [vmem:[#allocation11 + $0x400] sm:$0xff] }
 0x49a   : > { %8341 = vmatmul.mubr.f32.gmra.mrb[46].mxu1 %v11573_v50  ;;  %v4702_v50 = vld [vmem:[#allocation11 + $0x268] sm:$0xff] }
 0x49b   : > { %8343 = vmatprep.mubr.f32.mxu1 %v3619_v11  ;;  %v9266_v16 = vpack.c.bf16 %v4702_v50, %v4701_v5  ;;  %v4970_v11 = vld [vmem:[#allocation11 + $0x3b8] sm:$0xff]  ;;  %v5278_v5 = vld [vmem:[#allocation11 + $0x128] sm:$0xff] }
 0x49c   : > { %v10058_v50 = vld [vmem:[#allocation2 + $0x39] sm:$0xff] }
 0x49e   : > { %8344 = vmatmul.mubr.f32.gmra.mrb[48].mxu1 %v3620_v30 }
 0x49f   : > { %8378 = vmatprep.mubr.f32.mxu1 %v11638_v19 }
 0x4a2   : > { %8379 = vmatmul.mubr.f32.vlgmr.msra.gmra.mrb[18].mxu1 %v11638_v19 }
 0x4a3   : > { %8381 = vmatprep.mubr.f32.mxu1 %v11337_v13  ;;  %9245 = vmatpush3.bf16.msra.mxu1 %v9242_v57  ;;  %v4969_v57 = vld [vmem:[#allocation11 + $0x3b0] sm:$0xff] }
 0x4a4   : > { %9247 = vmatprep.subr.bf16.mxu1 %v9246_v37  ;;  %v9286_v30 = vpack.c.bf16 %v4970_v11, %v4969_v57  ;;  %v5286_v57 = vld [vmem:[#allocation11 + $0x168] sm:$0xff]  ;;  %v5287_v11 = vld [vmem:[#allocation11 + $0x170] sm:$0xff] }
 0x4a6   : > { %8382 = vmatmul.mubr.f32.gmra.mrb[20].mxu1 %v11335_v7 }
 0x4a7   : > { %8384 = vmatprep.mubr.f32.mxu1 %v11345_v46  ;;  %9249 = vmatpush3.bf16.msra.mxu1 %v9246_v37  ;;  %v4976_v37 = vld [vmem:[#allocation11 + $0x3e8] sm:$0xff] }
 0x4a8   : > { %9251 = vmatprep.subr.bf16.mxu1 %v9250_v42 }
 0x4aa   : > { %8385 = vmatmul.mubr.f32.gmra.mrb[22].mxu1 %v11343_v33 }
 0x4ab   : > { %8387 = vmatprep.mubr.f32.mxu1 %v11353_v51  ;;  %9253 = vmatpush3.bf16.msra.mxu1 %v9250_v42  ;;  %v5273_v42 = vld [vmem:[#allocation11 + $0x100] sm:$0xff] }
 0x4ac   : > { %9255 = vmatprep.subr.bf16.mxu1 %v9254_v47  ;;  %v9306_v53 = vpack.c.bf16 %v5274_v24, %v5273_v42  ;;  %v5561_v42 = vld [vmem:[#allocation11 + $0x2f0] sm:$0xff]  ;;  %v5562_v24 = vld [vmem:[#allocation11 + $0x2f8] sm:$0xff] }
 0x4ae   : > { %8388 = vmatmul.mubr.f32.gmra.mrb[24].mxu1 %v11351_v35 }
 0x4af   : > { %8390 = vmatprep.mubr.f32.mxu1 %v11367_v15  ;;  %9257 = vmatpush3.bf16.msra.mxu1 %v9254_v47  ;;  %v12236_v47 = vld [vmem:[#allocation35_spill] sm:$0xff] }
 0x4b0   : > { %9259 = vmatprep.subr.bf16.mxu1 %v9258_v6 }
 0x4b2   : > { %8391 = vmatmul.mubr.f32.gmra.mrb[26].mxu1 %v11364_v41 }
 0x4b3   : > { %8393 = vmatprep.mubr.f32.mxu1 %v11382_v61  ;;  %9261 = vmatpush3.bf16.msra.mxu1 %v9258_v6  ;;  %v12237_v6 = vld [vmem:[#allocation34_spill] sm:$0xff] }
 0x4b4   : > { %9263 = vmatprep.subr.bf16.mxu1 %v9262_v58 }
 0x4b6   : > { %8394 = vmatmul.mubr.f32.gmra.mrb[28].mxu1 %v11379_v23 }
 0x4b7   : > { %8396 = vmatprep.mubr.f32.mxu1 %v11396_v27  ;;  %9265 = vmatpush3.bf16.msra.mxu1 %v9262_v58  ;;  %v5277_v58 = vld [vmem:[#allocation11 + $0x120] sm:$0xff] }
 0x4b8   : > { %9267 = vmatprep.subr.bf16.mxu1 %v9266_v16  ;;  %v9314_v34 = vpack.c.bf16 %v5278_v5, %v5277_v58  ;;  %v11770_v58 = vld [vmem:[#allocation2 + $0xb2] sm:$0xff]  ;;  %v11773_v5 = vld [vmem:[#allocation2 + $0xc2] sm:$0xff] }
 0x4ba   : > { %8397 = vmatmul.mubr.f32.gmra.mrb[30].mxu1 %v11393_v10 }
 0x4bb   : > { %8399 = vmatprep.mubr.f32.mxu1 %v11410_v22  ;;  %9269 = vmatpush3.bf16.msra.mxu1 %v9266_v16  ;;  %v10059_v16 = vld [vmem:[#allocation2 + $0x49] sm:$0xff] }
 0x4bc   : > { %9271 = vmatprep.subr.bf16.mxu1 %v9270_v21 }
 0x4be   : > { %8400 = vmatmul.mubr.f32.gmra.mrb[32].mxu1 %v11407_v1 }
 0x4bf   : > { %8402 = vmatprep.mubr.f32.mxu1 %v11424_v55  ;;  %9273 = vmatpush3.bf16.msra.mxu1 %v9270_v21  ;;  %v5280_v21 = vld [vmem:[#allocation11 + $0x138] sm:$0xff] }
 0x4c0   : > { %9275 = vmatprep.subr.bf16.mxu1 %v9274_v38  ;;  %v9318_v0 = vpack.c.bf16 %v5280_v21, %v5279_v62  ;;  %v11785_v62 = vld [vmem:[#allocation2 + $0xf2] sm:$0xff]  ;;  %v11788_v21 = vld [vmem:[#allocation2 + $0xfa] sm:$0xff] }
 0x4c2   : > { %8403 = vmatmul.mubr.f32.gmra.mrb[34].mxu1 %v11421_v28 }
 0x4c3   : > { %8405 = vmatprep.mubr.f32.mxu1 %v11445_v14 }
 0x4c6   : > { %8406 = vmatmul.mubr.f32.gmra.mrb[36].mxu1 %v11438_v3 }
 0x4c7   : > { %8408 = vmatprep.mubr.f32.mxu1 %v11463_v36 }
 0x4ca   : > { %8409 = vmatmul.mubr.f32.gmra.mrb[38].mxu1 %v11454_v52 }
 0x4cb   : > { %8411 = vmatprep.mubr.f32.mxu1 %v12226_v48 }
 0x4ce   : > { %8412 = vmatmul.mubr.f32.gmra.mrb[40].mxu1 %v12227_v49 }
 0x4cf   : > { %8414 = vmatprep.mubr.f32.mxu1 %v12228_v20 }
 0x4d2   : > { %8415 = vmatmul.mubr.f32.gmra.mrb[42].mxu1 %v12229_v26 }
 0x4d3   : > { %8417 = vmatprep.mubr.f32.mxu1 %v12230_v54 }
 0x4d6   : > { %8418 = vmatmul.mubr.f32.gmra.mrb[44].mxu1 %v12231_v12 }
 0x4d7   : > { %8420 = vmatprep.mubr.f32.mxu1 %v12232_v8 }
 0x4da   : > { %8421 = vmatmul.mubr.f32.gmra.mrb[46].mxu1 %v12233_v18 }
 0x4db   : > { %8423 = vmatprep.mubr.f32.mxu1 %v12234_v29 }
 0x4de   : > { %8424 = vmatmul.mubr.f32.gmra.mrb[48].mxu1 %v12235_v43 }
 0x4df   : > { %8458 = vmatprep.mubr.f32.mxu1 %v11337_v13  ;;  %v4971_v13 = vld [vmem:[#allocation11 + $0x3c0] sm:$0xff] }
 0x4e2   : > { %8459 = vmatmul.mubr.f32.vlgmr.msra.gmra.mrb[18].mxu1 %v11335_v7  ;;  %v9290_v7 = vpack.c.bf16 %v4972_v2, %v4971_v13  ;;  %v5548_v13 = vld [vmem:[#allocation11 + $0x288] sm:$0xff]  ;;  %v11746_v2 = vld [vmem:[#allocation2 + $0x52] sm:$0xff] }
 0x4e3   : > { %8461 = vmatprep.mubr.f32.mxu1 %v11345_v46  ;;  %9277 = vmatpush3.bf16.msra.mxu1 %v9274_v38  ;;  %v4973_v46 = vld [vmem:[#allocation11 + $0x3d0] sm:$0xff]  ;;  %v5281_v38 = vld [vmem:[#allocation11 + $0x140] sm:$0xff] }
 0x4e4   : > { %9279 = vmatprep.subr.bf16.mxu1 %v9278_v4 }
 0x4e6   : > { %8462 = vmatmul.mubr.f32.gmra.mrb[20].mxu1 %v11343_v33  ;;  %v9294_v33 = vpack.c.bf16 %v4974_v32, %v4973_v46  ;;  %v5558_v46 = vld [vmem:[#allocation11 + $0x2d8] sm:$0xff]  ;;  %v11749_v32 = vld [vmem:[#allocation2 + $0x62] sm:$0xff] }
 0x4e7   : > { %8464 = vmatprep.mubr.f32.mxu1 %v11353_v51  ;;  %9281 = vmatpush3.bf16.msra.mxu1 %v9278_v4  ;;  %v4975_v51 = vld [vmem:[#allocation11 + $0x3e0] sm:$0xff]  ;;  %v9322_v4 = vpack.c.bf16 %v5282_v45, %v5281_v38  ;;  %v11800_v45 = vld [vmem:[#allocation2 + $0x12a] sm:$0xff] }
 0x4e8   : > { %9283 = vmatprep.subr.bf16.mxu1 %v9282_v60  ;;  %v11797_v38 = vld [vmem:[#allocation2 + $0x122] sm:$0xff] }
 0x4ea   : > { %8465 = vmatmul.mubr.f32.gmra.mrb[22].mxu1 %v11351_v35  ;;  %v9298_v35 = vpack.c.bf16 %v4976_v37, %v4975_v51  ;;  %v11752_v51 = vld [vmem:[#allocation2 + $0x6a] sm:$0xff]  ;;  %v5559_v37 = vld [vmem:[#allocation11 + $0x2e0] sm:$0xff] }
 0x4eb   : > { %8467 = vmatprep.mubr.f32.mxu1 %v11367_v15  ;;  %9285 = vmatpush3.bf16.msra.mxu1 %v9282_v60  ;;  %v5285_v60 = vld [vmem:[#allocation11 + $0x160] sm:$0xff] }
 0x4ec   : > { %9287 = vmatprep.subr.bf16.mxu1 %v9286_v30 }
 0x4ee   : > { %8468 = vmatmul.mubr.f32.gmra.mrb[24].mxu1 %v11364_v41  ;;  %v9302_v41 = vpack.c.bf16 %v4978_v39, %v4977_v25  ;;  %v11755_v25 = vld [vmem:[#allocation2 + $0x7a] sm:$0xff] }
 0x4ef   : > { %8470 = vmatprep.mubr.f32.mxu1 %v11382_v61  ;;  %9289 = vmatpush3.bf16.msra.mxu1 %v9286_v30  ;;  %v5288_v30 = vld [vmem:[#allocation11 + $0x178] sm:$0xff] }
 0x4f0   : > { %9291 = vmatprep.subr.bf16.mxu1 %v9290_v7 }
 0x4f2   : > { %8471 = vmatmul.mubr.f32.gmra.mrb[26].mxu1 %v11379_v23 }
 0x4f3   : > { %8473 = vmatprep.mubr.f32.mxu1 %v11396_v27  ;;  %9293 = vmatpush3.bf16.msra.mxu1 %v9290_v7  ;;  %v5557_v7 = vld [vmem:[#allocation11 + $0x2d0] sm:$0xff] }
 0x4f4   : > { %9295 = vmatprep.subr.bf16.mxu1 %v9294_v33 }
 0x4f6   : > { %8474 = vmatmul.mubr.f32.gmra.mrb[28].mxu1 %v11393_v10 }
 0x4f7   : > { %8476 = vmatprep.mubr.f32.mxu1 %v11410_v22  ;;  %9297 = vmatpush3.bf16.msra.mxu1 %v9294_v33  ;;  %v9358_v33 = vpack.c.bf16 %v5558_v46, %v5557_v7  ;;  %v5269_v7 = vld [vmem:[#allocation2 + $0x18a] sm:$0xff]  ;;  %v11882_v46 = vld [vmem:[%s12046_s6] ss:$0 sm:$0xff] }
 0x4f8   : > { %9299 = vmatprep.subr.bf16.mxu1 %v9298_v35 }
 0x4fa   : > { %8477 = vmatmul.mubr.f32.gmra.mrb[30].mxu1 %v11407_v1 }
 0x4fb   : > { %8479 = vmatprep.mubr.f32.mxu1 %v11424_v55  ;;  %9301 = vmatpush3.bf16.msra.mxu1 %v9298_v35  ;;  %v5560_v35 = vld [vmem:[#allocation11 + $0x2e8] sm:$0xff] }
 0x4fc   : > { %9303 = vmatprep.subr.bf16.mxu1 %v9302_v41  ;;  %v9362_v39 = vpack.c.bf16 %v5560_v35, %v5559_v37  ;;  %v6133_v35 = vld [vmem:[%s10645_s15] sm:$0xff] }
 0x4fe   : > { %8480 = vmatmul.mubr.f32.gmra.mrb[32].mxu1 %v11421_v28 }
 0x4ff   : > { %8482 = vmatprep.mubr.f32.mxu1 %v11445_v14  ;;  %9305 = vmatpush3.bf16.msra.mxu1 %v9302_v41  ;;  %v11758_v41 = vld [vmem:[#allocation2 + $0x82] sm:$0xff] }
 0x500   : > { %9307 = vmatprep.subr.bf16.mxu1 %v9306_v53 }
 0x502   : > { %8483 = vmatmul.mubr.f32.gmra.mrb[34].mxu1 %v11438_v3 }
 0x503   : > { %8485 = vmatprep.mubr.f32.mxu1 %v11463_v36 }
 0x506   : > { %8486 = vmatmul.mubr.f32.gmra.mrb[36].mxu1 %v11454_v52 }
 0x507   : > { %8488 = vmatprep.mubr.f32.mxu1 %v12226_v48 }
 0x50a   : > { %8489 = vmatmul.mubr.f32.gmra.mrb[38].mxu1 %v12227_v49 }
 0x50b   : > { %8491 = vmatprep.mubr.f32.mxu1 %v12228_v20 }
 0x50e   : > { %8492 = vmatmul.mubr.f32.gmra.mrb[40].mxu1 %v12229_v26 }
 0x50f   : > { %8494 = vmatprep.mubr.f32.mxu1 %v12230_v54 }
 0x512   : > { %8495 = vmatmul.mubr.f32.gmra.mrb[42].mxu1 %v12231_v12 }
 0x513   : > { %8497 = vmatprep.mubr.f32.mxu1 %v12232_v8 }
 0x516   : > { %8498 = vmatmul.mubr.f32.gmra.mrb[44].mxu1 %v12233_v18 }
 0x517   : > { %8500 = vmatprep.mubr.f32.mxu1 %v12234_v29 }
 0x51a   : > { %8501 = vmatmul.mubr.f32.gmra.mrb[46].mxu1 %v12235_v43 }
 0x51b   : > { %8503 = vmatprep.mubr.f32.mxu1 %v12236_v47 }
 0x51e   : > { %8504 = vmatmul.mubr.f32.gmra.mrb[48].mxu1 %v12237_v6 }
 0x51f   : > { %8538 = vmatprep.mubr.f32.mxu1 %v10057_v56  ;;  %v11767_v56 = vld [vmem:[#allocation2 + $0xaa] sm:$0xff] }
 0x522   : > { %8539 = vmatmul.mubr.f32.vlgmr.msra.gmra.mrb[18].mxu1 %v10058_v50  ;;  %v11776_v50 = vld [vmem:[#allocation2 + $0xca] sm:$0xff] }
 0x523   : > { %8541 = vmatprep.mubr.f32.mxu1 %v10059_v16  ;;  %9309 = vmatpush3.bf16.msra.mxu1 %v9306_v53  ;;  %v11761_v53 = vld [vmem:[#allocation2 + $0x92] sm:$0xff]  ;;  %v11779_v16 = vld [vmem:[#allocation2 + $0xda] sm:$0xff] }
 0x524   : > { %9311 = vmatprep.subr.bf16.mxu1 %v9310_v31 }
 0x526   : > { %8542 = vmatmul.mubr.f32.gmra.mrb[20].mxu1 %v10060_v40  ;;  %v11791_v40 = vld [vmem:[#allocation2 + $0x10a] sm:$0xff] }
 0x527   : > { %8544 = vmatprep.mubr.f32.mxu1 %v11367_v15  ;;  %9313 = vmatpush3.bf16.msra.mxu1 %v9310_v31  ;;  %v9326_v15 = vpack.c.bf16 %v5284_v9, %v5283_v17  ;;  %v11809_v17 = vld [vmem:[#allocation2 + $0x152] sm:$0xff]  ;;  %v11812_v9 = vld [vmem:[#allocation2 + $0x15a] sm:$0xff] }
 0x528   : > { %9315 = vmatprep.subr.bf16.mxu1 %v9314_v34 }
 0x52a   : > { %8545 = vmatmul.mubr.f32.gmra.mrb[22].mxu1 %v10061_v63  ;;  %v11803_v63 = vld [vmem:[#allocation2 + $0x13a] sm:$0xff] }
 0x52b   : > { %8547 = vmatprep.mubr.f32.mxu1 %v11382_v61  ;;  %9317 = vmatpush3.bf16.msra.mxu1 %v9314_v34  ;;  %v9330_v61 = vpack.c.bf16 %v5286_v57, %v5285_v60  ;;  %v11782_v34 = vld [vmem:[#allocation2 + $0xe2] sm:$0xff]  ;;  %v11818_v60 = vld [vmem:[#allocation2 + $0x172] sm:$0xff] }
 0x52c   : > { %9319 = vmatprep.subr.bf16.mxu1 %v9318_v0  ;;  %v5823_v57 = vld [vmem:[#allocation11 + $0x410] sm:$0xff] }
 0x52e   : > { %8548 = vmatmul.mubr.f32.gmra.mrb[24].mxu1 %v11379_v23  ;;  %v9334_v23 = vpack.c.bf16 %v5288_v30, %v5287_v11  ;;  %v2428_v11 = vld [vmem:[#allocation2 + $0x1ca] sm:$0xff]  ;;  %v2429_v30 = vld [vmem:[#allocation2 + $0x1d2] sm:$0xff] }
 0x52f   : > { %8550 = vmatprep.mubr.f32.mxu1 %v11396_v27  ;;  %9321 = vmatpush3.bf16.msra.mxu1 %v9318_v0  ;;  %v5547_v27 = vld [vmem:[#allocation11 + $0x280] sm:$0xff]  ;;  %v11794_v0 = vld [vmem:[#allocation2 + $0x112] sm:$0xff] }
 0x530   : > { %9323 = vmatprep.subr.bf16.mxu1 %v9322_v4  ;;  %8103 = vmatprep.mubr.f32.mxu0 %v2428_v11  ;;  %v6141_v11 = vld [vmem:[%s10645_s15 + $0x40] sm:$0xff] }
 0x531   : > { %8104 = vmatmul.mubr.f32.gmra.mrb[64].mxu0 %v2429_v30 }
 0x532   : > { %8551 = vmatmul.mubr.f32.gmra.mrb[26].mxu1 %v11393_v10  ;;  %v9338_v10 = vpack.c.bf16 %v5548_v13, %v5547_v27  ;;  %v5825_v27 = vld [vmem:[#allocation11 + $0x420] sm:$0xff]  ;;  %v5826_v13 = vld [vmem:[#allocation11 + $0x428] sm:$0xff] }
 0x533   : > { %8553 = vmatprep.mubr.f32.mxu1 %v11410_v22  ;;  %9325 = vmatpush3.bf16.msra.mxu1 %v9322_v4  ;;  %v5549_v22 = vld [vmem:[#allocation11 + $0x290] sm:$0xff]  ;;  %v11806_v4 = vld [vmem:[#allocation2 + $0x142] sm:$0xff] }
 0x534   : > { %9327 = vmatprep.subr.bf16.mxu1 %v9326_v15 }
 0x536   : > { %8554 = vmatmul.mubr.f32.gmra.mrb[28].mxu1 %v11407_v1  ;;  %v5236_v1 = vld [vmem:[#allocation2 + $0x2] sm:$0xff] }
 0x537   : > { %8556 = vmatprep.mubr.f32.mxu1 %v11424_v55  ;;  %9329 = vmatpush3.bf16.msra.mxu1 %v9326_v15  ;;  %v5237_v55 = vld [vmem:[#allocation2 + $0xa] sm:$0xff] }
 0x538   : > { %9331 = vmatprep.subr.bf16.mxu1 %v9330_v61  ;;  %v11815_v15 = vld [vmem:[#allocation2 + $0x16a] sm:$0xff] }
 0x53a   : > { %8557 = vmatmul.mubr.f32.gmra.mrb[30].mxu1 %v11421_v28  ;;  %v5550_v28 = vld [vmem:[#allocation11 + $0x298] sm:$0xff] }
 0x53b   : > { %8559 = vmatprep.mubr.f32.mxu1 %v11445_v14  ;;  %9333 = vmatpush3.bf16.msra.mxu1 %v9330_v61  ;;  %v5551_v14 = vld [vmem:[#allocation11 + $0x2a0] sm:$0xff]  ;;  %v5824_v61 = vld [vmem:[#allocation11 + $0x418] sm:$0xff] }
 0x53c   : > { %9335 = vmatprep.subr.bf16.mxu1 %v9334_v23 }
 0x53e   : > { %8560 = vmatmul.mubr.f32.gmra.mrb[32].mxu1 %v11438_v3  ;;  %v9342_v3 = vpack.c.bf16 %v5550_v28, %v5549_v22  ;;  %v5828_v22 = vld [vmem:[#allocation11 + $0x438] sm:$0xff] }
 0x53f   : > { %8562 = vmatprep.mubr.f32.mxu1 %v11463_v36  ;;  %9337 = vmatpush3.bf16.msra.mxu1 %v9334_v23  ;;  %v11731_v36 = vld [vmem:[#allocation2 + $0x1a] sm:$0xff]  ;;  %v9374_v23 = vpack.c.bf16 %v5824_v61, %v5823_v57 }
 0x540   : > { %9339 = vmatprep.subr.bf16.mxu1 %v9338_v10 }
 0x542   : > { %8563 = vmatmul.mubr.f32.gmra.mrb[34].mxu1 %v11454_v52  ;;  %v5552_v52 = vld [vmem:[#allocation11 + $0x2a8] sm:$0xff] }
 0x543   : > { %8565 = vmatprep.mubr.f32.mxu1 %v12226_v48  ;;  %v9346_v48 = vpack.c.bf16 %v5552_v52, %v5551_v14  ;;  %v5831_v52 = vld [vmem:[#allocation11 + $0x450] sm:$0xff] }
 0x546   : > { %8566 = vmatmul.mubr.f32.gmra.mrb[36].mxu1 %v12227_v49  ;;  %v11734_v49 = vld [vmem:[#allocation2 + $0x22] sm:$0xff] }
 0x547   : > { %8568 = vmatprep.mubr.f32.mxu1 %v12228_v20  ;;  %v5553_v20 = vld [vmem:[#allocation11 + $0x2b0] sm:$0xff] }
 0x54a   : > { %8569 = vmatmul.mubr.f32.gmra.mrb[38].mxu1 %v12229_v26  ;;  %v5554_v26 = vld [vmem:[#allocation11 + $0x2b8] sm:$0xff] }
 0x54b   : > { %8571 = vmatprep.mubr.f32.mxu1 %v12230_v54  ;;  %v9350_v54 = vpack.c.bf16 %v5554_v26, %v5553_v20  ;;  %v5834_v20 = vld [vmem:[#allocation11 + $0x468] sm:$0xff] }
 0x54e   : > { %8572 = vmatmul.mubr.f32.gmra.mrb[40].mxu1 %v12231_v12  ;;  %v11740_v12 = vld [vmem:[#allocation2 + $0x3a] sm:$0xff] }
 0x54f   : > { %8574 = vmatprep.mubr.f32.mxu1 %v12232_v8  ;;  %v5555_v8 = vld [vmem:[#allocation11 + $0x2c0] sm:$0xff] }
 0x552   : > { %8575 = vmatmul.mubr.f32.gmra.mrb[42].mxu1 %v12233_v18  ;;  %v5556_v18 = vld [vmem:[#allocation11 + $0x2c8] sm:$0xff] }
 0x553   : > { %8577 = vmatprep.mubr.f32.mxu1 %v12234_v29  ;;  %v11743_v29 = vld [vmem:[#allocation2 + $0x4a] sm:$0xff] }
 0x556   : > { %8578 = vmatmul.mubr.f32.gmra.mrb[44].mxu1 %v12235_v43  ;;  %v9354_v43 = vpack.c.bf16 %v5556_v18, %v5555_v8  ;;  %v5836_v8 = vld [vmem:[#allocation11 + $0x478] sm:$0xff] }
 0x557   : > { %8580 = vmatprep.mubr.f32.mxu1 %v12236_v47  ;;  %v9366_v47 = vpack.c.bf16 %v5562_v24, %v5561_v42  ;;  %v6136_v24 = vld [vmem:[%s10645_s15 + $0x18] sm:$0xff] }
 0x55a   : > { %8581 = vmatmul.mubr.f32.gmra.mrb[46].mxu1 %v12237_v6  ;;  %v5822_v6 = vld [vmem:[#allocation11 + $0x408] sm:$0xff] }
 0x55b   : > { %8583 = vmatprep.mubr.f32.mxu1 %v11638_v19  ;;  %v9370_v31 = vpack.c.bf16 %v5822_v6, %v5821_v44 }
 0x55e   : > { %8584 = vmatmul.mubr.f32.gmra.mrb[48].mxu1 %v11638_v19  ;;  %v11737_v19 = vld [vmem:[#allocation2 + $0x32] sm:$0xff] }
 0x55f   : > { %8618 = vmatprep.mubr.f32.mxu1 %v5236_v1  ;;  %v5827_v1 = vld [vmem:[#allocation11 + $0x430] sm:$0xff] }
 0x560   : > { %v9382_v28 = vpack.c.bf16 %v5828_v22, %v5827_v1 }
 0x562   : > { %8619 = vmatmul.mubr.f32.vlgmr.msra.gmra.mrb[18].mxu1 %v5237_v55  ;;  %v5829_v55 = vld [vmem:[#allocation11 + $0x440] sm:$0xff] }
 0x563   : > { %8621 = vmatprep.mubr.f32.mxu1 %v11731_v36  ;;  %9341 = vmatpush3.bf16.msra.mxu1 %v9338_v10  ;;  %v9378_v10 = vpack.c.bf16 %v5826_v13, %v5825_v27 }
 0x564   : > { %9343 = vmatprep.subr.bf16.mxu1 %v9342_v3 }
 0x566   : > { %8622 = vmatmul.mubr.f32.gmra.mrb[20].mxu1 %v11734_v49 }
 0x567   : > { %8624 = vmatprep.mubr.f32.mxu1 %v11737_v19  ;;  %9345 = vmatpush3.bf16.msra.mxu1 %v9342_v3  ;;  %v5830_v3 = vld [vmem:[#allocation11 + $0x448] sm:$0xff] }
 0x568   : > { %9347 = vmatprep.subr.bf16.mxu1 %v9346_v48  ;;  %v9386_v14 = vpack.c.bf16 %v5830_v3, %v5829_v55 }
 0x56a   : > { %8625 = vmatmul.mubr.f32.gmra.mrb[22].mxu1 %v11740_v12 }
 0x56b   : > { %8627 = vmatprep.mubr.f32.mxu1 %v11743_v29  ;;  %9349 = vmatpush3.bf16.msra.mxu1 %v9346_v48 }
 0x56c   : > { %9351 = vmatprep.subr.bf16.mxu1 %v9350_v54 }
 0x56e   : > { %8628 = vmatmul.mubr.f32.gmra.mrb[24].mxu1 %v11746_v2 }
 0x56f   : > { %8630 = vmatprep.mubr.f32.mxu1 %v11749_v32  ;;  %9353 = vmatpush3.bf16.msra.mxu1 %v9350_v54  ;;  %v5835_v54 = vld [vmem:[#allocation11 + $0x470] sm:$0xff] }
 0x570   : > { %9355 = vmatprep.subr.bf16.mxu1 %v9354_v43  ;;  %v9398_v18 = vpack.c.bf16 %v5836_v8, %v5835_v54 }
 0x572   : > { %8631 = vmatmul.mubr.f32.gmra.mrb[26].mxu1 %v11752_v51 }
 0x573   : > { %8633 = vmatprep.mubr.f32.mxu1 %v11755_v25  ;;  %9357 = vmatpush3.bf16.msra.mxu1 %v9354_v43  ;;  %v5268_v43 = vld [vmem:[#allocation2 + $0x182] sm:$0xff] }
 0x574   : > { %9359 = vmatprep.subr.bf16.mxu1 %v9358_v33 }
 0x576   : > { %8634 = vmatmul.mubr.f32.gmra.mrb[28].mxu1 %v11758_v41 }
 0x577   : > { %8636 = vmatprep.mubr.f32.mxu1 %v11761_v53  ;;  %9361 = vmatpush3.bf16.msra.mxu1 %v9358_v33  ;;  %v6134_v33 = vld [vmem:[%s10645_s15 + $0x8] sm:$0xff] }
 0x578   : > { %9363 = vmatprep.subr.bf16.mxu1 %v9362_v39 }
 0x57a   : > { %8637 = vmatmul.mubr.f32.gmra.mrb[30].mxu1 %v11764_v59 }
 0x57b   : > { %8639 = vmatprep.mubr.f32.mxu1 %v11767_v56  ;;  %9365 = vmatpush3.bf16.msra.mxu1 %v9362_v39 }
 0x57c   : > { %9367 = vmatprep.subr.bf16.mxu1 %v9366_v47 }
 0x57e   : > { %8640 = vmatmul.mubr.f32.gmra.mrb[32].mxu1 %v11770_v58 }
 0x57f   : > { %8642 = vmatprep.mubr.f32.mxu1 %v11773_v5  ;;  %9369 = vmatpush3.bf16.msra.mxu1 %v9366_v47 }
 0x580   : > { %9371 = vmatprep.subr.bf16.mxu1 %v9370_v31 }
 0x582   : > { %8643 = vmatmul.mubr.f32.gmra.mrb[34].mxu1 %v11776_v50 }
 0x583   : > { %8645 = vmatprep.mubr.f32.mxu1 %v11779_v16 }
 0x586   : > { %8646 = vmatmul.mubr.f32.gmra.mrb[36].mxu1 %v11782_v34 }
 0x587   : > { %8648 = vmatprep.mubr.f32.mxu1 %v11785_v62 }
 0x58a   : > { %8649 = vmatmul.mubr.f32.gmra.mrb[38].mxu1 %v11788_v21 }
 0x58b   : > { %8651 = vmatprep.mubr.f32.mxu1 %v11791_v40 }
 0x58e   : > { %8652 = vmatmul.mubr.f32.gmra.mrb[40].mxu1 %v11794_v0 }
 0x58f   : > { %8654 = vmatprep.mubr.f32.mxu1 %v11797_v38 }
 0x592   : > { %8655 = vmatmul.mubr.f32.gmra.mrb[42].mxu1 %v11800_v45 }
 0x593   : > { %8657 = vmatprep.mubr.f32.mxu1 %v11803_v63 }
 0x596   : > { %8658 = vmatmul.mubr.f32.gmra.mrb[44].mxu1 %v11806_v4 }
 0x597   : > { %8660 = vmatprep.mubr.f32.mxu1 %v11809_v17 }
 0x59a   : > { %8661 = vmatmul.mubr.f32.gmra.mrb[46].mxu1 %v11812_v9 }
 0x59b   : > { %8663 = vmatprep.mubr.f32.mxu1 %v11815_v15 }
 0x59e   : > { %8664 = vmatmul.mubr.f32.gmra.mrb[48].mxu1 %v11818_v60 }
 0x59f   : > { %8698 = vmatprep.mubr.f32.mxu1 %v11731_v36  ;;  %v5832_v36 = vld [vmem:[#allocation11 + $0x458] sm:$0xff] }
 0x5a0   : > { %v9390_v48 = vpack.c.bf16 %v5832_v36, %v5831_v52  ;;  %v6146_v36 = vld [vmem:[%s10645_s15 + $0x68] sm:$0xff] }
 0x5a2   : > { %8699 = vmatmul.mubr.f32.vlgmr.msra.gmra.mrb[18].mxu1 %v11734_v49  ;;  %v5833_v49 = vld [vmem:[#allocation11 + $0x460] sm:$0xff] }
 0x5a3   : > { %8701 = vmatprep.mubr.f32.mxu1 %v11737_v19  ;;  %9373 = vmatpush3.bf16.msra.mxu1 %v9370_v31  ;;  %v9394_v26 = vpack.c.bf16 %v5834_v20, %v5833_v49  ;;  %v6145_v20 = vld [vmem:[%s10645_s15 + $0x60] sm:$0xff] }
 0x5a4   : > { %9375 = vmatprep.subr.bf16.mxu1 %v9374_v23 }
 0x5a6   : > { %8702 = vmatmul.mubr.f32.gmra.mrb[20].mxu1 %v11740_v12 }
 0x5a7   : > { %8704 = vmatprep.mubr.f32.mxu1 %v11743_v29  ;;  %9377 = vmatpush3.bf16.msra.mxu1 %v9374_v23 }
 0x5a8   : > { %9379 = vmatprep.subr.bf16.mxu1 %v9378_v10 }
 0x5aa   : > { %8705 = vmatmul.mubr.f32.gmra.mrb[22].mxu1 %v11746_v2 }
 0x5ab   : > { %8707 = vmatprep.mubr.f32.mxu1 %v11749_v32  ;;  %9381 = vmatpush3.bf16.msra.mxu1 %v9378_v10  ;;  %v6144_v10 = vld [vmem:[%s10645_s15 + $0x58] sm:$0xff] }
 0x5ac   : > { %9383 = vmatprep.subr.bf16.mxu1 %v9382_v28 }
 0x5ae   : > { %8708 = vmatmul.mubr.f32.gmra.mrb[24].mxu1 %v11752_v51 }
 0x5af   : > { %8710 = vmatprep.mubr.f32.mxu1 %v11755_v25  ;;  %9385 = vmatpush3.bf16.msra.mxu1 %v9382_v28  ;;  %v6143_v28 = vld [vmem:[%s10645_s15 + $0x50] sm:$0xff] }
 0x5b0   : > { %9387 = vmatprep.subr.bf16.mxu1 %v9386_v14 }
 0x5b2   : > { %8711 = vmatmul.mubr.f32.gmra.mrb[26].mxu1 %v11758_v41 }
 0x5b3   : > { %8713 = vmatprep.mubr.f32.mxu1 %v11761_v53  ;;  %9389 = vmatpush3.bf16.msra.mxu1 %v9386_v14 }
 0x5b4   : > { %9391 = vmatprep.subr.bf16.mxu1 %v9390_v48 }
 0x5b6   : > { %8714 = vmatmul.mubr.f32.gmra.mrb[28].mxu1 %v11764_v59 }
 0x5b7   : > { %8716 = vmatprep.mubr.f32.mxu1 %v11767_v56  ;;  %9393 = vmatpush3.bf16.msra.mxu1 %v9390_v48 }
 0x5b8   : > { %9395 = vmatprep.subr.bf16.mxu1 %v9394_v26 }
 0x5ba   : > { %8717 = vmatmul.mubr.f32.gmra.mrb[30].mxu1 %v11770_v58 }
 0x5bb   : > { %8719 = vmatprep.mubr.f32.mxu1 %v11773_v5  ;;  %9397 = vmatpush3.bf16.msra.mxu1 %v9394_v26 }
 0x5bc   : > { %9399 = vmatprep.subr.bf16.mxu1 %v9398_v18 }
 0x5be   : > { %8720 = vmatmul.mubr.f32.gmra.mrb[32].mxu1 %v11776_v50 }
 0x5bf   : > { %8722 = vmatprep.mubr.f32.mxu1 %v11779_v16  ;;  %9401 = vmatpush3.bf16.msra.mxu1 %v9398_v18 }
 0x5c2   : > { %8723 = vmatmul.mubr.f32.gmra.mrb[34].mxu1 %v11782_v34 }
 0x5c3   : > { %8725 = vmatprep.mubr.f32.mxu1 %v11785_v62 }
 0x5c6   : > { %8726 = vmatmul.mubr.f32.gmra.mrb[36].mxu1 %v11788_v21 }
 0x5c7   : > { %8728 = vmatprep.mubr.f32.mxu1 %v11791_v40 }
 0x5ca   : > { %8729 = vmatmul.mubr.f32.gmra.mrb[38].mxu1 %v11794_v0 }
 0x5cb   : > { %8731 = vmatprep.mubr.f32.mxu1 %v11797_v38 }
 0x5ce   : > { %8732 = vmatmul.mubr.f32.gmra.mrb[40].mxu1 %v11800_v45 }
 0x5cf   : > { %8734 = vmatprep.mubr.f32.mxu1 %v11803_v63 }
 0x5d2   : > { %8735 = vmatmul.mubr.f32.gmra.mrb[42].mxu1 %v11806_v4 }
 0x5d3   : > { %8737 = vmatprep.mubr.f32.mxu1 %v11809_v17 }
 0x5d6   : > { %8738 = vmatmul.mubr.f32.gmra.mrb[44].mxu1 %v11812_v9 }
 0x5d7   : > { %8740 = vmatprep.mubr.f32.mxu1 %v11815_v15 }
 0x5da   : > { %8741 = vmatmul.mubr.f32.gmra.mrb[46].mxu1 %v11818_v60 }
 0x5db   : > { %8743 = vmatprep.mubr.f32.mxu1 %v5268_v43 }
 0x5de   : > { %8744 = vmatmul.mubr.f32.gmra.mrb[48].mxu1 %v5269_v7 }
 0x5df   : > { %8778 = vmatprep.mubr.f32.mxu1 %v11737_v19  ;;  %v5270_v19 = vld [vmem:[#allocation2 + $0x19a] sm:$0xff] }
 0x5e2   : > { %8779 = vmatmul.mubr.f32.vlgmr.msra.gmra.mrb[18].mxu1 %v11740_v12  ;;  %v5271_v12 = vld [vmem:[#allocation2 + $0x1a2] sm:$0xff] }
 0x5e3   : > { %8781 = vmatprep.mubr.f32.mxu1 %v11743_v29 }
 0x5e6   : > { %8782 = vmatmul.mubr.f32.gmra.mrb[20].mxu1 %v11746_v2 }
 0x5e7   : > { %8784 = vmatprep.mubr.f32.mxu1 %v11749_v32 }
 0x5ea   : > { %8785 = vmatmul.mubr.f32.gmra.mrb[22].mxu1 %v11752_v51 }
 0x5eb   : > { %8787 = vmatprep.mubr.f32.mxu1 %v11755_v25 }
 0x5ee   : > { %8788 = vmatmul.mubr.f32.gmra.mrb[24].mxu1 %v11758_v41 }
 0x5ef   : > { %8790 = vmatprep.mubr.f32.mxu1 %v11761_v53 }
 0x5f2   : > { %8791 = vmatmul.mubr.f32.gmra.mrb[26].mxu1 %v11764_v59  ;;  %v6135_v59 = vld [vmem:[%s10645_s15 + $0x10] sm:$0xff] }
 0x5f3   : > { %8793 = vmatprep.mubr.f32.mxu1 %v11767_v56 }
 0x5f6   : > { %8794 = vmatmul.mubr.f32.gmra.mrb[28].mxu1 %v11770_v58  ;;  %v6138_v58 = vld [vmem:[%s10645_s15 + $0x28] sm:$0xff] }
 0x5f7   : > { %8796 = vmatprep.mubr.f32.mxu1 %v11773_v5 }
 0x5fa   : > { %8797 = vmatmul.mubr.f32.gmra.mrb[30].mxu1 %v11776_v50 }
 0x5fb   : > { %8799 = vmatprep.mubr.f32.mxu1 %v11779_v16  ;;  %v6137_v16 = vld [vmem:[%s10645_s15 + $0x20] sm:$0xff] }
 0x5fe   : > { %8800 = vmatmul.mubr.f32.gmra.mrb[32].mxu1 %v11782_v34 }
 0x5ff   : > { %8802 = vmatprep.mubr.f32.mxu1 %v11785_v62 }
 0x602   : > { %8803 = vmatmul.mubr.f32.gmra.mrb[34].mxu1 %v11788_v21 }
 0x603   : > { %8805 = vmatprep.mubr.f32.mxu1 %v11791_v40 }
 0x604   : > { %v8105_v29 = vpop.f32.mrb[64].mxu0 }
 0x605   : > { %v3279_v2 = vpop.f32.mrb[65].mxu0 }
 0x606   : > { %8806 = vmatmul.mubr.f32.gmra.mrb[36].mxu1 %v11794_v0  ;;  %v6140_v0 = vld [vmem:[%s10645_s15 + $0x38] sm:$0xff] }
 0x607   : > { %8808 = vmatprep.mubr.f32.mxu1 %v11797_v38 }
 0x60a   : > { %8809 = vmatmul.mubr.f32.gmra.mrb[38].mxu1 %v11800_v45 }
 0x60b   : > { %8811 = vmatprep.mubr.f32.mxu1 %v11803_v63  ;;  %v6139_v63 = vld [vmem:[%s10645_s15 + $0x30] sm:$0xff] }
 0x60e   : > { %8812 = vmatmul.mubr.f32.gmra.mrb[40].mxu1 %v11806_v4 }
 0x60f   : > { %8814 = vmatprep.mubr.f32.mxu1 %v11809_v17 }
 0x612   : > { %8815 = vmatmul.mubr.f32.gmra.mrb[42].mxu1 %v11812_v9 }
 0x613   : > { %8817 = vmatprep.mubr.f32.mxu1 %v11815_v15 }
 0x616   : > { %8818 = vmatmul.mubr.f32.gmra.mrb[44].mxu1 %v11818_v60  ;;  %v6142_v60 = vld [vmem:[%s10645_s15 + $0x48] sm:$0xff] }
 0x617   : > { %8820 = vmatprep.mubr.f32.mxu1 %v5268_v43  ;;  %v6148_v43 = vld [vmem:[%s10645_s15 + $0x78] sm:$0xff] }
 0x61a   : > { %8821 = vmatmul.mubr.f32.gmra.mrb[46].mxu1 %v5269_v7 }
 0x61b   : > { %8823 = vmatprep.mubr.f32.mxu1 %v5270_v19 }
 0x61e   : > { %8824 = vmatmul.mubr.f32.gmra.mrb[48].mxu1 %v5271_v12  ;;  %v6147_v12 = vld [vmem:[%s10645_s15 + $0x70] sm:$0xff] }
 0x6b5   : > { %v8780_v32 = vpop.f32.mrb[18].mxu1 }
 0x6b6   : > { %v6102_v51 = vadd.f32 %v8780_v32, %v11882_v46  ;;  %v5903_v37 = vpop.f32.mrb[19].mxu1 }
 0x6b7   : > { %v6101_v25 = vadd.f32 %v11882_v46, %v5903_v37 }
 0x6b8   : > { %v6166_v39 = vadd.f32 %v6134_v33, %v6102_v51  ;;  %v6150_v51 = vld [vmem:[%s10645_s15 + $0x88] sm:$0xff] }
 0x6b9   : > { %v6165_v41 = vadd.f32 %v6133_v35, %v6101_v25  ;;  %v8783_v42 = vpop.f32.mrb[20].mxu1  ;;  %v6149_v25 = vld [vmem:[%s10645_s15 + $0x80] sm:$0xff] }
 0x6ba   : > { %6198 = vst [vmem:[%s11891_s20 + $0x8] sm:$0xff] %v6166_v39  ;;  %v6104_v53 = vadd.f32 %v8783_v42, %v11882_v46  ;;  %v5913_v47 = vpop.f32.mrb[21].mxu1 }
 0x6bb   : > { %6197 = vst [vmem:[%s11891_s20] sm:$0xff] %v6165_v41  ;;  %v6103_v44 = vadd.f32 %v11882_v46, %v5913_v47 }
 0x6bc   : > { %v6168_v6 = vadd.f32 %v6136_v24, %v6104_v53  ;;  %v6152_v53 = vld [vmem:[%s10645_s15 + $0x98] sm:$0xff] }
 0x6bd   : > { %v6167_v56 = vadd.f32 %v6135_v59, %v6103_v44  ;;  %v8786_v31 = vpop.f32.mrb[22].mxu1  ;;  %v6151_v44 = vld [vmem:[%s10645_s15 + $0x90] sm:$0xff] }
 0x6be   : > { %6200 = vst [vmem:[%s11891_s20 + $0x18] sm:$0xff] %v6168_v6  ;;  %v6106_v5 = vadd.f32 %v8786_v31, %v11882_v46  ;;  %v5923_v50 = vpop.f32.mrb[23].mxu1 }
 0x6bf   : > { %6199 = vst [vmem:[%s11891_s20 + $0x10] sm:$0xff] %v6167_v56  ;;  %v6105_v34 = vadd.f32 %v11882_v46, %v5923_v50 }
 0x6c0   : > { %v6170_v62 = vadd.f32 %v6138_v58, %v6106_v5  ;;  %v6154_v5 = vld [vmem:[%s10645_s15 + $0xa8] sm:$0xff] }
 0x6c1   : > { %v6169_v21 = vadd.f32 %v6137_v16, %v6105_v34  ;;  %v8789_v40 = vpop.f32.mrb[24].mxu1  ;;  %v6153_v34 = vld [vmem:[%s10645_s15 + $0xa0] sm:$0xff] }
 0x6c2   : > { %6202 = vst [vmem:[%s11891_s20 + $0x28] sm:$0xff] %v6170_v62  ;;  %v6108_v38 = vadd.f32 %v8789_v40, %v11882_v46  ;;  %v5933_v45 = vpop.f32.mrb[25].mxu1 }
 0x6c3   : > { %6201 = vst [vmem:[%s11891_s20 + $0x20] sm:$0xff] %v6169_v21  ;;  %v6107_v4 = vadd.f32 %v11882_v46, %v5933_v45 }
 0x6c4   : > { %v6172_v17 = vadd.f32 %v6140_v0, %v6108_v38  ;;  %v6156_v38 = vld [vmem:[%s10645_s15 + $0xb8] sm:$0xff] }
 0x6c5   : > { %v6171_v9 = vadd.f32 %v6139_v63, %v6107_v4  ;;  %v8792_v15 = vpop.f32.mrb[26].mxu1  ;;  %v6155_v4 = vld [vmem:[%s10645_s15 + $0xb0] sm:$0xff] }
 0x6c6   : > { %6204 = vst [vmem:[%s11891_s20 + $0x38] sm:$0xff] %v6172_v17  ;;  %v6110_v57 = vadd.f32 %v8792_v15, %v11882_v46  ;;  %v5943_v61 = vpop.f32.mrb[27].mxu1 }
 0x6c7   : > { %6203 = vst [vmem:[%s11891_s20 + $0x30] sm:$0xff] %v6171_v9  ;;  %v6109_v30 = vadd.f32 %v11882_v46, %v5943_v61 }
 0x6c8   : > { %v6174_v23 = vadd.f32 %v6142_v60, %v6110_v57  ;;  %v6158_v57 = vld [vmem:[%s10645_s15 + $0xc8] sm:$0xff] }
 0x6c9   : > { %v6173_v27 = vadd.f32 %v6141_v11, %v6109_v30  ;;  %v8795_v13 = vpop.f32.mrb[28].mxu1  ;;  %v6157_v30 = vld [vmem:[%s10645_s15 + $0xc0] sm:$0xff] }
 0x6ca   : > { %6206 = vst [vmem:[%s11891_s20 + $0x48] sm:$0xff] %v6174_v23  ;;  %v6112_v1 = vadd.f32 %v8795_v13, %v11882_v46  ;;  %v5953_v22 = vpop.f32.mrb[29].mxu1 }
 0x6cb   : > { %6205 = vst [vmem:[%s11891_s20 + $0x40] sm:$0xff] %v6173_v27  ;;  %v6111_v55 = vadd.f32 %v11882_v46, %v5953_v22 }
 0x6cc   : > { %v6176_v3 = vadd.f32 %v6144_v10, %v6112_v1  ;;  %v6160_v1 = vld [vmem:[%s10645_s15 + $0xd8] sm:$0xff] }
 0x6cd   : > { %v6175_v14 = vadd.f32 %v6143_v28, %v6111_v55  ;;  %v8798_v52 = vpop.f32.mrb[30].mxu1  ;;  %v6159_v55 = vld [vmem:[%s10645_s15 + $0xd0] sm:$0xff] }
 0x6ce   : > { %6208 = vst [vmem:[%s11891_s20 + $0x58] sm:$0xff] %v6176_v3  ;;  %v6114_v48 = vadd.f32 %v8798_v52, %v11882_v46  ;;  %v5963_v49 = vpop.f32.mrb[31].mxu1 }
 0x6cf   : > { %6207 = vst [vmem:[%s11891_s20 + $0x50] sm:$0xff] %v6175_v14  ;;  %v6113_v26 = vadd.f32 %v11882_v46, %v5963_v49 }
 0x6d0   : > { %v6178_v54 = vadd.f32 %v6146_v36, %v6114_v48  ;;  %v6162_v48 = vld [vmem:[%s10645_s15 + $0xe8] sm:$0xff] }
 0x6d1   : > { %v6177_v8 = vadd.f32 %v6145_v20, %v6113_v26  ;;  %v8801_v18 = vpop.f32.mrb[32].mxu1  ;;  %v6161_v26 = vld [vmem:[%s10645_s15 + $0xe0] sm:$0xff] }
 0x6d2   : > { %6210 = vst [vmem:[%s11891_s20 + $0x68] sm:$0xff] %v6178_v54  ;;  %v6116_v7 = vadd.f32 %v8801_v18, %v11882_v46  ;;  %v5973_v19 = vpop.f32.mrb[33].mxu1 }
 0x6d3   : > { %6209 = vst [vmem:[%s11891_s20 + $0x60] sm:$0xff] %v6177_v8  ;;  %v6115_v29 = vadd.f32 %v11882_v46, %v5973_v19 }
 0x6d4   : > { %v6180_v2 = vadd.f32 %v6148_v43, %v6116_v7  ;;  %v6164_v7 = vld [vmem:[%s10645_s15 + $0xf8] sm:$0xff] }
 0x6d5   : > { %v6179_v32 = vadd.f32 %v6147_v12, %v6115_v29  ;;  %v8804_v33 = vpop.f32.mrb[34].mxu1  ;;  %v6163_v29 = vld [vmem:[%s10645_s15 + $0xf0] sm:$0xff] }
 0x6d6   : > { %6212 = vst [vmem:[%s11891_s20 + $0x78] sm:$0xff] %v6180_v2  ;;  %v6118_v37 = vadd.f32 %v8804_v33, %v11882_v46  ;;  %v5983_v35 = vpop.f32.mrb[35].mxu1 }
 0x6d7   : > { %6211 = vst [vmem:[%s11891_s20 + $0x70] sm:$0xff] %v6179_v32  ;;  %v6117_v39 = vadd.f32 %v11882_v46, %v5983_v35 }
 0x6d8   : > { %v6182_v41 = vadd.f32 %v6150_v51, %v6118_v37 }
 0x6d9   : > { %v6181_v42 = vadd.f32 %v6149_v25, %v6117_v39  ;;  %v8807_v24 = vpop.f32.mrb[36].mxu1 }
 0x6da   : > { %6214 = vst [vmem:[%s11891_s20 + $0x88] sm:$0xff] %v6182_v41  ;;  %v6120_v47 = vadd.f32 %v8807_v24, %v11882_v46  ;;  %v5993_v59 = vpop.f32.mrb[37].mxu1 }
 0x6db   : > { %6213 = vst [vmem:[%s11891_s20 + $0x80] sm:$0xff] %v6181_v42  ;;  %v6119_v6 = vadd.f32 %v11882_v46, %v5993_v59 }
 0x6dc   : > { %v6184_v56 = vadd.f32 %v6152_v53, %v6120_v47 }
 0x6dd   : > { %v6183_v31 = vadd.f32 %v6151_v44, %v6119_v6  ;;  %v8810_v58 = vpop.f32.mrb[38].mxu1 }
 0x6de   : > { %6216 = vst [vmem:[%s11891_s20 + $0x98] sm:$0xff] %v6184_v56  ;;  %v6122_v50 = vadd.f32 %v8810_v58, %v11882_v46  ;;  %v6003_v16 = vpop.f32.mrb[39].mxu1 }
 0x6df   : > { %6215 = vst [vmem:[%s11891_s20 + $0x90] sm:$0xff] %v6183_v31  ;;  %v6121_v62 = vadd.f32 %v11882_v46, %v6003_v16 }
 0x6e0   : > { %v6186_v21 = vadd.f32 %v6154_v5, %v6122_v50 }
 0x6e1   : > { %v6185_v40 = vadd.f32 %v6153_v34, %v6121_v62  ;;  %v8813_v0 = vpop.f32.mrb[40].mxu1 }
 0x6e2   : > { %6218 = vst [vmem:[%s11891_s20 + $0xa8] sm:$0xff] %v6186_v21  ;;  %v6124_v45 = vadd.f32 %v8813_v0, %v11882_v46  ;;  %v6013_v63 = vpop.f32.mrb[41].mxu1 }
 0x6e3   : > { %6217 = vst [vmem:[%s11891_s20 + $0xa0] sm:$0xff] %v6185_v40  ;;  %v6123_v17 = vadd.f32 %v11882_v46, %v6013_v63 }
 0x6e4   : > { %v6188_v9 = vadd.f32 %v6156_v38, %v6124_v45 }
 0x6e5   : > { %v6187_v15 = vadd.f32 %v6155_v4, %v6123_v17  ;;  %v8816_v60 = vpop.f32.mrb[42].mxu1 }
 0x6e6   : > { %6220 = vst [vmem:[%s11891_s20 + $0xb8] sm:$0xff] %v6188_v9  ;;  %v6126_v61 = vadd.f32 %v8816_v60, %v11882_v46  ;;  %v6023_v11 = vpop.f32.mrb[43].mxu1 }
 0x6e7   : > { %6219 = vst [vmem:[%s11891_s20 + $0xb0] sm:$0xff] %v6187_v15  ;;  %v6125_v23 = vadd.f32 %v11882_v46, %v6023_v11 }
 0x6e8   : > { %v6190_v27 = vadd.f32 %v6158_v57, %v6126_v61 }
 0x6e9   : > { %v6189_v13 = vadd.f32 %v6157_v30, %v6125_v23  ;;  %v8819_v10 = vpop.f32.mrb[44].mxu1 }
 0x6ea   : > { %6222 = vst [vmem:[%s11891_s20 + $0xc8] sm:$0xff] %v6190_v27  ;;  %v6128_v22 = vadd.f32 %v8819_v10, %v11882_v46  ;;  %v6033_v28 = vpop.f32.mrb[45].mxu1 }
 0x6eb   : > { %6221 = vst [vmem:[%s11891_s20 + $0xc0] sm:$0xff] %v6189_v13  ;;  %v6127_v3 = vadd.f32 %v11882_v46, %v6033_v28 }
 0x6ec   : > { %v6192_v14 = vadd.f32 %v6160_v1, %v6128_v22 }
 0x6ed   : > { %v6191_v52 = vadd.f32 %v6159_v55, %v6127_v3  ;;  %v8822_v36 = vpop.f32.mrb[46].mxu1 }
 0x6ee   : > { %6224 = vst [vmem:[%s11891_s20 + $0xd8] sm:$0xff] %v6192_v14  ;;  %v6130_v49 = vadd.f32 %v8822_v36, %v11882_v46  ;;  %v6043_v20 = vpop.f32.mrb[47].mxu1 }
 0x6ef   : > { %6223 = vst [vmem:[%s11891_s20 + $0xd0] sm:$0xff] %v6191_v52  ;;  %v6129_v54 = vadd.f32 %v11882_v46, %v6043_v20 }
 0x6f0   : > { %v6194_v8 = vadd.f32 %v6162_v48, %v6130_v49 }
 0x6f1   : > { %v6193_v18 = vadd.f32 %v6161_v26, %v6129_v54  ;;  %v8825_v43 = vpop.f32.mrb[48].mxu1 }
 0x6f2   : > { %6226 = vst [vmem:[%s11891_s20 + $0xe8] sm:$0xff] %v6194_v8  ;;  %v6132_v19 = vadd.f32 %v8825_v43, %v11882_v46  ;;  %v6053_v12 = vpop.f32.mrb[49].mxu1 }
 0x6f3   : > { %6225 = vst [vmem:[%s11891_s20 + $0xe0] sm:$0xff] %v6193_v18  ;;  %v6131_v2 = vadd.f32 %v11882_v46, %v6053_v12 }
 0x6f4   : > { %v6196_v32 = vadd.f32 %v6164_v7, %v6132_v19 }
 0x6f5   : > { %v6195_v33 = vadd.f32 %v6163_v29, %v6131_v2 }
 0x6f6   : > { %6228 = vst [vmem:[%s11891_s20 + $0xf8] sm:$0xff] %v6196_v32 }
 0x6f7   : > { %6227 = vst [vmem:[%s11891_s20 + $0xf0] sm:$0xff] %v6195_v33 }
 0x6f8   : > { %10223 = shalt.err (!%p10220_p11)
}
 0x6f9   : > { %s10224_s1 = scalar_lea.hbm %s11987_s10, 4096  ;;  %s10228_s18 = scalar_lea.hbm %s12238_s19, 8192 }
 0x6fa   : > { %p10225_p8 = scmp.ne.s32.totalorder %s11987_s10, %s10224_s1  ;;  %p10229_p3 = scmp.lt.u32.totalorder %s11987_s10, %s12238_s19 }
 0x6fb   : > { %p10230_p10 = scmp.lt.u32.totalorder %s10228_s18, %s10224_s1  ;;  %p10232_p1 = scmp.lt.u32.totalorder %s10224_s1, %s11987_s10 }
 0x6fc   : > { %p10226_p5 = pnand %p10225_p8, %p12239_p4 }
 0x6fd   : > { %p10231_p12 = por %p10230_p10, %p10229_p3 }
 0x6fe   : > { %p10227_p9 = pneg %p10226_p5 }
 0x6ff   : > { %p10233_p0 = por %p10232_p1, %p10231_p12 }
 0x701   : > { %p10234_p7 = pnand %p10233_p0, %p10227_p9 }
 0x703   : > { %10237 = shalt.err (!%p10234_p7)
}
 0x704   : > { %s10311_s9 = smov 128   ;;  %s10312_s30 = smov 8  }
 0x705   : > { %9945 = dma.vmem_to_hbm [thread:$0]  (%p12239_p4), %s11989_s24, 4096, %s11987_s10, %s6230_s27, %s10311_s9, %s10311_s9, %s10312_s30  }
 0x706 PF: > { %s12240_s11 = sld [smem:[#allocation17_spill]]  ;;  %s12241_s13 = sld [smem:[#allocation21_spill]] }
 0x707   : > { %s12242_s29 = sld [smem:[#allocation20_spill]] }
 0x70c   : > { %s6261_s20 = sand.u32 1, %s12240_s11   ;;  %p12243_p2 = scmp.ne.s32.totalorder %s12241_s13, 0 }
 0x70d   : > { %p12244_p13 = scmp.ge.s32.totalorder %s12242_s29, 2  ;;  %s6262_s16 = scalar_lea.sflag [#allocation5], %s6261_s20 }
 0x70f   : > { %p9965_p6 = pnand %p12244_p13, %p12243_p2 }
 0x711   : > { %10275 = dma.done.wait (!%p9965_p6), %s6262_s16, 4096  }
 0x712   : > { %10277 = vsyncadd (!%p9965_p6), %s6262_s16, 4294963200  ;;  %s27_s29 = sadd.s32 1, %s12242_s29   ;;  %s12245_s17 = sld [smem:[#allocation18_spill]] }
 0x713   : > { %p24_p11 = scmp.ge.s32.totalorder %s27_s29, 4   ;;  %s12246_s26 = sld [smem:[#allocation23_spill]] }
 0x714   : > { %s12247_s27 = sld [smem:[#allocation19_spill]]  ;;  %s12248_s28 = sld [smem:[#allocation22_spill]] }
 0x715   : > { %s12249_s24 = smov %s10284_s25  ;;  %26 = sbr.rel (!%p24_p11) target bundleno = 13 (0xd), region = 143 }
 0x718   : > { %s12250_s25 = smov %s12245_s17 }
 0x71c   :  { %6267 = vsyncpa [#allocation4], 1 }
 0x71d   :  { %6269 = vsyncpa [#allocation4 + $0x1], 1 }
 0x71e   :  { %6270 = vsyncpa [#allocation7], 1 }
 0x71f   :  { %6272 = vsyncpa [#allocation7 + $0x1], 1 }
 0x720   :  { %6273 = vsyncpa [#allocation10], 1 }
 0x721   :  { %6274 = vsyncpa [#allocation5], 1 }
 0x722   :  { %6276 = vsyncpa [#allocation5 + $0x1], 1 }

// kernel: tpu_custom_call.1
= control target key start
LH: loop header
LB: loop body
LE: loop exit
PB: predicated region body
PF: predicated region fallthrough
CT: control target
= control target key end

     0   :  { %s12040_s0 = inlined_call_operand.hbm [shape: f32[2,34,16,128], index: 0, kind: input, shape index: {}]   ;;  %s12041_s1 = inlined_call_operand.hbm [shape: f32[2,34,16,128], index: 1, kind: input, shape index: {}]   ;;  %s12042_s2 = inlined_call_operand.hbm [shape: f32[2,34,16,128], index: 2, kind: input, shape index: {}]   ;;  %s12043_s3 = inlined_call_operand.hbm [shape: f32[9,128,128], index: 3, kind: input, shape index: {}]   ;;  %s12044_s4 = inlined_call_operand.vmem [shape: f32[1,128], index: 4, kind: input, shape index: {}]   ;;  %s12045_s5 = inlined_call_operand.hbm [shape: f32[9,128,128], index: 5, kind: input, shape index: {}]   ;;  %s12046_s6 = inlined_call_operand.vmem [shape: f32[1,128], index: 6, kind: input, shape index: {}]   ;;  %s12047_s7 = inlined_call_operand.hbm [shape: f32[2,16,16,128], index: 7, kind: output, shape index: {}]  }
   0x1   :  { %12137 = sst [smem:[#allocation45_spill]] %s12041_s1 }
   0x2   :  { %12138 = sst [smem:[#allocation46_spill]] %s12043_s3 }
   0x3   :  { %12139 = sst [smem:[#allocation47_spill]] %s12047_s7 }
   0x4   :  { %12 = vsyncpa [#allocation4], 0 }
   0x5   :  { %14 = vsyncpa [#allocation4 + $0x1], 0 }
   0x6   :  { %15 = vsyncpa [#allocation7], 0 }
   0x7   :  { %17 = vsyncpa [#allocation7 + $0x1], 0 }
   0x8   :  { %18 = vsyncpa [#allocation10], 0 }
   0x9   :  { %19 = vsyncpa [#allocation5], 0 }
   0xa   :  { %21 = vsyncpa [#allocation5 + $0x1], 0  ;;  %s10353_s24 = smov 0   ;;  %s10355_s25 = smov 0  }
   0xb   :  { %s10357_s26 = smov 0   ;;  %s10359_s27 = smov 0  }
   0xc   :  { %s10361_s28 = smov 0   ;;  %s10363_s29 = smov 0  }
   0xd LB: > { %12140 = sst [smem:[#allocation17_spill]] %s10280_s24  ;;  %s10384_s30 = sadd.s32 4294967295, %s10300_s29   ;;  %s10300_s29 = sphi %s10363_s29, %s27_s29   ;;  %s10296_s28 = sphi %s10361_s28, %s12248_s28   ;;  %s10292_s27 = sphi %s10359_s27, %s12247_s27   ;;  %s10288_s26 = sphi %s10357_s26, %s12246_s26   ;;  %s10284_s25 = sphi %s10355_s25, %s12250_s25   ;;  %s10280_s24 = sphi %s10353_s24, %s12249_s24  }
   0xe   : > { %12141 = sst [smem:[#allocation18_spill]] %s10288_s26  ;;  %s6404_s8 = sadd.s32 4294967294, %s10300_s29  }
   0xf   : > { %12142 = sst [smem:[#allocation19_spill]] %s10296_s28  ;;  %p61_p0 = scmp.ne.s32.totalorder %s10288_s26, %s10284_s25 }
  0x10   : > { %12143 = sst [smem:[#allocation20_spill]] %s10300_s29  ;;  %p62_p1 = scmp.eq.s32.totalorder %s10300_s29, 0 }
  0x11   : > { %p67_p2 = scmp.ne.s32.totalorder %s10284_s25, %s10280_s24  ;;  %p12049_p3 = scmp.eq.s32.totalorder %s10384_s30, 0 }
  0x12   : > { %p239_p4 = scmp.eq.s32.totalorder %s10384_s30, 1  ;;  %p10395_p5 = por %p62_p1, %p61_p0 }
  0x13   : > { %p245_p6 = scmp.eq.s32.totalorder %s6404_s8, 1  ;;  %p10401_p7 = por %p12049_p3, %p67_p2 }
  0x14   : > { %p10405_p8 = por %p239_p4, %p61_p0  ;;  %p6405_p10 = scmp.ge.s32.totalorder %s10300_s29, 1 }
  0x15   : > { %s12145_s11 = scalar_select %p10401_p7, 1, 0 }
  0x16   : > { %s12146_s12 = scalar_select %p10405_p8, 1, 0 }
  0x17   : > { %p10409_p9 = por %p245_p6, %p67_p2  ;;  %p252_p11 = scmp.lt.s32.totalorder %s10300_s29, 3 }
  0x18   : > { %s10302_s15 = smov [#allocation9]   ;;  %s39_s18 = sadd.s32 1, %s10296_s28 }
  0x19   : > { %s12147_s13 = scalar_select %p10409_p9, 1, 0 }
  0x1a   : > { %p10415_p12 = pnand %p6405_p10, %p252_p11  ;;  %s264_s16 = sshll.u32 %s10302_s15, 4  ;;  %s10419_s16 = int_to_ptr.vmem [resolvable:$true] %s264_s16 }
  0x1b   : > { %12148 = sst [smem:[#allocation21_spill]] %s12147_s13  ;;  %s10433_s19 = sand.u32 1, %s10288_s26  }
  0x1c   : > { %s12149_s14 = scalar_select %p10415_p12, 1, 0 }
  0x1d   : > { %p9947_p13 = pneg %p10415_p12  ;;  %p10435_p4 = scmp.ge.s32.totalorder %s39_s18, 2 }
  0x1e   : > { %s12152_s3 = sld [smem:[#allocation46_spill]] }
  0x1f   : > { %p10427_p2 = pnand %p9947_p13, %p12049_p3 }
  0x21   : > { %s12150_s17 = scalar_select %p10427_p2, 1, 0 }
  0x22   : > { %p12061_p10 = pneg %p10427_p2 }
  0x24   : > { %s10062_s23 = scalar_lea.hbm %s12152_s3, 18432 }
  0x25   : > { %p10063_p6 = scmp.ne.s32.totalorder %s12152_s3, %s10062_s23  ;;  %p10069_p0 = scmp.lt.u32.totalorder %s10062_s23, %s12152_s3 }
  0x27   : > { %p10065_p11 = pnand %p12061_p10, %p10063_p6 }
  0x29   : > { %p10066_p13 = pneg %p10065_p11 }
  0x2b   : > { %p10071_p3 = pnand %p10069_p0, %p10066_p13 }
  0x2d   : > { %10074 = shalt.err (!%p10071_p3)
}
  0x2e   : > { %s10075_s21 = scalar_lea.vmem %s10419_s16, 18432  ;;  %p10083_p7 = scmp.lt.s32.totalorder %s10419_s16, %s10419_s16 }
  0x2f   : > { %p10076_p1 = scmp.ne.s32.totalorder %s10419_s16, %s10075_s21  ;;  %p10084_p6 = scmp.lt.s32.totalorder %s10075_s21, %s10075_s21 }
  0x31   : > { %p10078_p9 = pnand %p10076_p1, %p12061_p10  ;;  %p10085_p11 = por %p10084_p6, %p10083_p7 }
  0x33   : > { %p10079_p8 = pneg %p10078_p9 }
  0x35   : > { %p10086_p12 = pnand %p10085_p11, %p10079_p8 }
  0x37   : > { %10089 = shalt.err (!%p10086_p12)
}
  0x38   : > { %s12055_s9 = smov 128   ;;  %s12057_s13 = smov 8  }
  0x39   : > { %9950 = dma.hbm_to_vmem [thread:$0]  (!%p10427_p2), %s12152_s3, 18432, %s10419_s16, [#allocation10], %s12055_s9, %s12055_s9, %s12057_s13  }
  0x3a   : > { %s12252_s18 = smov (%p10435_p4, %s39_s18), 0  ;;  %p12154_p3 = scmp.lt.s32.totalorder %s10300_s29, 2 }
  0x3b   : > { %12153 = sst [smem:[#allocation22_spill]] %s12252_s18  ;;  %s49_s15 = ssub.s32 %s10296_s28, %s12252_s18 }
  0x3c   : > { %p10477_p7 = pnand %p12154_p3, %p10395_p5  ;;  %s10484_s21 = smul.u32 8704, %s10296_s28 }
  0x3d   : > { %p52_p8 = scmp.eq.s32.totalorder %s49_s15, 0  ;;  %s324_s24 = sand.u32 1, %s10300_s29  }
  0x3e   : > { %s12155_s8 = scalar_select %p10477_p7, 1, 0 }
  0x3f   : > { %s6411_s7 = sshll.u32 %s10433_s19, 8  ;;  %s12156_s22 = sadd.s32 1, %s10288_s26 }
  0x40   : > { %s10491_s16 = scalar_select %p52_p8, %s10288_s26, %s12156_s22  }
  0x41   : > { %s12158_s1 = sld [smem:[#allocation45_spill]]  ;;  %s328_s9 = scalar_lea.vmem [#allocation6], %s6411_s7 }
  0x42   : > { %12157 = sst [smem:[#allocation23_spill]] %s10491_s16  ;;  %s347_s13 = sshll.u32 %s328_s9, 4  ;;  %s10499_s13 = int_to_ptr.vmem [resolvable:$true] %s347_s13 }
  0x43   : > { %s10501_s18 = scalar_lea.sflag [#allocation7], %s324_s24  ;;  %p10506_p9 = pneg %p10477_p7 }
  0x45   : > { %s12159_s22 = scalar_select %p10506_p9, 1, 0 }
  0x47   : > { %s6292_s10 = scalar_lea.hbm %s12158_s1, %s10484_s21  ;;  %s10095_s20 = scalar_lea.hbm %s12158_s1, 17408 }
  0x48   : > { %s10497_s3 = scalar_lea.hbm %s6292_s10, 4096  ;;  %s10120_s15 = scalar_lea.hbm %s6292_s10, 8192 }
  0x49   : > { %p10091_p5 = scmp.ne.s32.totalorder %s10497_s3, %s10120_s15  ;;  %p10096_p1 = scmp.lt.u32.totalorder %s10497_s3, %s12158_s1 }
  0x4a   : > { %p10097_p4 = scmp.lt.u32.totalorder %s10095_s20, %s10120_s15  ;;  %p10099_p6 = scmp.lt.u32.totalorder %s10120_s15, %s10497_s3 }
  0x4b   : > { %p10093_p12 = pnand %p10506_p9, %p10091_p5 }
  0x4c   : > { %p10098_p13 = por %p10097_p4, %p10096_p1 }
  0x4d   : > { %p10094_p0 = pneg %p10093_p12 }
  0x4e   : > { %p10100_p11 = por %p10099_p6, %p10098_p13 }
  0x50   : > { %p10101_p3 = pnand %p10100_p11, %p10094_p0 }
  0x52   : > { %10104 = shalt.err (!%p10101_p3)
}
  0x53   : > { %s10105_s24 = scalar_lea.vmem %s10499_s13, 4096  ;;  %s10305_s10 = smov [#allocation6]  }
  0x54   : > { %p10106_p8 = scmp.ne.s32.totalorder %s10499_s13, %s10105_s24  ;;  %s10110_s7 = sshll.u32 %s10305_s10, 4  ;;  %s10111_s7 = int_to_ptr.vmem [resolvable:$false] %s10110_s7 }
  0x55   : > { %s10112_s28 = scalar_lea.vmem %s10111_s7, 8192  ;;  %p10113_p10 = scmp.lt.s32.totalorder %s10499_s13, %s10111_s7 }
  0x56   : > { %p10108_p5 = pnand %p10106_p8, %p10506_p9  ;;  %p10114_p2 = scmp.lt.s32.totalorder %s10112_s28, %s10105_s24 }
  0x58   : > { %p10109_p12 = pneg %p10108_p5  ;;  %p10115_p1 = por %p10114_p2, %p10113_p10 }
  0x5a   : > { %p10116_p4 = pnand %p10115_p1, %p10109_p12 }
  0x5c   : > { %10119 = shalt.err (!%p10116_p4)
}
  0x5d   : > { %s12160_s15 = smov 8   ;;  %s12161_s9 = smov 128  }
  0x5e   : > { %9960 = dma.hbm_to_vmem [thread:$0]  (!%p10477_p7), %s10497_s3, 4096, %s10499_s13, %s10501_s18, %s12161_s9, %s12161_s9, %s12160_s15  }
  0x5f   : > { %s10306_s20 = smov [#allocation11]   ;;  %s6409_s10 = sshll.u32 %s10433_s19, 5 }
  0x60   : > { %s280_s23 = sshll.u32 %s10306_s20, 4  ;;  %s10121_s28 = scalar_lea.hbm %s12045_s5, 18432  ;;  %s281_s23 = int_to_ptr.vmem [resolvable:$true] %s280_s23 }
  0x61   : > { %p10122_p2 = scmp.ne.s32.totalorder %s12045_s5, %s10121_s28  ;;  %p12162_p10 = scmp.ne.s32.totalorder %s12150_s17, 0 }
  0x62   : > { %p10128_p11 = scmp.lt.u32.totalorder %s10121_s28, %s12045_s5 }
  0x63   : > { %p12163_p0 = pneg %p12162_p10 }
  0x65   : > { %p10124_p13 = pnand %p10122_p2, %p12163_p0 }
  0x67   : > { %p10125_p6 = pneg %p10124_p13 }
  0x69   : > { %p10130_p3 = pnand %p10128_p11, %p10125_p6 }
  0x6b   : > { %10133 = shalt.err (!%p10130_p3)
}
  0x6c   : > { %s10134_s3 = scalar_lea.vmem %s281_s23, 18432  ;;  %p12164_p5 = pmov %p12163_p0 }
  0x6d   : > { %p10135_p8 = scmp.ne.s32.totalorder %s281_s23, %s10134_s3  ;;  %p10142_p4 = scmp.lt.s32.totalorder %s281_s23, %s281_s23 }
  0x6e   : > { %p10143_p7 = scmp.lt.s32.totalorder %s10134_s3, %s10134_s3 }
  0x6f   : > { %p10137_p12 = pnand %p10135_p8, %p12164_p5 }
  0x70   : > { %p10144_p9 = por %p10143_p7, %p10142_p4 }
  0x71   : > { %p10138_p1 = pneg %p10137_p12 }
  0x73   : > { %p10145_p0 = pnand %p10144_p9, %p10138_p1 }
  0x75   : > { %10148 = shalt.err (!%p10145_p0)
}
  0x76   : > { %9953 = dma.hbm_to_vmem [thread:$0]  (!%p12162_p10), %s12045_s5, 18432, %s281_s23, [#allocation10], %s12161_s9, %s12161_s9, %s12160_s15  }
  0x77   : > { %s6430_s29 = sadd.s32 3584, %s10484_s21  ;;  %s301_s13 = scalar_lea.vmem [#allocation3], %s6409_s10 }
  0x78   : > { %s314_s16 = sshll.u32 %s301_s13, 4  ;;  %s10563_s24 = scalar_lea.hbm %s12040_s0, %s6430_s29  ;;  %s10565_s16 = int_to_ptr.vmem [resolvable:$true] %s314_s16 }
  0x79   : > { %s298_s17 = scalar_lea.sflag [#allocation4], %s10433_s19  ;;  %s10149_s28 = scalar_lea.hbm %s10563_s24, 512 }
  0x7a   : > { %p10150_p7 = scmp.ne.s32.totalorder %s10563_s24, %s10149_s28  ;;  %p12165_p9 = scmp.ne.s32.totalorder %s12159_s22, 0 }
  0x7b   : > { %s10154_s1 = scalar_lea.hbm %s12040_s0, 17408  ;;  %p10155_p13 = scmp.lt.u32.totalorder %s10563_s24, %s12040_s0 }
  0x7c   : > { %p10152_p2 = pnand %p10150_p7, %p12165_p9  ;;  %p10156_p6 = scmp.lt.u32.totalorder %s10154_s1, %s10149_s28 }
  0x7d   : > { %p10158_p3 = scmp.lt.u32.totalorder %s10149_s28, %s10563_s24 }
  0x7e   : > { %p10153_p10 = pneg %p10152_p2  ;;  %p10157_p11 = por %p10156_p6, %p10155_p13 }
  0x80   : > { %p10159_p8 = por %p10158_p3, %p10157_p11 }
  0x82   : > { %p10160_p5 = pnand %p10159_p8, %p10153_p10 }
  0x84   : > { %10163 = shalt.err (!%p10160_p5)
}
  0x85   : > { %s10164_s29 = scalar_lea.vmem %s10565_s16, 512  ;;  %s10307_s20 = smov [#allocation3]  }
  0x86   : > { %p10165_p12 = scmp.ne.s32.totalorder %s10565_s16, %s10164_s29  ;;  %s10169_s7 = sshll.u32 %s10307_s20, 4  ;;  %s10170_s7 = int_to_ptr.vmem [resolvable:$false] %s10169_s7 }
  0x87   : > { %s10171_s23 = scalar_lea.vmem %s10170_s7, 1024  ;;  %p10172_p0 = scmp.lt.s32.totalorder %s10565_s16, %s10170_s7 }
  0x88   : > { %p10167_p1 = pnand %p10165_p12, %p12165_p9  ;;  %p10173_p7 = scmp.lt.s32.totalorder %s10171_s23, %s10164_s29 }
  0x8a   : > { %p10168_p4 = pneg %p10167_p1  ;;  %p10174_p2 = por %p10173_p7, %p10172_p0 }
  0x8c   : > { %p10175_p13 = pnand %p10174_p2, %p10168_p4 }
  0x8e   : > { %10178 = shalt.err (!%p10175_p13)
}
  0x8f   : > { %p12166_p10 = scmp.ne.s32.totalorder %s12155_s8, 0  ;;  %s6301_s1 = scalar_lea.hbm %s12042_s2, %s10484_s21 }
  0x90   : > { %s361_s26 = scalar_lea.vmem [#allocation8], %s6409_s10  ;;  %s10600_s29 = scalar_lea.hbm %s6301_s1, 8192 }
  0x91   : > { %9957 = dma.hbm_to_vmem [thread:$0]  (!%p12166_p10), %s10563_s24, 512, %s10565_s16, %s298_s17, %s12161_s9, %s12161_s9, %s12160_s15  }
  0x92   : > { %s373_s13 = sshll.u32 %s361_s26, 4  ;;  %s10209_s20 = scalar_lea.hbm %s6301_s1, 8704  ;;  %s10602_s13 = int_to_ptr.vmem [resolvable:$true] %s373_s13 }
  0x93   : > { %p10180_p6 = scmp.ne.s32.totalorder %s10600_s29, %s10209_s20  ;;  %s10184_s17 = scalar_lea.hbm %s12042_s2, 17408 }
  0x94   : > { %p10185_p8 = scmp.lt.u32.totalorder %s10600_s29, %s12042_s2  ;;  %p10186_p5 = scmp.lt.u32.totalorder %s10184_s17, %s10209_s20 }
  0x95   : > { %p10182_p11 = pnand %p10180_p6, %p12165_p9  ;;  %p10188_p1 = scmp.lt.u32.totalorder %s10209_s20, %s10600_s29 }
  0x96   : > { %p10187_p12 = por %p10186_p5, %p10185_p8 }
  0x97   : > { %p10183_p3 = pneg %p10182_p11 }
  0x98   : > { %p10189_p4 = por %p10188_p1, %p10187_p12 }
  0x9a   : > { %p10190_p0 = pnand %p10189_p4, %p10183_p3 }
  0x9c   : > { %10193 = shalt.err (!%p10190_p0)
}
  0x9d   : > { %s10194_s10 = scalar_lea.vmem %s10602_s13, 512  ;;  %s10308_s7 = smov [#allocation8]  }
  0x9e   : > { %p10195_p7 = scmp.ne.s32.totalorder %s10602_s13, %s10194_s10  ;;  %s10199_s23 = sshll.u32 %s10308_s7, 4  ;;  %s10200_s23 = int_to_ptr.vmem [resolvable:$false] %s10199_s23 }
  0x9f   : > { %s10201_s28 = scalar_lea.vmem %s10200_s23, 1024  ;;  %p10202_p6 = scmp.lt.s32.totalorder %s10602_s13, %s10200_s23 }
  0xa0   : > { %p10197_p2 = pnand %p10195_p7, %p12165_p9  ;;  %p10203_p11 = scmp.lt.s32.totalorder %s10201_s28, %s10194_s10 }
  0xa2   : > { %p10198_p13 = pneg %p10197_p2  ;;  %p10204_p8 = por %p10203_p11, %p10202_p6 }
  0xa4   : > { %p10205_p5 = pnand %p10204_p8, %p10198_p13 }
  0xa6   : > { %10208 = shalt.err (!%p10205_p5)
}
  0xa7   : > { %9963 = dma.hbm_to_vmem [thread:$0]  (!%p12166_p10), %s10600_s29, 512, %s10602_s13, %s10501_s18, %s12161_s9, %s12161_s9, %s12160_s15  }
  0xa8   : > { %p12167_p9 = scmp.ne.s32.totalorder %s12149_s14, 0 }
  0xaa   : > { %385 = sbr.rel (%p12167_p9) target bundleno = 1798 (0x706), region = 48 }
  0xb1   : > { %s10631_s22 = sand.u32 1, %s10284_s25   ;;  %p12168_p3 = scmp.ne.s32.totalorder %s12145_s11, 0 }
  0xb2   : > { %s6416_s3 = sshll.u32 %s10631_s22, 5  ;;  %s388_s1 = scalar_lea.sflag [#allocation4], %s10631_s22 }
  0xb3   : > { %s10635_s26 = scalar_lea.vmem [#allocation3], %s6416_s3 }
  0xb4   : > { %10263 = dma.done.wait (%p12168_p3), %s388_s1, 512  }
  0xb5   : > { %10265 = vsyncadd (%p12168_p3), %s388_s1, 4294966784  ;;  %s396_s14 = sand.u32 1, %s10384_s30   ;;  %s6417_s18 = sshll.u32 %s10631_s22, 8 }
  0xb6   : > { %s397_s8 = scalar_lea.sflag [#allocation7], %s396_s14  ;;  %s10645_s15 = scalar_lea.vmem [#allocation6], %s6417_s18 }
  0xb7   : > { %10267 = dma.done.wait (%p12168_p3), %s397_s8, 4608  }
  0xb8   : > { %10269 = vsyncadd (%p12168_p3), %s397_s8, 4294962688  ;;  %s10651_s9 = scalar_lea.vmem [#allocation8], %s6416_s3  ;;  %p12169_p10 = scmp.eq.s32.totalorder %s10384_s30, 0 }
  0xba   : > { %10271 = dma.done.wait (%p12169_p10), [#allocation10], 36864   ;;  %p12170_p12 = pmov %p12169_p10 }
  0xbb   : > { %v12071_v0 = vmov 0.0   ;;  %v652_v1 = vld [vmem:[#allocation9 + $0x180] sm:$0xff]  ;;  %v653_v2 = vld [vmem:[#allocation9 + $0x188] sm:$0xff]  ;;  %v654_v3 = vld [vmem:[#allocation9 + $0x190] sm:$0xff]  ;;  %s11891_s20 = scalar_lea.vmem [#allocation12], %s6417_s18  ;;  %s6431_s16 = sshll.u32 %s10292_s27, 12 }
  0xbc   : > { %10273 = vsyncadd (%p12170_p12), [#allocation10], 4294930432  ;;  %474 = vst [vmem:[#allocation2 + $0x18] sm:$0x1] %v12071_v0  ;;  %v8826_v4 = vpack.c.bf16 %v653_v2, %v652_v1  ;;  %v655_v5 = vld [vmem:[#allocation9 + $0x198] sm:$0xff]  ;;  %v656_v7 = vld [vmem:[#allocation9 + $0x1a0] sm:$0xff] }
  0xbd   : > { %473 = vst [vmem:[#allocation2] sm:$0x1] %v12071_v0  ;;  %475 = vst [vmem:[#allocation2 + $0x30] sm:$0x1] %v12071_v0  ;;  %v8830_v6 = vpack.c.bf16 %v655_v5, %v654_v3  ;;  %v657_v8 = vld [vmem:[#allocation9 + $0x1a8] sm:$0xff]  ;;  %v10698_v10 = vld [vmem:[%s10635_s26 + $0x10] sm:$0xff] }
  0xbe   : > { %476 = vst [vmem:[#allocation2 + $0x48] sm:$0x1] %v12071_v0  ;;  %477 = vst [vmem:[#allocation2 + $0x60] sm:$0x1] %v12071_v0  ;;  %8827 = vmatprep.subr.bf16.mxu0 %v8826_v4  ;;  %9402 = vmatprep.subr.bf16.mxu1 %v8826_v4  ;;  %v8834_v9 = vpack.c.bf16 %v657_v8, %v656_v7  ;;  %v10701_v11 = vld [vmem:[%s10635_s26 + $0x18] sm:$0xff]  ;;  %v658_v12 = vld [vmem:[#allocation9 + $0x1b0] sm:$0xff] }
  0xbf   : > { %478 = vst [vmem:[#allocation2 + $0x78] sm:$0x1] %v12071_v0  ;;  %479 = vst [vmem:[#allocation2 + $0x90] sm:$0x1] %v12071_v0  ;;  %8829 = vmatpush3.bf16.msra.mxu0 %v8826_v4  ;;  %9410 = vmatpush3.bf16.msra.mxu1 %v8826_v4  ;;  %v659_v13 = vld [vmem:[#allocation9 + $0x1b8] sm:$0xff]  ;;  %v10706_v14 = vld [vmem:[%s10645_s15] sm:$0xff] }
  0xc0   : > { %480 = vst [vmem:[#allocation2 + $0xa8] sm:$0x1] %v12071_v0  ;;  %481 = vst [vmem:[#allocation2 + $0xc0] sm:$0x1] %v12071_v0  ;;  %8831 = vmatprep.subr.bf16.mxu0 %v8830_v6  ;;  %9403 = vmatprep.subr.bf16.mxu1 %v8830_v6  ;;  %v10710_v15 = vld [vmem:[%s10645_s15 + $0x8] sm:$0xff]  ;;  %v10714_v16 = vld [vmem:[%s10645_s15 + $0x10] sm:$0xff]  ;;  %v8838_v18 = vpack.c.bf16 %v659_v13, %v658_v12 }
  0xc1   : > { %482 = vst [vmem:[#allocation2 + $0xd8] sm:$0x1] %v12071_v0  ;;  %483 = vst [vmem:[#allocation2 + $0xf0] sm:$0x1] %v12071_v0  ;;  %v10717_v17 = vld [vmem:[%s10645_s15 + $0x18] sm:$0xff]  ;;  %v10722_v19 = vld [vmem:[%s10645_s15 + $0x20] sm:$0xff] }
  0xc2   : > { %484 = vst [vmem:[#allocation2 + $0x108] sm:$0x1] %v12071_v0  ;;  %485 = vst [vmem:[#allocation2 + $0x120] sm:$0x1] %v12071_v0  ;;  %v10725_v20 = vld [vmem:[%s10645_s15 + $0x28] sm:$0xff]  ;;  %v660_v21 = vld [vmem:[#allocation9 + $0x1c0] sm:$0xff] }
  0xc3   : > { %486 = vst [vmem:[#allocation2 + $0x138] sm:$0x1] %v12071_v0  ;;  %487 = vst [vmem:[#allocation2 + $0x150] sm:$0x1] %v12071_v0  ;;  %8833 = vmatpush3.bf16.msra.mxu0 %v8830_v6  ;;  %9411 = vmatpush3.bf16.msra.mxu1 %v8830_v6  ;;  %v661_v22 = vld [vmem:[#allocation9 + $0x1c8] sm:$0xff]  ;;  %v10730_v23 = vld [vmem:[%s10645_s15 + $0x30] sm:$0xff] }
  0xc4   : > { %488 = vst [vmem:[#allocation2 + $0x168] sm:$0x1] %v12071_v0  ;;  %489 = vst [vmem:[#allocation2 + $0x180] sm:$0x1] %v12071_v0  ;;  %8835 = vmatprep.subr.bf16.mxu0 %v8834_v9  ;;  %9404 = vmatprep.subr.bf16.mxu1 %v8834_v9  ;;  %v10734_v24 = vld [vmem:[%s10645_s15 + $0x38] sm:$0xff]  ;;  %v10738_v25 = vld [vmem:[%s10645_s15 + $0x40] sm:$0xff]  ;;  %v8842_v28 = vpack.c.bf16 %v661_v22, %v660_v21 }
  0xc5   : > { %490 = vst [vmem:[#allocation2 + $0x198] sm:$0x1] %v12071_v0  ;;  %491 = vst [vmem:[#allocation2 + $0x1b0] sm:$0x1] %v12071_v0  ;;  %v10741_v26 = vld [vmem:[%s10645_s15 + $0x48] sm:$0xff]  ;;  %v10744_v27 = vld [vmem:[%s10645_s15 + $0x50] sm:$0xff] }
  0xc6   : > { %492 = vst [vmem:[#allocation2 + $0x1c8] sm:$0x1] %v12071_v0  ;;  %493 = vst [vmem:[#allocation2 + $0x11] sm:$0x1] %v12071_v0  ;;  %v662_v30 = vld [vmem:[#allocation9 + $0x1d0] sm:$0xff]  ;;  %v663_v31 = vld [vmem:[#allocation9 + $0x1d8] sm:$0xff] }
  0xc7   : > { %494 = vst [vmem:[#allocation2 + $0x29] sm:$0x1] %v12071_v0  ;;  %495 = vst [vmem:[#allocation2 + $0x41] sm:$0x1] %v12071_v0  ;;  %8837 = vmatpush3.bf16.msra.mxu0 %v8834_v9  ;;  %9412 = vmatpush3.bf16.msra.mxu1 %v8834_v9  ;;  %v10753_v32 = vld [vmem:[%s10645_s15 + $0x58] sm:$0xff]  ;;  %v10757_v33 = vld [vmem:[%s10645_s15 + $0x60] sm:$0xff]  ;;  %v8846_v34 = vpack.c.bf16 %v663_v31, %v662_v30 }
  0xc8   : > { %496 = vst [vmem:[#allocation2 + $0x59] sm:$0x1] %v12071_v0  ;;  %497 = vst [vmem:[#allocation2 + $0x71] sm:$0x1] %v12071_v0  ;;  %8839 = vmatprep.subr.bf16.mxu0 %v8838_v18  ;;  %9405 = vmatprep.subr.bf16.mxu1 %v8838_v18  ;;  %v664_v35 = vld [vmem:[#allocation9 + $0x1e0] sm:$0xff]  ;;  %v10761_v36 = vld [vmem:[%s10645_s15 + $0x68] sm:$0xff] }
  0xc9   : > { %498 = vst [vmem:[#allocation2 + $0x89] sm:$0x1] %v12071_v0  ;;  %499 = vst [vmem:[#allocation2 + $0xa1] sm:$0x1] %v12071_v0  ;;  %v665_v37 = vld [vmem:[#allocation9 + $0x1e8] sm:$0xff]  ;;  %v10765_v38 = vld [vmem:[%s10645_s15 + $0x70] sm:$0xff] }
  0xca   : > { %500 = vst [vmem:[#allocation2 + $0xb9] sm:$0x1] %v12071_v0  ;;  %501 = vst [vmem:[#allocation2 + $0xd1] sm:$0x1] %v12071_v0  ;;  %v10768_v39 = vld [vmem:[%s10645_s15 + $0x78] sm:$0xff]  ;;  %v8850_v40 = vpack.c.bf16 %v665_v37, %v664_v35  ;;  %v10773_v41 = vld [vmem:[%s10635_s26] sm:$0xff] }
  0xcb   : > { %502 = vst [vmem:[#allocation2 + $0xe9] sm:$0x1] %v12071_v0  ;;  %503 = vst [vmem:[#allocation2 + $0x101] sm:$0x1] %v12071_v0  ;;  %8841 = vmatpush3.bf16.msra.mxu0 %v8838_v18  ;;  %9413 = vmatpush3.bf16.msra.mxu1 %v8838_v18  ;;  %v10776_v42 = vld [vmem:[%s10635_s26 + $0x8] sm:$0xff]  ;;  %v666_v43 = vld [vmem:[#allocation9 + $0x1f0] sm:$0xff] }
  0xcc   : > { %504 = vst [vmem:[#allocation2 + $0x119] sm:$0x1] %v12071_v0  ;;  %505 = vst [vmem:[#allocation2 + $0x131] sm:$0x1] %v12071_v0  ;;  %8843 = vmatprep.subr.bf16.mxu0 %v8842_v28  ;;  %9406 = vmatprep.subr.bf16.mxu1 %v8842_v28  ;;  %v667_v44 = vld [vmem:[#allocation9 + $0x1f8] sm:$0xff]  ;;  %v635_v46 = vld [vmem:[#allocation9] sm:$0xff] }
  0xcd   : > { %506 = vst [vmem:[#allocation2 + $0x149] sm:$0x1] %v12071_v0  ;;  %507 = vst [vmem:[#allocation2 + $0x161] sm:$0x1] %v12071_v0  ;;  %v8854_v45 = vpack.c.bf16 %v667_v44, %v666_v43  ;;  %v636_v47 = vld [vmem:[#allocation9 + $0x8] sm:$0xff]  ;;  %v10781_v48 = vld [vmem:[%s10645_s15 + $0x80] sm:$0xff] }
  0xce   : > { %508 = vst [vmem:[#allocation2 + $0x179] sm:$0x1] %v12071_v0  ;;  %509 = vst [vmem:[#allocation2 + $0x191] sm:$0x1] %v12071_v0  ;;  %v10785_v49 = vld [vmem:[%s10645_s15 + $0x88] sm:$0xff]  ;;  %v10788_v50 = vld [vmem:[%s10645_s15 + $0x90] sm:$0xff]  ;;  %v8858_v53 = vpack.c.bf16 %v636_v47, %v635_v46 }
  0xcf   : > { %510 = vst [vmem:[#allocation2 + $0x1a9] sm:$0x1] %v12071_v0  ;;  %511 = vst [vmem:[#allocation2 + $0x1c1] sm:$0x1] %v12071_v0  ;;  %8845 = vmatpush3.bf16.msra.mxu0 %v8842_v28  ;;  %9414 = vmatpush3.bf16.msra.mxu1 %v8842_v28  ;;  %v10791_v51 = vld [vmem:[%s10645_s15 + $0x98] sm:$0xff]  ;;  %v10797_v52 = vld [vmem:[%s10645_s15 + $0xa0] sm:$0xff] }
  0xd0   : > { %512 = vst [vmem:[#allocation2 + $0x1d9] sm:$0x1] %v12071_v0  ;;  %519 = vst [vmem:[#allocation2 + $0x19] sm:$0xff] %v10698_v10  ;;  %8847 = vmatprep.subr.bf16.mxu0 %v8846_v34  ;;  %9407 = vmatprep.subr.bf16.mxu1 %v8846_v34  ;;  %v637_v54 = vld [vmem:[#allocation9 + $0x10] sm:$0xff]  ;;  %v10801_v55 = vld [vmem:[%s10645_s15 + $0xa8] sm:$0xff]  ;;  %s6246_s24 = sshll.u32 %s11891_s20, 4  ;;  %s11989_s24 = int_to_ptr.vmem [resolvable:$true] %s6246_s24 }
  0xd1   : > { %520 = vst [vmem:[#allocation2 + $0x21] sm:$0xff] %v10701_v11  ;;  %563 = vst [vmem:[#allocation2 + $0x31] sm:$0xff] %v10706_v14  ;;  %v638_v56 = vld [vmem:[#allocation9 + $0x18] sm:$0xff]  ;;  %v10805_v57 = vld [vmem:[%s10645_s15 + $0xb0] sm:$0xff]  ;;  %s12238_s19 = sld [smem:[#allocation47_spill]]  ;;  %s6230_s27 = scalar_lea.sflag [#allocation5], %s10631_s22 }
  0xd2   : > { %564 = vst [vmem:[#allocation2 + $0x39] sm:$0xff] %v10710_v15  ;;  %565 = vst [vmem:[#allocation2 + $0x49] sm:$0xff] %v10714_v16  ;;  %v10808_v58 = vld [vmem:[%s10645_s15 + $0xb8] sm:$0xff]  ;;  %v10815_v60 = vld [vmem:[%s10645_s15 + $0xc0] sm:$0xff]  ;;  %v8862_v4 = vpack.c.bf16 %v638_v56, %v637_v54  ;;  %s10210_s7 = scalar_lea.vmem %s11989_s24, 4096  ;;  %p12239_p4 = scmp.ne.s32.totalorder %s12146_s12, 0 }
  0xd3   : > { %566 = vst [vmem:[#allocation2 + $0x51] sm:$0xff] %v10717_v17  ;;  %567 = vst [vmem:[#allocation2 + $0x61] sm:$0xff] %v10722_v19  ;;  %8849 = vmatpush3.bf16.msra.mxu0 %v8846_v34  ;;  %9415 = vmatpush3.bf16.msra.mxu1 %v8846_v34  ;;  %v10818_v61 = vld [vmem:[%s10645_s15 + $0xc8] sm:$0xff]  ;;  %v639_v62 = vld [vmem:[#allocation9 + $0x20] sm:$0xff]  ;;  %p10211_p1 = scmp.ne.s32.totalorder %s11989_s24, %s10210_s7  ;;  %s10310_s23 = smov [#allocation12]  }
  0xd4   : > { %568 = vst [vmem:[#allocation2 + $0x69] sm:$0xff] %v10725_v20  ;;  %569 = vst [vmem:[#allocation2 + $0x79] sm:$0xff] %v10730_v23  ;;  %8851 = vmatprep.subr.bf16.mxu0 %v8850_v40  ;;  %9408 = vmatprep.subr.bf16.mxu1 %v8850_v40  ;;  %v10823_v63 = vld [vmem:[%s10645_s15 + $0xd0] sm:$0xff]  ;;  %v10826_v1 = vld [vmem:[%s10645_s15 + $0xd8] sm:$0xff]  ;;  %s10214_s28 = sshll.u32 %s10310_s23, 4  ;;  %s10215_s28 = int_to_ptr.vmem [resolvable:$false] %s10214_s28 }
  0xd5   : > { %570 = vst [vmem:[#allocation2 + $0x81] sm:$0xff] %v10734_v24  ;;  %571 = vst [vmem:[#allocation2 + $0x91] sm:$0xff] %v10738_v25  ;;  %v10829_v2 = vld [vmem:[%s10645_s15 + $0xe0] sm:$0xff]  ;;  %v640_v5 = vld [vmem:[#allocation9 + $0x28] sm:$0xff]  ;;  %p10212_p0 = pnand %p10211_p1, %p12239_p4  ;;  %s10216_s3 = scalar_lea.vmem %s10215_s28, 8192 }
  0xd6   : > { %572 = vst [vmem:[#allocation2 + $0x99] sm:$0xff] %v10741_v26  ;;  %573 = vst [vmem:[#allocation2 + $0xa9] sm:$0xff] %v10744_v27  ;;  %v10837_v6 = vld [vmem:[%s10645_s15 + $0xe8] sm:$0xff]  ;;  %v10843_v8 = vld [vmem:[%s10645_s15 + $0xf0] sm:$0xff]  ;;  %v8866_v21 = vpack.c.bf16 %v640_v5, %v639_v62  ;;  %p10217_p2 = scmp.lt.s32.totalorder %s11989_s24, %s10215_s28  ;;  %p10218_p13 = scmp.lt.s32.totalorder %s10216_s3, %s10210_s7 }
  0xd7   : > { %v10746_v29 = vld [vmem:[#allocation2 + $0x18] sm:$0xff]  ;;  %574 = vst [vmem:[#allocation2 + $0xb1] sm:$0xff] %v10753_v32  ;;  %575 = vst [vmem:[#allocation2 + $0xc1] sm:$0xff] %v10757_v33  ;;  %8853 = vmatpush3.bf16.msra.mxu0 %v8850_v40  ;;  %9416 = vmatpush3.bf16.msra.mxu1 %v8850_v40  ;;  %v641_v28 = vld [vmem:[#allocation9 + $0x30] sm:$0xff]  ;;  %s11987_s10 = scalar_lea.hbm %s12238_s19, %s6431_s16  ;;  %p10213_p7 = pneg %p10212_p0 }
  0xd8   : > { %7364 = vmatprep.mubr.f32.mxu0 %v10746_v29  ;;  %576 = vst [vmem:[#allocation2 + $0xc9] sm:$0xff] %v10761_v36  ;;  %12171 = vst [vmem:[#allocation24_spill] sm:$0xff] %v10765_v38  ;;  %8855 = vmatprep.subr.bf16.mxu0 %v8854_v45  ;;  %v10810_v59 = vld [vmem:[#allocation2 + $0x20] sm:$0xff]  ;;  %v10831_v3 = vld [vmem:[#allocation2 + $0x30] sm:$0xff]  ;;  %p10219_p6 = por %p10218_p13, %p10217_p2 }
  0xd9   : > { %12172 = vst [vmem:[#allocation25_spill] sm:$0xff] %v10768_v39  ;;  %577 = vst [vmem:[#allocation2 + $0xd9] sm:$0xff] %v10765_v38  ;;  %9409 = vmatprep.subr.bf16.mxu1 %v8854_v45  ;;  %v10846_v9 = vld [vmem:[%s10645_s15 + $0xf8] sm:$0xff]  ;;  %v10857_v18 = vld [vmem:[#allocation2 + $0x48] sm:$0xff] }
  0xda   : > { %578 = vst [vmem:[#allocation2 + $0xe1] sm:$0xff] %v10768_v39  ;;  %517 = vst [vmem:[#allocation2 + $0x1] sm:$0xff] %v10773_v41  ;;  %v10853_v12 = vld [vmem:[#allocation2 + $0x38] sm:$0xff]  ;;  %v10865_v31 = vld [vmem:[#allocation2 + $0x50] sm:$0xff]  ;;  %p10220_p11 = pnand %p10219_p6, %p10213_p7 }
  0xdb   : > { %518 = vst [vmem:[#allocation2 + $0x9] sm:$0xff] %v10776_v42  ;;  %12173 = vst [vmem:[#allocation26_spill] sm:$0xff] %v10781_v48  ;;  %8857 = vmatpush3.bf16.msra.mxu0 %v8854_v45  ;;  %9417 = vmatpush3.bf16.msra.mxu1 %v8854_v45  ;;  %v642_v30 = vld [vmem:[#allocation9 + $0x38] sm:$0xff]  ;;  %v10869_v35 = vld [vmem:[#allocation2 + $0x60] sm:$0xff] }
  0xdc   : > { %579 = vst [vmem:[#allocation2 + $0xf1] sm:$0xff] %v10781_v48  ;;  %12174 = vst [vmem:[#allocation27_spill] sm:$0xff] %v10785_v49  ;;  %8859 = vmatprep.subr.bf16.mxu0 %v8858_v53  ;;  %v8870_v37 = vpack.c.bf16 %v642_v30, %v641_v28  ;;  %v643_v43 = vld [vmem:[#allocation9 + $0x40] sm:$0xff]  ;;  %v644_v44 = vld [vmem:[#allocation9 + $0x48] sm:$0xff] }
  0xdd   : > { %12175 = vst [vmem:[#allocation28_spill] sm:$0xff] %v10788_v50  ;;  %12176 = vst [vmem:[#allocation29_spill] sm:$0xff] %v10791_v51  ;;  %v10877_v45 = vld [vmem:[#allocation2 + $0x68] sm:$0xff]  ;;  %v10881_v47 = vld [vmem:[#allocation2 + $0x78] sm:$0xff] }
  0xde   : > { %580 = vst [vmem:[#allocation2 + $0xf9] sm:$0xff] %v10785_v49  ;;  %581 = vst [vmem:[#allocation2 + $0x109] sm:$0xff] %v10788_v50  ;;  %7365 = vmatmul.mubr.f32.vlgmr.msra.gmra.mrb[0].mxu0 %v10810_v59  ;;  %v645_v56 = vld [vmem:[#allocation9 + $0x50] sm:$0xff]  ;;  %v646_v62 = vld [vmem:[#allocation9 + $0x58] sm:$0xff] }
  0xdf   : > { %582 = vst [vmem:[#allocation2 + $0x111] sm:$0xff] %v10791_v51  ;;  %12177 = vst [vmem:[#allocation30_spill] sm:$0xff] %v10797_v52  ;;  %8861 = vmatpush3.bf16.msra.mxu0 %v8858_v53  ;;  %7367 = vmatprep.mubr.f32.mxu0 %v10831_v3  ;;  %v8874_v53 = vpack.c.bf16 %v644_v44, %v643_v43  ;;  %v8878_v28 = vpack.c.bf16 %v646_v62, %v645_v56  ;;  %v647_v43 = vld [vmem:[#allocation9 + $0x60] sm:$0xff]  ;;  %v648_v44 = vld [vmem:[#allocation9 + $0x68] sm:$0xff] }
  0xe0   : > { %583 = vst [vmem:[#allocation2 + $0x121] sm:$0xff] %v10797_v52  ;;  %12178 = vst [vmem:[#allocation31_spill] sm:$0xff] %v10801_v55  ;;  %8863 = vmatprep.subr.bf16.mxu0 %v8862_v4  ;;  %v8882_v56 = vpack.c.bf16 %v648_v44, %v647_v43  ;;  %v10944_v50 = vld [vmem:[%s10651_s9] sm:$0xff]  ;;  %v1164_v48 = vld [vmem:[#allocation9 + $0x328] sm:$0xff] }
  0xe1   : > { %584 = vst [vmem:[#allocation2 + $0x129] sm:$0xff] %v10801_v55  ;;  %12179 = vst [vmem:[#allocation32_spill] sm:$0xff] %v10805_v57  ;;  %v595_v55 = vld [vmem:[#allocation2] sm:$0xff]  ;;  %v10957_v38 = vld [vmem:[%s10651_s9 + $0x18] sm:$0xff] }
  0xe2   : > { %12180 = vst [vmem:[#allocation33_spill] sm:$0xff] %v10808_v58  ;;  %585 = vst [vmem:[#allocation2 + $0x139] sm:$0xff] %v10805_v57  ;;  %7368 = vmatmul.mubr.f32.gmra.mrb[2].mxu0 %v10853_v12  ;;  %v10937_v57 = vld [vmem:[#allocation2 + $0xe0] sm:$0xff]  ;;  %v596_v52 = vld [vmem:[#allocation2 + $0x8] sm:$0xff] }
  0xe3   : > { %586 = vst [vmem:[#allocation2 + $0x141] sm:$0xff] %v10808_v58  ;;  %12181 = vst [vmem:[#allocation34_spill] sm:$0xff] %v10815_v60  ;;  %v10839_v7 = vld [vmem:[#allocation2 + $0xf0] sm:$0xff]  ;;  %8865 = vmatpush3.bf16.msra.mxu0 %v8862_v4  ;;  %7370 = vmatprep.mubr.f32.mxu0 %v10857_v18  ;;  %v10889_v4 = vld [vmem:[#allocation2 + $0x80] sm:$0xff] }
  0xe4   : > { %12182 = vst [vmem:[#allocation35_spill] sm:$0xff] %v10818_v61  ;;  %587 = vst [vmem:[#allocation2 + $0x151] sm:$0xff] %v10815_v60  ;;  %7391 = vmatprep.mubr.f32.mxu1 %v10839_v7  ;;  %8867 = vmatprep.subr.bf16.mxu0 %v8866_v21  ;;  %v10925_v60 = vld [vmem:[#allocation2 + $0xc8] sm:$0xff]  ;;  %v10929_v58 = vld [vmem:[#allocation2 + $0xd8] sm:$0xff] }
  0xe5   : > { %588 = vst [vmem:[#allocation2 + $0x159] sm:$0xff] %v10818_v61  ;;  %12183 = vst [vmem:[#allocation36_spill] sm:$0xff] %v10823_v63  ;;  %v10855_v13 = vld [vmem:[#allocation2 + $0xf8] sm:$0xff]  ;;  %v10859_v22 = vld [vmem:[#allocation2 + $0x108] sm:$0xff] }
  0xe6   : > { %12184 = vst [vmem:[#allocation37_spill] sm:$0xff] %v10826_v1  ;;  %12185 = vst [vmem:[#allocation38_spill] sm:$0xff] %v10829_v2  ;;  %7392 = vmatmul.mubr.f32.vlgmr.msra.gmra.mrb[0].mxu1 %v10855_v13  ;;  %v10867_v34 = vld [vmem:[#allocation2 + $0x110] sm:$0xff]  ;;  %7371 = vmatmul.mubr.f32.gmra.mrb[4].mxu0 %v10865_v31  ;;  %v1160_v61 = vld [vmem:[#allocation9 + $0x308] sm:$0xff] }
  0xe7   : > { %589 = vst [vmem:[#allocation2 + $0x169] sm:$0xff] %v10823_v63  ;;  %590 = vst [vmem:[#allocation2 + $0x171] sm:$0xff] %v10826_v1  ;;  %7394 = vmatprep.mubr.f32.mxu1 %v10859_v22  ;;  %v10871_v40 = vld [vmem:[#allocation2 + $0x120] sm:$0xff]  ;;  %8869 = vmatpush3.bf16.msra.mxu0 %v8866_v21  ;;  %v10893_v21 = vld [vmem:[#allocation2 + $0x90] sm:$0xff] }
  0xe8   : > { %591 = vst [vmem:[#allocation2 + $0x181] sm:$0xff] %v10829_v2  ;;  %12186 = vst [vmem:[#allocation39_spill] sm:$0xff] %v10837_v6  ;;  %7373 = vmatprep.mubr.f32.mxu0 %v10869_v35  ;;  %v10879_v46 = vld [vmem:[#allocation2 + $0x128] sm:$0xff]  ;;  %8871 = vmatprep.subr.bf16.mxu0 %v8870_v37  ;;  %v10917_v1 = vld [vmem:[#allocation2 + $0xc0] sm:$0xff] }
  0xe9   : > { %592 = vst [vmem:[#allocation2 + $0x189] sm:$0xff] %v10837_v6  ;;  %12187 = vst [vmem:[#allocation40_spill] sm:$0xff] %v10843_v8  ;;  %v10883_v54 = vld [vmem:[#allocation2 + $0x138] sm:$0xff]  ;;  %v1159_v63 = vld [vmem:[#allocation9 + $0x300] sm:$0xff] }
  0xea   : > { %12188 = vst [vmem:[#allocation41_spill] sm:$0xff] %v10846_v9  ;;  %593 = vst [vmem:[#allocation2 + $0x199] sm:$0xff] %v10843_v8  ;;  %7395 = vmatmul.mubr.f32.gmra.mrb[2].mxu1 %v10867_v34  ;;  %7374 = vmatmul.mubr.f32.gmra.mrb[6].mxu0 %v10877_v45  ;;  %v10891_v5 = vld [vmem:[#allocation2 + $0x140] sm:$0xff]  ;;  %v649_v8 = vld [vmem:[#allocation9 + $0x70] sm:$0xff] }
  0xeb   : > { %594 = vst [vmem:[#allocation2 + $0x1a1] sm:$0xff] %v10846_v9  ;;  %7397 = vmatprep.mubr.f32.mxu1 %v10871_v40  ;;  %7376 = vmatprep.mubr.f32.mxu0 %v10881_v47  ;;  %v10895_v30 = vld [vmem:[#allocation2 + $0x150] sm:$0xff]  ;;  %v10905_v9 = vld [vmem:[#allocation2 + $0xa8] sm:$0xff]  ;;  %v650_v6 = vld [vmem:[#allocation9 + $0x78] sm:$0xff] }
  0xec   : > { %8873 = vmatpush3.bf16.msra.mxu0 %v8870_v37  ;;  %v10901_v37 = vld [vmem:[#allocation2 + $0x98] sm:$0xff]  ;;  %v8886_v43 = vpack.c.bf16 %v650_v6, %v649_v8  ;;  %v8890_v6 = vpack.c.bf16 %v1160_v61, %v1159_v63  ;;  %v1161_v61 = vld [vmem:[#allocation9 + $0x310] sm:$0xff]  ;;  %v1163_v49 = vld [vmem:[#allocation9 + $0x320] sm:$0xff]  ;;  %526 = vst [vmem:[#allocation2 + $0x1b1] sm:$0xff] %v10944_v50 }
  0xed   : > { %8875 = vmatprep.subr.bf16.mxu0 %v8874_v53  ;;  %v10903_v0 = vld [vmem:[#allocation2 + $0x158] sm:$0xff]  ;;  %v8898_v39 = vpack.c.bf16 %v1164_v48, %v1163_v49  ;;  %12191 = vst [vmem:[#allocation44_spill] sm:$0xff] %v10957_v38  ;;  %529 = vst [vmem:[#allocation2 + $0x1d1] sm:$0xff] %v10957_v38  ;;  %v1167_v48 = vld [vmem:[#allocation9 + $0x340] sm:$0xff] }
  0xee   : > { %7398 = vmatmul.mubr.f32.gmra.mrb[4].mxu1 %v10879_v46  ;;  %7377 = vmatmul.mubr.f32.gmra.mrb[8].mxu0 %v10889_v4  ;;  %v10907_v62 = vld [vmem:[#allocation2 + $0x168] sm:$0xff]  ;;  %v10915_v2 = vld [vmem:[#allocation2 + $0x170] sm:$0xff]  ;;  %v1162_v63 = vld [vmem:[#allocation9 + $0x318] sm:$0xff] }
  0xef   : > { %7400 = vmatprep.mubr.f32.mxu1 %v10883_v54  ;;  %7379 = vmatprep.mubr.f32.mxu0 %v10893_v21  ;;  %v10919_v44 = vld [vmem:[#allocation2 + $0x180] sm:$0xff]  ;;  %v8894_v51 = vpack.c.bf16 %v1162_v63, %v1161_v61  ;;  %v1165_v61 = vld [vmem:[#allocation9 + $0x330] sm:$0xff]  ;;  %v1166_v63 = vld [vmem:[#allocation9 + $0x338] sm:$0xff] }
  0xf0   : > { %8877 = vmatpush3.bf16.msra.mxu0 %v8874_v53  ;;  %v10913_v53 = vld [vmem:[#allocation2 + $0xb0] sm:$0xff]  ;;  %v1168_v49 = vld [vmem:[#allocation9 + $0x348] sm:$0xff]  ;;  %v1170_v38 = vld [vmem:[#allocation9 + $0x358] sm:$0xff] }
  0xf1   : > { %8879 = vmatprep.subr.bf16.mxu0 %v8878_v28  ;;  %v10931_v8 = vld [vmem:[#allocation2 + $0x198] sm:$0xff] }
  0xf2   : > { %7401 = vmatmul.mubr.f32.gmra.mrb[6].mxu1 %v10891_v5  ;;  %7380 = vmatmul.mubr.f32.gmra.mrb[10].mxu0 %v10901_v37 }
  0xf3   : > { %7403 = vmatprep.mubr.f32.mxu1 %v10895_v30  ;;  %7382 = vmatprep.mubr.f32.mxu0 %v10905_v9 }
  0xf4   : > { %8881 = vmatpush3.bf16.msra.mxu0 %v8878_v28  ;;  %v10927_v28 = vld [vmem:[#allocation2 + $0x188] sm:$0xff] }
  0xf5   : > { %8883 = vmatprep.subr.bf16.mxu0 %v8882_v56 }
  0xf6   : > { %7404 = vmatmul.mubr.f32.gmra.mrb[8].mxu1 %v10903_v0  ;;  %7383 = vmatmul.mubr.f32.gmra.mrb[12].mxu0 %v10913_v53 }
  0xf7   : > { %7406 = vmatprep.mubr.f32.mxu1 %v10907_v62  ;;  %7385 = vmatprep.mubr.f32.mxu0 %v10917_v1 }
  0xf8   : > { %8885 = vmatpush3.bf16.msra.mxu0 %v8882_v56  ;;  %v10939_v56 = vld [vmem:[#allocation2 + $0x1a0] sm:$0xff] }
  0xf9   : > { %8887 = vmatprep.subr.bf16.mxu0 %v8886_v43 }
  0xfa   : > { %7407 = vmatmul.mubr.f32.gmra.mrb[10].mxu1 %v10915_v2  ;;  %7386 = vmatmul.mubr.f32.gmra.mrb[14].mxu0 %v10925_v60 }
  0xfb   : > { %7409 = vmatprep.mubr.f32.mxu1 %v10919_v44  ;;  %7388 = vmatprep.mubr.f32.mxu0 %v10929_v58 }
  0xfc   : > { %8889 = vmatpush3.bf16.msra.mxu0 %v8886_v43  ;;  %v10948_v43 = vld [vmem:[%s10651_s9 + $0x8] sm:$0xff] }
  0xfd   : > { %8891 = vmatprep.subr.bf16.mxu0 %v8890_v6  ;;  %12189 = vst [vmem:[#allocation42_spill] sm:$0xff] %v10948_v43  ;;  %527 = vst [vmem:[#allocation2 + $0x1b9] sm:$0xff] %v10948_v43  ;;  %v1173_v43 = vld [vmem:[#allocation9 + $0x370] sm:$0xff] }
  0xfe   : > { %7410 = vmatmul.mubr.f32.gmra.mrb[12].mxu1 %v10927_v28  ;;  %7389 = vmatmul.mubr.f32.gmra.mrb[16].mxu0 %v10937_v57 }
  0xff   : > { %7412 = vmatprep.mubr.f32.mxu1 %v10931_v8  ;;  %7450 = vmatprep.mubr.f32.mxu0 %v595_v55  ;;  %v10953_v55 = vld [vmem:[%s10651_s9 + $0x10] sm:$0xff] }
 0x100   : > { %12190 = vst [vmem:[#allocation43_spill] sm:$0xff] %v10953_v55  ;;  %528 = vst [vmem:[#allocation2 + $0x1c9] sm:$0xff] %v10953_v55  ;;  %v1172_v55 = vld [vmem:[#allocation9 + $0x368] sm:$0xff] }
 0x102   : > { %7413 = vmatmul.mubr.f32.gmra.mrb[14].mxu1 %v10939_v56  ;;  %7451 = vmatmul.mubr.f32.vlgmr.msra.gmra.mrb[18].mxu0 %v596_v52  ;;  %v8902_v52 = vpack.c.bf16 %v1166_v63, %v1165_v61  ;;  %v1171_v63 = vld [vmem:[#allocation9 + $0x360] sm:$0xff] }
 0x103   : > { %8893 = vmatpush3.bf16.msra.mxu0 %v8890_v6  ;;  %7453 = vmatprep.mubr.f32.mxu0 %v10746_v29  ;;  %v10962_v29 = vld [vmem:[#allocation2 + $0x1b0] sm:$0xff] }
 0x104   : > { %8895 = vmatprep.subr.bf16.mxu0 %v8894_v51  ;;  %v10964_v6 = vld [vmem:[#allocation2 + $0x1b8] sm:$0xff]  ;;  %7415 = vmatprep.mubr.f32.mxu1 %v10962_v29 }
 0x106   : > { %7454 = vmatmul.mubr.f32.gmra.mrb[2].mxu0 %v10810_v59  ;;  %7416 = vmatmul.mubr.f32.gmra.mrb[16].mxu1 %v10964_v6  ;;  %v8906_v59 = vpack.c.bf16 %v1168_v49, %v1167_v48  ;;  %v1174_v48 = vld [vmem:[#allocation9 + $0x378] sm:$0xff]  ;;  %v1497_v49 = vld [vmem:[#allocation9 + $0x80] sm:$0xff] }
 0x107   : > { %7456 = vmatprep.mubr.f32.mxu0 %v10831_v3  ;;  %8897 = vmatpush3.bf16.msra.mxu0 %v8894_v51  ;;  %v1169_v51 = vld [vmem:[#allocation9 + $0x350] sm:$0xff] }
 0x108   : > { %8899 = vmatprep.subr.bf16.mxu0 %v8898_v39  ;;  %v8910_v61 = vpack.c.bf16 %v1170_v38, %v1169_v51  ;;  %v1498_v38 = vld [vmem:[#allocation9 + $0x88] sm:$0xff] }
 0x10a   : > { %7457 = vmatmul.mubr.f32.gmra.mrb[4].mxu0 %v10853_v12 }
 0x10b   : > { %7459 = vmatprep.mubr.f32.mxu0 %v10857_v18  ;;  %8901 = vmatpush3.bf16.msra.mxu0 %v8898_v39  ;;  %v8914_v39 = vpack.c.bf16 %v1172_v55, %v1171_v63  ;;  %v1500_v55 = vld [vmem:[#allocation9 + $0x98] sm:$0xff]  ;;  %v1502_v63 = vld [vmem:[#allocation9 + $0xa8] sm:$0xff] }
 0x10c   : > { %8903 = vmatprep.subr.bf16.mxu0 %v8902_v52 }
 0x10e   : > { %7460 = vmatmul.mubr.f32.gmra.mrb[6].mxu0 %v10865_v31 }
 0x10f   : > { %7462 = vmatprep.mubr.f32.mxu0 %v10869_v35  ;;  %8905 = vmatpush3.bf16.msra.mxu0 %v8902_v52  ;;  %v8918_v52 = vpack.c.bf16 %v1174_v48, %v1173_v43  ;;  %v1499_v43 = vld [vmem:[#allocation9 + $0x90] sm:$0xff] }
 0x110   : > { %8907 = vmatprep.subr.bf16.mxu0 %v8906_v59  ;;  %v8926_v51 = vpack.c.bf16 %v1500_v55, %v1499_v43  ;;  %v1503_v48 = vld [vmem:[#allocation9 + $0xb0] sm:$0xff]  ;;  %v1510_v43 = vld [vmem:[#allocation9 + $0xe8] sm:$0xff]  ;;  %v1512_v55 = vld [vmem:[#allocation9 + $0xf8] sm:$0xff] }
 0x112   : > { %7463 = vmatmul.mubr.f32.gmra.mrb[8].mxu0 %v10877_v45 }
 0x113   : > { %7465 = vmatprep.mubr.f32.mxu0 %v10881_v47  ;;  %8909 = vmatpush3.bf16.msra.mxu0 %v8906_v59  ;;  %v8922_v59 = vpack.c.bf16 %v1498_v38, %v1497_v49  ;;  %v1506_v38 = vld [vmem:[#allocation9 + $0xc8] sm:$0xff] }
 0x114   : > { %8911 = vmatprep.subr.bf16.mxu0 %v8910_v61 }
 0x116   : > { %7466 = vmatmul.mubr.f32.gmra.mrb[10].mxu0 %v10889_v4 }
 0x117   : > { %7468 = vmatprep.mubr.f32.mxu0 %v10893_v21  ;;  %8913 = vmatpush3.bf16.msra.mxu0 %v8910_v61  ;;  %v1501_v61 = vld [vmem:[#allocation9 + $0xa0] sm:$0xff] }
 0x118   : > { %8915 = vmatprep.subr.bf16.mxu0 %v8914_v39 }
 0x11a   : > { %7469 = vmatmul.mubr.f32.gmra.mrb[12].mxu0 %v10901_v37 }
 0x11b   : > { %7471 = vmatprep.mubr.f32.mxu0 %v10905_v9  ;;  %8917 = vmatpush3.bf16.msra.mxu0 %v8914_v39  ;;  %v8930_v39 = vpack.c.bf16 %v1502_v63, %v1501_v61 }
 0x11c   : > { %8919 = vmatprep.subr.bf16.mxu0 %v8918_v52 }
 0x11e   : > { %7472 = vmatmul.mubr.f32.gmra.mrb[14].mxu0 %v10913_v53 }
 0x11f   : > { %7474 = vmatprep.mubr.f32.mxu0 %v10917_v1  ;;  %8921 = vmatpush3.bf16.msra.mxu0 %v8918_v52  ;;  %v1504_v52 = vld [vmem:[#allocation9 + $0xb8] sm:$0xff] }
 0x120   : > { %8923 = vmatprep.subr.bf16.mxu0 %v8922_v59  ;;  %v8934_v49 = vpack.c.bf16 %v1504_v52, %v1503_v48  ;;  %v12193_v48 = vld [vmem:[#allocation25_spill] sm:$0xff]  ;;  %v12194_v52 = vld [vmem:[#allocation26_spill] sm:$0xff] }
 0x122   : > { %7475 = vmatmul.mubr.f32.gmra.mrb[16].mxu0 %v10925_v60 }
 0x123   : > { %7477 = vmatprep.mubr.f32.mxu0 %v10929_v58 }
 0x126   : > { %7478 = vmatmul.mubr.f32.gmra.mrb[20].mxu0 %v10937_v57 }
 0x127   : > { %7480 = vmatprep.mubr.f32.mxu0 %v10839_v7 }
 0x12a   : > { %7481 = vmatmul.mubr.f32.gmra.mrb[22].mxu0 %v10855_v13 }
 0x12b   : > { %7483 = vmatprep.mubr.f32.mxu0 %v10859_v22 }
 0x12e   : > { %7484 = vmatmul.mubr.f32.gmra.mrb[24].mxu0 %v10867_v34 }
 0x12f   : > { %7486 = vmatprep.mubr.f32.mxu0 %v10871_v40 }
 0x132   : > { %7487 = vmatmul.mubr.f32.gmra.mrb[26].mxu0 %v10879_v46 }
 0x133   : > { %7489 = vmatprep.mubr.f32.mxu0 %v10883_v54 }
 0x136   : > { %7490 = vmatmul.mubr.f32.gmra.mrb[28].mxu0 %v10891_v5 }
 0x137   : > { %7492 = vmatprep.mubr.f32.mxu0 %v10895_v30 }
 0x13a   : > { %7493 = vmatmul.mubr.f32.gmra.mrb[30].mxu0 %v10903_v0 }
 0x13b   : > { %7495 = vmatprep.mubr.f32.mxu0 %v10907_v62 }
 0x13e   : > { %7496 = vmatmul.mubr.f32.gmra.mrb[32].mxu0 %v10915_v2 }
 0x13f   : > { %7498 = vmatprep.mubr.f32.mxu0 %v10919_v44 }
 0x142   : > { %7499 = vmatmul.mubr.f32.gmra.mrb[34].mxu0 %v10927_v28 }
 0x143   : > { %7501 = vmatprep.mubr.f32.mxu0 %v10931_v8 }
 0x146   : > { %7502 = vmatmul.mubr.f32.gmra.mrb[36].mxu0 %v10939_v56 }
 0x147   : > { %7536 = vmatprep.mubr.f32.mxu0 %v10831_v3  ;;  %v1505_v3 = vld [vmem:[#allocation9 + $0xc0] sm:$0xff] }
 0x14a   : > { %7537 = vmatmul.mubr.f32.vlgmr.msra.gmra.mrb[38].mxu0 %v10853_v12  ;;  %v8938_v12 = vpack.c.bf16 %v1506_v38, %v1505_v3  ;;  %v12196_v3 = vld [vmem:[#allocation28_spill] sm:$0xff]  ;;  %v12197_v38 = vld [vmem:[#allocation29_spill] sm:$0xff] }
 0x14b   : > { %8925 = vmatpush3.bf16.msra.mxu0 %v8922_v59  ;;  %7539 = vmatprep.mubr.f32.mxu0 %v10857_v18  ;;  %v1507_v18 = vld [vmem:[#allocation9 + $0xd0] sm:$0xff]  ;;  %v1508_v59 = vld [vmem:[#allocation9 + $0xd8] sm:$0xff] }
 0x14c   : > { %8927 = vmatprep.subr.bf16.mxu0 %v8926_v51 }
 0x14e   : > { %7540 = vmatmul.mubr.f32.gmra.mrb[2].mxu0 %v10865_v31  ;;  %v8942_v31 = vpack.c.bf16 %v1508_v59, %v1507_v18  ;;  %v12199_v18 = vld [vmem:[#allocation31_spill] sm:$0xff]  ;;  %v12200_v59 = vld [vmem:[#allocation32_spill] sm:$0xff] }
 0x14f   : > { %7542 = vmatprep.mubr.f32.mxu0 %v10869_v35  ;;  %8929 = vmatpush3.bf16.msra.mxu0 %v8926_v51  ;;  %v1509_v35 = vld [vmem:[#allocation9 + $0xe0] sm:$0xff]  ;;  %v1796_v51 = vld [vmem:[#allocation9 + $0x208] sm:$0xff] }
 0x150   : > { %8931 = vmatprep.subr.bf16.mxu0 %v8930_v39 }
 0x152   : > { %7543 = vmatmul.mubr.f32.gmra.mrb[4].mxu0 %v10877_v45  ;;  %v8946_v45 = vpack.c.bf16 %v1510_v43, %v1509_v35  ;;  %v12202_v35 = vld [vmem:[#allocation34_spill] sm:$0xff]  ;;  %v12203_v43 = vld [vmem:[#allocation35_spill] sm:$0xff] }
 0x153   : > { %7545 = vmatprep.mubr.f32.mxu0 %v10881_v47  ;;  %8933 = vmatpush3.bf16.msra.mxu0 %v8930_v39  ;;  %v1511_v47 = vld [vmem:[#allocation9 + $0xf0] sm:$0xff]  ;;  %v12192_v39 = vld [vmem:[#allocation24_spill] sm:$0xff] }
 0x154   : > { %8935 = vmatprep.subr.bf16.mxu0 %v8934_v49 }
 0x156   : > { %7546 = vmatmul.mubr.f32.gmra.mrb[6].mxu0 %v10889_v4  ;;  %v8950_v4 = vpack.c.bf16 %v1512_v55, %v1511_v47  ;;  %v12205_v47 = vld [vmem:[#allocation37_spill] sm:$0xff]  ;;  %v12206_v55 = vld [vmem:[#allocation38_spill] sm:$0xff] }
 0x157   : > { %7548 = vmatprep.mubr.f32.mxu0 %v10893_v21  ;;  %8937 = vmatpush3.bf16.msra.mxu0 %v8934_v49  ;;  %v1795_v21 = vld [vmem:[#allocation9 + $0x200] sm:$0xff]  ;;  %v12195_v49 = vld [vmem:[#allocation27_spill] sm:$0xff] }
 0x158   : > { %8939 = vmatprep.subr.bf16.mxu0 %v8938_v12 }
 0x15a   : > { %7549 = vmatmul.mubr.f32.gmra.mrb[8].mxu0 %v10901_v37  ;;  %v1807_v37 = vld [vmem:[#allocation9 + $0x260] sm:$0xff] }
 0x15b   : > { %7551 = vmatprep.mubr.f32.mxu0 %v10905_v9  ;;  %8941 = vmatpush3.bf16.msra.mxu0 %v8938_v12  ;;  %v8954_v9 = vpack.c.bf16 %v1796_v51, %v1795_v21  ;;  %v12198_v12 = vld [vmem:[#allocation30_spill] sm:$0xff]  ;;  %v12208_v21 = vld [vmem:[#allocation40_spill] sm:$0xff] }
 0x15c   : > { %8943 = vmatprep.subr.bf16.mxu0 %v8942_v31 }
 0x15e   : > { %7552 = vmatmul.mubr.f32.gmra.mrb[10].mxu0 %v10913_v53 }
 0x15f   : > { %7554 = vmatprep.mubr.f32.mxu0 %v10917_v1  ;;  %8945 = vmatpush3.bf16.msra.mxu0 %v8942_v31  ;;  %v12201_v31 = vld [vmem:[#allocation33_spill] sm:$0xff] }
 0x160   : > { %8947 = vmatprep.subr.bf16.mxu0 %v8946_v45 }
 0x162   : > { %7555 = vmatmul.mubr.f32.gmra.mrb[12].mxu0 %v10925_v60  ;;  %v1798_v60 = vld [vmem:[#allocation9 + $0x218] sm:$0xff] }
 0x163   : > { %7557 = vmatprep.mubr.f32.mxu0 %v10929_v58  ;;  %8949 = vmatpush3.bf16.msra.mxu0 %v8946_v45  ;;  %v634_v58 = vld [vmem:[#allocation2 + $0x1d0] sm:$0xff]  ;;  %v12204_v45 = vld [vmem:[#allocation36_spill] sm:$0xff] }
 0x164   : > { %8951 = vmatprep.subr.bf16.mxu0 %v8950_v4 }
 0x166   : > { %7558 = vmatmul.mubr.f32.gmra.mrb[14].mxu0 %v10937_v57  ;;  %v633_v57 = vld [vmem:[#allocation2 + $0x1c8] sm:$0xff] }
 0x167   : > { %7560 = vmatprep.mubr.f32.mxu0 %v10839_v7  ;;  %8953 = vmatpush3.bf16.msra.mxu0 %v8950_v4  ;;  %v1800_v7 = vld [vmem:[#allocation9 + $0x228] sm:$0xff]  ;;  %v12207_v4 = vld [vmem:[#allocation39_spill] sm:$0xff] }
 0x168   : > { %8955 = vmatprep.subr.bf16.mxu0 %v8954_v9 }
 0x16a   : > { %7561 = vmatmul.mubr.f32.gmra.mrb[16].mxu0 %v10855_v13 }
 0x16b   : > { %7563 = vmatprep.mubr.f32.mxu0 %v10859_v22  ;;  %v1801_v22 = vld [vmem:[#allocation9 + $0x230] sm:$0xff] }
 0x16e   : > { %7564 = vmatmul.mubr.f32.gmra.mrb[20].mxu0 %v10867_v34  ;;  %v1802_v34 = vld [vmem:[#allocation9 + $0x238] sm:$0xff] }
 0x16f   : > { %7566 = vmatprep.mubr.f32.mxu0 %v10871_v40  ;;  %v8966_v40 = vpack.c.bf16 %v1802_v34, %v1801_v22  ;;  %v2100_v22 = vld [vmem:[#allocation9 + $0x3b8] sm:$0xff] }
 0x172   : > { %7567 = vmatmul.mubr.f32.gmra.mrb[22].mxu0 %v10879_v46  ;;  %v1804_v46 = vld [vmem:[#allocation9 + $0x248] sm:$0xff] }
 0x173   : > { %7569 = vmatprep.mubr.f32.mxu0 %v10883_v54  ;;  %v1805_v54 = vld [vmem:[#allocation9 + $0x250] sm:$0xff] }
 0x176   : > { %7570 = vmatmul.mubr.f32.gmra.mrb[24].mxu0 %v10891_v5  ;;  %v1806_v5 = vld [vmem:[#allocation9 + $0x258] sm:$0xff] }
 0x177   : > { %7572 = vmatprep.mubr.f32.mxu0 %v10895_v30  ;;  %v8974_v30 = vpack.c.bf16 %v1806_v5, %v1805_v54  ;;  %v2107_v54 = vld [vmem:[#allocation9 + $0x3f0] sm:$0xff] }
 0x17a   : > { %7573 = vmatmul.mubr.f32.gmra.mrb[26].mxu0 %v10903_v0  ;;  %v1797_v0 = vld [vmem:[#allocation9 + $0x210] sm:$0xff] }
 0x17b   : > { %7575 = vmatprep.mubr.f32.mxu0 %v10907_v62  ;;  %v8958_v1 = vpack.c.bf16 %v1798_v60, %v1797_v0  ;;  %v1808_v62 = vld [vmem:[#allocation9 + $0x268] sm:$0xff] }
 0x17c   : > { %v8978_v53 = vpack.c.bf16 %v1808_v62, %v1807_v37  ;;  %v12209_v0 = vld [vmem:[#allocation41_spill] sm:$0xff]  ;;  %v12211_v62 = vld [vmem:[#allocation42_spill] sm:$0xff] }
 0x17d   : > { %v2432_v37 = vld [vmem:[#allocation9 + $0x108] sm:$0xff] }
 0x17e   : > { %7576 = vmatmul.mubr.f32.gmra.mrb[28].mxu0 %v10915_v2  ;;  %v1799_v2 = vld [vmem:[#allocation9 + $0x220] sm:$0xff] }
 0x17f   : > { %7578 = vmatprep.mubr.f32.mxu0 %v10919_v44  ;;  %v8962_v13 = vpack.c.bf16 %v1800_v7, %v1799_v2  ;;  %v1809_v44 = vld [vmem:[#allocation9 + $0x270] sm:$0xff]  ;;  %v2098_v2 = vld [vmem:[#allocation9 + $0x3a8] sm:$0xff] }
 0x182   : > { %7579 = vmatmul.mubr.f32.gmra.mrb[30].mxu0 %v10927_v28  ;;  %v1810_v28 = vld [vmem:[#allocation9 + $0x278] sm:$0xff] }
 0x183   : > { %7581 = vmatprep.mubr.f32.mxu0 %v10931_v8  ;;  %v8982_v8 = vpack.c.bf16 %v1810_v28, %v1809_v44  ;;  %v2435_v28 = vld [vmem:[#allocation9 + $0x120] sm:$0xff] }
 0x186   : > { %7582 = vmatmul.mubr.f32.gmra.mrb[32].mxu0 %v10939_v56  ;;  %v2093_v56 = vld [vmem:[#allocation9 + $0x380] sm:$0xff] }
 0x187   : > { %7584 = vmatprep.mubr.f32.mxu0 %v10962_v29  ;;  %v2094_v29 = vld [vmem:[#allocation9 + $0x388] sm:$0xff] }
 0x18a   : > { %7585 = vmatmul.mubr.f32.gmra.mrb[34].mxu0 %v10964_v6  ;;  %v8986_v6 = vpack.c.bf16 %v2094_v29, %v2093_v56  ;;  %v10031_v56 = vld [vmem:[#allocation2 + $0x39] sm:$0xff]  ;;  %v10032_v29 = vld [vmem:[#allocation2 + $0x49] sm:$0xff] }
 0x18b   : > { %7587 = vmatprep.mubr.f32.mxu0 %v633_v57  ;;  %v2096_v57 = vld [vmem:[#allocation9 + $0x398] sm:$0xff] }
 0x18e   : > { %7588 = vmatmul.mubr.f32.gmra.mrb[40].mxu0 %v634_v58 }
 0x18f   : > { %7622 = vmatprep.mubr.f32.mxu0 %v10773_v41  ;;  %v1803_v41 = vld [vmem:[#allocation9 + $0x240] sm:$0xff] }
 0x192   : > { %7623 = vmatmul.mubr.f32.vlgmr.msra.gmra.mrb[42].mxu0 %v10776_v42  ;;  %v8970_v42 = vpack.c.bf16 %v1804_v46, %v1803_v41  ;;  %v2104_v41 = vld [vmem:[#allocation9 + $0x3d8] sm:$0xff]  ;;  %v11077_v46 = vld [vmem:[#allocation2 + $0x2] sm:$0xff] }
 0x193   : > { %8957 = vmatpush3.bf16.msra.mxu0 %v8954_v9  ;;  %7625 = vmatprep.mubr.f32.mxu0 %v10698_v10  ;;  %v2095_v9 = vld [vmem:[#allocation9 + $0x390] sm:$0xff] }
 0x194   : > { %8959 = vmatprep.subr.bf16.mxu0 %v8958_v1  ;;  %v8990_v60 = vpack.c.bf16 %v2096_v57, %v2095_v9  ;;  %v10038_v9 = vld [vmem:[#allocation2 + $0x91] sm:$0xff] }
 0x196   : > { %7626 = vmatmul.mubr.f32.gmra.mrb[2].mxu0 %v10701_v11 }
 0x197   : > { %7628 = vmatprep.mubr.f32.mxu0 %v10706_v14  ;;  %8961 = vmatpush3.bf16.msra.mxu0 %v8958_v1  ;;  %v2097_v1 = vld [vmem:[#allocation9 + $0x3a0] sm:$0xff] }
 0x198   : > { %8963 = vmatprep.subr.bf16.mxu0 %v8962_v13  ;;  %v8994_v7 = vpack.c.bf16 %v2098_v2, %v2097_v1  ;;  %v10039_v1 = vld [vmem:[#allocation2 + $0x99] sm:$0xff]  ;;  %v10040_v2 = vld [vmem:[#allocation2 + $0xa9] sm:$0xff] }
 0x19a   : > { %7629 = vmatmul.mubr.f32.gmra.mrb[4].mxu0 %v10710_v15 }
 0x19b   : > { %7631 = vmatprep.mubr.f32.mxu0 %v10714_v16  ;;  %8965 = vmatpush3.bf16.msra.mxu0 %v8962_v13  ;;  %v2099_v13 = vld [vmem:[#allocation9 + $0x3b0] sm:$0xff] }
 0x19c   : > { %8967 = vmatprep.subr.bf16.mxu0 %v8966_v40  ;;  %v8998_v34 = vpack.c.bf16 %v2100_v22, %v2099_v13  ;;  %v2445_v13 = vld [vmem:[#allocation9 + $0x170] sm:$0xff]  ;;  %v2446_v22 = vld [vmem:[#allocation9 + $0x178] sm:$0xff] }
 0x19e   : > { %7632 = vmatmul.mubr.f32.gmra.mrb[6].mxu0 %v10717_v17 }
 0x19f   : > { %7634 = vmatprep.mubr.f32.mxu0 %v10722_v19  ;;  %8969 = vmatpush3.bf16.msra.mxu0 %v8966_v40  ;;  %v2102_v40 = vld [vmem:[#allocation9 + $0x3c8] sm:$0xff] }
 0x1a0   : > { %8971 = vmatprep.subr.bf16.mxu0 %v8970_v42 }
 0x1a2   : > { %7635 = vmatmul.mubr.f32.gmra.mrb[8].mxu0 %v10725_v20 }
 0x1a3   : > { %7637 = vmatprep.mubr.f32.mxu0 %v10730_v23  ;;  %8973 = vmatpush3.bf16.msra.mxu0 %v8970_v42  ;;  %v2106_v42 = vld [vmem:[#allocation9 + $0x3e8] sm:$0xff] }
 0x1a4   : > { %8975 = vmatprep.subr.bf16.mxu0 %v8974_v30 }
 0x1a6   : > { %7638 = vmatmul.mubr.f32.gmra.mrb[10].mxu0 %v10734_v24 }
 0x1a7   : > { %7640 = vmatprep.mubr.f32.mxu0 %v10738_v25  ;;  %8977 = vmatpush3.bf16.msra.mxu0 %v8974_v30  ;;  %v2431_v30 = vld [vmem:[#allocation9 + $0x100] sm:$0xff] }
 0x1a8   : > { %8979 = vmatprep.subr.bf16.mxu0 %v8978_v53 }
 0x1aa   : > { %7641 = vmatmul.mubr.f32.gmra.mrb[12].mxu0 %v10741_v26 }
 0x1ab   : > { %7643 = vmatprep.mubr.f32.mxu0 %v10744_v27  ;;  %8981 = vmatpush3.bf16.msra.mxu0 %v8978_v53  ;;  %v10030_v53 = vld [vmem:[#allocation2 + $0x31] sm:$0xff] }
 0x1ac   : > { %8983 = vmatprep.subr.bf16.mxu0 %v8982_v8 }
 0x1ae   : > { %7644 = vmatmul.mubr.f32.gmra.mrb[14].mxu0 %v10753_v32 }
 0x1af   : > { %7646 = vmatprep.mubr.f32.mxu0 %v10757_v33  ;;  %8985 = vmatpush3.bf16.msra.mxu0 %v8982_v8  ;;  %v2436_v8 = vld [vmem:[#allocation9 + $0x128] sm:$0xff] }
 0x1b0   : > { %8987 = vmatprep.subr.bf16.mxu0 %v8986_v6 }
 0x1b1   : > { %v7366_v61 = vpop.f32.mrb[0].mxu0 }
 0x1b2   : > { %v734_v63 = vpop.f32.mrb[1].mxu0  ;;  %7647 = vmatmul.mubr.f32.gmra.mrb[16].mxu0 %v10761_v36  ;;  %v2437_v61 = vld [vmem:[#allocation9 + $0x130] sm:$0xff] }
 0x1b3   : > { %7649 = vmatprep.mubr.f32.mxu0 %v12192_v39  ;;  %v2438_v63 = vld [vmem:[#allocation9 + $0x138] sm:$0xff] }
 0x1b6   : > { %7650 = vmatmul.mubr.f32.gmra.mrb[20].mxu0 %v12193_v48 }
 0x1b7   : > { %7652 = vmatprep.mubr.f32.mxu0 %v12194_v52 }
 0x1ba   : > { %7653 = vmatmul.mubr.f32.gmra.mrb[22].mxu0 %v12195_v49 }
 0x1bb   : > { %7655 = vmatprep.mubr.f32.mxu0 %v12196_v3 }
 0x1be   : > { %7656 = vmatmul.mubr.f32.gmra.mrb[24].mxu0 %v12197_v38 }
 0x1bf   : > { %7658 = vmatprep.mubr.f32.mxu0 %v12198_v12 }
 0x1c2   : > { %7659 = vmatmul.mubr.f32.gmra.mrb[26].mxu0 %v12199_v18 }
 0x1c3   : > { %7661 = vmatprep.mubr.f32.mxu0 %v12200_v59 }
 0x1c6   : > { %7662 = vmatmul.mubr.f32.gmra.mrb[28].mxu0 %v12201_v31 }
 0x1c7   : > { %7664 = vmatprep.mubr.f32.mxu0 %v12202_v35 }
 0x1ca   : > { %7665 = vmatmul.mubr.f32.gmra.mrb[30].mxu0 %v12203_v43 }
 0x1cb   : > { %7667 = vmatprep.mubr.f32.mxu0 %v12204_v45 }
 0x1ce   : > { %7668 = vmatmul.mubr.f32.gmra.mrb[32].mxu0 %v12205_v47 }
 0x1cf   : > { %7670 = vmatprep.mubr.f32.mxu0 %v12206_v55 }
 0x1d2   : > { %7671 = vmatmul.mubr.f32.gmra.mrb[34].mxu0 %v12207_v4 }
 0x1d3   : > { %7673 = vmatprep.mubr.f32.mxu0 %v12208_v21 }
 0x1d5   : > { %v7452_v51 = vpop.f32.mrb[18].mxu0 }
 0x1d6   : > { %v979_v58 = vpop.f32.mrb[19].mxu0  ;;  %7674 = vmatmul.mubr.f32.gmra.mrb[44].mxu0 %v12209_v0  ;;  %v10037_v51 = vld [vmem:[#allocation2 + $0x81] sm:$0xff] }
 0x1d7   : > { %7708 = vmatprep.mubr.f32.mxu0 %v10698_v10  ;;  %v2101_v10 = vld [vmem:[#allocation9 + $0x3c0] sm:$0xff] }
 0x1d8   : > { %v2443_v58 = vld [vmem:[#allocation9 + $0x160] sm:$0xff] }
 0x1da   : > { %7709 = vmatmul.mubr.f32.vlgmr.msra.gmra.mrb[46].mxu0 %v10701_v11  ;;  %v9002_v11 = vpack.c.bf16 %v2102_v40, %v2101_v10  ;;  %v10042_v10 = vld [vmem:[#allocation2 + $0xc1] sm:$0xff]  ;;  %v9046_v40 = vpack.c.bf16 %v2446_v22, %v2445_v13  ;;  %v11168_v22 = vld [vmem:[#allocation2 + $0xb2] sm:$0xff] }
 0x1db   : > { %8989 = vmatpush3.bf16.msra.mxu0 %v8986_v6  ;;  %7711 = vmatprep.mubr.f32.mxu0 %v10706_v14  ;;  %v2103_v14 = vld [vmem:[#allocation9 + $0x3d0] sm:$0xff]  ;;  %v9026_v6 = vpack.c.bf16 %v2436_v8, %v2435_v28  ;;  %v3028_v13 = vld [vmem:[#allocation9 + $0x408] sm:$0xff] }
 0x1dc   : > { %8991 = vmatprep.subr.bf16.mxu0 %v8990_v60  ;;  %v2735_v8 = vld [vmem:[#allocation9 + $0x2b0] sm:$0xff] }
 0x1de   : > { %7712 = vmatmul.mubr.f32.gmra.mrb[2].mxu0 %v10710_v15  ;;  %v12210_v15 = vmov 0.0  }
 0x1df   : > { %7714 = vmatprep.mubr.f32.mxu0 %v10714_v16  ;;  %8993 = vmatpush3.bf16.msra.mxu0 %v8990_v60  ;;  %3549 = vst [vmem:[#allocation2 + $0x1] sm:$0xff] %v12210_v15  ;;  %v11081_v16 = vld [vmem:[#allocation2 + $0xa] sm:$0xff] }
 0x1e0   : > { %8995 = vmatprep.subr.bf16.mxu0 %v8994_v7  ;;  %3550 = vst [vmem:[#allocation2 + $0x9] sm:$0xff] %v12210_v15  ;;  %v2444_v60 = vld [vmem:[#allocation9 + $0x168] sm:$0xff] }
 0x1e2   : > { %7715 = vmatmul.mubr.f32.gmra.mrb[4].mxu0 %v10717_v17  ;;  %v9006_v17 = vpack.c.bf16 %v2104_v41, %v2103_v14  ;;  %v2730_v14 = vld [vmem:[#allocation9 + $0x288] sm:$0xff] }
 0x1e3   : > { %7717 = vmatprep.mubr.f32.mxu0 %v10722_v19  ;;  %8997 = vmatpush3.bf16.msra.mxu0 %v8994_v7  ;;  %v2105_v19 = vld [vmem:[#allocation9 + $0x3e0] sm:$0xff]  ;;  %v9042_v7 = vpack.c.bf16 %v2444_v60, %v2443_v58  ;;  %v10043_v41 = vld [vmem:[#allocation2 + $0xc9] sm:$0xff]  ;;  %v2744_v58 = vld [vmem:[#allocation9 + $0x2f8] sm:$0xff] }
 0x1e4   : > { %8999 = vmatprep.subr.bf16.mxu0 %v8998_v34  ;;  %v11162_v60 = vld [vmem:[#allocation2 + $0x9a] sm:$0xff] }
 0x1e6   : > { %7718 = vmatmul.mubr.f32.gmra.mrb[6].mxu0 %v10725_v20  ;;  %v9010_v20 = vpack.c.bf16 %v2106_v42, %v2105_v19  ;;  %v10045_v19 = vld [vmem:[#allocation2 + $0xe1] sm:$0xff]  ;;  %v10046_v42 = vld [vmem:[#allocation2 + $0xf1] sm:$0xff] }
 0x1e7   : > { %7720 = vmatprep.mubr.f32.mxu0 %v10730_v23  ;;  %9001 = vmatpush3.bf16.msra.mxu0 %v8998_v34  ;;  %v2108_v23 = vld [vmem:[#allocation9 + $0x3f8] sm:$0xff] }
 0x1e8   : > { %9003 = vmatprep.subr.bf16.mxu0 %v9002_v11  ;;  %v9014_v5 = vpack.c.bf16 %v2108_v23, %v2107_v54  ;;  %v10041_v34 = vld [vmem:[#allocation2 + $0xb1] sm:$0xff]  ;;  %v10048_v54 = vld [vmem:[#allocation2 + $0x109] sm:$0xff] }
 0x1e9   : > { %v10049_v23 = vld [vmem:[#allocation2 + $0x111] sm:$0xff] }
 0x1ea   : > { %7721 = vmatmul.mubr.f32.gmra.mrb[8].mxu0 %v10734_v24  ;;  %v9018_v24 = vpack.c.bf16 %v2432_v37, %v2431_v30  ;;  %v10051_v30 = vld [vmem:[#allocation2 + $0x129] sm:$0xff]  ;;  %v10052_v37 = vld [vmem:[#allocation2 + $0x139] sm:$0xff] }
 0x1eb   : > { %7723 = vmatprep.mubr.f32.mxu0 %v10738_v25  ;;  %9005 = vmatpush3.bf16.msra.mxu0 %v9002_v11  ;;  %v2729_v11 = vld [vmem:[#allocation9 + $0x280] sm:$0xff] }
 0x1ec   : > { %9007 = vmatprep.subr.bf16.mxu0 %v9006_v17 }
 0x1ee   : > { %7724 = vmatmul.mubr.f32.gmra.mrb[10].mxu0 %v10741_v26 }
 0x1ef   : > { %7726 = vmatprep.mubr.f32.mxu0 %v10744_v27  ;;  %9009 = vmatpush3.bf16.msra.mxu0 %v9006_v17  ;;  %v9050_v17 = vpack.c.bf16 %v2730_v14, %v2729_v11  ;;  %v11176_v11 = vld [vmem:[#allocation2 + $0xda] sm:$0xff]  ;;  %v11180_v14 = vld [vmem:[#allocation2 + $0xe2] sm:$0xff] }
 0x1f0   : > { %9011 = vmatprep.subr.bf16.mxu0 %v9010_v20 }
 0x1f2   : > { %7727 = vmatmul.mubr.f32.gmra.mrb[12].mxu0 %v10753_v32  ;;  %v2433_v32 = vld [vmem:[#allocation9 + $0x110] sm:$0xff] }
 0x1f3   : > { %7729 = vmatprep.mubr.f32.mxu0 %v10757_v33  ;;  %9013 = vmatpush3.bf16.msra.mxu0 %v9010_v20  ;;  %v2434_v33 = vld [vmem:[#allocation9 + $0x118] sm:$0xff] }
 0x1f4   : > { %9015 = vmatprep.subr.bf16.mxu0 %v9014_v5  ;;  %v9022_v44 = vpack.c.bf16 %v2434_v33, %v2433_v32  ;;  %v10047_v20 = vld [vmem:[#allocation2 + $0xf9] sm:$0xff] }
 0x1f5   : > { %v12212_v33 = vld [vmem:[#allocation43_spill] sm:$0xff] }
 0x1f6   : > { %7730 = vmatmul.mubr.f32.gmra.mrb[14].mxu0 %v10761_v36 }
 0x1f7   : > { %7732 = vmatprep.mubr.f32.mxu0 %v12192_v39  ;;  %9017 = vmatpush3.bf16.msra.mxu0 %v9014_v5  ;;  %v10033_v39 = vld [vmem:[#allocation2 + $0x51] sm:$0xff]  ;;  %v10050_v5 = vld [vmem:[#allocation2 + $0x121] sm:$0xff] }
 0x1f8   : > { %9019 = vmatprep.subr.bf16.mxu0 %v9018_v24 }
 0x1fa   : > { %7733 = vmatmul.mubr.f32.gmra.mrb[16].mxu0 %v12193_v48  ;;  %v10034_v48 = vld [vmem:[#allocation2 + $0x61] sm:$0xff] }
 0x1fb   : > { %7735 = vmatprep.mubr.f32.mxu0 %v12194_v52  ;;  %v9030_v52 = vpack.c.bf16 %v2438_v63, %v2437_v61  ;;  %v2738_v61 = vld [vmem:[#allocation9 + $0x2c8] sm:$0xff]  ;;  %v11144_v63 = vld [vmem:[#allocation2 + $0x52] sm:$0xff] }
 0x1fe   : > { %7736 = vmatmul.mubr.f32.gmra.mrb[20].mxu0 %v12195_v49  ;;  %v2439_v49 = vld [vmem:[#allocation9 + $0x140] sm:$0xff] }
 0x1ff   : > { %7738 = vmatprep.mubr.f32.mxu0 %v12196_v3  ;;  %v2440_v3 = vld [vmem:[#allocation9 + $0x148] sm:$0xff] }
 0x202   : > { %7739 = vmatmul.mubr.f32.gmra.mrb[22].mxu0 %v12197_v38  ;;  %v10035_v38 = vld [vmem:[#allocation2 + $0x69] sm:$0xff] }
 0x203   : > { %7741 = vmatprep.mubr.f32.mxu0 %v12198_v12  ;;  %v10036_v12 = vld [vmem:[#allocation2 + $0x79] sm:$0xff] }
 0x206   : > { %7742 = vmatmul.mubr.f32.gmra.mrb[24].mxu0 %v12199_v18  ;;  %v9034_v18 = vpack.c.bf16 %v2440_v3, %v2439_v49  ;;  %v2740_v49 = vld [vmem:[#allocation9 + $0x2d8] sm:$0xff]  ;;  %v11150_v3 = vld [vmem:[#allocation2 + $0x6a] sm:$0xff] }
 0x207   : > { %7744 = vmatprep.mubr.f32.mxu0 %v12200_v59  ;;  %v11111_v59 = vld [vmem:[#allocation2 + $0x19a] sm:$0xff] }
 0x208   : > { %3583 = vst [vmem:[#allocation2 + $0x199] sm:$0xff] %v12210_v15 }
 0x20a   : > { %7745 = vmatmul.mubr.f32.gmra.mrb[26].mxu0 %v12201_v31  ;;  %v2441_v31 = vld [vmem:[#allocation9 + $0x150] sm:$0xff] }
 0x20b   : > { %7747 = vmatprep.mubr.f32.mxu0 %v12202_v35  ;;  %v2442_v35 = vld [vmem:[#allocation9 + $0x158] sm:$0xff] }
 0x20c   : > { %v9038_v57 = vpack.c.bf16 %v2442_v35, %v2441_v31  ;;  %v2742_v31 = vld [vmem:[#allocation9 + $0x2e8] sm:$0xff] }
 0x20d   : > { %v11156_v35 = vld [vmem:[#allocation2 + $0x82] sm:$0xff] }
 0x20e   : > { %7748 = vmatmul.mubr.f32.gmra.mrb[28].mxu0 %v12203_v43  ;;  %v11114_v43 = vld [vmem:[#allocation2 + $0x1a2] sm:$0xff] }
 0x20f   : > { %7750 = vmatprep.mubr.f32.mxu0 %v12204_v45  ;;  %3584 = vst [vmem:[#allocation2 + $0x1a1] sm:$0xff] %v12210_v15  ;;  %v10044_v15 = vld [vmem:[#allocation2 + $0xd9] sm:$0xff] }
 0x212   : > { %7751 = vmatmul.mubr.f32.gmra.mrb[30].mxu0 %v12205_v47 }
 0x213   : > { %7753 = vmatprep.mubr.f32.mxu0 %v12206_v55 }
 0x216   : > { %7754 = vmatmul.mubr.f32.gmra.mrb[32].mxu0 %v12207_v4 }
 0x217   : > { %7756 = vmatprep.mubr.f32.mxu0 %v12208_v21 }
 0x219   : > { %v7503_v25 = vpop.f32.mrb[36].mxu0 }
 0x21a   : > { %v1149_v26 = vpop.f32.mrb[37].mxu0  ;;  %7757 = vmatmul.mubr.f32.gmra.mrb[34].mxu0 %v12209_v0  ;;  %v10054_v25 = vld [vmem:[#allocation2 + $0x151] sm:$0xff] }
 0x21b   : > { %7759 = vmatprep.mubr.f32.mxu0 %v10944_v50  ;;  %v10055_v26 = vld [vmem:[#allocation2 + $0x159] sm:$0xff] }
 0x21d   : > { %v7538_v27 = vpop.f32.mrb[38].mxu0 }
 0x21e   : > { %v1241_v36 = vpop.f32.mrb[39].mxu0  ;;  %7760 = vmatmul.mubr.f32.gmra.mrb[48].mxu0 %v12211_v62 }
 0x21f   : > { %7794 = vmatprep.mubr.f32.mxu0 %v10030_v53  ;;  %v2732_v53 = vld [vmem:[#allocation9 + $0x298] sm:$0xff] }
 0x222   : > { %7795 = vmatmul.mubr.f32.vlgmr.msra.gmra.mrb[50].mxu0 %v10031_v56  ;;  %v2736_v56 = vld [vmem:[#allocation9 + $0x2b8] sm:$0xff] }
 0x223   : > { %9021 = vmatpush3.bf16.msra.mxu0 %v9018_v24  ;;  %7797 = vmatprep.mubr.f32.mxu0 %v10032_v29  ;;  %v10053_v24 = vld [vmem:[#allocation2 + $0x141] sm:$0xff]  ;;  %v11140_v29 = vld [vmem:[#allocation2 + $0x4a] sm:$0xff] }
 0x224   : > { %9023 = vmatprep.subr.bf16.mxu0 %v9022_v44 }
 0x226   : > { %7798 = vmatmul.mubr.f32.gmra.mrb[2].mxu0 %v10033_v39  ;;  %v11146_v39 = vld [vmem:[#allocation2 + $0x62] sm:$0xff] }
 0x227   : > { %7800 = vmatprep.mubr.f32.mxu0 %v10034_v48  ;;  %9025 = vmatpush3.bf16.msra.mxu0 %v9022_v44  ;;  %v12213_v44 = vld [vmem:[#allocation44_spill] sm:$0xff] }
 0x228   : > { %9027 = vmatprep.subr.bf16.mxu0 %v9026_v6 }
 0x22a   : > { %7801 = vmatmul.mubr.f32.gmra.mrb[4].mxu0 %v10035_v38  ;;  %v11152_v38 = vld [vmem:[#allocation2 + $0x7a] sm:$0xff] }
 0x22b   : > { %7803 = vmatprep.mubr.f32.mxu0 %v10036_v12  ;;  %9029 = vmatpush3.bf16.msra.mxu0 %v9026_v6  ;;  %v2737_v6 = vld [vmem:[#allocation9 + $0x2c0] sm:$0xff] }
 0x22c   : > { %9031 = vmatprep.subr.bf16.mxu0 %v9030_v52  ;;  %v9066_v48 = vpack.c.bf16 %v2738_v61, %v2737_v6  ;;  %v3038_v6 = vld [vmem:[#allocation9 + $0x458] sm:$0xff] }
 0x22e   : > { %7804 = vmatmul.mubr.f32.gmra.mrb[6].mxu0 %v10037_v51  ;;  %v11158_v51 = vld [vmem:[#allocation2 + $0x92] sm:$0xff] }
 0x22f   : > { %7806 = vmatprep.mubr.f32.mxu0 %v10038_v9  ;;  %9033 = vmatpush3.bf16.msra.mxu0 %v9030_v52  ;;  %v2739_v52 = vld [vmem:[#allocation9 + $0x2d0] sm:$0xff] }
 0x230   : > { %9035 = vmatprep.subr.bf16.mxu0 %v9034_v18  ;;  %v9070_v12 = vpack.c.bf16 %v2740_v49, %v2739_v52  ;;  %v3040_v52 = vld [vmem:[#allocation9 + $0x468] sm:$0xff] }
 0x232   : > { %7807 = vmatmul.mubr.f32.gmra.mrb[8].mxu0 %v10039_v1  ;;  %v11164_v1 = vld [vmem:[#allocation2 + $0xaa] sm:$0xff] }
 0x233   : > { %7809 = vmatprep.mubr.f32.mxu0 %v10040_v2  ;;  %9037 = vmatpush3.bf16.msra.mxu0 %v9034_v18  ;;  %v2741_v18 = vld [vmem:[#allocation9 + $0x2e0] sm:$0xff] }
 0x234   : > { %9039 = vmatprep.subr.bf16.mxu0 %v9038_v57  ;;  %v9074_v9 = vpack.c.bf16 %v2742_v31, %v2741_v18  ;;  %v3042_v18 = vld [vmem:[#allocation9 + $0x478] sm:$0xff] }
 0x236   : > { %7810 = vmatmul.mubr.f32.gmra.mrb[10].mxu0 %v10041_v34  ;;  %v11170_v34 = vld [vmem:[#allocation2 + $0xc2] sm:$0xff] }
 0x237   : > { %7812 = vmatprep.mubr.f32.mxu0 %v10042_v10  ;;  %9041 = vmatpush3.bf16.msra.mxu0 %v9038_v57  ;;  %v2743_v57 = vld [vmem:[#allocation9 + $0x2f0] sm:$0xff] }
 0x238   : > { %9043 = vmatprep.subr.bf16.mxu0 %v9042_v7  ;;  %v9078_v2 = vpack.c.bf16 %v2744_v58, %v2743_v57 }
 0x23a   : > { %7813 = vmatmul.mubr.f32.gmra.mrb[12].mxu0 %v10043_v41  ;;  %v11182_v41 = vld [vmem:[#allocation2 + $0xf2] sm:$0xff] }
 0x23b   : > { %7815 = vmatprep.mubr.f32.mxu0 %v10044_v15  ;;  %9045 = vmatpush3.bf16.msra.mxu0 %v9042_v7  ;;  %v3027_v7 = vld [vmem:[#allocation9 + $0x400] sm:$0xff] }
 0x23c   : > { %9047 = vmatprep.subr.bf16.mxu0 %v9046_v40  ;;  %v9082_v10 = vpack.c.bf16 %v3028_v13, %v3027_v7  ;;  %v11186_v15 = vld [vmem:[#allocation2 + $0xfa] sm:$0xff] }
 0x23e   : > { %7816 = vmatmul.mubr.f32.gmra.mrb[14].mxu0 %v10045_v19  ;;  %v11192_v19 = vld [vmem:[#allocation2 + $0x112] sm:$0xff] }
 0x23f   : > { %7818 = vmatprep.mubr.f32.mxu0 %v10046_v42  ;;  %9049 = vmatpush3.bf16.msra.mxu0 %v9046_v40  ;;  %v11174_v40 = vld [vmem:[#allocation2 + $0xca] sm:$0xff]  ;;  %v11194_v42 = vld [vmem:[#allocation2 + $0x122] sm:$0xff] }
 0x240   : > { %9051 = vmatprep.subr.bf16.mxu0 %v9050_v17 }
 0x242   : > { %7819 = vmatmul.mubr.f32.gmra.mrb[16].mxu0 %v10047_v20  ;;  %v11198_v20 = vld [vmem:[#allocation2 + $0x12a] sm:$0xff] }
 0x243   : > { %7821 = vmatprep.mubr.f32.mxu0 %v10048_v54  ;;  %v11200_v54 = vld [vmem:[#allocation2 + $0x13a] sm:$0xff] }
 0x246   : > { %7822 = vmatmul.mubr.f32.gmra.mrb[20].mxu0 %v10049_v23  ;;  %v11204_v23 = vld [vmem:[#allocation2 + $0x142] sm:$0xff] }
 0x247   : > { %7824 = vmatprep.mubr.f32.mxu0 %v10050_v5  ;;  %v11206_v5 = vld [vmem:[#allocation2 + $0x152] sm:$0xff] }
 0x24a   : > { %7825 = vmatmul.mubr.f32.gmra.mrb[22].mxu0 %v10051_v30  ;;  %v11210_v30 = vld [vmem:[#allocation2 + $0x15a] sm:$0xff] }
 0x24b   : > { %7827 = vmatprep.mubr.f32.mxu0 %v10052_v37  ;;  %v11212_v37 = vld [vmem:[#allocation2 + $0x16a] sm:$0xff] }
 0x24e   : > { %7828 = vmatmul.mubr.f32.gmra.mrb[24].mxu0 %v10053_v24  ;;  %v11216_v24 = vld [vmem:[#allocation2 + $0x172] sm:$0xff] }
 0x24f   : > { %7830 = vmatprep.mubr.f32.mxu0 %v10054_v25  ;;  %v11218_v25 = vld [vmem:[#allocation2 + $0x182] sm:$0xff] }
 0x252   : > { %7831 = vmatmul.mubr.f32.gmra.mrb[26].mxu0 %v10055_v26  ;;  %v11222_v26 = vld [vmem:[#allocation2 + $0x18a] sm:$0xff] }
 0x253   : > { %7833 = vmatprep.mubr.f32.mxu0 %v12204_v45  ;;  %v2731_v45 = vld [vmem:[#allocation9 + $0x290] sm:$0xff] }
 0x256   : > { %7834 = vmatmul.mubr.f32.gmra.mrb[28].mxu0 %v12205_v47 }
 0x257   : > { %7836 = vmatprep.mubr.f32.mxu0 %v12206_v55  ;;  %v11128_v55 = vld [vmem:[#allocation2 + $0x1a] sm:$0xff] }
 0x25a   : > { %7837 = vmatmul.mubr.f32.gmra.mrb[30].mxu0 %v12207_v4  ;;  %v9054_v4 = vpack.c.bf16 %v2732_v53, %v2731_v45  ;;  %v3030_v45 = vld [vmem:[#allocation9 + $0x418] sm:$0xff] }
 0x25b   : > { %7839 = vmatprep.mubr.f32.mxu0 %v12208_v21  ;;  %v2733_v21 = vld [vmem:[#allocation9 + $0x2a0] sm:$0xff] }
 0x25e   : > { %7840 = vmatmul.mubr.f32.gmra.mrb[32].mxu0 %v12209_v0  ;;  %v2734_v0 = vld [vmem:[#allocation9 + $0x2a8] sm:$0xff] }
 0x25f   : > { %7842 = vmatprep.mubr.f32.mxu0 %v10944_v50  ;;  %v11132_v50 = vld [vmem:[#allocation2 + $0x22] sm:$0xff]  ;;  %v9058_v28 = vpack.c.bf16 %v2734_v0, %v2733_v21  ;;  %v3033_v0 = vld [vmem:[#allocation9 + $0x430] sm:$0xff] }
 0x261   : > { %v7589_v27 = vpop.f32.mrb[40].mxu0 }
 0x262   : > { %v1411_v32 = vpop.f32.mrb[41].mxu0  ;;  %7843 = vmatmul.mubr.f32.gmra.mrb[34].mxu0 %v12211_v62  ;;  %v11134_v62 = vld [vmem:[#allocation2 + $0x32] sm:$0xff] }
 0x263   : > { %7845 = vmatprep.mubr.f32.mxu0 %v12212_v33 }
 0x265   : > { %v7624_v36 = vpop.f32.mrb[42].mxu0 }
 0x266   : > { %v1579_v47 = vpop.f32.mrb[43].mxu0  ;;  %7846 = vmatmul.mubr.f32.gmra.mrb[52].mxu0 %v12213_v44  ;;  %v3029_v36 = vld [vmem:[#allocation9 + $0x410] sm:$0xff]  ;;  %v3031_v44 = vld [vmem:[#allocation9 + $0x420] sm:$0xff] }
 0x267   : > { %7880 = vmatprep.mubr.f32.mxu0 %v11077_v46  ;;  %v11138_v46 = vld [vmem:[#allocation2 + $0x3a] sm:$0xff]  ;;  %v9086_v47 = vpack.c.bf16 %v3030_v45, %v3029_v36 }
 0x268   : > { %v3642_v36 = vld [vmem:[#allocation11 + $0x1a0] sm:$0xff] }
 0x26a   : > { %7881 = vmatmul.mubr.f32.vlgmr.msra.gmra.mrb[54].mxu0 %v11081_v16  ;;  %v9062_v16 = vpack.c.bf16 %v2736_v56, %v2735_v8  ;;  %v3036_v56 = vld [vmem:[#allocation9 + $0x448] sm:$0xff] }
 0x26b   : > { %9053 = vmatpush3.bf16.msra.mxu0 %v9050_v17  ;;  %7883 = vmatprep.mubr.f32.mxu0 %v11128_v55  ;;  %v11188_v17 = vld [vmem:[#allocation2 + $0x10a] sm:$0xff] }
 0x26c   : > { %9055 = vmatprep.subr.bf16.mxu0 %v9054_v4 }
 0x26e   : > { %7884 = vmatmul.mubr.f32.gmra.mrb[2].mxu0 %v11132_v50 }
 0x26f   : > { %7886 = vmatprep.mubr.f32.mxu0 %v11134_v62  ;;  %9057 = vmatpush3.bf16.msra.mxu0 %v9054_v4  ;;  %v3032_v4 = vld [vmem:[#allocation9 + $0x428] sm:$0xff] }
 0x270   : > { %9059 = vmatprep.subr.bf16.mxu0 %v9058_v28  ;;  %v9090_v21 = vpack.c.bf16 %v3032_v4, %v3031_v44 }
 0x272   : > { %7887 = vmatmul.mubr.f32.gmra.mrb[4].mxu0 %v11138_v46 }
 0x273   : > { %7889 = vmatprep.mubr.f32.mxu0 %v11140_v29  ;;  %9061 = vmatpush3.bf16.msra.mxu0 %v9058_v28  ;;  %v3034_v28 = vld [vmem:[#allocation9 + $0x438] sm:$0xff] }
 0x274   : > { %9063 = vmatprep.subr.bf16.mxu0 %v9062_v16  ;;  %v9094_v8 = vpack.c.bf16 %v3034_v28, %v3033_v0 }
 0x276   : > { %7890 = vmatmul.mubr.f32.gmra.mrb[6].mxu0 %v11144_v63 }
 0x277   : > { %7892 = vmatprep.mubr.f32.mxu0 %v11146_v39  ;;  %9065 = vmatpush3.bf16.msra.mxu0 %v9062_v16  ;;  %v3037_v16 = vld [vmem:[#allocation9 + $0x450] sm:$0xff] }
 0x278   : > { %9067 = vmatprep.subr.bf16.mxu0 %v9066_v48  ;;  %v9102_v61 = vpack.c.bf16 %v3038_v6, %v3037_v16 }
 0x27a   : > { %7893 = vmatmul.mubr.f32.gmra.mrb[8].mxu0 %v11150_v3 }
 0x27b   : > { %7895 = vmatprep.mubr.f32.mxu0 %v11152_v38  ;;  %9069 = vmatpush3.bf16.msra.mxu0 %v9066_v48  ;;  %v3039_v48 = vld [vmem:[#allocation9 + $0x460] sm:$0xff] }
 0x27c   : > { %9071 = vmatprep.subr.bf16.mxu0 %v9070_v12  ;;  %v9106_v49 = vpack.c.bf16 %v3040_v52, %v3039_v48 }
 0x27e   : > { %7896 = vmatmul.mubr.f32.gmra.mrb[10].mxu0 %v11156_v35 }
 0x27f   : > { %7898 = vmatprep.mubr.f32.mxu0 %v11158_v51  ;;  %9073 = vmatpush3.bf16.msra.mxu0 %v9070_v12  ;;  %v3041_v12 = vld [vmem:[#allocation9 + $0x470] sm:$0xff] }
 0x280   : > { %9075 = vmatprep.subr.bf16.mxu0 %v9074_v9  ;;  %v9110_v31 = vpack.c.bf16 %v3042_v18, %v3041_v12 }
 0x282   : > { %7899 = vmatmul.mubr.f32.gmra.mrb[12].mxu0 %v11162_v60 }
 0x283   : > { %7901 = vmatprep.mubr.f32.mxu0 %v11164_v1  ;;  %9077 = vmatpush3.bf16.msra.mxu0 %v9074_v9  ;;  %v2426_v9 = vld [vmem:[#allocation2 + $0x1b2] sm:$0xff] }
 0x284   : > { %9079 = vmatprep.subr.bf16.mxu0 %v9078_v2 }
 0x286   : > { %7902 = vmatmul.mubr.f32.gmra.mrb[14].mxu0 %v11168_v22 }
 0x287   : > { %7904 = vmatprep.mubr.f32.mxu0 %v11170_v34  ;;  %9081 = vmatpush3.bf16.msra.mxu0 %v9078_v2  ;;  %v2427_v2 = vld [vmem:[#allocation2 + $0x1ba] sm:$0xff] }
 0x288   : > { %9083 = vmatprep.subr.bf16.mxu0 %v9082_v10 }
 0x28a   : > { %7905 = vmatmul.mubr.f32.gmra.mrb[16].mxu0 %v11174_v40 }
 0x28b   : > { %7907 = vmatprep.mubr.f32.mxu0 %v11176_v11 }
 0x28e   : > { %7908 = vmatmul.mubr.f32.gmra.mrb[20].mxu0 %v11180_v14 }
 0x28f   : > { %7910 = vmatprep.mubr.f32.mxu0 %v11182_v41 }
 0x292   : > { %7911 = vmatmul.mubr.f32.gmra.mrb[22].mxu0 %v11186_v15 }
 0x293   : > { %7913 = vmatprep.mubr.f32.mxu0 %v11188_v17 }
 0x296   : > { %7914 = vmatmul.mubr.f32.gmra.mrb[24].mxu0 %v11192_v19 }
 0x297   : > { %7916 = vmatprep.mubr.f32.mxu0 %v11194_v42 }
 0x29a   : > { %7917 = vmatmul.mubr.f32.gmra.mrb[26].mxu0 %v11198_v20 }
 0x29b   : > { %7919 = vmatprep.mubr.f32.mxu0 %v11200_v54 }
 0x29e   : > { %7920 = vmatmul.mubr.f32.gmra.mrb[28].mxu0 %v11204_v23 }
 0x29f   : > { %7922 = vmatprep.mubr.f32.mxu0 %v11206_v5 }
 0x2a2   : > { %7923 = vmatmul.mubr.f32.gmra.mrb[30].mxu0 %v11210_v30 }
 0x2a3   : > { %7925 = vmatprep.mubr.f32.mxu0 %v11212_v37 }
 0x2a6   : > { %7926 = vmatmul.mubr.f32.gmra.mrb[32].mxu0 %v11216_v24 }
 0x2a7   : > { %7928 = vmatprep.mubr.f32.mxu0 %v11218_v25 }
 0x2a9   : > { %v7675_v27 = vpop.f32.mrb[44].mxu0 }
 0x2aa   : > { %v1749_v32 = vpop.f32.mrb[45].mxu0  ;;  %7929 = vmatmul.mubr.f32.gmra.mrb[34].mxu0 %v11222_v26  ;;  %v3639_v27 = vld [vmem:[#allocation11 + $0x188] sm:$0xff] }
 0x2ab   : > { %7931 = vmatprep.mubr.f32.mxu0 %v11111_v59  ;;  %v3640_v32 = vld [vmem:[#allocation11 + $0x190] sm:$0xff] }
 0x2ad   : > { %v7710_v33 = vpop.f32.mrb[46].mxu0 }
 0x2ae   : > { %v1877_v53 = vpop.f32.mrb[47].mxu0  ;;  %7932 = vmatmul.mubr.f32.gmra.mrb[56].mxu0 %v11114_v43  ;;  %v3641_v33 = vld [vmem:[#allocation11 + $0x198] sm:$0xff] }
 0x2af   : > { %7966 = vmatprep.mubr.f32.mxu0 %v11128_v55  ;;  %v3035_v55 = vld [vmem:[#allocation9 + $0x440] sm:$0xff] }
 0x2b2   : > { %7967 = vmatmul.mubr.f32.vlgmr.msra.gmra.mrb[58].mxu0 %v11132_v50  ;;  %v9098_v50 = vpack.c.bf16 %v3036_v56, %v3035_v55 }
 0x2b3   : > { %9085 = vmatpush3.bf16.msra.mxu0 %v9082_v10  ;;  %7969 = vmatprep.mubr.f32.mxu0 %v11134_v62  ;;  %v3638_v10 = vld [vmem:[#allocation11 + $0x180] sm:$0xff] }
 0x2b4   : > { %9087 = vmatprep.subr.bf16.mxu0 %v9086_v47 }
 0x2b6   : > { %7970 = vmatmul.mubr.f32.gmra.mrb[2].mxu0 %v11138_v46 }
 0x2b7   : > { %7972 = vmatprep.mubr.f32.mxu0 %v11140_v29  ;;  %9089 = vmatpush3.bf16.msra.mxu0 %v9086_v47 }
 0x2b8   : > { %9091 = vmatprep.subr.bf16.mxu0 %v9090_v21 }
 0x2ba   : > { %7973 = vmatmul.mubr.f32.gmra.mrb[4].mxu0 %v11144_v63 }
 0x2bb   : > { %7975 = vmatprep.mubr.f32.mxu0 %v11146_v39  ;;  %9093 = vmatpush3.bf16.msra.mxu0 %v9090_v21 }
 0x2bc   : > { %9095 = vmatprep.subr.bf16.mxu0 %v9094_v8 }
 0x2be   : > { %7976 = vmatmul.mubr.f32.gmra.mrb[6].mxu0 %v11150_v3 }
 0x2bf   : > { %7978 = vmatprep.mubr.f32.mxu0 %v11152_v38  ;;  %9097 = vmatpush3.bf16.msra.mxu0 %v9094_v8 }
 0x2c0   : > { %9099 = vmatprep.subr.bf16.mxu0 %v9098_v50 }
 0x2c2   : > { %7979 = vmatmul.mubr.f32.gmra.mrb[8].mxu0 %v11156_v35 }
 0x2c3   : > { %7981 = vmatprep.mubr.f32.mxu0 %v11158_v51  ;;  %9101 = vmatpush3.bf16.msra.mxu0 %v9098_v50 }
 0x2c4   : > { %9103 = vmatprep.subr.bf16.mxu0 %v9102_v61 }
 0x2c6   : > { %7982 = vmatmul.mubr.f32.gmra.mrb[10].mxu0 %v11162_v60 }
 0x2c7   : > { %7984 = vmatprep.mubr.f32.mxu0 %v11164_v1  ;;  %9105 = vmatpush3.bf16.msra.mxu0 %v9102_v61 }
 0x2c8   : > { %9107 = vmatprep.subr.bf16.mxu0 %v9106_v49 }
 0x2ca   : > { %7985 = vmatmul.mubr.f32.gmra.mrb[12].mxu0 %v11168_v22 }
 0x2cb   : > { %7987 = vmatprep.mubr.f32.mxu0 %v11170_v34  ;;  %9109 = vmatpush3.bf16.msra.mxu0 %v9106_v49 }
 0x2cc   : > { %9111 = vmatprep.subr.bf16.mxu0 %v9110_v31 }
 0x2ce   : > { %7988 = vmatmul.mubr.f32.gmra.mrb[14].mxu0 %v11174_v40 }
 0x2cf   : > { %7990 = vmatprep.mubr.f32.mxu0 %v11176_v11  ;;  %9113 = vmatpush3.bf16.msra.mxu0 %v9110_v31  ;;  %v11331_v31 = vld [vmem:[%s12044_s4] ss:$0 sm:$0xff] }
 0x2d2   : > { %7991 = vmatmul.mubr.f32.gmra.mrb[16].mxu0 %v11180_v14 }
 0x2d3   : > { %7993 = vmatprep.mubr.f32.mxu0 %v11182_v41 }
 0x2d6   : > { %7994 = vmatmul.mubr.f32.gmra.mrb[20].mxu0 %v11186_v15 }
 0x2d7   : > { %7996 = vmatprep.mubr.f32.mxu0 %v11188_v17 }
 0x2da   : > { %7997 = vmatmul.mubr.f32.gmra.mrb[22].mxu0 %v11192_v19 }
 0x2db   : > { %7999 = vmatprep.mubr.f32.mxu0 %v11194_v42 }
 0x2de   : > { %8000 = vmatmul.mubr.f32.gmra.mrb[24].mxu0 %v11198_v20 }
 0x2df   : > { %8002 = vmatprep.mubr.f32.mxu0 %v11200_v54 }
 0x2e2   : > { %8003 = vmatmul.mubr.f32.gmra.mrb[26].mxu0 %v11204_v23 }
 0x2e3   : > { %8005 = vmatprep.mubr.f32.mxu0 %v11206_v5 }
 0x2e6   : > { %8006 = vmatmul.mubr.f32.gmra.mrb[28].mxu0 %v11210_v30 }
 0x2e7   : > { %8008 = vmatprep.mubr.f32.mxu0 %v11212_v37 }
 0x2ea   : > { %8009 = vmatmul.mubr.f32.gmra.mrb[30].mxu0 %v11216_v24 }
 0x2eb   : > { %8011 = vmatprep.mubr.f32.mxu0 %v11218_v25 }
 0x2ee   : > { %8012 = vmatmul.mubr.f32.gmra.mrb[32].mxu0 %v11222_v26 }
 0x2ef   : > { %8014 = vmatprep.mubr.f32.mxu0 %v11111_v59 }
 0x2f1   : > { %v7761_v57 = vpop.f32.mrb[48].mxu0 }
 0x2f2   : > { %v2047_v58 = vpop.f32.mrb[49].mxu0  ;;  %8015 = vmatmul.mubr.f32.gmra.mrb[34].mxu0 %v11114_v43 }
 0x2f3   : > { %8017 = vmatprep.mubr.f32.mxu0 %v2426_v9 }
 0x2f5   : > { %v7796_v7 = vpop.f32.mrb[50].mxu0 }
 0x2f6   : > { %v2175_v13 = vpop.f32.mrb[51].mxu0  ;;  %8018 = vmatmul.mubr.f32.gmra.mrb[60].mxu0 %v2427_v2 }
 0x2f7   : > { %8052 = vmatprep.mubr.f32.mxu0 %v11134_v62  ;;  %v9114_v62 = vpack.c.bf16 %v3639_v27, %v3638_v10 }
 0x2f9   : > { %9115 = vmatprep.subr.bf16.mxu1 %v9114_v62 }
 0x2fa   : > { %8053 = vmatmul.mubr.f32.vlgmr.msra.gmra.mrb[62].mxu0 %v11138_v46  ;;  %v9118_v46 = vpack.c.bf16 %v3641_v33, %v3640_v32  ;;  %9117 = vmatpush3.bf16.msra.mxu1 %v9114_v62 }
 0x2fb   : > { %8055 = vmatprep.mubr.f32.mxu0 %v11140_v29  ;;  %v3643_v29 = vld [vmem:[#allocation11 + $0x1a8] sm:$0xff] }
 0x2fc   : > { %9119 = vmatprep.subr.bf16.mxu1 %v9118_v46 }
 0x2fe   : > { %8056 = vmatmul.mubr.f32.gmra.mrb[2].mxu0 %v11144_v63  ;;  %v9122_v63 = vpack.c.bf16 %v3643_v29, %v3642_v36  ;;  %9121 = vmatpush3.bf16.msra.mxu1 %v9118_v46 }
 0x2ff   : > { %8058 = vmatprep.mubr.f32.mxu0 %v11146_v39 }
 0x300   : > { %9123 = vmatprep.subr.bf16.mxu1 %v9122_v63 }
 0x302   : > { %8059 = vmatmul.mubr.f32.gmra.mrb[4].mxu0 %v11150_v3  ;;  %9125 = vmatpush3.bf16.msra.mxu1 %v9122_v63 }
 0x303   : > { %8061 = vmatprep.mubr.f32.mxu0 %v11152_v38 }
 0x306   : > { %8062 = vmatmul.mubr.f32.gmra.mrb[6].mxu0 %v11156_v35 }
 0x307   : > { %8064 = vmatprep.mubr.f32.mxu0 %v11158_v51  ;;  %v3644_v51 = vld [vmem:[#allocation11 + $0x1b0] sm:$0xff] }
 0x30a   : > { %8065 = vmatmul.mubr.f32.gmra.mrb[8].mxu0 %v11162_v60  ;;  %v3645_v60 = vld [vmem:[#allocation11 + $0x1b8] sm:$0xff] }
 0x30b   : > { %8067 = vmatprep.mubr.f32.mxu0 %v11164_v1  ;;  %v9126_v1 = vpack.c.bf16 %v3645_v60, %v3644_v51 }
 0x30d   : > { %9127 = vmatprep.subr.bf16.mxu1 %v9126_v1 }
 0x30e   : > { %8068 = vmatmul.mubr.f32.gmra.mrb[10].mxu0 %v11168_v22  ;;  %9129 = vmatpush3.bf16.msra.mxu1 %v9126_v1  ;;  %v3646_v22 = vld [vmem:[#allocation11 + $0x1c0] sm:$0xff] }
 0x30f   : > { %8070 = vmatprep.mubr.f32.mxu0 %v11170_v34  ;;  %v3647_v34 = vld [vmem:[#allocation11 + $0x1c8] sm:$0xff] }
 0x312   : > { %8071 = vmatmul.mubr.f32.gmra.mrb[12].mxu0 %v11174_v40  ;;  %v9130_v40 = vpack.c.bf16 %v3647_v34, %v3646_v22 }
 0x313   : > { %8073 = vmatprep.mubr.f32.mxu0 %v11176_v11  ;;  %v3648_v11 = vld [vmem:[#allocation11 + $0x1d0] sm:$0xff] }
 0x314   : > { %9131 = vmatprep.subr.bf16.mxu1 %v9130_v40 }
 0x315   : > { %9133 = vmatpush3.bf16.msra.mxu1 %v9130_v40 }
 0x316   : > { %8074 = vmatmul.mubr.f32.gmra.mrb[14].mxu0 %v11180_v14 }
 0x317   : > { %8076 = vmatprep.mubr.f32.mxu0 %v11182_v41  ;;  %v3651_v41 = vld [vmem:[#allocation11 + $0x1e8] sm:$0xff] }
 0x31a   : > { %8077 = vmatmul.mubr.f32.gmra.mrb[16].mxu0 %v11186_v15 }
 0x31b   : > { %8079 = vmatprep.mubr.f32.mxu0 %v11188_v17  ;;  %v3652_v17 = vld [vmem:[#allocation11 + $0x1f0] sm:$0xff] }
 0x31e   : > { %8080 = vmatmul.mubr.f32.gmra.mrb[20].mxu0 %v11192_v19  ;;  %v3653_v19 = vld [vmem:[#allocation11 + $0x1f8] sm:$0xff] }
 0x31f   : > { %8082 = vmatprep.mubr.f32.mxu0 %v11194_v42  ;;  %v9142_v42 = vpack.c.bf16 %v3653_v19, %v3652_v17 }
 0x322   : > { %8083 = vmatmul.mubr.f32.gmra.mrb[22].mxu0 %v11198_v20  ;;  %v3621_v20 = vld [vmem:[#allocation11] sm:$0xff] }
 0x323   : > { %8085 = vmatprep.mubr.f32.mxu0 %v11200_v54  ;;  %v3622_v54 = vld [vmem:[#allocation11 + $0x8] sm:$0xff] }
 0x326   : > { %8086 = vmatmul.mubr.f32.gmra.mrb[24].mxu0 %v11204_v23  ;;  %v11293_v23 = vpack.c.bf16 %v3622_v54, %v3621_v20 }
 0x327   : > { %8088 = vmatprep.mubr.f32.mxu0 %v11206_v5  ;;  %v11296_v5 = vpop.f32.mrb[0].mxu1 }
 0x32a   : > { %8089 = vmatmul.mubr.f32.gmra.mrb[26].mxu0 %v11210_v30  ;;  %v11298_v30 = vpop.f32.mrb[1].mxu1 }
 0x32b   : > { %8091 = vmatprep.mubr.f32.mxu0 %v11212_v37  ;;  %v11300_v37 = vpop.f32.mrb[2].mxu1 }
 0x32e   : > { %8092 = vmatmul.mubr.f32.gmra.mrb[28].mxu0 %v11216_v24  ;;  %v11302_v24 = vpop.f32.mrb[3].mxu1 }
 0x32f   : > { %8094 = vmatprep.mubr.f32.mxu0 %v11218_v25  ;;  %v11304_v25 = vpop.f32.mrb[4].mxu1 }
 0x332   : > { %8095 = vmatmul.mubr.f32.gmra.mrb[30].mxu0 %v11222_v26  ;;  %v11306_v26 = vpop.f32.mrb[5].mxu1 }
 0x333   : > { %8097 = vmatprep.mubr.f32.mxu0 %v11111_v59  ;;  %v3649_v59 = vld [vmem:[#allocation11 + $0x1d8] sm:$0xff]  ;;  %v11308_v45 = vpop.f32.mrb[6].mxu1 }
 0x334   : > { %v9134_v14 = vpack.c.bf16 %v3649_v59, %v3648_v11  ;;  %v11310_v53 = vpop.f32.mrb[7].mxu1 }
 0x335   : > { %v11312_v47 = vpop.f32.mrb[8].mxu1 }
 0x336   : > { %8098 = vmatmul.mubr.f32.gmra.mrb[32].mxu0 %v11114_v43  ;;  %9135 = vmatprep.subr.bf16.mxu1 %v9134_v14  ;;  %v3650_v43 = vld [vmem:[#allocation11 + $0x1e0] sm:$0xff]  ;;  %v11314_v4 = vpop.f32.mrb[9].mxu1 }
 0x337   : > { %8100 = vmatprep.mubr.f32.mxu0 %v2426_v9  ;;  %9137 = vmatpush3.bf16.msra.mxu1 %v9134_v14  ;;  %v9138_v15 = vpack.c.bf16 %v3651_v41, %v3650_v43  ;;  %v11316_v0 = vpop.f32.mrb[10].mxu1  ;;  %v3625_v14 = vld [vmem:[#allocation11 + $0x20] sm:$0xff]  ;;  %v3626_v43 = vld [vmem:[#allocation11 + $0x28] sm:$0xff] }
 0x338   : > { %v11318_v8 = vpop.f32.mrb[11].mxu1 }
 0x339   : > { %v7847_v39 = vpop.f32.mrb[52].mxu0  ;;  %9139 = vmatprep.subr.bf16.mxu1 %v9138_v15  ;;  %v11320_v56 = vpop.f32.mrb[12].mxu1 }
 0x33a   : > { %v2345_v3 = vpop.f32.mrb[53].mxu0  ;;  %8101 = vmatmul.mubr.f32.gmra.mrb[34].mxu0 %v2427_v2  ;;  %v11322_v50 = vpop.f32.mrb[13].mxu1 }
 0x33b   : > { %9141 = vmatpush3.bf16.msra.mxu1 %v9138_v15  ;;  %v11324_v16 = vpop.f32.mrb[14].mxu1  ;;  %v3623_v3 = vld [vmem:[#allocation11 + $0x10] sm:$0xff] }
 0x33c   : > { %9143 = vmatprep.subr.bf16.mxu1 %v9142_v42  ;;  %v11326_v6 = vpop.f32.mrb[15].mxu1 }
 0x33d   : > { %v7882_v38 = vpop.f32.mrb[54].mxu0  ;;  %v7417_v61 = vpop.f32.mrb[16].mxu1 }
 0x33e   : > { %v2513_v35 = vpop.f32.mrb[55].mxu0  ;;  %v904_v48 = vpop.f32.mrb[17].mxu1  ;;  %v3624_v38 = vld [vmem:[#allocation11 + $0x18] sm:$0xff] }
 0x33f   : > { %9145 = vmatpush3.bf16.msra.mxu1 %v9142_v42  ;;  %v9150_v11 = vpack.c.bf16 %v3624_v38, %v3623_v3  ;;  %v3631_v38 = vld [vmem:[#allocation11 + $0x50] sm:$0xff] }
 0x340   : > { %9147 = vmatprep.subr.bf16.mxu1 %v11293_v23 }
 0x381   : > { %v7933_v44 = vpop.f32.mrb[56].mxu0 }
 0x382   : > { %v2683_v21 = vpop.f32.mrb[57].mxu0  ;;  %v9154_v44 = vpack.c.bf16 %v3626_v43, %v3625_v14 }
 0x385   : > { %v7968_v28 = vpop.f32.mrb[58].mxu0 }
 0x386   : > { %v2811_v55 = vpop.f32.mrb[59].mxu0  ;;  %v3627_v28 = vld [vmem:[#allocation11 + $0x30] sm:$0xff] }
 0x387   : > { %v3628_v55 = vld [vmem:[#allocation11 + $0x38] sm:$0xff] }
 0x3c9   : > { %v8019_v52 = vpop.f32.mrb[60].mxu0 }
 0x3ca   : > { %v2981_v49 = vpop.f32.mrb[61].mxu0 }
 0x3cd   : > { %v8054_v12 = vpop.f32.mrb[62].mxu0 }
 0x3ce   : > { %v3109_v18 = vpop.f32.mrb[63].mxu0 }
 0x3d1   : > { %v8057_v9 = vpop.f32.mrb[2].mxu0 }
 0x3d2   : > { %v3334_v57 = vadd.f32 %v8057_v9, %v11331_v31  ;;  %v3119_v58 = vpop.f32.mrb[3].mxu0  ;;  %v9158_v9 = vpack.c.bf16 %v3628_v55, %v3627_v28 }
 0x3d3   : > { %v3333_v2 = vadd.f32 %v11331_v31, %v3119_v58  ;;  %v3629_v58 = vld [vmem:[#allocation11 + $0x40] sm:$0xff] }
 0x3d4   : > { %v11335_v7 = vmax.f32 %v3334_v57, 0.0 }
 0x3d5   : > { %v11337_v13 = vmax.f32 %v3333_v2, 0.0  ;;  %v8060_v10 = vpop.f32.mrb[4].mxu0  ;;  %v3630_v2 = vld [vmem:[#allocation11 + $0x48] sm:$0xff] }
 0x3d6   : > { %3552 = vst [vmem:[#allocation2 + $0x21] sm:$0xff] %v11335_v7  ;;  %v3336_v27 = vadd.f32 %v8060_v10, %v11331_v31  ;;  %v3129_v32 = vpop.f32.mrb[5].mxu0 }
 0x3d7   : > { %3551 = vst [vmem:[#allocation2 + $0x19] sm:$0xff] %v11337_v13  ;;  %v3335_v62 = vadd.f32 %v11331_v31, %v3129_v32 }
 0x3d8   : > { %v11343_v33 = vmax.f32 %v3336_v27, 0.0 }
 0x3d9   : > { %v11345_v46 = vmax.f32 %v3335_v62, 0.0  ;;  %v8063_v36 = vpop.f32.mrb[6].mxu0 }
 0x3da   : > { %3554 = vst [vmem:[#allocation2 + $0x39] sm:$0xff] %v11343_v33  ;;  %v3338_v29 = vadd.f32 %v8063_v36, %v11331_v31  ;;  %v3139_v63 = vpop.f32.mrb[7].mxu0 }
 0x3db   : > { %3553 = vst [vmem:[#allocation2 + $0x31] sm:$0xff] %v11345_v46  ;;  %v3337_v39 = vadd.f32 %v11331_v31, %v3139_v63 }
 0x3dc   : > { %v11351_v35 = vmax.f32 %v3338_v29, 0.0 }
 0x3dd   : > { %v11353_v51 = vmax.f32 %v3337_v39, 0.0  ;;  %v8066_v60 = vpop.f32.mrb[8].mxu0  ;;  %v9162_v39 = vpack.c.bf16 %v3630_v2, %v3629_v58 }
 0x3de   : > { %3556 = vst [vmem:[#allocation2 + $0x51] sm:$0xff] %v11351_v35  ;;  %v3340_v1 = vadd.f32 %v8066_v60, %v11331_v31  ;;  %v3149_v22 = vpop.f32.mrb[9].mxu0  ;;  %v11357_v34 = vld [vmem:[#allocation2 + $0x18] sm:$0xff]  ;;  %v11359_v40 = vld [vmem:[#allocation2 + $0x20] sm:$0xff] }
 0x3df   : > { %3555 = vst [vmem:[#allocation2 + $0x49] sm:$0xff] %v11353_v51  ;;  %v3339_v59 = vadd.f32 %v11331_v31, %v3149_v22  ;;  %8138 = vmatprep.mubr.f32.mxu1 %v11357_v34  ;;  %v3632_v60 = vld [vmem:[#allocation11 + $0x58] sm:$0xff] }
 0x3e0   : > { %v11364_v41 = vmax.f32 %v3340_v1, 0.0  ;;  %8139 = vmatmul.mubr.f32.vlgmr.msra.gmra.mrb[18].mxu1 %v11359_v40 }
 0x3e1   : > { %v11367_v15 = vmax.f32 %v3339_v59, 0.0  ;;  %v8069_v17 = vpop.f32.mrb[10].mxu0  ;;  %9149 = vmatpush3.bf16.msra.mxu1 %v11293_v23 }
 0x3e2   : > { %3558 = vst [vmem:[#allocation2 + $0x69] sm:$0xff] %v11364_v41  ;;  %v3342_v19 = vadd.f32 %v8069_v17, %v11331_v31  ;;  %v3159_v42 = vpop.f32.mrb[11].mxu0  ;;  %v11372_v20 = vld [vmem:[#allocation2 + $0x30] sm:$0xff]  ;;  %v11374_v54 = vld [vmem:[#allocation2 + $0x38] sm:$0xff]  ;;  %9151 = vmatprep.subr.bf16.mxu1 %v9150_v11 }
 0x3e3   : > { %3557 = vst [vmem:[#allocation2 + $0x61] sm:$0xff] %v11367_v15  ;;  %v3341_v21 = vadd.f32 %v11331_v31, %v3159_v42  ;;  %8141 = vmatprep.mubr.f32.mxu1 %v11372_v20 }
 0x3e4   : > { %v11379_v23 = vmax.f32 %v3342_v19, 0.0  ;;  %8142 = vmatmul.mubr.f32.gmra.mrb[20].mxu1 %v11374_v54  ;;  %v9166_v19 = vpack.c.bf16 %v3632_v60, %v3631_v38 }
 0x3e5   : > { %v11382_v61 = vmax.f32 %v3341_v21, 0.0  ;;  %v8072_v48 = vpop.f32.mrb[12].mxu0  ;;  %9153 = vmatpush3.bf16.msra.mxu1 %v9150_v11  ;;  %v3634_v21 = vld [vmem:[#allocation11 + $0x68] sm:$0xff] }
 0x3e6   : > { %3560 = vst [vmem:[#allocation2 + $0x81] sm:$0xff] %v11379_v23  ;;  %v3344_v52 = vadd.f32 %v8072_v48, %v11331_v31  ;;  %v3169_v49 = vpop.f32.mrb[13].mxu0  ;;  %v11386_v12 = vld [vmem:[#allocation2 + $0x48] sm:$0xff]  ;;  %v11388_v18 = vld [vmem:[#allocation2 + $0x50] sm:$0xff]  ;;  %9155 = vmatprep.subr.bf16.mxu1 %v9154_v44 }
 0x3e7   : > { %3559 = vst [vmem:[#allocation2 + $0x79] sm:$0xff] %v11382_v61  ;;  %v3343_v57 = vadd.f32 %v11331_v31, %v3169_v49  ;;  %8144 = vmatprep.mubr.f32.mxu1 %v11386_v12 }
 0x3e8   : > { %v11393_v10 = vmax.f32 %v3344_v52, 0.0  ;;  %8145 = vmatmul.mubr.f32.gmra.mrb[22].mxu1 %v11388_v18 }
 0x3e9   : > { %v11396_v27 = vmax.f32 %v3343_v57, 0.0  ;;  %v8075_v32 = vpop.f32.mrb[14].mxu0  ;;  %9157 = vmatpush3.bf16.msra.mxu1 %v9154_v44  ;;  %v3633_v44 = vld [vmem:[#allocation11 + $0x60] sm:$0xff] }
 0x3ea   : > { %3562 = vst [vmem:[#allocation2 + $0x99] sm:$0xff] %v11393_v10  ;;  %v3346_v62 = vadd.f32 %v8075_v32, %v11331_v31  ;;  %v3179_v36 = vpop.f32.mrb[15].mxu0  ;;  %v11400_v29 = vld [vmem:[#allocation2 + $0x60] sm:$0xff]  ;;  %v11402_v63 = vld [vmem:[#allocation2 + $0x68] sm:$0xff]  ;;  %9159 = vmatprep.subr.bf16.mxu1 %v9158_v9  ;;  %v9170_v58 = vpack.c.bf16 %v3634_v21, %v3633_v44  ;;  %v3635_v32 = vld [vmem:[#allocation11 + $0x70] sm:$0xff] }
 0x3eb   : > { %3561 = vst [vmem:[#allocation2 + $0x91] sm:$0xff] %v11396_v27  ;;  %v3345_v3 = vadd.f32 %v11331_v31, %v3179_v36  ;;  %8147 = vmatprep.mubr.f32.mxu1 %v11400_v29  ;;  %v4105_v44 = vld [vmem:[#allocation11 + $0x300] sm:$0xff]  ;;  %v4106_v21 = vld [vmem:[#allocation11 + $0x308] sm:$0xff] }
 0x3ec   : > { %v11407_v1 = vmax.f32 %v3346_v62, 0.0  ;;  %8148 = vmatmul.mubr.f32.gmra.mrb[24].mxu1 %v11402_v63  ;;  %v3636_v62 = vld [vmem:[#allocation11 + $0x78] sm:$0xff] }
 0x3ed   : > { %v11410_v22 = vmax.f32 %v3345_v3, 0.0  ;;  %v8078_v11 = vpop.f32.mrb[16].mxu0  ;;  %9161 = vmatpush3.bf16.msra.mxu1 %v9158_v9 }
 0x3ee   : > { %3564 = vst [vmem:[#allocation2 + $0xb1] sm:$0xff] %v11407_v1  ;;  %v3348_v59 = vadd.f32 %v8078_v11, %v11331_v31  ;;  %v3189_v14 = vpop.f32.mrb[17].mxu0  ;;  %v11414_v43 = vld [vmem:[#allocation2 + $0x78] sm:$0xff]  ;;  %v11416_v17 = vld [vmem:[#allocation2 + $0x80] sm:$0xff]  ;;  %9163 = vmatprep.subr.bf16.mxu1 %v9162_v39 }
 0x3ef   : > { %3563 = vst [vmem:[#allocation2 + $0xa9] sm:$0xff] %v11410_v22  ;;  %v3347_v42 = vadd.f32 %v11331_v31, %v3189_v14  ;;  %8150 = vmatprep.mubr.f32.mxu1 %v11414_v43 }
 0x3f0   : > { %v11421_v28 = vmax.f32 %v3348_v59, 0.0  ;;  %8151 = vmatmul.mubr.f32.gmra.mrb[26].mxu1 %v11416_v17  ;;  %v9174_v59 = vpack.c.bf16 %v3636_v62, %v3635_v32  ;;  %v11461_v62 = vpack.c.bf16 %v4106_v21, %v4105_v44 }
 0x3f1   : > { %v11424_v55 = vmax.f32 %v3347_v42, 0.0  ;;  %v8081_v48 = vpop.f32.mrb[20].mxu0  ;;  %9165 = vmatpush3.bf16.msra.mxu1 %v9162_v39 }
 0x3f2   : > { %3566 = vst [vmem:[#allocation2 + $0xc9] sm:$0xff] %v11421_v28  ;;  %v9418_v52 = vadd.f32 %v8081_v48, %v11296_v5  ;;  %v3199_v49 = vpop.f32.mrb[21].mxu0  ;;  %v11428_v9 = vld [vmem:[#allocation2 + $0x90] sm:$0xff]  ;;  %v11430_v57 = vld [vmem:[#allocation2 + $0x98] sm:$0xff]  ;;  %9167 = vmatprep.subr.bf16.mxu1 %v9166_v19 }
 0x3f3   : > { %3565 = vst [vmem:[#allocation2 + $0xc1] sm:$0xff] %v11424_v55  ;;  %v9419_v2 = vadd.f32 %v3199_v49, %v11298_v30  ;;  %8153 = vmatprep.mubr.f32.mxu1 %v11428_v9 }
 0x3f4   : > { %v3350_v36 = vadd.f32 %v9418_v52, %v11331_v31  ;;  %8154 = vmatmul.mubr.f32.gmra.mrb[28].mxu1 %v11430_v57 }
 0x3f5   : > { %v3349_v5 = vadd.f32 %v9419_v2, %v11331_v31  ;;  %v8084_v39 = vpop.f32.mrb[22].mxu0  ;;  %9169 = vmatpush3.bf16.msra.mxu1 %v9166_v19 }
 0x3f6   : > { %v11438_v3 = vmax.f32 %v3350_v36, 0.0  ;;  %v9420_v38 = vadd.f32 %v8084_v39, %v11300_v37  ;;  %v3209_v60 = vpop.f32.mrb[23].mxu0  ;;  %v11441_v11 = vld [vmem:[#allocation2 + $0xa8] sm:$0xff]  ;;  %v11443_v30 = vld [vmem:[#allocation2 + $0xb0] sm:$0xff]  ;;  %9171 = vmatprep.subr.bf16.mxu1 %v9170_v58 }
 0x3f7   : > { %v11445_v14 = vmax.f32 %v3349_v5, 0.0  ;;  %v9421_v42 = vadd.f32 %v3209_v60, %v11302_v24  ;;  %8156 = vmatprep.mubr.f32.mxu1 %v11441_v11 }
 0x3f8   : > { %3568 = vst [vmem:[#allocation2 + $0xe1] sm:$0xff] %v11438_v3  ;;  %v3352_v19 = vadd.f32 %v9420_v38, %v11331_v31  ;;  %8157 = vmatmul.mubr.f32.gmra.mrb[30].mxu1 %v11443_v30 }
 0x3f9   : > { %3567 = vst [vmem:[#allocation2 + $0xd9] sm:$0xff] %v11445_v14  ;;  %v3351_v37 = vadd.f32 %v9421_v42, %v11331_v31  ;;  %v8087_v48 = vpop.f32.mrb[24].mxu0  ;;  %9173 = vmatpush3.bf16.msra.mxu1 %v9170_v58 }
 0x3fa   : > { %v11454_v52 = vmax.f32 %v3352_v19, 0.0  ;;  %v9422_v24 = vadd.f32 %v8087_v48, %v11304_v25  ;;  %v3219_v49 = vpop.f32.mrb[25].mxu0  ;;  %v11457_v2 = vld [vmem:[#allocation2 + $0xc0] sm:$0xff]  ;;  %v11459_v32 = vld [vmem:[#allocation2 + $0xc8] sm:$0xff]  ;;  %9175 = vmatprep.subr.bf16.mxu1 %v9174_v59 }
 0x3fb   : > { %v11463_v36 = vmax.f32 %v3351_v37, 0.0  ;;  %v9423_v5 = vadd.f32 %v3219_v49, %v11306_v26  ;;  %8159 = vmatprep.mubr.f32.mxu1 %v11457_v2 }
 0x3fc   : > { %3570 = vst [vmem:[#allocation2 + $0xf9] sm:$0xff] %v11454_v52  ;;  %v3354_v58 = vadd.f32 %v9422_v24, %v11331_v31  ;;  %8160 = vmatmul.mubr.f32.gmra.mrb[32].mxu1 %v11459_v32 }
 0x3fd   : > { %3569 = vst [vmem:[#allocation2 + $0xf1] sm:$0xff] %v11463_v36  ;;  %v3353_v25 = vadd.f32 %v9423_v5, %v11331_v31  ;;  %v8090_v39 = vpop.f32.mrb[26].mxu0  ;;  %9177 = vmatpush3.bf16.msra.mxu1 %v9174_v59 }
 0x3fe   : > { %v11472_v38 = vmax.f32 %v3354_v58, 0.0  ;;  %v9424_v60 = vadd.f32 %v8090_v39, %v11308_v45  ;;  %v3229_v42 = vpop.f32.mrb[27].mxu0  ;;  %9179 = vmatprep.subr.bf16.mxu1 %v11461_v62 }
 0x3ff   : > { %v11476_v26 = vmax.f32 %v3353_v25, 0.0  ;;  %v9425_v44 = vadd.f32 %v3229_v42, %v11310_v53 }
 0x400   : > { %12214 = vst [vmem:[#allocation24_spill] sm:$0xff] %v11472_v38  ;;  %3572 = vst [vmem:[#allocation2 + $0x111] sm:$0xff] %v11472_v38  ;;  %v3356_v21 = vadd.f32 %v9424_v60, %v11331_v31  ;;  %v11481_v19 = vld [vmem:[#allocation2 + $0xd8] sm:$0xff]  ;;  %v11483_v37 = vld [vmem:[#allocation2 + $0xe0] sm:$0xff] }
 0x401   : > { %12215 = vst [vmem:[#allocation25_spill] sm:$0xff] %v11476_v26  ;;  %3571 = vst [vmem:[#allocation2 + $0x109] sm:$0xff] %v11476_v26  ;;  %v3355_v59 = vadd.f32 %v9425_v44, %v11331_v31  ;;  %v8093_v45 = vpop.f32.mrb[28].mxu0  ;;  %8162 = vmatprep.mubr.f32.mxu1 %v11481_v19  ;;  %v4112_v38 = vld [vmem:[#allocation11 + $0x338] sm:$0xff]  ;;  %v4113_v26 = vld [vmem:[#allocation11 + $0x340] sm:$0xff] }
 0x402   : > { %v11488_v48 = vmax.f32 %v3356_v21, 0.0  ;;  %v9426_v24 = vadd.f32 %v8093_v45, %v11312_v47  ;;  %v3239_v53 = vpop.f32.mrb[29].mxu0  ;;  %8163 = vmatmul.mubr.f32.gmra.mrb[34].mxu1 %v11483_v37 }
 0x403   : > { %v11492_v49 = vmax.f32 %v3355_v59, 0.0  ;;  %v9427_v5 = vadd.f32 %v3239_v53, %v11314_v4 }
 0x404   : > { %12216 = vst [vmem:[#allocation26_spill] sm:$0xff] %v11488_v48  ;;  %3574 = vst [vmem:[#allocation2 + $0x129] sm:$0xff] %v11488_v48  ;;  %v3358_v58 = vadd.f32 %v9426_v24, %v11331_v31  ;;  %v11497_v25 = vld [vmem:[#allocation2 + $0xf0] sm:$0xff]  ;;  %v11499_v39 = vld [vmem:[#allocation2 + $0xf8] sm:$0xff] }
 0x405   : > { %12217 = vst [vmem:[#allocation27_spill] sm:$0xff] %v11492_v49  ;;  %3573 = vst [vmem:[#allocation2 + $0x121] sm:$0xff] %v11492_v49  ;;  %v3357_v60 = vadd.f32 %v9427_v5, %v11331_v31  ;;  %v8096_v47 = vpop.f32.mrb[30].mxu0  ;;  %8165 = vmatprep.mubr.f32.mxu1 %v11497_v25  ;;  %v4111_v49 = vld [vmem:[#allocation11 + $0x330] sm:$0xff] }
 0x406   : > { %v11504_v42 = vmax.f32 %v3358_v58, 0.0  ;;  %v9428_v44 = vadd.f32 %v8096_v47, %v11316_v0  ;;  %v3249_v4 = vpop.f32.mrb[31].mxu0  ;;  %8166 = vmatmul.mubr.f32.gmra.mrb[36].mxu1 %v11499_v39 }
 0x407   : > { %v11508_v21 = vmax.f32 %v3357_v60, 0.0  ;;  %v9429_v59 = vadd.f32 %v3249_v4, %v11318_v8 }
 0x408   : > { %12218 = vst [vmem:[#allocation28_spill] sm:$0xff] %v11504_v42  ;;  %3576 = vst [vmem:[#allocation2 + $0x141] sm:$0xff] %v11504_v42  ;;  %v3360_v45 = vadd.f32 %v9428_v44, %v11331_v31  ;;  %v11513_v24 = vld [vmem:[#allocation2 + $0x108] sm:$0xff]  ;;  %v11515_v53 = vld [vmem:[#allocation2 + $0x110] sm:$0xff] }
 0x409   : > { %12219 = vst [vmem:[#allocation29_spill] sm:$0xff] %v11508_v21  ;;  %3575 = vst [vmem:[#allocation2 + $0x139] sm:$0xff] %v11508_v21  ;;  %v3359_v5 = vadd.f32 %v9429_v59, %v11331_v31  ;;  %v8099_v0 = vpop.f32.mrb[32].mxu0  ;;  %8168 = vmatprep.mubr.f32.mxu1 %v11513_v24  ;;  %v4110_v21 = vld [vmem:[#allocation11 + $0x328] sm:$0xff] }
 0x40a   : > { %v11520_v58 = vmax.f32 %v3360_v45, 0.0  ;;  %v9430_v60 = vadd.f32 %v8099_v0, %v11320_v56  ;;  %v3259_v8 = vpop.f32.mrb[33].mxu0  ;;  %8169 = vmatmul.mubr.f32.gmra.mrb[38].mxu1 %v11515_v53 }
 0x40b   : > { %v11524_v47 = vmax.f32 %v3359_v5, 0.0  ;;  %v9431_v44 = vadd.f32 %v3259_v8, %v11322_v50 }
 0x40c   : > { %12220 = vst [vmem:[#allocation30_spill] sm:$0xff] %v11520_v58  ;;  %3578 = vst [vmem:[#allocation2 + $0x159] sm:$0xff] %v11520_v58  ;;  %v3362_v4 = vadd.f32 %v9430_v60, %v11331_v31  ;;  %v11529_v42 = vld [vmem:[#allocation2 + $0x120] sm:$0xff]  ;;  %v11531_v59 = vld [vmem:[#allocation2 + $0x128] sm:$0xff] }
 0x40d   : > { %12221 = vst [vmem:[#allocation31_spill] sm:$0xff] %v11524_v47  ;;  %3577 = vst [vmem:[#allocation2 + $0x151] sm:$0xff] %v11524_v47  ;;  %v3361_v45 = vadd.f32 %v9431_v44, %v11331_v31  ;;  %v8102_v56 = vpop.f32.mrb[34].mxu0  ;;  %8171 = vmatprep.mubr.f32.mxu1 %v11529_v42 }
 0x40e   : > { %v11536_v0 = vmax.f32 %v3362_v4, 0.0  ;;  %v9432_v5 = vadd.f32 %v8102_v56, %v11324_v16  ;;  %v3269_v50 = vpop.f32.mrb[35].mxu0  ;;  %8172 = vmatmul.mubr.f32.gmra.mrb[40].mxu1 %v11531_v59 }
 0x40f   : > { %v11540_v8 = vmax.f32 %v3361_v45, 0.0  ;;  %v9433_v60 = vadd.f32 %v3269_v50, %v11326_v6 }
 0x410   : > { %12222 = vst [vmem:[#allocation32_spill] sm:$0xff] %v11536_v0  ;;  %3580 = vst [vmem:[#allocation2 + $0x171] sm:$0xff] %v11536_v0  ;;  %v3364_v58 = vadd.f32 %v9432_v5, %v11331_v31  ;;  %v11545_v47 = vld [vmem:[#allocation2 + $0x138] sm:$0xff]  ;;  %v11547_v44 = vld [vmem:[#allocation2 + $0x140] sm:$0xff] }
 0x411   : > { %12223 = vst [vmem:[#allocation33_spill] sm:$0xff] %v11540_v8  ;;  %3579 = vst [vmem:[#allocation2 + $0x169] sm:$0xff] %v11540_v8  ;;  %v3363_v4 = vadd.f32 %v9433_v60, %v11331_v31  ;;  %8174 = vmatprep.mubr.f32.mxu1 %v11545_v47  ;;  %v3585_v60 = vld [vmem:[#allocation2] sm:$0xff] }
 0x412   : > { %v11552_v16 = vmax.f32 %v3364_v58, 0.0  ;;  %8175 = vmatmul.mubr.f32.gmra.mrb[42].mxu1 %v11547_v44  ;;  %v4109_v8 = vld [vmem:[#allocation11 + $0x320] sm:$0xff] }
 0x413   : > { %v11555_v45 = vmax.f32 %v3363_v4, 0.0  ;;  %v4107_v4 = vld [vmem:[#allocation11 + $0x310] sm:$0xff]  ;;  %v9186_v48 = vpack.c.bf16 %v4110_v21, %v4109_v8  ;;  %v4116_v21 = vld [vmem:[#allocation11 + $0x358] sm:$0xff] }
 0x414   : > { %12224 = vst [vmem:[#allocation34_spill] sm:$0xff] %v11552_v16  ;;  %3582 = vst [vmem:[#allocation2 + $0x189] sm:$0xff] %v11552_v16  ;;  %v11558_v6 = vld [vmem:[#allocation2 + $0x150] sm:$0xff]  ;;  %v11560_v56 = vld [vmem:[#allocation2 + $0x158] sm:$0xff] }
 0x415   : > { %12225 = vst [vmem:[#allocation35_spill] sm:$0xff] %v11555_v45  ;;  %3581 = vst [vmem:[#allocation2 + $0x181] sm:$0xff] %v11555_v45  ;;  %8177 = vmatprep.mubr.f32.mxu1 %v11558_v6  ;;  %v4108_v16 = vld [vmem:[#allocation11 + $0x318] sm:$0xff]  ;;  %v3586_v45 = vld [vmem:[#allocation2 + $0x8] sm:$0xff] }
 0x416   : > { %8178 = vmatmul.mubr.f32.gmra.mrb[44].mxu1 %v11560_v56  ;;  %v9182_v0 = vpack.c.bf16 %v4108_v16, %v4107_v4  ;;  %v4114_v16 = vld [vmem:[#allocation11 + $0x348] sm:$0xff] }
 0x417   : > { %v4416_v4 = vld [vmem:[#allocation11 + $0x88] sm:$0xff] }
 0x418   : > { %v11565_v31 = vld [vmem:[#allocation2 + $0x168] sm:$0xff]  ;;  %v11567_v58 = vld [vmem:[#allocation2 + $0x170] sm:$0xff] }
 0x419   : > { %8180 = vmatprep.mubr.f32.mxu1 %v11565_v31 }
 0x41a   : > { %8181 = vmatmul.mubr.f32.gmra.mrb[46].mxu1 %v11567_v58 }
 0x41c   : > { %v11571_v5 = vld [vmem:[#allocation2 + $0x180] sm:$0xff]  ;;  %v11573_v50 = vld [vmem:[#allocation2 + $0x188] sm:$0xff] }
 0x41d   : > { %8183 = vmatprep.mubr.f32.mxu1 %v11571_v5 }
 0x41e   : > { %8184 = vmatmul.mubr.f32.gmra.mrb[48].mxu1 %v11573_v50 }
 0x41f   : > { %8218 = vmatprep.mubr.f32.mxu1 %v3585_v60  ;;  %v9190_v60 = vpack.c.bf16 %v4112_v38, %v4111_v49  ;;  %v4118_v38 = vld [vmem:[#allocation11 + $0x368] sm:$0xff]  ;;  %v4119_v49 = vld [vmem:[#allocation11 + $0x370] sm:$0xff] }
 0x422   : > { %8219 = vmatmul.mubr.f32.vlgmr.msra.gmra.mrb[18].mxu1 %v3586_v45  ;;  %v4415_v45 = vld [vmem:[#allocation11 + $0x80] sm:$0xff] }
 0x423   : > { %8221 = vmatprep.mubr.f32.mxu1 %v11357_v34  ;;  %9181 = vmatpush3.bf16.msra.mxu1 %v11461_v62  ;;  %v9194_v34 = vpack.c.bf16 %v4114_v16, %v4113_v26  ;;  %v4115_v62 = vld [vmem:[#allocation11 + $0x350] sm:$0xff]  ;;  %v4120_v26 = vld [vmem:[#allocation11 + $0x378] sm:$0xff] }
 0x424   : > { %9183 = vmatprep.subr.bf16.mxu1 %v9182_v0  ;;  %v9206_v8 = vpack.c.bf16 %v4120_v26, %v4119_v49  ;;  %v4417_v16 = vld [vmem:[#allocation11 + $0x90] sm:$0xff]  ;;  %v4424_v26 = vld [vmem:[#allocation11 + $0xc8] sm:$0xff] }
 0x426   : > { %8222 = vmatmul.mubr.f32.gmra.mrb[20].mxu1 %v11359_v40  ;;  %v9198_v40 = vpack.c.bf16 %v4116_v21, %v4115_v62  ;;  %v4419_v21 = vld [vmem:[#allocation11 + $0xa0] sm:$0xff] }
 0x427   : > { %8224 = vmatprep.mubr.f32.mxu1 %v11372_v20  ;;  %9185 = vmatpush3.bf16.msra.mxu1 %v9182_v0  ;;  %v4117_v0 = vld [vmem:[#allocation11 + $0x360] sm:$0xff] }
 0x428   : > { %9187 = vmatprep.subr.bf16.mxu1 %v9186_v48 }
 0x42a   : > { %8225 = vmatmul.mubr.f32.gmra.mrb[22].mxu1 %v11374_v54 }
 0x42b   : > { %8227 = vmatprep.mubr.f32.mxu1 %v11386_v12  ;;  %9189 = vmatpush3.bf16.msra.mxu1 %v9186_v48  ;;  %v9202_v48 = vpack.c.bf16 %v4118_v38, %v4117_v0  ;;  %v4421_v38 = vld [vmem:[#allocation11 + $0xb0] sm:$0xff] }
 0x42c   : > { %9191 = vmatprep.subr.bf16.mxu1 %v9190_v60 }
 0x42e   : > { %8228 = vmatmul.mubr.f32.gmra.mrb[24].mxu1 %v11388_v18 }
 0x42f   : > { %8230 = vmatprep.mubr.f32.mxu1 %v11400_v29  ;;  %9193 = vmatpush3.bf16.msra.mxu1 %v9190_v60  ;;  %v9210_v60 = vpack.c.bf16 %v4416_v4, %v4415_v45  ;;  %v4428_v45 = vld [vmem:[#allocation11 + $0xe8] sm:$0xff]  ;;  %v4430_v4 = vld [vmem:[#allocation11 + $0xf8] sm:$0xff] }
 0x430   : > { %9195 = vmatprep.subr.bf16.mxu1 %v9194_v34 }
 0x432   : > { %8231 = vmatmul.mubr.f32.gmra.mrb[26].mxu1 %v11402_v63 }
 0x433   : > { %8233 = vmatprep.mubr.f32.mxu1 %v11414_v43  ;;  %9197 = vmatpush3.bf16.msra.mxu1 %v9194_v34  ;;  %v4418_v34 = vld [vmem:[#allocation11 + $0x98] sm:$0xff] }
 0x434   : > { %9199 = vmatprep.subr.bf16.mxu1 %v9198_v40  ;;  %v9214_v62 = vpack.c.bf16 %v4418_v34, %v4417_v16  ;;  %v4703_v34 = vld [vmem:[#allocation11 + $0x270] sm:$0xff] }
 0x436   : > { %8234 = vmatmul.mubr.f32.gmra.mrb[28].mxu1 %v11416_v17 }
 0x437   : > { %8236 = vmatprep.mubr.f32.mxu1 %v11428_v9  ;;  %9201 = vmatpush3.bf16.msra.mxu1 %v9198_v40  ;;  %v4420_v40 = vld [vmem:[#allocation11 + $0xa8] sm:$0xff] }
 0x438   : > { %9203 = vmatprep.subr.bf16.mxu1 %v9202_v48  ;;  %v9218_v0 = vpack.c.bf16 %v4420_v40, %v4419_v21  ;;  %v4963_v40 = vld [vmem:[#allocation11 + $0x380] sm:$0xff] }
 0x43a   : > { %8237 = vmatmul.mubr.f32.gmra.mrb[30].mxu1 %v11430_v57 }
 0x43b   : > { %8239 = vmatprep.mubr.f32.mxu1 %v11441_v11  ;;  %9205 = vmatpush3.bf16.msra.mxu1 %v9202_v48  ;;  %v4422_v48 = vld [vmem:[#allocation11 + $0xb8] sm:$0xff] }
 0x43c   : > { %9207 = vmatprep.subr.bf16.mxu1 %v9206_v8  ;;  %v9222_v49 = vpack.c.bf16 %v4422_v48, %v4421_v38  ;;  %v12226_v48 = vld [vmem:[#allocation25_spill] sm:$0xff] }
 0x43e   : > { %8240 = vmatmul.mubr.f32.gmra.mrb[32].mxu1 %v11443_v30 }
 0x43f   : > { %8242 = vmatprep.mubr.f32.mxu1 %v11457_v2  ;;  %9209 = vmatpush3.bf16.msra.mxu1 %v9206_v8  ;;  %v4426_v8 = vld [vmem:[#allocation11 + $0xd8] sm:$0xff] }
 0x440   : > { %9211 = vmatprep.subr.bf16.mxu1 %v9210_v60 }
 0x442   : > { %8243 = vmatmul.mubr.f32.gmra.mrb[34].mxu1 %v11459_v32 }
 0x443   : > { %8245 = vmatprep.mubr.f32.mxu1 %v11481_v19 }
 0x446   : > { %8246 = vmatmul.mubr.f32.gmra.mrb[36].mxu1 %v11483_v37 }
 0x447   : > { %8248 = vmatprep.mubr.f32.mxu1 %v11497_v25 }
 0x44a   : > { %8249 = vmatmul.mubr.f32.gmra.mrb[38].mxu1 %v11499_v39 }
 0x44b   : > { %8251 = vmatprep.mubr.f32.mxu1 %v11513_v24 }
 0x44e   : > { %8252 = vmatmul.mubr.f32.gmra.mrb[40].mxu1 %v11515_v53 }
 0x44f   : > { %8254 = vmatprep.mubr.f32.mxu1 %v11529_v42 }
 0x452   : > { %8255 = vmatmul.mubr.f32.gmra.mrb[42].mxu1 %v11531_v59 }
 0x453   : > { %8257 = vmatprep.mubr.f32.mxu1 %v11545_v47 }
 0x456   : > { %8258 = vmatmul.mubr.f32.gmra.mrb[44].mxu1 %v11547_v44 }
 0x457   : > { %8260 = vmatprep.mubr.f32.mxu1 %v11558_v6 }
 0x45a   : > { %8261 = vmatmul.mubr.f32.gmra.mrb[46].mxu1 %v11560_v56 }
 0x45b   : > { %8263 = vmatprep.mubr.f32.mxu1 %v11565_v31 }
 0x45e   : > { %8264 = vmatmul.mubr.f32.gmra.mrb[48].mxu1 %v11567_v58 }
 0x45f   : > { %8298 = vmatprep.mubr.f32.mxu1 %v11372_v20  ;;  %v4423_v20 = vld [vmem:[#allocation11 + $0xc0] sm:$0xff] }
 0x462   : > { %8299 = vmatmul.mubr.f32.vlgmr.msra.gmra.mrb[18].mxu1 %v11374_v54  ;;  %v9226_v54 = vpack.c.bf16 %v4424_v26, %v4423_v20  ;;  %v12228_v20 = vld [vmem:[#allocation27_spill] sm:$0xff]  ;;  %v12229_v26 = vld [vmem:[#allocation26_spill] sm:$0xff] }
 0x463   : > { %8301 = vmatprep.mubr.f32.mxu1 %v11386_v12  ;;  %9213 = vmatpush3.bf16.msra.mxu1 %v9210_v60  ;;  %v4425_v12 = vld [vmem:[#allocation11 + $0xd0] sm:$0xff]  ;;  %v4690_v60 = vld [vmem:[#allocation11 + $0x208] sm:$0xff] }
 0x464   : > { %9215 = vmatprep.subr.bf16.mxu1 %v9214_v62 }
 0x466   : > { %8302 = vmatmul.mubr.f32.gmra.mrb[20].mxu1 %v11388_v18  ;;  %v9230_v18 = vpack.c.bf16 %v4426_v8, %v4425_v12  ;;  %v12231_v12 = vld [vmem:[#allocation28_spill] sm:$0xff]  ;;  %v12232_v8 = vld [vmem:[#allocation31_spill] sm:$0xff] }
 0x467   : > { %8304 = vmatprep.mubr.f32.mxu1 %v11400_v29  ;;  %9217 = vmatpush3.bf16.msra.mxu1 %v9214_v62  ;;  %v4427_v29 = vld [vmem:[#allocation11 + $0xe0] sm:$0xff]  ;;  %v4704_v62 = vld [vmem:[#allocation11 + $0x278] sm:$0xff] }
 0x468   : > { %9219 = vmatprep.subr.bf16.mxu1 %v9218_v0  ;;  %v9270_v21 = vpack.c.bf16 %v4704_v62, %v4703_v34  ;;  %v5279_v62 = vld [vmem:[#allocation11 + $0x130] sm:$0xff] }
 0x46a   : > { %8305 = vmatmul.mubr.f32.gmra.mrb[22].mxu1 %v11402_v63  ;;  %v9234_v63 = vpack.c.bf16 %v4428_v45, %v4427_v29  ;;  %v12234_v29 = vld [vmem:[#allocation33_spill] sm:$0xff]  ;;  %v4965_v45 = vld [vmem:[#allocation11 + $0x390] sm:$0xff] }
 0x46b   : > { %8307 = vmatprep.mubr.f32.mxu1 %v11414_v43  ;;  %9221 = vmatpush3.bf16.msra.mxu1 %v9218_v0  ;;  %v4429_v43 = vld [vmem:[#allocation11 + $0xf0] sm:$0xff]  ;;  %v4964_v0 = vld [vmem:[#allocation11 + $0x388] sm:$0xff] }
 0x46c   : > { %9223 = vmatprep.subr.bf16.mxu1 %v9222_v49  ;;  %v9274_v38 = vpack.c.bf16 %v4964_v0, %v4963_v40  ;;  %v10060_v40 = vld [vmem:[#allocation2 + $0x51] sm:$0xff] }
 0x46e   : > { %8308 = vmatmul.mubr.f32.gmra.mrb[24].mxu1 %v11416_v17  ;;  %v9238_v17 = vpack.c.bf16 %v4430_v4, %v4429_v43  ;;  %v12235_v43 = vld [vmem:[#allocation32_spill] sm:$0xff] }
 0x46f   : > { %8310 = vmatprep.mubr.f32.mxu1 %v11428_v9  ;;  %9225 = vmatpush3.bf16.msra.mxu1 %v9222_v49  ;;  %v4689_v9 = vld [vmem:[#allocation11 + $0x200] sm:$0xff] }
 0x470   : > { %9227 = vmatprep.subr.bf16.mxu1 %v9226_v54  ;;  %v12227_v49 = vld [vmem:[#allocation24_spill] sm:$0xff] }
 0x472   : > { %8311 = vmatmul.mubr.f32.gmra.mrb[26].mxu1 %v11430_v57  ;;  %v9242_v57 = vpack.c.bf16 %v4690_v60, %v4689_v9  ;;  %v4968_v9 = vld [vmem:[#allocation11 + $0x3a8] sm:$0xff] }
 0x473   : > { %8313 = vmatprep.mubr.f32.mxu1 %v11441_v11  ;;  %9229 = vmatpush3.bf16.msra.mxu1 %v9226_v54  ;;  %v3619_v11 = vld [vmem:[#allocation2 + $0x198] sm:$0xff]  ;;  %v12230_v54 = vld [vmem:[#allocation29_spill] sm:$0xff] }
 0x474   : > { %9231 = vmatprep.subr.bf16.mxu1 %v9230_v18 }
 0x476   : > { %8314 = vmatmul.mubr.f32.gmra.mrb[28].mxu1 %v11443_v30  ;;  %v3620_v30 = vld [vmem:[#allocation2 + $0x1a0] sm:$0xff] }
 0x477   : > { %8316 = vmatprep.mubr.f32.mxu1 %v11457_v2  ;;  %9233 = vmatpush3.bf16.msra.mxu1 %v9230_v18  ;;  %v4691_v2 = vld [vmem:[#allocation11 + $0x210] sm:$0xff] }
 0x478   : > { %9235 = vmatprep.subr.bf16.mxu1 %v9234_v63  ;;  %v12233_v18 = vld [vmem:[#allocation30_spill] sm:$0xff] }
 0x47a   : > { %8317 = vmatmul.mubr.f32.gmra.mrb[30].mxu1 %v11459_v32  ;;  %v4692_v32 = vld [vmem:[#allocation11 + $0x218] sm:$0xff] }
 0x47b   : > { %8319 = vmatprep.mubr.f32.mxu1 %v11481_v19  ;;  %9237 = vmatpush3.bf16.msra.mxu1 %v9234_v63  ;;  %v11638_v19 = vld [vmem:[#allocation2 + $0x1] sm:$0xff]  ;;  %v4966_v63 = vld [vmem:[#allocation11 + $0x398] sm:$0xff] }
 0x47c   : > { %9239 = vmatprep.subr.bf16.mxu1 %v9238_v17  ;;  %v9278_v4 = vpack.c.bf16 %v4966_v63, %v4965_v45  ;;  %v5282_v45 = vld [vmem:[#allocation11 + $0x148] sm:$0xff] }
 0x47d   : > { %v10061_v63 = vld [vmem:[#allocation2 + $0x69] sm:$0xff] }
 0x47e   : > { %8320 = vmatmul.mubr.f32.gmra.mrb[32].mxu1 %v11483_v37  ;;  %v9246_v37 = vpack.c.bf16 %v4692_v32, %v4691_v2  ;;  %v4972_v2 = vld [vmem:[#allocation11 + $0x3c8] sm:$0xff]  ;;  %v4974_v32 = vld [vmem:[#allocation11 + $0x3d8] sm:$0xff] }
 0x47f   : > { %8322 = vmatprep.mubr.f32.mxu1 %v11497_v25  ;;  %9241 = vmatpush3.bf16.msra.mxu1 %v9238_v17  ;;  %v4693_v25 = vld [vmem:[#allocation11 + $0x220] sm:$0xff] }
 0x480   : > { %9243 = vmatprep.subr.bf16.mxu1 %v9242_v57  ;;  %v4967_v17 = vld [vmem:[#allocation11 + $0x3a0] sm:$0xff] }
 0x481   : > { %v9282_v60 = vpack.c.bf16 %v4968_v9, %v4967_v17  ;;  %v5283_v17 = vld [vmem:[#allocation11 + $0x150] sm:$0xff]  ;;  %v5284_v9 = vld [vmem:[#allocation11 + $0x158] sm:$0xff] }
 0x482   : > { %8323 = vmatmul.mubr.f32.gmra.mrb[34].mxu1 %v11499_v39  ;;  %v4694_v39 = vld [vmem:[#allocation11 + $0x228] sm:$0xff] }
 0x483   : > { %8325 = vmatprep.mubr.f32.mxu1 %v11513_v24  ;;  %v4695_v24 = vld [vmem:[#allocation11 + $0x230] sm:$0xff] }
 0x486   : > { %8326 = vmatmul.mubr.f32.gmra.mrb[36].mxu1 %v11515_v53  ;;  %v4696_v53 = vld [vmem:[#allocation11 + $0x238] sm:$0xff] }
 0x487   : > { %8328 = vmatprep.mubr.f32.mxu1 %v11529_v42  ;;  %v9250_v42 = vpack.c.bf16 %v4694_v39, %v4693_v25  ;;  %v4977_v25 = vld [vmem:[#allocation11 + $0x3f0] sm:$0xff]  ;;  %v4978_v39 = vld [vmem:[#allocation11 + $0x3f8] sm:$0xff] }
 0x48a   : > { %8329 = vmatmul.mubr.f32.gmra.mrb[38].mxu1 %v11531_v59  ;;  %v4697_v59 = vld [vmem:[#allocation11 + $0x240] sm:$0xff] }
 0x48b   : > { %8331 = vmatprep.mubr.f32.mxu1 %v11545_v47  ;;  %v9254_v47 = vpack.c.bf16 %v4696_v53, %v4695_v24  ;;  %v5274_v24 = vld [vmem:[#allocation11 + $0x108] sm:$0xff] }
 0x48e   : > { %8332 = vmatmul.mubr.f32.gmra.mrb[40].mxu1 %v11547_v44  ;;  %v4698_v44 = vld [vmem:[#allocation11 + $0x248] sm:$0xff] }
 0x48f   : > { %8334 = vmatprep.mubr.f32.mxu1 %v11558_v6  ;;  %v9258_v6 = vpack.c.bf16 %v4698_v44, %v4697_v59  ;;  %v5275_v59 = vld [vmem:[#allocation11 + $0x110] sm:$0xff]  ;;  %v5276_v44 = vld [vmem:[#allocation11 + $0x118] sm:$0xff] }
 0x492   : > { %8335 = vmatmul.mubr.f32.gmra.mrb[42].mxu1 %v11560_v56  ;;  %v4699_v56 = vld [vmem:[#allocation11 + $0x250] sm:$0xff] }
 0x493   : > { %8337 = vmatprep.mubr.f32.mxu1 %v11565_v31  ;;  %v4700_v31 = vld [vmem:[#allocation11 + $0x258] sm:$0xff] }
 0x496   : > { %8338 = vmatmul.mubr.f32.gmra.mrb[44].mxu1 %v11567_v58  ;;  %v9262_v58 = vpack.c.bf16 %v4700_v31, %v4699_v56  ;;  %v10057_v56 = vld [vmem:[#allocation2 + $0x31] sm:$0xff]  ;;  %v9310_v31 = vpack.c.bf16 %v5276_v44, %v5275_v59  ;;  %v11764_v59 = vld [vmem:[#allocation2 + $0x9a] sm:$0xff] }
 0x497   : > { %8340 = vmatprep.mubr.f32.mxu1 %v11571_v5  ;;  %v4701_v5 = vld [vmem:[#allocation11 + $0x260] sm:$0xff] }
 0x498   : > { %v5821_v44 = vld [vmem:[#allocation11 + $0x400] sm:$0xff] }
 0x49a   : > { %8341 = vmatmul.mubr.f32.gmra.mrb[46].mxu1 %v11573_v50  ;;  %v4702_v50 = vld [vmem:[#allocation11 + $0x268] sm:$0xff] }
 0x49b   : > { %8343 = vmatprep.mubr.f32.mxu1 %v3619_v11  ;;  %v9266_v16 = vpack.c.bf16 %v4702_v50, %v4701_v5  ;;  %v4970_v11 = vld [vmem:[#allocation11 + $0x3b8] sm:$0xff]  ;;  %v5278_v5 = vld [vmem:[#allocation11 + $0x128] sm:$0xff] }
 0x49c   : > { %v10058_v50 = vld [vmem:[#allocation2 + $0x39] sm:$0xff] }
 0x49e   : > { %8344 = vmatmul.mubr.f32.gmra.mrb[48].mxu1 %v3620_v30 }
 0x49f   : > { %8378 = vmatprep.mubr.f32.mxu1 %v11638_v19 }
 0x4a2   : > { %8379 = vmatmul.mubr.f32.vlgmr.msra.gmra.mrb[18].mxu1 %v11638_v19 }
 0x4a3   : > { %8381 = vmatprep.mubr.f32.mxu1 %v11337_v13  ;;  %9245 = vmatpush3.bf16.msra.mxu1 %v9242_v57  ;;  %v4969_v57 = vld [vmem:[#allocation11 + $0x3b0] sm:$0xff] }
 0x4a4   : > { %9247 = vmatprep.subr.bf16.mxu1 %v9246_v37  ;;  %v9286_v30 = vpack.c.bf16 %v4970_v11, %v4969_v57  ;;  %v5286_v57 = vld [vmem:[#allocation11 + $0x168] sm:$0xff]  ;;  %v5287_v11 = vld [vmem:[#allocation11 + $0x170] sm:$0xff] }
 0x4a6   : > { %8382 = vmatmul.mubr.f32.gmra.mrb[20].mxu1 %v11335_v7 }
 0x4a7   : > { %8384 = vmatprep.mubr.f32.mxu1 %v11345_v46  ;;  %9249 = vmatpush3.bf16.msra.mxu1 %v9246_v37  ;;  %v4976_v37 = vld [vmem:[#allocation11 + $0x3e8] sm:$0xff] }
 0x4a8   : > { %9251 = vmatprep.subr.bf16.mxu1 %v9250_v42 }
 0x4aa   : > { %8385 = vmatmul.mubr.f32.gmra.mrb[22].mxu1 %v11343_v33 }
 0x4ab   : > { %8387 = vmatprep.mubr.f32.mxu1 %v11353_v51  ;;  %9253 = vmatpush3.bf16.msra.mxu1 %v9250_v42  ;;  %v5273_v42 = vld [vmem:[#allocation11 + $0x100] sm:$0xff] }
 0x4ac   : > { %9255 = vmatprep.subr.bf16.mxu1 %v9254_v47  ;;  %v9306_v53 = vpack.c.bf16 %v5274_v24, %v5273_v42  ;;  %v5561_v42 = vld [vmem:[#allocation11 + $0x2f0] sm:$0xff]  ;;  %v5562_v24 = vld [vmem:[#allocation11 + $0x2f8] sm:$0xff] }
 0x4ae   : > { %8388 = vmatmul.mubr.f32.gmra.mrb[24].mxu1 %v11351_v35 }
 0x4af   : > { %8390 = vmatprep.mubr.f32.mxu1 %v11367_v15  ;;  %9257 = vmatpush3.bf16.msra.mxu1 %v9254_v47  ;;  %v12236_v47 = vld [vmem:[#allocation35_spill] sm:$0xff] }
 0x4b0   : > { %9259 = vmatprep.subr.bf16.mxu1 %v9258_v6 }
 0x4b2   : > { %8391 = vmatmul.mubr.f32.gmra.mrb[26].mxu1 %v11364_v41 }
 0x4b3   : > { %8393 = vmatprep.mubr.f32.mxu1 %v11382_v61  ;;  %9261 = vmatpush3.bf16.msra.mxu1 %v9258_v6  ;;  %v12237_v6 = vld [vmem:[#allocation34_spill] sm:$0xff] }
 0x4b4   : > { %9263 = vmatprep.subr.bf16.mxu1 %v9262_v58 }
 0x4b6   : > { %8394 = vmatmul.mubr.f32.gmra.mrb[28].mxu1 %v11379_v23 }
 0x4b7   : > { %8396 = vmatprep.mubr.f32.mxu1 %v11396_v27  ;;  %9265 = vmatpush3.bf16.msra.mxu1 %v9262_v58  ;;  %v5277_v58 = vld [vmem:[#allocation11 + $0x120] sm:$0xff] }
 0x4b8   : > { %9267 = vmatprep.subr.bf16.mxu1 %v9266_v16  ;;  %v9314_v34 = vpack.c.bf16 %v5278_v5, %v5277_v58  ;;  %v11770_v58 = vld [vmem:[#allocation2 + $0xb2] sm:$0xff]  ;;  %v11773_v5 = vld [vmem:[#allocation2 + $0xc2] sm:$0xff] }
 0x4ba   : > { %8397 = vmatmul.mubr.f32.gmra.mrb[30].mxu1 %v11393_v10 }
 0x4bb   : > { %8399 = vmatprep.mubr.f32.mxu1 %v11410_v22  ;;  %9269 = vmatpush3.bf16.msra.mxu1 %v9266_v16  ;;  %v10059_v16 = vld [vmem:[#allocation2 + $0x49] sm:$0xff] }
 0x4bc   : > { %9271 = vmatprep.subr.bf16.mxu1 %v9270_v21 }
 0x4be   : > { %8400 = vmatmul.mubr.f32.gmra.mrb[32].mxu1 %v11407_v1 }
 0x4bf   : > { %8402 = vmatprep.mubr.f32.mxu1 %v11424_v55  ;;  %9273 = vmatpush3.bf16.msra.mxu1 %v9270_v21  ;;  %v5280_v21 = vld [vmem:[#allocation11 + $0x138] sm:$0xff] }
 0x4c0   : > { %9275 = vmatprep.subr.bf16.mxu1 %v9274_v38  ;;  %v9318_v0 = vpack.c.bf16 %v5280_v21, %v5279_v62  ;;  %v11785_v62 = vld [vmem:[#allocation2 + $0xf2] sm:$0xff]  ;;  %v11788_v21 = vld [vmem:[#allocation2 + $0xfa] sm:$0xff] }
 0x4c2   : > { %8403 = vmatmul.mubr.f32.gmra.mrb[34].mxu1 %v11421_v28 }
 0x4c3   : > { %8405 = vmatprep.mubr.f32.mxu1 %v11445_v14 }
 0x4c6   : > { %8406 = vmatmul.mubr.f32.gmra.mrb[36].mxu1 %v11438_v3 }
 0x4c7   : > { %8408 = vmatprep.mubr.f32.mxu1 %v11463_v36 }
 0x4ca   : > { %8409 = vmatmul.mubr.f32.gmra.mrb[38].mxu1 %v11454_v52 }
 0x4cb   : > { %8411 = vmatprep.mubr.f32.mxu1 %v12226_v48 }
 0x4ce   : > { %8412 = vmatmul.mubr.f32.gmra.mrb[40].mxu1 %v12227_v49 }
 0x4cf   : > { %8414 = vmatprep.mubr.f32.mxu1 %v12228_v20 }
 0x4d2   : > { %8415 = vmatmul.mubr.f32.gmra.mrb[42].mxu1 %v12229_v26 }
 0x4d3   : > { %8417 = vmatprep.mubr.f32.mxu1 %v12230_v54 }
 0x4d6   : > { %8418 = vmatmul.mubr.f32.gmra.mrb[44].mxu1 %v12231_v12 }
 0x4d7   : > { %8420 = vmatprep.mubr.f32.mxu1 %v12232_v8 }
 0x4da   : > { %8421 = vmatmul.mubr.f32.gmra.mrb[46].mxu1 %v12233_v18 }
 0x4db   : > { %8423 = vmatprep.mubr.f32.mxu1 %v12234_v29 }
 0x4de   : > { %8424 = vmatmul.mubr.f32.gmra.mrb[48].mxu1 %v12235_v43 }
 0x4df   : > { %8458 = vmatprep.mubr.f32.mxu1 %v11337_v13  ;;  %v4971_v13 = vld [vmem:[#allocation11 + $0x3c0] sm:$0xff] }
 0x4e2   : > { %8459 = vmatmul.mubr.f32.vlgmr.msra.gmra.mrb[18].mxu1 %v11335_v7  ;;  %v9290_v7 = vpack.c.bf16 %v4972_v2, %v4971_v13  ;;  %v5548_v13 = vld [vmem:[#allocation11 + $0x288] sm:$0xff]  ;;  %v11746_v2 = vld [vmem:[#allocation2 + $0x52] sm:$0xff] }
 0x4e3   : > { %8461 = vmatprep.mubr.f32.mxu1 %v11345_v46  ;;  %9277 = vmatpush3.bf16.msra.mxu1 %v9274_v38  ;;  %v4973_v46 = vld [vmem:[#allocation11 + $0x3d0] sm:$0xff]  ;;  %v5281_v38 = vld [vmem:[#allocation11 + $0x140] sm:$0xff] }
 0x4e4   : > { %9279 = vmatprep.subr.bf16.mxu1 %v9278_v4 }
 0x4e6   : > { %8462 = vmatmul.mubr.f32.gmra.mrb[20].mxu1 %v11343_v33  ;;  %v9294_v33 = vpack.c.bf16 %v4974_v32, %v4973_v46  ;;  %v5558_v46 = vld [vmem:[#allocation11 + $0x2d8] sm:$0xff]  ;;  %v11749_v32 = vld [vmem:[#allocation2 + $0x62] sm:$0xff] }
 0x4e7   : > { %8464 = vmatprep.mubr.f32.mxu1 %v11353_v51  ;;  %9281 = vmatpush3.bf16.msra.mxu1 %v9278_v4  ;;  %v4975_v51 = vld [vmem:[#allocation11 + $0x3e0] sm:$0xff]  ;;  %v9322_v4 = vpack.c.bf16 %v5282_v45, %v5281_v38  ;;  %v11800_v45 = vld [vmem:[#allocation2 + $0x12a] sm:$0xff] }
 0x4e8   : > { %9283 = vmatprep.subr.bf16.mxu1 %v9282_v60  ;;  %v11797_v38 = vld [vmem:[#allocation2 + $0x122] sm:$0xff] }
 0x4ea   : > { %8465 = vmatmul.mubr.f32.gmra.mrb[22].mxu1 %v11351_v35  ;;  %v9298_v35 = vpack.c.bf16 %v4976_v37, %v4975_v51  ;;  %v11752_v51 = vld [vmem:[#allocation2 + $0x6a] sm:$0xff]  ;;  %v5559_v37 = vld [vmem:[#allocation11 + $0x2e0] sm:$0xff] }
 0x4eb   : > { %8467 = vmatprep.mubr.f32.mxu1 %v11367_v15  ;;  %9285 = vmatpush3.bf16.msra.mxu1 %v9282_v60  ;;  %v5285_v60 = vld [vmem:[#allocation11 + $0x160] sm:$0xff] }
 0x4ec   : > { %9287 = vmatprep.subr.bf16.mxu1 %v9286_v30 }
 0x4ee   : > { %8468 = vmatmul.mubr.f32.gmra.mrb[24].mxu1 %v11364_v41  ;;  %v9302_v41 = vpack.c.bf16 %v4978_v39, %v4977_v25  ;;  %v11755_v25 = vld [vmem:[#allocation2 + $0x7a] sm:$0xff] }
 0x4ef   : > { %8470 = vmatprep.mubr.f32.mxu1 %v11382_v61  ;;  %9289 = vmatpush3.bf16.msra.mxu1 %v9286_v30  ;;  %v5288_v30 = vld [vmem:[#allocation11 + $0x178] sm:$0xff] }
 0x4f0   : > { %9291 = vmatprep.subr.bf16.mxu1 %v9290_v7 }
 0x4f2   : > { %8471 = vmatmul.mubr.f32.gmra.mrb[26].mxu1 %v11379_v23 }
 0x4f3   : > { %8473 = vmatprep.mubr.f32.mxu1 %v11396_v27  ;;  %9293 = vmatpush3.bf16.msra.mxu1 %v9290_v7  ;;  %v5557_v7 = vld [vmem:[#allocation11 + $0x2d0] sm:$0xff] }
 0x4f4   : > { %9295 = vmatprep.subr.bf16.mxu1 %v9294_v33 }
 0x4f6   : > { %8474 = vmatmul.mubr.f32.gmra.mrb[28].mxu1 %v11393_v10 }
 0x4f7   : > { %8476 = vmatprep.mubr.f32.mxu1 %v11410_v22  ;;  %9297 = vmatpush3.bf16.msra.mxu1 %v9294_v33  ;;  %v9358_v33 = vpack.c.bf16 %v5558_v46, %v5557_v7  ;;  %v5269_v7 = vld [vmem:[#allocation2 + $0x18a] sm:$0xff]  ;;  %v11882_v46 = vld [vmem:[%s12046_s6] ss:$0 sm:$0xff] }
 0x4f8   : > { %9299 = vmatprep.subr.bf16.mxu1 %v9298_v35 }
 0x4fa   : > { %8477 = vmatmul.mubr.f32.gmra.mrb[30].mxu1 %v11407_v1 }
 0x4fb   : > { %8479 = vmatprep.mubr.f32.mxu1 %v11424_v55  ;;  %9301 = vmatpush3.bf16.msra.mxu1 %v9298_v35  ;;  %v5560_v35 = vld [vmem:[#allocation11 + $0x2e8] sm:$0xff] }
 0x4fc   : > { %9303 = vmatprep.subr.bf16.mxu1 %v9302_v41  ;;  %v9362_v39 = vpack.c.bf16 %v5560_v35, %v5559_v37  ;;  %v6133_v35 = vld [vmem:[%s10645_s15] sm:$0xff] }
 0x4fe   : > { %8480 = vmatmul.mubr.f32.gmra.mrb[32].mxu1 %v11421_v28 }
 0x4ff   : > { %8482 = vmatprep.mubr.f32.mxu1 %v11445_v14  ;;  %9305 = vmatpush3.bf16.msra.mxu1 %v9302_v41  ;;  %v11758_v41 = vld [vmem:[#allocation2 + $0x82] sm:$0xff] }
 0x500   : > { %9307 = vmatprep.subr.bf16.mxu1 %v9306_v53 }
 0x502   : > { %8483 = vmatmul.mubr.f32.gmra.mrb[34].mxu1 %v11438_v3 }
 0x503   : > { %8485 = vmatprep.mubr.f32.mxu1 %v11463_v36 }
 0x506   : > { %8486 = vmatmul.mubr.f32.gmra.mrb[36].mxu1 %v11454_v52 }
 0x507   : > { %8488 = vmatprep.mubr.f32.mxu1 %v12226_v48 }
 0x50a   : > { %8489 = vmatmul.mubr.f32.gmra.mrb[38].mxu1 %v12227_v49 }
 0x50b   : > { %8491 = vmatprep.mubr.f32.mxu1 %v12228_v20 }
 0x50e   : > { %8492 = vmatmul.mubr.f32.gmra.mrb[40].mxu1 %v12229_v26 }
 0x50f   : > { %8494 = vmatprep.mubr.f32.mxu1 %v12230_v54 }
 0x512   : > { %8495 = vmatmul.mubr.f32.gmra.mrb[42].mxu1 %v12231_v12 }
 0x513   : > { %8497 = vmatprep.mubr.f32.mxu1 %v12232_v8 }
 0x516   : > { %8498 = vmatmul.mubr.f32.gmra.mrb[44].mxu1 %v12233_v18 }
 0x517   : > { %8500 = vmatprep.mubr.f32.mxu1 %v12234_v29 }
 0x51a   : > { %8501 = vmatmul.mubr.f32.gmra.mrb[46].mxu1 %v12235_v43 }
 0x51b   : > { %8503 = vmatprep.mubr.f32.mxu1 %v12236_v47 }
 0x51e   : > { %8504 = vmatmul.mubr.f32.gmra.mrb[48].mxu1 %v12237_v6 }
 0x51f   : > { %8538 = vmatprep.mubr.f32.mxu1 %v10057_v56  ;;  %v11767_v56 = vld [vmem:[#allocation2 + $0xaa] sm:$0xff] }
 0x522   : > { %8539 = vmatmul.mubr.f32.vlgmr.msra.gmra.mrb[18].mxu1 %v10058_v50  ;;  %v11776_v50 = vld [vmem:[#allocation2 + $0xca] sm:$0xff] }
 0x523   : > { %8541 = vmatprep.mubr.f32.mxu1 %v10059_v16  ;;  %9309 = vmatpush3.bf16.msra.mxu1 %v9306_v53  ;;  %v11761_v53 = vld [vmem:[#allocation2 + $0x92] sm:$0xff]  ;;  %v11779_v16 = vld [vmem:[#allocation2 + $0xda] sm:$0xff] }
 0x524   : > { %9311 = vmatprep.subr.bf16.mxu1 %v9310_v31 }
 0x526   : > { %8542 = vmatmul.mubr.f32.gmra.mrb[20].mxu1 %v10060_v40  ;;  %v11791_v40 = vld [vmem:[#allocation2 + $0x10a] sm:$0xff] }
 0x527   : > { %8544 = vmatprep.mubr.f32.mxu1 %v11367_v15  ;;  %9313 = vmatpush3.bf16.msra.mxu1 %v9310_v31  ;;  %v9326_v15 = vpack.c.bf16 %v5284_v9, %v5283_v17  ;;  %v11809_v17 = vld [vmem:[#allocation2 + $0x152] sm:$0xff]  ;;  %v11812_v9 = vld [vmem:[#allocation2 + $0x15a] sm:$0xff] }
 0x528   : > { %9315 = vmatprep.subr.bf16.mxu1 %v9314_v34 }
 0x52a   : > { %8545 = vmatmul.mubr.f32.gmra.mrb[22].mxu1 %v10061_v63  ;;  %v11803_v63 = vld [vmem:[#allocation2 + $0x13a] sm:$0xff] }
 0x52b   : > { %8547 = vmatprep.mubr.f32.mxu1 %v11382_v61  ;;  %9317 = vmatpush3.bf16.msra.mxu1 %v9314_v34  ;;  %v9330_v61 = vpack.c.bf16 %v5286_v57, %v5285_v60  ;;  %v11782_v34 = vld [vmem:[#allocation2 + $0xe2] sm:$0xff]  ;;  %v11818_v60 = vld [vmem:[#allocation2 + $0x172] sm:$0xff] }
 0x52c   : > { %9319 = vmatprep.subr.bf16.mxu1 %v9318_v0  ;;  %v5823_v57 = vld [vmem:[#allocation11 + $0x410] sm:$0xff] }
 0x52e   : > { %8548 = vmatmul.mubr.f32.gmra.mrb[24].mxu1 %v11379_v23  ;;  %v9334_v23 = vpack.c.bf16 %v5288_v30, %v5287_v11  ;;  %v2428_v11 = vld [vmem:[#allocation2 + $0x1ca] sm:$0xff]  ;;  %v2429_v30 = vld [vmem:[#allocation2 + $0x1d2] sm:$0xff] }
 0x52f   : > { %8550 = vmatprep.mubr.f32.mxu1 %v11396_v27  ;;  %9321 = vmatpush3.bf16.msra.mxu1 %v9318_v0  ;;  %v5547_v27 = vld [vmem:[#allocation11 + $0x280] sm:$0xff]  ;;  %v11794_v0 = vld [vmem:[#allocation2 + $0x112] sm:$0xff] }
 0x530   : > { %9323 = vmatprep.subr.bf16.mxu1 %v9322_v4  ;;  %8103 = vmatprep.mubr.f32.mxu0 %v2428_v11  ;;  %v6141_v11 = vld [vmem:[%s10645_s15 + $0x40] sm:$0xff] }
 0x531   : > { %8104 = vmatmul.mubr.f32.gmra.mrb[64].mxu0 %v2429_v30 }
 0x532   : > { %8551 = vmatmul.mubr.f32.gmra.mrb[26].mxu1 %v11393_v10  ;;  %v9338_v10 = vpack.c.bf16 %v5548_v13, %v5547_v27  ;;  %v5825_v27 = vld [vmem:[#allocation11 + $0x420] sm:$0xff]  ;;  %v5826_v13 = vld [vmem:[#allocation11 + $0x428] sm:$0xff] }
 0x533   : > { %8553 = vmatprep.mubr.f32.mxu1 %v11410_v22  ;;  %9325 = vmatpush3.bf16.msra.mxu1 %v9322_v4  ;;  %v5549_v22 = vld [vmem:[#allocation11 + $0x290] sm:$0xff]  ;;  %v11806_v4 = vld [vmem:[#allocation2 + $0x142] sm:$0xff] }
 0x534   : > { %9327 = vmatprep.subr.bf16.mxu1 %v9326_v15 }
 0x536   : > { %8554 = vmatmul.mubr.f32.gmra.mrb[28].mxu1 %v11407_v1  ;;  %v5236_v1 = vld [vmem:[#allocation2 + $0x2] sm:$0xff] }
 0x537   : > { %8556 = vmatprep.mubr.f32.mxu1 %v11424_v55  ;;  %9329 = vmatpush3.bf16.msra.mxu1 %v9326_v15  ;;  %v5237_v55 = vld [vmem:[#allocation2 + $0xa] sm:$0xff] }
 0x538   : > { %9331 = vmatprep.subr.bf16.mxu1 %v9330_v61  ;;  %v11815_v15 = vld [vmem:[#allocation2 + $0x16a] sm:$0xff] }
 0x53a   : > { %8557 = vmatmul.mubr.f32.gmra.mrb[30].mxu1 %v11421_v28  ;;  %v5550_v28 = vld [vmem:[#allocation11 + $0x298] sm:$0xff] }
 0x53b   : > { %8559 = vmatprep.mubr.f32.mxu1 %v11445_v14  ;;  %9333 = vmatpush3.bf16.msra.mxu1 %v9330_v61  ;;  %v5551_v14 = vld [vmem:[#allocation11 + $0x2a0] sm:$0xff]  ;;  %v5824_v61 = vld [vmem:[#allocation11 + $0x418] sm:$0xff] }
 0x53c   : > { %9335 = vmatprep.subr.bf16.mxu1 %v9334_v23 }
 0x53e   : > { %8560 = vmatmul.mubr.f32.gmra.mrb[32].mxu1 %v11438_v3  ;;  %v9342_v3 = vpack.c.bf16 %v5550_v28, %v5549_v22  ;;  %v5828_v22 = vld [vmem:[#allocation11 + $0x438] sm:$0xff] }
 0x53f   : > { %8562 = vmatprep.mubr.f32.mxu1 %v11463_v36  ;;  %9337 = vmatpush3.bf16.msra.mxu1 %v9334_v23  ;;  %v11731_v36 = vld [vmem:[#allocation2 + $0x1a] sm:$0xff]  ;;  %v9374_v23 = vpack.c.bf16 %v5824_v61, %v5823_v57 }
 0x540   : > { %9339 = vmatprep.subr.bf16.mxu1 %v9338_v10 }
 0x542   : > { %8563 = vmatmul.mubr.f32.gmra.mrb[34].mxu1 %v11454_v52  ;;  %v5552_v52 = vld [vmem:[#allocation11 + $0x2a8] sm:$0xff] }
 0x543   : > { %8565 = vmatprep.mubr.f32.mxu1 %v12226_v48  ;;  %v9346_v48 = vpack.c.bf16 %v5552_v52, %v5551_v14  ;;  %v5831_v52 = vld [vmem:[#allocation11 + $0x450] sm:$0xff] }
 0x546   : > { %8566 = vmatmul.mubr.f32.gmra.mrb[36].mxu1 %v12227_v49  ;;  %v11734_v49 = vld [vmem:[#allocation2 + $0x22] sm:$0xff] }
 0x547   : > { %8568 = vmatprep.mubr.f32.mxu1 %v12228_v20  ;;  %v5553_v20 = vld [vmem:[#allocation11 + $0x2b0] sm:$0xff] }
 0x54a   : > { %8569 = vmatmul.mubr.f32.gmra.mrb[38].mxu1 %v12229_v26  ;;  %v5554_v26 = vld [vmem:[#allocation11 + $0x2b8] sm:$0xff] }
 0x54b   : > { %8571 = vmatprep.mubr.f32.mxu1 %v12230_v54  ;;  %v9350_v54 = vpack.c.bf16 %v5554_v26, %v5553_v20  ;;  %v5834_v20 = vld [vmem:[#allocation11 + $0x468] sm:$0xff] }
 0x54e   : > { %8572 = vmatmul.mubr.f32.gmra.mrb[40].mxu1 %v12231_v12  ;;  %v11740_v12 = vld [vmem:[#allocation2 + $0x3a] sm:$0xff] }
 0x54f   : > { %8574 = vmatprep.mubr.f32.mxu1 %v12232_v8  ;;  %v5555_v8 = vld [vmem:[#allocation11 + $0x2c0] sm:$0xff] }
 0x552   : > { %8575 = vmatmul.mubr.f32.gmra.mrb[42].mxu1 %v12233_v18  ;;  %v5556_v18 = vld [vmem:[#allocation11 + $0x2c8] sm:$0xff] }
 0x553   : > { %8577 = vmatprep.mubr.f32.mxu1 %v12234_v29  ;;  %v11743_v29 = vld [vmem:[#allocation2 + $0x4a] sm:$0xff] }
 0x556   : > { %8578 = vmatmul.mubr.f32.gmra.mrb[44].mxu1 %v12235_v43  ;;  %v9354_v43 = vpack.c.bf16 %v5556_v18, %v5555_v8  ;;  %v5836_v8 = vld [vmem:[#allocation11 + $0x478] sm:$0xff] }
 0x557   : > { %8580 = vmatprep.mubr.f32.mxu1 %v12236_v47  ;;  %v9366_v47 = vpack.c.bf16 %v5562_v24, %v5561_v42  ;;  %v6136_v24 = vld [vmem:[%s10645_s15 + $0x18] sm:$0xff] }
 0x55a   : > { %8581 = vmatmul.mubr.f32.gmra.mrb[46].mxu1 %v12237_v6  ;;  %v5822_v6 = vld [vmem:[#allocation11 + $0x408] sm:$0xff] }
 0x55b   : > { %8583 = vmatprep.mubr.f32.mxu1 %v11638_v19  ;;  %v9370_v31 = vpack.c.bf16 %v5822_v6, %v5821_v44 }
 0x55e   : > { %8584 = vmatmul.mubr.f32.gmra.mrb[48].mxu1 %v11638_v19  ;;  %v11737_v19 = vld [vmem:[#allocation2 + $0x32] sm:$0xff] }
 0x55f   : > { %8618 = vmatprep.mubr.f32.mxu1 %v5236_v1  ;;  %v5827_v1 = vld [vmem:[#allocation11 + $0x430] sm:$0xff] }
 0x560   : > { %v9382_v28 = vpack.c.bf16 %v5828_v22, %v5827_v1 }
 0x562   : > { %8619 = vmatmul.mubr.f32.vlgmr.msra.gmra.mrb[18].mxu1 %v5237_v55  ;;  %v5829_v55 = vld [vmem:[#allocation11 + $0x440] sm:$0xff] }
 0x563   : > { %8621 = vmatprep.mubr.f32.mxu1 %v11731_v36  ;;  %9341 = vmatpush3.bf16.msra.mxu1 %v9338_v10  ;;  %v9378_v10 = vpack.c.bf16 %v5826_v13, %v5825_v27 }
 0x564   : > { %9343 = vmatprep.subr.bf16.mxu1 %v9342_v3 }
 0x566   : > { %8622 = vmatmul.mubr.f32.gmra.mrb[20].mxu1 %v11734_v49 }
 0x567   : > { %8624 = vmatprep.mubr.f32.mxu1 %v11737_v19  ;;  %9345 = vmatpush3.bf16.msra.mxu1 %v9342_v3  ;;  %v5830_v3 = vld [vmem:[#allocation11 + $0x448] sm:$0xff] }
 0x568   : > { %9347 = vmatprep.subr.bf16.mxu1 %v9346_v48  ;;  %v9386_v14 = vpack.c.bf16 %v5830_v3, %v5829_v55 }
 0x56a   : > { %8625 = vmatmul.mubr.f32.gmra.mrb[22].mxu1 %v11740_v12 }
 0x56b   : > { %8627 = vmatprep.mubr.f32.mxu1 %v11743_v29  ;;  %9349 = vmatpush3.bf16.msra.mxu1 %v9346_v48 }
 0x56c   : > { %9351 = vmatprep.subr.bf16.mxu1 %v9350_v54 }
 0x56e   : > { %8628 = vmatmul.mubr.f32.gmra.mrb[24].mxu1 %v11746_v2 }
 0x56f   : > { %8630 = vmatprep.mubr.f32.mxu1 %v11749_v32  ;;  %9353 = vmatpush3.bf16.msra.mxu1 %v9350_v54  ;;  %v5835_v54 = vld [vmem:[#allocation11 + $0x470] sm:$0xff] }
 0x570   : > { %9355 = vmatprep.subr.bf16.mxu1 %v9354_v43  ;;  %v9398_v18 = vpack.c.bf16 %v5836_v8, %v5835_v54 }
 0x572   : > { %8631 = vmatmul.mubr.f32.gmra.mrb[26].mxu1 %v11752_v51 }
 0x573   : > { %8633 = vmatprep.mubr.f32.mxu1 %v11755_v25  ;;  %9357 = vmatpush3.bf16.msra.mxu1 %v9354_v43  ;;  %v5268_v43 = vld [vmem:[#allocation2 + $0x182] sm:$0xff] }
 0x574   : > { %9359 = vmatprep.subr.bf16.mxu1 %v9358_v33 }
 0x576   : > { %8634 = vmatmul.mubr.f32.gmra.mrb[28].mxu1 %v11758_v41 }
 0x577   : > { %8636 = vmatprep.mubr.f32.mxu1 %v11761_v53  ;;  %9361 = vmatpush3.bf16.msra.mxu1 %v9358_v33  ;;  %v6134_v33 = vld [vmem:[%s10645_s15 + $0x8] sm:$0xff] }
 0x578   : > { %9363 = vmatprep.subr.bf16.mxu1 %v9362_v39 }
 0x57a   : > { %8637 = vmatmul.mubr.f32.gmra.mrb[30].mxu1 %v11764_v59 }
 0x57b   : > { %8639 = vmatprep.mubr.f32.mxu1 %v11767_v56  ;;  %9365 = vmatpush3.bf16.msra.mxu1 %v9362_v39 }
 0x57c   : > { %9367 = vmatprep.subr.bf16.mxu1 %v9366_v47 }
 0x57e   : > { %8640 = vmatmul.mubr.f32.gmra.mrb[32].mxu1 %v11770_v58 }
 0x57f   : > { %8642 = vmatprep.mubr.f32.mxu1 %v11773_v5  ;;  %9369 = vmatpush3.bf16.msra.mxu1 %v9366_v47 }
 0x580   : > { %9371 = vmatprep.subr.bf16.mxu1 %v9370_v31 }
 0x582   : > { %8643 = vmatmul.mubr.f32.gmra.mrb[34].mxu1 %v11776_v50 }
 0x583   : > { %8645 = vmatprep.mubr.f32.mxu1 %v11779_v16 }
 0x586   : > { %8646 = vmatmul.mubr.f32.gmra.mrb[36].mxu1 %v11782_v34 }
 0x587   : > { %8648 = vmatprep.mubr.f32.mxu1 %v11785_v62 }
 0x58a   : > { %8649 = vmatmul.mubr.f32.gmra.mrb[38].mxu1 %v11788_v21 }
 0x58b   : > { %8651 = vmatprep.mubr.f32.mxu1 %v11791_v40 }
 0x58e   : > { %8652 = vmatmul.mubr.f32.gmra.mrb[40].mxu1 %v11794_v0 }
 0x58f   : > { %8654 = vmatprep.mubr.f32.mxu1 %v11797_v38 }
 0x592   : > { %8655 = vmatmul.mubr.f32.gmra.mrb[42].mxu1 %v11800_v45 }
 0x593   : > { %8657 = vmatprep.mubr.f32.mxu1 %v11803_v63 }
 0x596   : > { %8658 = vmatmul.mubr.f32.gmra.mrb[44].mxu1 %v11806_v4 }
 0x597   : > { %8660 = vmatprep.mubr.f32.mxu1 %v11809_v17 }
 0x59a   : > { %8661 = vmatmul.mubr.f32.gmra.mrb[46].mxu1 %v11812_v9 }
 0x59b   : > { %8663 = vmatprep.mubr.f32.mxu1 %v11815_v15 }
 0x59e   : > { %8664 = vmatmul.mubr.f32.gmra.mrb[48].mxu1 %v11818_v60 }
 0x59f   : > { %8698 = vmatprep.mubr.f32.mxu1 %v11731_v36  ;;  %v5832_v36 = vld [vmem:[#allocation11 + $0x458] sm:$0xff] }
 0x5a0   : > { %v9390_v48 = vpack.c.bf16 %v5832_v36, %v5831_v52  ;;  %v6146_v36 = vld [vmem:[%s10645_s15 + $0x68] sm:$0xff] }
 0x5a2   : > { %8699 = vmatmul.mubr.f32.vlgmr.msra.gmra.mrb[18].mxu1 %v11734_v49  ;;  %v5833_v49 = vld [vmem:[#allocation11 + $0x460] sm:$0xff] }
 0x5a3   : > { %8701 = vmatprep.mubr.f32.mxu1 %v11737_v19  ;;  %9373 = vmatpush3.bf16.msra.mxu1 %v9370_v31  ;;  %v9394_v26 = vpack.c.bf16 %v5834_v20, %v5833_v49  ;;  %v6145_v20 = vld [vmem:[%s10645_s15 + $0x60] sm:$0xff] }
 0x5a4   : > { %9375 = vmatprep.subr.bf16.mxu1 %v9374_v23 }
 0x5a6   : > { %8702 = vmatmul.mubr.f32.gmra.mrb[20].mxu1 %v11740_v12 }
 0x5a7   : > { %8704 = vmatprep.mubr.f32.mxu1 %v11743_v29  ;;  %9377 = vmatpush3.bf16.msra.mxu1 %v9374_v23 }
 0x5a8   : > { %9379 = vmatprep.subr.bf16.mxu1 %v9378_v10 }
 0x5aa   : > { %8705 = vmatmul.mubr.f32.gmra.mrb[22].mxu1 %v11746_v2 }
 0x5ab   : > { %8707 = vmatprep.mubr.f32.mxu1 %v11749_v32  ;;  %9381 = vmatpush3.bf16.msra.mxu1 %v9378_v10  ;;  %v6144_v10 = vld [vmem:[%s10645_s15 + $0x58] sm:$0xff] }
 0x5ac   : > { %9383 = vmatprep.subr.bf16.mxu1 %v9382_v28 }
 0x5ae   : > { %8708 = vmatmul.mubr.f32.gmra.mrb[24].mxu1 %v11752_v51 }
 0x5af   : > { %8710 = vmatprep.mubr.f32.mxu1 %v11755_v25  ;;  %9385 = vmatpush3.bf16.msra.mxu1 %v9382_v28  ;;  %v6143_v28 = vld [vmem:[%s10645_s15 + $0x50] sm:$0xff] }
 0x5b0   : > { %9387 = vmatprep.subr.bf16.mxu1 %v9386_v14 }
 0x5b2   : > { %8711 = vmatmul.mubr.f32.gmra.mrb[26].mxu1 %v11758_v41 }
 0x5b3   : > { %8713 = vmatprep.mubr.f32.mxu1 %v11761_v53  ;;  %9389 = vmatpush3.bf16.msra.mxu1 %v9386_v14 }
 0x5b4   : > { %9391 = vmatprep.subr.bf16.mxu1 %v9390_v48 }
 0x5b6   : > { %8714 = vmatmul.mubr.f32.gmra.mrb[28].mxu1 %v11764_v59 }
 0x5b7   : > { %8716 = vmatprep.mubr.f32.mxu1 %v11767_v56  ;;  %9393 = vmatpush3.bf16.msra.mxu1 %v9390_v48 }
 0x5b8   : > { %9395 = vmatprep.subr.bf16.mxu1 %v9394_v26 }
 0x5ba   : > { %8717 = vmatmul.mubr.f32.gmra.mrb[30].mxu1 %v11770_v58 }
 0x5bb   : > { %8719 = vmatprep.mubr.f32.mxu1 %v11773_v5  ;;  %9397 = vmatpush3.bf16.msra.mxu1 %v9394_v26 }
 0x5bc   : > { %9399 = vmatprep.subr.bf16.mxu1 %v9398_v18 }
 0x5be   : > { %8720 = vmatmul.mubr.f32.gmra.mrb[32].mxu1 %v11776_v50 }
 0x5bf   : > { %8722 = vmatprep.mubr.f32.mxu1 %v11779_v16  ;;  %9401 = vmatpush3.bf16.msra.mxu1 %v9398_v18 }
 0x5c2   : > { %8723 = vmatmul.mubr.f32.gmra.mrb[34].mxu1 %v11782_v34 }
 0x5c3   : > { %8725 = vmatprep.mubr.f32.mxu1 %v11785_v62 }
 0x5c6   : > { %8726 = vmatmul.mubr.f32.gmra.mrb[36].mxu1 %v11788_v21 }
 0x5c7   : > { %8728 = vmatprep.mubr.f32.mxu1 %v11791_v40 }
 0x5ca   : > { %8729 = vmatmul.mubr.f32.gmra.mrb[38].mxu1 %v11794_v0 }
 0x5cb   : > { %8731 = vmatprep.mubr.f32.mxu1 %v11797_v38 }
 0x5ce   : > { %8732 = vmatmul.mubr.f32.gmra.mrb[40].mxu1 %v11800_v45 }
 0x5cf   : > { %8734 = vmatprep.mubr.f32.mxu1 %v11803_v63 }
 0x5d2   : > { %8735 = vmatmul.mubr.f32.gmra.mrb[42].mxu1 %v11806_v4 }
 0x5d3   : > { %8737 = vmatprep.mubr.f32.mxu1 %v11809_v17 }
 0x5d6   : > { %8738 = vmatmul.mubr.f32.gmra.mrb[44].mxu1 %v11812_v9 }
 0x5d7   : > { %8740 = vmatprep.mubr.f32.mxu1 %v11815_v15 }
 0x5da   : > { %8741 = vmatmul.mubr.f32.gmra.mrb[46].mxu1 %v11818_v60 }
 0x5db   : > { %8743 = vmatprep.mubr.f32.mxu1 %v5268_v43 }
 0x5de   : > { %8744 = vmatmul.mubr.f32.gmra.mrb[48].mxu1 %v5269_v7 }
 0x5df   : > { %8778 = vmatprep.mubr.f32.mxu1 %v11737_v19  ;;  %v5270_v19 = vld [vmem:[#allocation2 + $0x19a] sm:$0xff] }
 0x5e2   : > { %8779 = vmatmul.mubr.f32.vlgmr.msra.gmra.mrb[18].mxu1 %v11740_v12  ;;  %v5271_v12 = vld [vmem:[#allocation2 + $0x1a2] sm:$0xff] }
 0x5e3   : > { %8781 = vmatprep.mubr.f32.mxu1 %v11743_v29 }
 0x5e6   : > { %8782 = vmatmul.mubr.f32.gmra.mrb[20].mxu1 %v11746_v2 }
 0x5e7   : > { %8784 = vmatprep.mubr.f32.mxu1 %v11749_v32 }
 0x5ea   : > { %8785 = vmatmul.mubr.f32.gmra.mrb[22].mxu1 %v11752_v51 }
 0x5eb   : > { %8787 = vmatprep.mubr.f32.mxu1 %v11755_v25 }
 0x5ee   : > { %8788 = vmatmul.mubr.f32.gmra.mrb[24].mxu1 %v11758_v41 }
 0x5ef   : > { %8790 = vmatprep.mubr.f32.mxu1 %v11761_v53 }
 0x5f2   : > { %8791 = vmatmul.mubr.f32.gmra.mrb[26].mxu1 %v11764_v59  ;;  %v6135_v59 = vld [vmem:[%s10645_s15 + $0x10] sm:$0xff] }
 0x5f3   : > { %8793 = vmatprep.mubr.f32.mxu1 %v11767_v56 }
 0x5f6   : > { %8794 = vmatmul.mubr.f32.gmra.mrb[28].mxu1 %v11770_v58  ;;  %v6138_v58 = vld [vmem:[%s10645_s15 + $0x28] sm:$0xff] }
 0x5f7   : > { %8796 = vmatprep.mubr.f32.mxu1 %v11773_v5 }
 0x5fa   : > { %8797 = vmatmul.mubr.f32.gmra.mrb[30].mxu1 %v11776_v50 }
 0x5fb   : > { %8799 = vmatprep.mubr.f32.mxu1 %v11779_v16  ;;  %v6137_v16 = vld [vmem:[%s10645_s15 + $0x20] sm:$0xff] }
 0x5fe   : > { %8800 = vmatmul.mubr.f32.gmra.mrb[32].mxu1 %v11782_v34 }
 0x5ff   : > { %8802 = vmatprep.mubr.f32.mxu1 %v11785_v62 }
 0x602   : > { %8803 = vmatmul.mubr.f32.gmra.mrb[34].mxu1 %v11788_v21 }
 0x603   : > { %8805 = vmatprep.mubr.f32.mxu1 %v11791_v40 }
 0x604   : > { %v8105_v29 = vpop.f32.mrb[64].mxu0 }
 0x605   : > { %v3279_v2 = vpop.f32.mrb[65].mxu0 }
 0x606   : > { %8806 = vmatmul.mubr.f32.gmra.mrb[36].mxu1 %v11794_v0  ;;  %v6140_v0 = vld [vmem:[%s10645_s15 + $0x38] sm:$0xff] }
 0x607   : > { %8808 = vmatprep.mubr.f32.mxu1 %v11797_v38 }
 0x60a   : > { %8809 = vmatmul.mubr.f32.gmra.mrb[38].mxu1 %v11800_v45 }
 0x60b   : > { %8811 = vmatprep.mubr.f32.mxu1 %v11803_v63  ;;  %v6139_v63 = vld [vmem:[%s10645_s15 + $0x30] sm:$0xff] }
 0x60e   : > { %8812 = vmatmul.mubr.f32.gmra.mrb[40].mxu1 %v11806_v4 }
 0x60f   : > { %8814 = vmatprep.mubr.f32.mxu1 %v11809_v17 }
 0x612   : > { %8815 = vmatmul.mubr.f32.gmra.mrb[42].mxu1 %v11812_v9 }
 0x613   : > { %8817 = vmatprep.mubr.f32.mxu1 %v11815_v15 }
 0x616   : > { %8818 = vmatmul.mubr.f32.gmra.mrb[44].mxu1 %v11818_v60  ;;  %v6142_v60 = vld [vmem:[%s10645_s15 + $0x48] sm:$0xff] }
 0x617   : > { %8820 = vmatprep.mubr.f32.mxu1 %v5268_v43  ;;  %v6148_v43 = vld [vmem:[%s10645_s15 + $0x78] sm:$0xff] }
 0x61a   : > { %8821 = vmatmul.mubr.f32.gmra.mrb[46].mxu1 %v5269_v7 }
 0x61b   : > { %8823 = vmatprep.mubr.f32.mxu1 %v5270_v19 }
 0x61e   : > { %8824 = vmatmul.mubr.f32.gmra.mrb[48].mxu1 %v5271_v12  ;;  %v6147_v12 = vld [vmem:[%s10645_s15 + $0x70] sm:$0xff] }
 0x6b5   : > { %v8780_v32 = vpop.f32.mrb[18].mxu1 }
 0x6b6   : > { %v6102_v51 = vadd.f32 %v8780_v32, %v11882_v46  ;;  %v5903_v37 = vpop.f32.mrb[19].mxu1 }
 0x6b7   : > { %v6101_v25 = vadd.f32 %v11882_v46, %v5903_v37 }
 0x6b8   : > { %v6166_v39 = vadd.f32 %v6134_v33, %v6102_v51  ;;  %v6150_v51 = vld [vmem:[%s10645_s15 + $0x88] sm:$0xff] }
 0x6b9   : > { %v6165_v41 = vadd.f32 %v6133_v35, %v6101_v25  ;;  %v8783_v42 = vpop.f32.mrb[20].mxu1  ;;  %v6149_v25 = vld [vmem:[%s10645_s15 + $0x80] sm:$0xff] }
 0x6ba   : > { %6198 = vst [vmem:[%s11891_s20 + $0x8] sm:$0xff] %v6166_v39  ;;  %v6104_v53 = vadd.f32 %v8783_v42, %v11882_v46  ;;  %v5913_v47 = vpop.f32.mrb[21].mxu1 }
 0x6bb   : > { %6197 = vst [vmem:[%s11891_s20] sm:$0xff] %v6165_v41  ;;  %v6103_v44 = vadd.f32 %v11882_v46, %v5913_v47 }
 0x6bc   : > { %v6168_v6 = vadd.f32 %v6136_v24, %v6104_v53  ;;  %v6152_v53 = vld [vmem:[%s10645_s15 + $0x98] sm:$0xff] }
 0x6bd   : > { %v6167_v56 = vadd.f32 %v6135_v59, %v6103_v44  ;;  %v8786_v31 = vpop.f32.mrb[22].mxu1  ;;  %v6151_v44 = vld [vmem:[%s10645_s15 + $0x90] sm:$0xff] }
 0x6be   : > { %6200 = vst [vmem:[%s11891_s20 + $0x18] sm:$0xff] %v6168_v6  ;;  %v6106_v5 = vadd.f32 %v8786_v31, %v11882_v46  ;;  %v5923_v50 = vpop.f32.mrb[23].mxu1 }
 0x6bf   : > { %6199 = vst [vmem:[%s11891_s20 + $0x10] sm:$0xff] %v6167_v56  ;;  %v6105_v34 = vadd.f32 %v11882_v46, %v5923_v50 }
 0x6c0   : > { %v6170_v62 = vadd.f32 %v6138_v58, %v6106_v5  ;;  %v6154_v5 = vld [vmem:[%s10645_s15 + $0xa8] sm:$0xff] }
 0x6c1   : > { %v6169_v21 = vadd.f32 %v6137_v16, %v6105_v34  ;;  %v8789_v40 = vpop.f32.mrb[24].mxu1  ;;  %v6153_v34 = vld [vmem:[%s10645_s15 + $0xa0] sm:$0xff] }
 0x6c2   : > { %6202 = vst [vmem:[%s11891_s20 + $0x28] sm:$0xff] %v6170_v62  ;;  %v6108_v38 = vadd.f32 %v8789_v40, %v11882_v46  ;;  %v5933_v45 = vpop.f32.mrb[25].mxu1 }
 0x6c3   : > { %6201 = vst [vmem:[%s11891_s20 + $0x20] sm:$0xff] %v6169_v21  ;;  %v6107_v4 = vadd.f32 %v11882_v46, %v5933_v45 }
 0x6c4   : > { %v6172_v17 = vadd.f32 %v6140_v0, %v6108_v38  ;;  %v6156_v38 = vld [vmem:[%s10645_s15 + $0xb8] sm:$0xff] }
 0x6c5   : > { %v6171_v9 = vadd.f32 %v6139_v63, %v6107_v4  ;;  %v8792_v15 = vpop.f32.mrb[26].mxu1  ;;  %v6155_v4 = vld [vmem:[%s10645_s15 + $0xb0] sm:$0xff] }
 0x6c6   : > { %6204 = vst [vmem:[%s11891_s20 + $0x38] sm:$0xff] %v6172_v17  ;;  %v6110_v57 = vadd.f32 %v8792_v15, %v11882_v46  ;;  %v5943_v61 = vpop.f32.mrb[27].mxu1 }
 0x6c7   : > { %6203 = vst [vmem:[%s11891_s20 + $0x30] sm:$0xff] %v6171_v9  ;;  %v6109_v30 = vadd.f32 %v11882_v46, %v5943_v61 }
 0x6c8   : > { %v6174_v23 = vadd.f32 %v6142_v60, %v6110_v57  ;;  %v6158_v57 = vld [vmem:[%s10645_s15 + $0xc8] sm:$0xff] }
 0x6c9   : > { %v6173_v27 = vadd.f32 %v6141_v11, %v6109_v30  ;;  %v8795_v13 = vpop.f32.mrb[28].mxu1  ;;  %v6157_v30 = vld [vmem:[%s10645_s15 + $0xc0] sm:$0xff] }
 0x6ca   : > { %6206 = vst [vmem:[%s11891_s20 + $0x48] sm:$0xff] %v6174_v23  ;;  %v6112_v1 = vadd.f32 %v8795_v13, %v11882_v46  ;;  %v5953_v22 = vpop.f32.mrb[29].mxu1 }
 0x6cb   : > { %6205 = vst [vmem:[%s11891_s20 + $0x40] sm:$0xff] %v6173_v27  ;;  %v6111_v55 = vadd.f32 %v11882_v46, %v5953_v22 }
 0x6cc   : > { %v6176_v3 = vadd.f32 %v6144_v10, %v6112_v1  ;;  %v6160_v1 = vld [vmem:[%s10645_s15 + $0xd8] sm:$0xff] }
 0x6cd   : > { %v6175_v14 = vadd.f32 %v6143_v28, %v6111_v55  ;;  %v8798_v52 = vpop.f32.mrb[30].mxu1  ;;  %v6159_v55 = vld [vmem:[%s10645_s15 + $0xd0] sm:$0xff] }
 0x6ce   : > { %6208 = vst [vmem:[%s11891_s20 + $0x58] sm:$0xff] %v6176_v3  ;;  %v6114_v48 = vadd.f32 %v8798_v52, %v11882_v46  ;;  %v5963_v49 = vpop.f32.mrb[31].mxu1 }
 0x6cf   : > { %6207 = vst [vmem:[%s11891_s20 + $0x50] sm:$0xff] %v6175_v14  ;;  %v6113_v26 = vadd.f32 %v11882_v46, %v5963_v49 }
 0x6d0   : > { %v6178_v54 = vadd.f32 %v6146_v36, %v6114_v48  ;;  %v6162_v48 = vld [vmem:[%s10645_s15 + $0xe8] sm:$0xff] }
 0x6d1   : > { %v6177_v8 = vadd.f32 %v6145_v20, %v6113_v26  ;;  %v8801_v18 = vpop.f32.mrb[32].mxu1  ;;  %v6161_v26 = vld [vmem:[%s10645_s15 + $0xe0] sm:$0xff] }
 0x6d2   : > { %6210 = vst [vmem:[%s11891_s20 + $0x68] sm:$0xff] %v6178_v54  ;;  %v6116_v7 = vadd.f32 %v8801_v18, %v11882_v46  ;;  %v5973_v19 = vpop.f32.mrb[33].mxu1 }
 0x6d3   : > { %6209 = vst [vmem:[%s11891_s20 + $0x60] sm:$0xff] %v6177_v8  ;;  %v6115_v29 = vadd.f32 %v11882_v46, %v5973_v19 }
 0x6d4   : > { %v6180_v2 = vadd.f32 %v6148_v43, %v6116_v7  ;;  %v6164_v7 = vld [vmem:[%s10645_s15 + $0xf8] sm:$0xff] }
 0x6d5   : > { %v6179_v32 = vadd.f32 %v6147_v12, %v6115_v29  ;;  %v8804_v33 = vpop.f32.mrb[34].mxu1  ;;  %v6163_v29 = vld [vmem:[%s10645_s15 + $0xf0] sm:$0xff] }
 0x6d6   : > { %6212 = vst [vmem:[%s11891_s20 + $0x78] sm:$0xff] %v6180_v2  ;;  %v6118_v37 = vadd.f32 %v8804_v33, %v11882_v46  ;;  %v5983_v35 = vpop.f32.mrb[35].mxu1 }
 0x6d7   : > { %6211 = vst [vmem:[%s11891_s20 + $0x70] sm:$0xff] %v6179_v32  ;;  %v6117_v39 = vadd.f32 %v11882_v46, %v5983_v35 }
 0x6d8   : > { %v6182_v41 = vadd.f32 %v6150_v51, %v6118_v37 }
 0x6d9   : > { %v6181_v42 = vadd.f32 %v6149_v25, %v6117_v39  ;;  %v8807_v24 = vpop.f32.mrb[36].mxu1 }
 0x6da   : > { %6214 = vst [vmem:[%s11891_s20 + $0x88] sm:$0xff] %v6182_v41  ;;  %v6120_v47 = vadd.f32 %v8807_v24, %v11882_v46  ;;  %v5993_v59 = vpop.f32.mrb[37].mxu1 }
 0x6db   : > { %6213 = vst [vmem:[%s11891_s20 + $0x80] sm:$0xff] %v6181_v42  ;;  %v6119_v6 = vadd.f32 %v11882_v46, %v5993_v59 }
 0x6dc   : > { %v6184_v56 = vadd.f32 %v6152_v53, %v6120_v47 }
 0x6dd   : > { %v6183_v31 = vadd.f32 %v6151_v44, %v6119_v6  ;;  %v8810_v58 = vpop.f32.mrb[38].mxu1 }
 0x6de   : > { %6216 = vst [vmem:[%s11891_s20 + $0x98] sm:$0xff] %v6184_v56  ;;  %v6122_v50 = vadd.f32 %v8810_v58, %v11882_v46  ;;  %v6003_v16 = vpop.f32.mrb[39].mxu1 }
 0x6df   : > { %6215 = vst [vmem:[%s11891_s20 + $0x90] sm:$0xff] %v6183_v31  ;;  %v6121_v62 = vadd.f32 %v11882_v46, %v6003_v16 }
 0x6e0   : > { %v6186_v21 = vadd.f32 %v6154_v5, %v6122_v50 }
 0x6e1   : > { %v6185_v40 = vadd.f32 %v6153_v34, %v6121_v62  ;;  %v8813_v0 = vpop.f32.mrb[40].mxu1 }
 0x6e2   : > { %6218 = vst [vmem:[%s11891_s20 + $0xa8] sm:$0xff] %v6186_v21  ;;  %v6124_v45 = vadd.f32 %v8813_v0, %v11882_v46  ;;  %v6013_v63 = vpop.f32.mrb[41].mxu1 }
 0x6e3   : > { %6217 = vst [vmem:[%s11891_s20 + $0xa0] sm:$0xff] %v6185_v40  ;;  %v6123_v17 = vadd.f32 %v11882_v46, %v6013_v63 }
 0x6e4   : > { %v6188_v9 = vadd.f32 %v6156_v38, %v6124_v45 }
 0x6e5   : > { %v6187_v15 = vadd.f32 %v6155_v4, %v6123_v17  ;;  %v8816_v60 = vpop.f32.mrb[42].mxu1 }
 0x6e6   : > { %6220 = vst [vmem:[%s11891_s20 + $0xb8] sm:$0xff] %v6188_v9  ;;  %v6126_v61 = vadd.f32 %v8816_v60, %v11882_v46  ;;  %v6023_v11 = vpop.f32.mrb[43].mxu1 }
 0x6e7   : > { %6219 = vst [vmem:[%s11891_s20 + $0xb0] sm:$0xff] %v6187_v15  ;;  %v6125_v23 = vadd.f32 %v11882_v46, %v6023_v11 }
 0x6e8   : > { %v6190_v27 = vadd.f32 %v6158_v57, %v6126_v61 }
 0x6e9   : > { %v6189_v13 = vadd.f32 %v6157_v30, %v6125_v23  ;;  %v8819_v10 = vpop.f32.mrb[44].mxu1 }
 0x6ea   : > { %6222 = vst [vmem:[%s11891_s20 + $0xc8] sm:$0xff] %v6190_v27  ;;  %v6128_v22 = vadd.f32 %v8819_v10, %v11882_v46  ;;  %v6033_v28 = vpop.f32.mrb[45].mxu1 }
 0x6eb   : > { %6221 = vst [vmem:[%s11891_s20 + $0xc0] sm:$0xff] %v6189_v13  ;;  %v6127_v3 = vadd.f32 %v11882_v46, %v6033_v28 }
 0x6ec   : > { %v6192_v14 = vadd.f32 %v6160_v1, %v6128_v22 }
 0x6ed   : > { %v6191_v52 = vadd.f32 %v6159_v55, %v6127_v3  ;;  %v8822_v36 = vpop.f32.mrb[46].mxu1 }
 0x6ee   : > { %6224 = vst [vmem:[%s11891_s20 + $0xd8] sm:$0xff] %v6192_v14  ;;  %v6130_v49 = vadd.f32 %v8822_v36, %v11882_v46  ;;  %v6043_v20 = vpop.f32.mrb[47].mxu1 }
 0x6ef   : > { %6223 = vst [vmem:[%s11891_s20 + $0xd0] sm:$0xff] %v6191_v52  ;;  %v6129_v54 = vadd.f32 %v11882_v46, %v6043_v20 }
 0x6f0   : > { %v6194_v8 = vadd.f32 %v6162_v48, %v6130_v49 }
 0x6f1   : > { %v6193_v18 = vadd.f32 %v6161_v26, %v6129_v54  ;;  %v8825_v43 = vpop.f32.mrb[48].mxu1 }
 0x6f2   : > { %6226 = vst [vmem:[%s11891_s20 + $0xe8] sm:$0xff] %v6194_v8  ;;  %v6132_v19 = vadd.f32 %v8825_v43, %v11882_v46  ;;  %v6053_v12 = vpop.f32.mrb[49].mxu1 }
 0x6f3   : > { %6225 = vst [vmem:[%s11891_s20 + $0xe0] sm:$0xff] %v6193_v18  ;;  %v6131_v2 = vadd.f32 %v11882_v46, %v6053_v12 }
 0x6f4   : > { %v6196_v32 = vadd.f32 %v6164_v7, %v6132_v19 }
 0x6f5   : > { %v6195_v33 = vadd.f32 %v6163_v29, %v6131_v2 }
 0x6f6   : > { %6228 = vst [vmem:[%s11891_s20 + $0xf8] sm:$0xff] %v6196_v32 }
 0x6f7   : > { %6227 = vst [vmem:[%s11891_s20 + $0xf0] sm:$0xff] %v6195_v33 }
 0x6f8   : > { %10223 = shalt.err (!%p10220_p11)
}
 0x6f9   : > { %s10224_s1 = scalar_lea.hbm %s11987_s10, 4096  ;;  %s10228_s18 = scalar_lea.hbm %s12238_s19, 8192 }
 0x6fa   : > { %p10225_p8 = scmp.ne.s32.totalorder %s11987_s10, %s10224_s1  ;;  %p10229_p3 = scmp.lt.u32.totalorder %s11987_s10, %s12238_s19 }
 0x6fb   : > { %p10230_p10 = scmp.lt.u32.totalorder %s10228_s18, %s10224_s1  ;;  %p10232_p1 = scmp.lt.u32.totalorder %s10224_s1, %s11987_s10 }
 0x6fc   : > { %p10226_p5 = pnand %p10225_p8, %p12239_p4 }
 0x6fd   : > { %p10231_p12 = por %p10230_p10, %p10229_p3 }
 0x6fe   : > { %p10227_p9 = pneg %p10226_p5 }
 0x6ff   : > { %p10233_p0 = por %p10232_p1, %p10231_p12 }
 0x701   : > { %p10234_p7 = pnand %p10233_p0, %p10227_p9 }
 0x703   : > { %10237 = shalt.err (!%p10234_p7)
}
 0x704   : > { %s10311_s9 = smov 128   ;;  %s10312_s30 = smov 8  }
 0x705   : > { %9945 = dma.vmem_to_hbm [thread:$0]  (%p12239_p4), %s11989_s24, 4096, %s11987_s10, %s6230_s27, %s10311_s9, %s10311_s9, %s10312_s30  }
 0x706 PF: > { %s12240_s11 = sld [smem:[#allocation17_spill]]  ;;  %s12241_s13 = sld [smem:[#allocation21_spill]] }
 0x707   : > { %s12242_s29 = sld [smem:[#allocation20_spill]] }
 0x70c   : > { %s6261_s20 = sand.u32 1, %s12240_s11   ;;  %p12243_p2 = scmp.ne.s32.totalorder %s12241_s13, 0 }
 0x70d   : > { %p12244_p13 = scmp.ge.s32.totalorder %s12242_s29, 2  ;;  %s6262_s16 = scalar_lea.sflag [#allocation5], %s6261_s20 }
 0x70f   : > { %p9965_p6 = pnand %p12244_p13, %p12243_p2 }
 0x711   : > { %10275 = dma.done.wait (!%p9965_p6), %s6262_s16, 4096  }
 0x712   : > { %10277 = vsyncadd (!%p9965_p6), %s6262_s16, 4294963200  ;;  %s27_s29 = sadd.s32 1, %s12242_s29   ;;  %s12245_s17 = sld [smem:[#allocation18_spill]] }
 0x713   : > { %p24_p11 = scmp.ge.s32.totalorder %s27_s29, 4   ;;  %s12246_s26 = sld [smem:[#allocation23_spill]] }
 0x714   : > { %s12247_s27 = sld [smem:[#allocation19_spill]]  ;;  %s12248_s28 = sld [smem:[#allocation22_spill]] }
 0x715   : > { %s12249_s24 = smov %s10284_s25  ;;  %26 = sbr.rel (!%p24_p11) target bundleno = 13 (0xd), region = 143 }
 0x718   : > { %s12250_s25 = smov %s12245_s17 }
 0x71c   :  { %6267 = vsyncpa [#allocation4], 1 }
 0x71d   :  { %6269 = vsyncpa [#allocation4 + $0x1], 1 }
 0x71e   :  { %6270 = vsyncpa [#allocation7], 1 }
 0x71f   :  { %6272 = vsyncpa [#allocation7 + $0x1], 1 }
 0x720   :  { %6273 = vsyncpa [#allocation10], 1 }
 0x721   :  { %6274 = vsyncpa [#allocation5], 1 }
 0x722   :  { %6276 = vsyncpa [#allocation5 + $0x1], 1 }

</bundles_post_ra>
